<compile_context>
chip_gen: v6e
topology: v6e:2x2x1
jax: 0.10.0
libtpu: 0.0.40
codegen_flags: <defaults>
</compile_context>

<pallas_src>
import functools

import jax
import jax.numpy as jnp
import numpy as np
from jax.experimental import pallas as pl
from jax.experimental.pallas import tpu as pltpu


def mha_kernel(x_ref, wqkv_ref, bqkv_ref, wp_ref, bp_ref, o_ref, *, num_heads):
    # x_ref block: (Bt, N, E) bfloat16 for the current batch-block.
    Bt, N, E = x_ref.shape
    H = num_heads
    D = E // H
    R = Bt * N
    bf = jnp.bfloat16

    x = x_ref[...].reshape(R, E)                                   # bf16 (R, E)

    # 1) fused Q/K/V projection: one (R,E)x(E,3E) MXU matmul, f32 accumulation.
    #    1/sqrt(E) scaling is already folded into the q columns of wqkv/bqkv.
    qkv = jnp.dot(x, wqkv_ref[...],
                  preferred_element_type=jnp.float32) + bqkv_ref[0]   # f32 (R, 3E)

    # static, 128-aligned lane slices
    q = qkv[:, :E].astype(bf)
    k = qkv[:, E:2 * E].astype(bf)
    v = qkv[:, 2 * E:].astype(bf)

    # 2) head split '(b n) (h d) -> (b h) n d'.
    #    NOTE: this splits the 128-lane minor dim (lane relayout through the
    #    XLU) -- done ONCE per grid block for all Bt*H (batch, head) pairs.
    def to_heads(t):
        return t.reshape(Bt, N, H, D).transpose(0, 2, 1, 3).reshape(Bt * H, N, D)

    qh, kh, vh = to_heads(q), to_heads(k), to_heads(v)

    # 3) attention scores for the whole block: one batched MXU einsum
    s = jnp.einsum('bqd,bkd->bqk', qh, kh,
                   preferred_element_type=jnp.float32)             # f32 (Bt*H, N, N)

    # 4) softmax over keys, batched over Bt*H, f32 math, EUP reciprocal
    m = jnp.max(s, axis=-1, keepdims=True)
    e = jnp.exp(s - m)
    att = e * pl.reciprocal(jnp.sum(e, axis=-1, keepdims=True), approx=True)

    # 5) att @ V: one batched MXU einsum
    o = jnp.einsum('bqk,bkd->bqd', att.astype(bf), vh,
                   preferred_element_type=jnp.float32)             # f32 (Bt*H, N, D)

    # 6) head merge '(b h) n d -> (b n) (h d)' + single output projection,
    #    then ONE lane-dense store of the whole (Bt, N, E) block.
    o = o.reshape(Bt, H, N, D).transpose(0, 2, 1, 3).reshape(R, E).astype(bf)
    y = jnp.dot(o, wp_ref[...], preferred_element_type=jnp.float32) + bp_ref[0]

    o_ref[...] = y.reshape(Bt, N, E).astype(o_ref.dtype)


def prepare_params(params, emb_size):
    """One-time parameter preparation (hoisted out of the per-call path):
    fuse Q/K/V weights into (E, 3E), fold the 1/sqrt(emb_size) scaling into
    the q weights/bias in f32, transpose to (in, out), cast weights to bf16.
    Biases stay f32 (added after f32 accumulation)."""
    E = emb_size
    inv_scale = float(E) ** -0.5          # the module scales scores by sqrt(emb_size)
    wq = params['wq'] * inv_scale
    bq = params['bq'] * inv_scale
    wqkv = jnp.concatenate([wq.T, params['wk'].T, params['wv'].T],
                           axis=1).astype(jnp.bfloat16)             # (E, 3E)
    bqkv = jnp.concatenate([bq, params['bk'], params['bv']]
                           ).reshape(1, 3 * E).astype(jnp.float32)   # (1, 3E)
    wp = params['wp'].T.astype(jnp.bfloat16)                         # (E, E)
    bp = params['bp'].reshape(1, E).astype(jnp.float32)              # (1, E)
    return {'wqkv': wqkv, 'bqkv': bqkv, 'wp': wp, 'bp': bp}


def _step_vmem_bytes(Bt, N, E, H, out_itemsize):
    """Rough per-grid-step VMEM footprint: pipeline buffers + live values."""
    R = Bt * N
    b = 0
    b += 2 * Bt * N * E * 2                                   # x blocks (bf16, 2-buf)
    b += 2 * Bt * N * E * out_itemsize                        # out blocks (2-buf)
    b += 2 * (E * 3 * E * 2 + 3 * E * 4 + E * E * 2 + E * 4)  # weights/biases (2-buf)
    b += R * 3 * E * 4                                        # qkv, f32
    b += 3 * R * E * 2                                        # q/k/v head copies, bf16
    b += 2 * Bt * H * N * N * 4                               # scores + exp, f32
    b += 2 * R * E * 4                                        # attn out + proj out, f32
    return b


def _choose_block_b(B, N, E, H, out_itemsize, vmem_budget=24 * 1024 * 1024):
    """Largest Bt dividing B such that one step fits the VMEM budget, stopping
    once R = Bt*N reaches 256 rows (fills the 256-row MXU on v6e/v7x; >=128
    already fills v5e).  Keeps grid = B//Bt >= 2 whenever B allows so v7x's
    two TensorCores both get work under dimension_semantics=("parallel",)."""
    best = 1
    for Bt in range(1, B + 1):
        if B % Bt:
            continue
        if B >= 2 and (B // Bt) < 2:
            continue
        if _step_vmem_bytes(Bt, N, E, H, out_itemsize) > vmem_budget:
            continue
        best = Bt
        if Bt * N >= 256:
            break
    return best


def multi_head_attention(x, prepared, num_heads, block_b=None, out_dtype=None,
                         vmem_limit_bytes=None):
    """x: (B, N, E).  prepared: output of prepare_params() (call it once).
    Returns (B, N, E) in out_dtype (defaults to x.dtype; pass jnp.bfloat16 to
    halve output writeback if the consumer accepts it)."""
    B, N, E = x.shape
    assert E % num_heads == 0
    out_dtype = out_dtype if out_dtype is not None else x.dtype
    out_itemsize = jnp.dtype(out_dtype).itemsize

    Bt = block_b if block_b is not None else _choose_block_b(
        B, N, E, num_heads, out_itemsize)
    assert B % Bt == 0

    step_bytes = _step_vmem_bytes(Bt, N, E, num_heads, out_itemsize)
    if vmem_limit_bytes is None:
        # 2x headroom, floor 16 MiB, cap 64 MiB (v7x physical VMEM).
        vmem_limit_bytes = min(max(2 * step_bytes, 16 * 1024 * 1024),
                               64 * 1024 * 1024)

    kernel = functools.partial(mha_kernel, num_heads=num_heads)
    # Constant (grid-invariant) weight/bias blocks, resident in VMEM.
    const = lambda r, c: pl.BlockSpec((r, c), lambda b: (0, 0))

    return pl.pallas_call(
        kernel,
        out_shape=jax.ShapeDtypeStruct((B, N, E), out_dtype),
        grid_spec=pltpu.PrefetchScalarGridSpec(
            num_scalar_prefetch=0,
            grid=(B // Bt,),
            in_specs=[
                pl.BlockSpec((Bt, N, E), lambda b: (b, 0, 0)),    # x (bf16)
                const(E, 3 * E),                                  # wqkv (bf16)
                const(1, 3 * E),                                  # bqkv (f32)
                const(E, E),                                      # wp (bf16)
                const(1, E),                                      # bp (f32)
            ],
            out_specs=pl.BlockSpec((Bt, N, E), lambda b: (b, 0, 0)),
        ),
        compiler_params=pltpu.CompilerParams(
            dimension_semantics=("parallel",),
            vmem_limit_bytes=vmem_limit_bytes),
    )(x.astype(jnp.bfloat16), prepared['wqkv'], prepared['bqkv'],
      prepared['wp'], prepared['bp'])


def reference_mha(x, params, num_heads):
    """Pure-JAX f32 reference mirroring the PyTorch forward (eval mode)."""
    B, N, E = x.shape
    H = num_heads
    D = E // H

    def linear(t, w, b):    # PyTorch Linear: y = x @ W^T + b
        return jnp.einsum('bne,oe->bno', t, w) + b

    q = linear(x, params['wq'], params['bq']).reshape(B, N, H, D).transpose(0, 2, 1, 3)
    k = linear(x, params['wk'], params['bk']).reshape(B, N, H, D).transpose(0, 2, 1, 3)
    v = linear(x, params['wv'], params['bv']).reshape(B, N, H, D).transpose(0, 2, 1, 3)

    energy = jnp.einsum('bhqd,bhkd->bhqk', q, k)
    att = jax.nn.softmax(energy / (E ** 0.5), axis=-1)
    out = jnp.einsum('bhal,bhlv->bhav', att, v)
    out = out.transpose(0, 2, 1, 3).reshape(B, N, E)
    return linear(out, params['wp'], params['bp'])


def reference_mha_bf16(x, params, num_heads):
    """Pure-JAX reference matching the kernel's precision choices (bf16
    operands, f32 accumulation, 1/sqrt(E) folded into the q weights in f32
    before the bf16 cast) for a tight numeric check."""
    B, N, E = x.shape
    H = num_heads
    D = E // H
    bf = jnp.bfloat16
    inv_scale = float(E) ** -0.5
    xb = x.astype(bf)

    def linear(t, w_eo, b):   # w already in (in, out) orientation
        return jnp.einsum('bne,eo->bno', t, w_eo.astype(bf),
                          preferred_element_type=jnp.float32) + b

    q = linear(xb, (params['wq'] * inv_scale).T, params['bq'] * inv_scale)
    k = linear(xb, params['wk'].T, params['bk'])
    v = linear(xb, params['wv'].T, params['bv'])
    to_h = lambda t: t.astype(bf).reshape(B, N, H, D).transpose(0, 2, 1, 3)
    q, k, v = to_h(q), to_h(k), to_h(v)

    s = jnp.einsum('bhqd,bhkd->bhqk', q, k, preferred_element_type=jnp.float32)
    att = jax.nn.softmax(s, axis=-1).astype(bf)
    o = jnp.einsum('bhqk,bhkd->bhqd', att, v, preferred_element_type=jnp.float32)
    o = o.transpose(0, 2, 1, 3).reshape(B, N, E).astype(bf)
    return linear(o, params['wp'].T, params['bp'])


def init_params(key, emb_size):
    """Deterministic init mimicking nn.Linear default (uniform +/- 1/sqrt(fan_in))."""
    bound = 1.0 / np.sqrt(emb_size)
    keys = jax.random.split(key, 8)
    u = lambda k, shape: jax.random.uniform(k, shape, jnp.float32, -bound, bound)
    return {
        'wq': u(keys[0], (emb_size, emb_size)), 'bq': u(keys[1], (emb_size,)),
        'wk': u(keys[2], (emb_size, emb_size)), 'bk': u(keys[3], (emb_size,)),
        'wv': u(keys[4], (emb_size, emb_size)), 'bv': u(keys[5], (emb_size,)),
        'wp': u(keys[6], (emb_size, emb_size)), 'bp': u(keys[7], (emb_size,)),
    }


if __name__ == "__main__":
    # Small but MXU-row- and lane-dense shapes: batch=16, seq=16, emb=128
    # (one 128-lane tile), heads=4 (head dim 32).  The block policy picks
    # Bt=8 -> R=128 projection rows per step and grid=2 (even, so both v7x
    # TensorCores get one step each).
    B, N, E, H = 16, 16, 128, 4
    key = jax.random.PRNGKey(0)
    kx, kp = jax.random.split(key)

    x = jax.random.normal(kx, (B, N, E), jnp.float32)
    params = init_params(kp, E)
    prepared = prepare_params(params, E)      # one-time weight fusion / scale fold

    out = jax.block_until_ready(multi_head_attention(x, prepared, num_heads=H))

    # Tight check against a reference with matched (bf16-operand) precision.
    ref_bf = reference_mha_bf16(x, params, num_heads=H)
    np.testing.assert_allclose(np.asarray(out), np.asarray(ref_bf),
                               rtol=5e-3, atol=5e-3)

    # Loose check against the full-f32 PyTorch-semantics reference.
    ref32 = reference_mha(x, params, num_heads=H)
    np.testing.assert_allclose(np.asarray(out), np.asarray(ref32),
                               rtol=5e-2, atol=5e-2)

    # Reduced-writeback path: bf16 output (halves vst / output DMA traffic).
    out_bf16 = jax.block_until_ready(
        multi_head_attention(x, prepared, num_heads=H, out_dtype=jnp.bfloat16))
    np.testing.assert_allclose(np.asarray(out_bf16, dtype=np.float32),
                               np.asarray(ref_bf), rtol=2e-2, atol=2e-2)

    print("KERNEL_OK")
</pallas_src>

<mosaic_0001>
module attributes {stable_mosaic.version = 11 : i64} {
  func.func @mha_kernel(%arg0: i32, %arg1: memref<8x16x128xbf16, #tpu.memory_space<vmem>>, %arg2: memref<128x384xbf16, #tpu.memory_space<vmem>>, %arg3: memref<1x384xf32, #tpu.memory_space<vmem>>, %arg4: memref<128x128xbf16, #tpu.memory_space<vmem>>, %arg5: memref<1x128xf32, #tpu.memory_space<vmem>>, %arg6: memref<8x16x128xf32, #tpu.memory_space<vmem>>) attributes {dimension_semantics = [#tpu.dimension_semantics<parallel>], iteration_bounds = array<i64: 2>, scalar_prefetch = 0 : i64, scratch_operands = 0 : i64, tpu.core_type = #tpu.core_type<tc>, window_params = [{transform_indices = @transform_0, window_bounds = array<i64: 8, 16, 128>}, {pipeline_mode = #tpu.pipeline_mode<synchronous>, transform_indices = @transform_1, window_bounds = array<i64: 128, 384>}, {pipeline_mode = #tpu.pipeline_mode<synchronous>, transform_indices = @transform_2, window_bounds = array<i64: 1, 384>}, {pipeline_mode = #tpu.pipeline_mode<synchronous>, transform_indices = @transform_3, window_bounds = array<i64: 128, 128>}, {pipeline_mode = #tpu.pipeline_mode<synchronous>, transform_indices = @transform_4, window_bounds = array<i64: 1, 128>}, {transform_indices = @transform_5, window_bounds = array<i64: 8, 16, 128>}]} {
    %c0 = arith.constant 0 : index
    %c0_0 = arith.constant 0 : index
    %c0_1 = arith.constant 0 : index
    %0 = vector.load %arg1[%c0, %c0_0, %c0_1] : memref<8x16x128xbf16, #tpu.memory_space<vmem>>, vector<8x16x128xbf16>
    %1 = vector.shape_cast %0 : vector<8x16x128xbf16> to vector<128x128xbf16>
    %c0_2 = arith.constant 0 : index
    %c0_3 = arith.constant 0 : index
    %2 = vector.load %arg2[%c0_2, %c0_3] : memref<128x384xbf16, #tpu.memory_space<vmem>>, vector<128x384xbf16>
    %cst = arith.constant dense<0.000000e+00> : vector<128x384xf32>
    %3 = tpu.matmul %1, %2, %cst {dimension_numbers = #tpu.dot_dimension_numbers<[1], [0], [0], [1], [0, 0, 1, 1], [], []>} : vector<128x128xbf16>, vector<128x384xbf16>, vector<128x384xf32> -> vector<128x384xf32>
    %c0_4 = arith.constant 0 : index
    %c0_5 = arith.constant 0 : index
    %4 = vector.load %arg3[%c0_4, %c0_5] : memref<1x384xf32, #tpu.memory_space<vmem>>, vector<1x384xf32>
    %5 = vector.shape_cast %4 : vector<1x384xf32> to vector<384xf32>
    %6 = vector.shape_cast %5 : vector<384xf32> to vector<1x384xf32>
    %7 = vector.broadcast %6 : vector<1x384xf32> to vector<128x384xf32>
    %8 = arith.addf %3, %7 : vector<128x384xf32>
    %9 = vector.extract_strided_slice %8 {offsets = [0, 0], sizes = [128, 128], strides = [1, 1]} : vector<128x384xf32> to vector<128x128xf32>
    %10 = arith.truncf %9 : vector<128x128xf32> to vector<128x128xbf16>
    %11 = vector.extract_strided_slice %8 {offsets = [0, 128], sizes = [128, 128], strides = [1, 1]} : vector<128x384xf32> to vector<128x128xf32>
    %12 = arith.truncf %11 : vector<128x128xf32> to vector<128x128xbf16>
    %13 = vector.extract_strided_slice %8 {offsets = [0, 256], sizes = [128, 128], strides = [1, 1]} : vector<128x384xf32> to vector<128x128xf32>
    %14 = arith.truncf %13 : vector<128x128xf32> to vector<128x128xbf16>
    %15 = vector.shape_cast %10 : vector<128x128xbf16> to vector<8x16x4x32xbf16>
    %16 = tpu.transpose %15, [0, 2, 1, 3] : vector<8x16x4x32xbf16> -> vector<8x4x16x32xbf16>
    %17 = vector.shape_cast %16 : vector<8x4x16x32xbf16> to vector<32x16x32xbf16>
    %18 = vector.shape_cast %12 : vector<128x128xbf16> to vector<8x16x4x32xbf16>
    %19 = tpu.transpose %18, [0, 2, 1, 3] : vector<8x16x4x32xbf16> -> vector<8x4x16x32xbf16>
    %20 = vector.shape_cast %19 : vector<8x4x16x32xbf16> to vector<32x16x32xbf16>
    %21 = vector.shape_cast %14 : vector<128x128xbf16> to vector<8x16x4x32xbf16>
    %22 = tpu.transpose %21, [0, 2, 1, 3] : vector<8x16x4x32xbf16> -> vector<8x4x16x32xbf16>
    %23 = vector.shape_cast %22 : vector<8x4x16x32xbf16> to vector<32x16x32xbf16>
    "tpu.trace_start"() <{level = 10 : i32, message = "bqd,bkd->bqk"}> : () -> ()
    %cst_6 = arith.constant dense<0.000000e+00> : vector<32x16x16xf32>
    %24 = tpu.matmul %17, %20, %cst_6 {dimension_numbers = #tpu.dot_dimension_numbers<[2], [2], [1], [1], [0, 0, 0, 1, 1, 1], [0], [0]>} : vector<32x16x32xbf16>, vector<32x16x32xbf16>, vector<32x16x16xf32> -> vector<32x16x16xf32>
    "tpu.trace_stop"() : () -> ()
    %cst_7 = arith.constant dense<0xFF800000> : vector<32x16xf32>
    %25 = vector.multi_reduction <maximumf>, %24, %cst_7 [2] : vector<32x16x16xf32> to vector<32x16xf32>
    %26 = vector.shape_cast %25 : vector<32x16xf32> to vector<32x16x1xf32>
    %27 = vector.broadcast %26 : vector<32x16x1xf32> to vector<32x16x16xf32>
    %28 = arith.subf %24, %27 : vector<32x16x16xf32>
    %29 = math.exp %28 : vector<32x16x16xf32>
    %cst_8 = arith.constant dense<0.000000e+00> : vector<32x16xf32>
    %30 = vector.multi_reduction <add>, %29, %cst_8 [2] : vector<32x16x16xf32> to vector<32x16xf32>
    %31 = vector.shape_cast %30 : vector<32x16xf32> to vector<32x16x1xf32>
    %32 = tpu.reciprocal %31 {approx = true} : vector<32x16x1xf32> -> vector<32x16x1xf32>
    %33 = vector.broadcast %32 : vector<32x16x1xf32> to vector<32x16x16xf32>
    %34 = arith.mulf %29, %33 : vector<32x16x16xf32>
    %35 = arith.truncf %34 : vector<32x16x16xf32> to vector<32x16x16xbf16>
    "tpu.trace_start"() <{level = 10 : i32, message = "bqk,bkd->bqd"}> : () -> ()
    %cst_9 = arith.constant dense<0.000000e+00> : vector<32x16x32xf32>
    %36 = tpu.matmul %35, %23, %cst_9 {dimension_numbers = #tpu.dot_dimension_numbers<[2], [1], [1], [2], [0, 0, 0, 1, 1, 2], [0], [0]>} : vector<32x16x16xbf16>, vector<32x16x32xbf16>, vector<32x16x32xf32> -> vector<32x16x32xf32>
    "tpu.trace_stop"() : () -> ()
    %37 = vector.shape_cast %36 : vector<32x16x32xf32> to vector<8x4x16x32xf32>
    %38 = tpu.transpose %37, [0, 2, 1, 3] : vector<8x4x16x32xf32> -> vector<8x16x4x32xf32>
    %39 = vector.shape_cast %38 : vector<8x16x4x32xf32> to vector<128x128xf32>
    %40 = arith.truncf %39 : vector<128x128xf32> to vector<128x128xbf16>
    %c0_10 = arith.constant 0 : index
    %c0_11 = arith.constant 0 : index
    %41 = vector.load %arg4[%c0_10, %c0_11] : memref<128x128xbf16, #tpu.memory_space<vmem>>, vector<128x128xbf16>
    %cst_12 = arith.constant dense<0.000000e+00> : vector<128x128xf32>
    %42 = tpu.matmul %40, %41, %cst_12 {dimension_numbers = #tpu.dot_dimension_numbers<[1], [0], [0], [1], [0, 0, 1, 1], [], []>} : vector<128x128xbf16>, vector<128x128xbf16>, vector<128x128xf32> -> vector<128x128xf32>
    %c0_13 = arith.constant 0 : index
    %c0_14 = arith.constant 0 : index
    %43 = vector.load %arg5[%c0_13, %c0_14] : memref<1x128xf32, #tpu.memory_space<vmem>>, vector<1x128xf32>
    %44 = vector.shape_cast %43 : vector<1x128xf32> to vector<128xf32>
    %45 = vector.shape_cast %44 : vector<128xf32> to vector<1x128xf32>
    %46 = vector.broadcast %45 : vector<1x128xf32> to vector<128x128xf32>
    %47 = arith.addf %42, %46 : vector<128x128xf32>
    %48 = vector.shape_cast %47 : vector<128x128xf32> to vector<8x16x128xf32>
    %c0_15 = arith.constant 0 : index
    %c0_16 = arith.constant 0 : index
    %c0_17 = arith.constant 0 : index
    %49 = vector.load %arg6[%c0_15, %c0_16, %c0_17] : memref<8x16x128xf32, #tpu.memory_space<vmem>>, vector<8x16x128xf32>
    tpu.vector_store %arg6[%c0_15, %c0_16, %c0_17], %48 {strides = array<i32>} : memref<8x16x128xf32, #tpu.memory_space<vmem>>, vector<8x16x128xf32>,
    return
  }
  func.func @transform_0(%arg0: i32) -> (i32, i32, i32) {
    %c0_i32 = arith.constant 0 : i32
    %c0_i32_0 = arith.constant 0 : i32
    %c0_i32_1 = arith.constant 0 : i32
    return %arg0, %c0_i32, %c0_i32_0 : i32, i32, i32
  }
  func.func @transform_1(%arg0: i32) -> (i32, i32) {
    %c0_i32 = arith.constant 0 : i32
    %c0_i32_0 = arith.constant 0 : i32
    %c0_i32_1 = arith.constant 0 : i32
    return %c0_i32, %c0_i32_0 : i32, i32
  }
  func.func @transform_2(%arg0: i32) -> (i32, i32) {
    %c0_i32 = arith.constant 0 : i32
    %c0_i32_0 = arith.constant 0 : i32
    %c0_i32_1 = arith.constant 0 : i32
    return %c0_i32, %c0_i32_0 : i32, i32
  }
  func.func @transform_3(%arg0: i32) -> (i32, i32) {
    %c0_i32 = arith.constant 0 : i32
    %c0_i32_0 = arith.constant 0 : i32
    %c0_i32_1 = arith.constant 0 : i32
    return %c0_i32, %c0_i32_0 : i32, i32
  }
  func.func @transform_4(%arg0: i32) -> (i32, i32) {
    %c0_i32 = arith.constant 0 : i32
    %c0_i32_0 = arith.constant 0 : i32
    %c0_i32_1 = arith.constant 0 : i32
    return %c0_i32, %c0_i32_0 : i32, i32
  }
  func.func @transform_5(%arg0: i32) -> (i32, i32, i32) {
    %c0_i32 = arith.constant 0 : i32
    %c0_i32_0 = arith.constant 0 : i32
    %c0_i32_1 = arith.constant 0 : i32
    return %arg0, %c0_i32, %c0_i32_0 : i32, i32, i32
  }
}

</mosaic_0001>

<bundles_post_ra>
// kernel: tpu_custom_call.1
= control target key start
LH: loop header
LB: loop body
LE: loop exit
PB: predicated region body
PF: predicated region fallthrough
CT: control target
= control target key end

     0   :  { %10 = vsyncpa [#allocation3], 0  ;;  %s19847_s0 = inlined_call_operand.hbm [shape: bf16[16,16,128], index: 0, kind: input, shape index: {}]   ;;  %s19848_s1 = inlined_call_operand.hbm [shape: bf16[128,384], index: 1, kind: input, shape index: {}]   ;;  %s19849_s2 = inlined_call_operand.vmem [shape: f32[1,384], index: 2, kind: input, shape index: {}]   ;;  %s19850_s3 = inlined_call_operand.hbm [shape: bf16[128,128], index: 3, kind: input, shape index: {}]   ;;  %s19851_s4 = inlined_call_operand.vmem [shape: f32[1,128], index: 4, kind: input, shape index: {}]   ;;  %s19852_s5 = inlined_call_operand.hbm [shape: f32[16,16,128], index: 5, kind: output, shape index: {}]  }
   0x1   :  { %12 = vsyncpa [#allocation3 + $0x1], 0 }
   0x2   :  { %13 = vsyncpa [#allocation6], 0 }
   0x3   :  { %14 = vsyncpa [#allocation4], 0 }
   0x4   :  { %16 = vsyncpa [#allocation4 + $0x1], 0  ;;  %s15148_s18 = smov 0   ;;  %s15150_s19 = smov 0  }
   0x5   :  { %s15152_s20 = smov 0   ;;  %s15154_s21 = smov 0  }
   0x6 LB: > { %s15169_s22 = sadd.s32 4294967295, %s15098_s21   ;;  %s13564_s23 = sadd.s32 4294967294, %s15098_s21   ;;  %s15098_s21 = sphi %s15154_s21, %s20467_s21   ;;  %s15094_s20 = sphi %s15152_s20, %s20466_s20   ;;  %s15090_s19 = sphi %s15150_s19, %s20465_s19   ;;  %s15086_s18 = sphi %s15148_s18, %s20464_s18  }
   0x7   : > { %p42_p0 = scmp.ne.s32.totalorder %s15090_s19, %s15086_s18  ;;  %p19853_p1 = scmp.eq.s32.totalorder %s15169_s22, 0 }
   0x8   : > { %p156_p3 = scmp.eq.s32.totalorder %s13564_s23, 1  ;;  %p13565_p5 = scmp.ge.s32.totalorder %s15098_s21, 1 }
   0x9   : > { %p15178_p4 = por %p19853_p1, %p42_p0  ;;  %p163_p7 = scmp.lt.s32.totalorder %s15098_s21, 3 }
   0xa   : > { %p15183_p6 = por %p156_p3, %p42_p0  ;;  %s15100_s27 = smov [#allocation5]  }
   0xb   : > { %s20041_s24 = scalar_select %p15178_p4, 1, 0 }
   0xc   : > { %s20042_s25 = scalar_select %p15183_p6, 1, 0 }
   0xd   : > { %p15188_p8 = pnand %p13565_p5, %p163_p7  ;;  %s175_s28 = sshll.u32 %s15100_s27, 4  ;;  %s176_s28 = int_to_ptr.vmem [resolvable:$true] %s175_s28 }
   0xe   : > { %s15101_s30 = smov [#allocation7]   ;;  %s14961_s7 = scalar_lea.vmem %s176_s28, 3072 }
   0xf   : > { %s20043_s26 = scalar_select %p15188_p8, 1, 0 }
  0x10   : > { %p14457_p9 = pneg %p15188_p8  ;;  %s191_s6 = sshll.u32 %s15101_s30, 4  ;;  %s192_s6 = int_to_ptr.vmem [resolvable:$true] %s191_s6 }
  0x11   : > { %p14962_p13 = scmp.ne.s32.totalorder %s176_s28, %s14961_s7  ;;  %p14969_p5 = scmp.lt.s32.totalorder %s176_s28, %s176_s28 }
  0x12   : > { %p15197_p11 = pnand %p14457_p9, %p19853_p1  ;;  %p14970_p7 = scmp.lt.s32.totalorder %s14961_s7, %s14961_s7 }
  0x14   : > { %p14952_p12 = pneg %p15197_p11  ;;  %p14971_p10 = por %p14970_p7, %p14969_p5 }
  0x16   : > { %p14964_p0 = pnand %p14962_p13, %p14952_p12 }
  0x18   : > { %p14965_p3 = pneg %p14964_p0 }
  0x1a   : > { %p14972_p9 = pnand %p14971_p10, %p14965_p3 }
  0x1c   : > { %14975 = shalt.err (!%p14972_p9)
}
  0x1d   : > { %s15102_s8 = smov 192   ;;  %s15103_s9 = smov 12  }
  0x1e   : > { %14460 = dma.hbm_to_vmem [thread:$0]  (!%p15197_p11), %s19848_s1, 3072, %s176_s28, [#allocation6], %s15102_s8, %s15102_s8, %s15103_s9  }
  0x1f   : > { %s14987_s12 = scalar_lea.vmem %s192_s6, 1024  ;;  %p14995_p2 = scmp.lt.s32.totalorder %s192_s6, %s192_s6 }
  0x20   : > { %p14988_p1 = scmp.ne.s32.totalorder %s192_s6, %s14987_s12  ;;  %p14996_p6 = scmp.lt.s32.totalorder %s14987_s12, %s14987_s12 }
  0x22   : > { %p14990_p13 = pnand %p14988_p1, %p14952_p12  ;;  %p14997_p5 = por %p14996_p6, %p14995_p2 }
  0x24   : > { %p14991_p0 = pneg %p14990_p13 }
  0x26   : > { %p14998_p10 = pnand %p14997_p5, %p14991_p0 }
  0x28   : > { %15001 = shalt.err (!%p14998_p10)
}
  0x29   : > { %s19854_s13 = smov 64   ;;  %s15105_s14 = smov 4  }
  0x2a   : > { %14463 = dma.hbm_to_vmem [thread:$0]  (!%p15197_p11), %s19850_s3, 1024, %s192_s6, [#allocation6], %s19854_s13, %s19854_s13, %s15105_s14  }
  0x2b   : > { %s15223_s17 = sadd.s32 1, %s15098_s21   ;;  %s29_s27 = sadd.s32 1, %s15094_s20 }
  0x2c   : > { %s26_s23 = ssub.s32 %s15098_s21, %s15223_s17  ;;  %p36_p2 = scmp.ne.s32.totalorder %s15094_s20, %s15090_s19 }
  0x2d   : > { %p27_p1 = scmp.eq.s32.totalorder %s26_s23, 0  ;;  %p37_p6 = scmp.eq.s32.totalorder %s15098_s21, 0 }
  0x2e   : > { %p20045_p3 = scmp.eq.s32.totalorder %s15169_s22, 1  ;;  %p14474_p9 = scmp.lt.s32.totalorder %s15098_s21, 2 }
  0x2f   : > { %s15232_s28 = scalar_select %p27_p1, %s15094_s20, %s29_s27  }
  0x30   : > { %p38_p12 = por %p37_p6, %p36_p2  ;;  %p15236_p7 = por %p20045_p3, %p36_p2 }
  0x31   : > { %s208_s30 = sand.u32 1, %s15094_s20   ;;  %s13818_s6 = sshll.u32 %s15098_s21, 10 }
  0x32   : > { %s20046_s29 = scalar_select %p15236_p7, 1, 0 }
  0x33   : > { %s13569_s7 = sshll.u32 %s208_s30, 6  ;;  %s15246_s10 = scalar_lea.hbm %s19847_s0, %s13818_s6 }
  0x34   : > { %s212_s11 = scalar_lea.vmem [#allocation2], %s13569_s7  ;;  %p15250_p11 = pnand %p14474_p9, %p38_p12 }
  0x35   : > { %s220_s12 = sshll.u32 %s212_s11, 4  ;;  %s15254_s16 = scalar_lea.sflag [#allocation3], %s208_s30  ;;  %s15248_s12 = int_to_ptr.vmem [resolvable:$true] %s220_s12 }
  0x36   : > { %s15002_s23 = scalar_lea.hbm %s15246_s10, 1024  ;;  %p15004_p0 = pneg %p15250_p11 }
  0x37   : > { %p15003_p13 = scmp.ne.s32.totalorder %s15246_s10, %s15002_s23  ;;  %s15007_s7 = scalar_lea.hbm %s19847_s0, 2048 }
  0x38   : > { %p15008_p1 = scmp.lt.s32.totalorder %s15246_s10, %s19847_s0  ;;  %p15009_p2 = scmp.lt.s32.totalorder %s15007_s7, %s15002_s23 }
  0x39   : > { %p15005_p5 = pnand %p15004_p0, %p15003_p13 }
  0x3a   : > { %p15010_p6 = por %p15009_p2, %p15008_p1 }
  0x3b   : > { %p15006_p10 = pneg %p15005_p5 }
  0x3d   : > { %p15011_p12 = pnand %p15010_p6, %p15006_p10 }
  0x3f   : > { %15014 = shalt.err (!%p15011_p12)
}
  0x40   : > { %s15015_s30 = scalar_lea.vmem %s15248_s12, 1024  ;;  %s15106_s11 = smov [#allocation2]  }
  0x41   : > { %p15016_p3 = scmp.ne.s32.totalorder %s15248_s12, %s15015_s30  ;;  %s15020_s13 = sshll.u32 %s15106_s11, 4  ;;  %s15021_s13 = int_to_ptr.vmem [resolvable:$false] %s15020_s13 }
  0x42   : > { %s15022_s27 = scalar_lea.vmem %s15021_s13, 2048  ;;  %p15023_p5 = scmp.lt.s32.totalorder %s15248_s12, %s15021_s13 }
  0x43   : > { %p15018_p9 = pnand %p15016_p3, %p15004_p0  ;;  %p15024_p7 = scmp.lt.s32.totalorder %s15022_s27, %s15015_s30 }
  0x45   : > { %p15019_p13 = pneg %p15018_p9  ;;  %p15025_p4 = por %p15024_p7, %p15023_p5 }
  0x47   : > { %p15026_p8 = pnand %p15025_p4, %p15019_p13 }
  0x49   : > { %15029 = shalt.err (!%p15026_p8)
}
  0x4a   : > { %s20048_s23 = smov 64   ;;  %p20049_p0 = scmp.ne.s32.totalorder %s20043_s26, 0 }
  0x4b   : > { %14467 = dma.hbm_to_vmem [thread:$0]  (!%p15250_p11), %s15246_s10, 1024, %s15248_s12, %s15254_s16, %s20048_s23, %s20048_s23, %s15105_s14  }
  0x4c   : > { %232 = sbr.rel (%p20049_p0) target bundleno = 1939 (0x793), region = 40 }
  0x51   : > { %s15281_s6 = sand.u32 1, %s15090_s19   ;;  %p20050_p4 = scmp.ne.s32.totalorder %s20041_s24, 0 }
  0x52   : > { %s13574_s13 = sshll.u32 %s15281_s6, 6  ;;  %s235_s7 = scalar_lea.sflag [#allocation3], %s15281_s6 }
  0x53   : > { %s15285_s8 = scalar_lea.vmem [#allocation2], %s13574_s13 }
  0x54   : > { %15073 = dma.done.wait (%p20050_p4), %s235_s7, 1024  }
  0x55   : > { %15075 = vsyncadd (%p20050_p4), %s235_s7, 4294966272  ;;  %p20051_p8 = scmp.eq.s32.totalorder %s15169_s22, 0 }
  0x57   : > { %15077 = dma.done.wait (%p20051_p8), [#allocation6], 4096   ;;  %p20052_p7 = pmov %p20051_p8 }
  0x58   : > { %v15107_v0 = vmov 0   ;;  %v14646_v1 = vld [vmem:[#allocation5 + $0xac] ss:$12 sps:$4 sm:$0xff]   ;;  %v14648_v2 = vld [vmem:[#allocation5 + $0xa8] ss:$12 sps:$4 sm:$0xff]   ;;  %v14670_v9 = vld [vmem:[%s15285_s8] sm:$0xff]   ;;  %v326_v33 = vlaneseq }
  0x59   : > { %15079 = vsyncadd (%p20052_p7), [#allocation6], 4294963200  ;;  %549 = vmatprep.mubr.bf16.mxu0 %v15107_v0  ;;  %517 = vmatprep.subr.bf16.mxu0 %v14646_v1  ;;  %v14649_v3 = vld [vmem:[#allocation5 + $0x94] ss:$12 sps:$4 sm:$0xff]   ;;  %v14651_v4 = vld [vmem:[#allocation5 + $0x90] ss:$12 sps:$4 sm:$0xff]  }
  0x5a   : > { %518 = vmatpush1.bf16.msra.mxu0 %v14648_v2  ;;  %v14652_v5 = vld [vmem:[#allocation5 + $0x7c] ss:$12 sps:$4 sm:$0xff]   ;;  %v14654_v6 = vld [vmem:[#allocation5 + $0x78] ss:$12 sps:$4 sm:$0xff]   ;;  %v14657_v8 = vld [vmem:[#allocation5 + $0x60] ss:$12 sps:$4 sm:$0xff]   ;;  %13997 = vmatprep.mubr.bf16.mxu1 %v14670_v9 }
  0x5b   : > { %519 = vmatprep.subr.bf16.mxu0 %v14649_v3  ;;  %v14655_v7 = vld [vmem:[#allocation5 + $0x64] ss:$12 sps:$4 sm:$0xff]   ;;  %v14658_v10 = vld [vmem:[#allocation5 + $0x4c] ss:$12 sps:$4 sm:$0xff]   ;;  %v14660_v11 = vld [vmem:[#allocation5 + $0x48] ss:$12 sps:$4 sm:$0xff]  }
  0x5c   : > { %v14661_v12 = vld [vmem:[#allocation5 + $0x34] ss:$12 sps:$4 sm:$0xff]   ;;  %v14663_v13 = vld [vmem:[#allocation5 + $0x30] ss:$12 sps:$4 sm:$0xff]   ;;  %v14679_v16 = vld [vmem:[#allocation5 + $0x98] ss:$12 sps:$4 sm:$0xff]  }
  0x5d   : > { %v14664_v14 = vld [vmem:[#allocation5 + $0x1c] ss:$12 sps:$4 sm:$0xff]   ;;  %v14666_v17 = vld [vmem:[#allocation5 + $0x18] ss:$12 sps:$4 sm:$0xff]   ;;  %v14680_v18 = vld [vmem:[#allocation5 + $0x80] ss:$12 sps:$4 sm:$0xff]  }
  0x5e   : > { %520 = vmatpush1.bf16.msra.mxu0 %v14651_v4  ;;  %v14678_v15 = vld [vmem:[#allocation5 + $0xb0] ss:$12 sps:$4 sm:$0xff]   ;;  %v14669_v20 = vld [vmem:[#allocation5] ss:$12 sps:$4 sm:$0xff]   ;;  %v14681_v21 = vld [vmem:[#allocation5 + $0x68] ss:$12 sps:$4 sm:$0xff]  }
  0x5f   : > { %521 = vmatprep.subr.bf16.mxu0 %v14652_v5  ;;  %13981 = vmatprep.subr.bf16.mxu1 %v14678_v15  ;;  %v14667_v19 = vld [vmem:[#allocation5 + $0x4] ss:$12 sps:$4 sm:$0xff]   ;;  %v14671_v24 = vld [vmem:[%s15285_s8 + $0x8] sm:$0xff]   ;;  %v14673_v28 = vld [vmem:[%s15285_s8 + $0x18] sm:$0xff]   ;;  %v15311_v34 = vshrl.u32 %v326_v33, 7  ;;  %s15108_s14 = smov 32  }
  0x60   : > { %13982 = vmatpush3.bf16.msra.mxu1 %v14678_v15  ;;  %v14682_v22 = vld [vmem:[#allocation5 + $0x50] ss:$12 sps:$4 sm:$0xff]   ;;  %v14683_v23 = vld [vmem:[#allocation5 + $0x38] ss:$12 sps:$4 sm:$0xff]   ;;  %v14684_v25 = vld [vmem:[#allocation5 + $0x20] ss:$12 sps:$4 sm:$0xff]  }
  0x61   : > { %13983 = vmatprep.subr.bf16.mxu1 %v14679_v16  ;;  %v14685_v26 = vld [vmem:[#allocation5 + $0x8] ss:$12 sps:$4 sm:$0xff]   ;;  %v14674_v29 = vld [vmem:[%s15285_s8 + $0x20] sm:$0xff]   ;;  %v14677_v32 = vld [vmem:[%s15285_s8 + $0x38] sm:$0xff]   ;;  %v332_v35 = vsub.s32 1, %v15311_v34  ;;  %v328_v39 = vsub.s32 0, %v15311_v34 }
  0x62   : > { %522 = vmatpush1.bf16.msra.mxu0 %v14654_v6  ;;  %v14672_v27 = vld [vmem:[%s15285_s8 + $0x10] sm:$0xff]   ;;  %v14675_v30 = vld [vmem:[%s15285_s8 + $0x28] sm:$0xff]   ;;  %v15317_v37 = vld [vmem:[%s19849_s2] sm:$0x7]  ;;  %s15109_s10 = smov 96   ;;  %s15110_s12 = smov 64  }
  0x63   : > { %523 = vmatprep.subr.bf16.mxu0 %v14655_v7  ;;  %v14676_v31 = vld [vmem:[%s15285_s8 + $0x30] sm:$0xff]   ;;  %v15321_v40 = vrot.slane %v15317_v37, %v332_v35  ;;  %v15324_v43 = vrot.slane %v15317_v37, %v328_v39  ;;  %vm15112_vm0 = vmmov 0   ;;  %vm7197_vm1 = vcmask 261120   ;;  %s13577_s15 = sshll.u32 %s15281_s6, 7  ;;  %s13820_s11 = sshll.u32 %s15169_s22, 11 }
  0x64   : > { %13984 = vmatpush3.bf16.msra.mxu1 %v14679_v16  ;;  %vm8702_vm2 = vcmask 130048   ;;  %vm13231_vm3 = vcmask 523264   ;;  %vm13248_vm4 = vcmask 785408   ;;  %s19752_s30 = scalar_lea.vmem [#allocation8], %s13577_s15  ;;  %s19799_s7 = scalar_lea.hbm %s19852_s5, %s13820_s11 }
  0x65   : > { %13985 = vmatprep.subr.bf16.mxu1 %v14680_v18  ;;  %s13472_s27 = sshll.u32 %s19752_s30, 4  ;;  %s13458_s22 = scalar_lea.sflag [#allocation4], %s15281_s6  ;;  %s19801_s27 = int_to_ptr.vmem [resolvable:$true] %s13472_s27 }
  0x66   : > { %524 = vmatpush1.bf16.msra.mxu0 %v14657_v8  ;;  %s15030_s8 = scalar_lea.vmem %s19801_s27, 2048  ;;  %p20461_p10 = scmp.ne.s32.totalorder %s20046_s29, 0 }
  0x67   : > { %525 = vmatprep.subr.bf16.mxu0 %v14658_v10  ;;  %p15031_p11 = scmp.ne.s32.totalorder %s19801_s27, %s15030_s8  ;;  %s15115_s24 = smov [#allocation8]  }
  0x68   : > { %13986 = vmatpush3.bf16.msra.mxu1 %v14680_v18  ;;  %s15034_s26 = sshll.u32 %s15115_s24, 4  ;;  %s15035_s26 = int_to_ptr.vmem [resolvable:$false] %s15034_s26 }
  0x69   : > { %13987 = vmatprep.subr.bf16.mxu1 %v14681_v21  ;;  %p15032_p1 = pnand %p15031_p11, %p20461_p10  ;;  %p15037_p6 = scmp.lt.s32.totalorder %s19801_s27, %s15035_s26 }
  0x6a   : > { %526 = vmatpush1.bf16.msra.mxu0 %v14660_v11 }
  0x6b   : > { %527 = vmatprep.subr.bf16.mxu0 %v14661_v12  ;;  %p15033_p2 = pneg %p15032_p1 }
  0x6c   : > { %13988 = vmatpush3.bf16.msra.mxu1 %v14681_v21 }
  0x6d   : > { %13989 = vmatprep.subr.bf16.mxu1 %v14682_v22 }
  0x6e   : > { %528 = vmatpush1.bf16.msra.mxu0 %v14663_v13 }
  0x6f   : > { %529 = vmatprep.subr.bf16.mxu0 %v14664_v14 }
  0x70   : > { %13990 = vmatpush3.bf16.msra.mxu1 %v14682_v22 }
  0x71   : > { %13991 = vmatprep.subr.bf16.mxu1 %v14683_v23 }
  0x72   : > { %530 = vmatpush1.bf16.msra.mxu0 %v14666_v17 }
  0x73   : > { %531 = vmatprep.subr.bf16.mxu0 %v14667_v19 }
  0x74   : > { %13992 = vmatpush3.bf16.msra.mxu1 %v14683_v23 }
  0x75   : > { %13993 = vmatprep.subr.bf16.mxu1 %v14684_v25 }
  0x76   : > { %532 = vmatpush1.bf16.msra.mxu0 %v14669_v20 }
  0x78   : > { %13994 = vmatpush3.bf16.msra.mxu1 %v14684_v25 }
  0x79   : > { %550 = vmatmul.mubr.bf16.vlgmr.msra.gmra.mxu0 %v14670_v9  ;;  %13995 = vmatprep.subr.bf16.mxu1 %v14685_v26 }
  0x7a   : > { %559 = vmatprep.mubr.bf16.mxu0 %v15107_v0 }
  0x7c   : > { %13996 = vmatpush3.bf16.msra.mxu1 %v14685_v26 }
  0x7f   : > { %13998 = vmatmul.mubr.bf16.vlgmr.msra.gmra.mxu1 %v14671_v24 }
  0x80   : > { %14001 = vmatprep.mubr.bf16.mxu1 %v14672_v27 }
  0x81   : > { %560 = vmatmul.mubr.bf16.gmra.mxu0 %v14671_v24 }
  0x82   : > { %569 = vmatprep.mubr.bf16.mxu0 %v15107_v0 }
  0x87   : > { %14002 = vmatmul.mubr.bf16.gmra.mxu1 %v14673_v28 }
  0x88   : > { %14005 = vmatprep.mubr.bf16.mxu1 %v14674_v29 }
  0x89   : > { %570 = vmatmul.mubr.bf16.gmra.mxu0 %v14672_v27 }
  0x8a   : > { %579 = vmatprep.mubr.bf16.mxu0 %v15107_v0 }
  0x8f   : > { %14006 = vmatmul.mubr.bf16.gmra.mxu1 %v14675_v30 }
  0x90   : > { %14009 = vmatprep.mubr.bf16.mxu1 %v14676_v31 }
  0x91   : > { %580 = vmatmul.mubr.bf16.gmra.mxu0 %v14673_v28 }
  0x92   : > { %589 = vmatprep.mubr.bf16.mxu0 %v15107_v0 }
  0x97   : > { %14010 = vmatmul.mubr.bf16.gmra.mxu1 %v14677_v32 }
  0x99   : > { %590 = vmatmul.mubr.bf16.gmra.mxu0 %v14674_v29 }
  0x9a   : > { %599 = vmatprep.mubr.bf16.mxu0 %v15107_v0 }
  0xa1   : > { %600 = vmatmul.mubr.bf16.gmra.mxu0 %v14675_v30 }
  0xa2   : > { %609 = vmatprep.mubr.bf16.mxu0 %v15107_v0 }
  0xa9   : > { %610 = vmatmul.mubr.bf16.gmra.mxu0 %v14676_v31  ;;  %v19858_v31 = vmov 0.0  }
  0xaa   : > { %619 = vmatprep.mubr.bf16.mxu0 %v15107_v0  ;;  %14013 = vmatprep.subr.bf16.mxu1 %v19858_v31 }
  0xab   : > { %14037 = vmatprep.subr.bf16.mxu0 %v19858_v31  ;;  %14015 = vmatprep.mubr.msk.bf16.mxu1 %vm15112_vm0, %v19858_v31 }
  0xb1   : > { %620 = vmatmul.mubr.bf16.gmra.mxu0 %v14677_v32 }
  0xb2   : > { %14039 = vmatprep.mubr.msk.bf16.mxu0 %vm15112_vm0, %v19858_v31 }
 0x139   : > { %v551_v36 = vpop.f32.mrf.mxu0 }
 0x13a   : > { %v552_v50 = vadd.f32 %v551_v36, %v15324_v43 }
 0x13b   : > { %v553_v38 = vpop.f32.mrf.mxu0 }
 0x13c   : > { %v554_v44 = vadd.f32 %v553_v38, %v15321_v40 }
 0x13d   : > { %v555_v41 = vpop.f32.mrf.mxu0 }
 0x13e   : > { %v556_v47 = vadd.f32 %v555_v41, %v15324_v43 }
 0x13f   : > { %v557_v42 = vpop.f32.mrf.mxu0 }
 0x140   : > { %v558_v45 = vadd.f32 %v557_v42, %v15321_v40  ;;  %v15336_v52 = vpack.c.bf16 %v556_v47, %v552_v50 }
 0x141   : > { %v561_v46 = vpop.f32.mrf.mxu0 }
 0x142   : > { %v15329_v48 = vpack.c.bf16 %v558_v45, %v554_v44  ;;  %v562_v59 = vadd.f32 %v561_v46, %v15324_v43 }
 0x143   : > { %v563_v49 = vpop.f32.mrf.mxu0 }
 0x144   : > { %2933 = vrot.lane.b32.xlu1 %v15329_v48, %s15108_s14  ;;  %2901 = vrot.lane.b32.xlu0 %v15329_v48, %s15109_s10  ;;  %v564_v57 = vadd.f32 %v563_v49, %v15321_v40 }
 0x145   : > { %v565_v51 = vpop.f32.mrf.mxu0 }
 0x146   : > { %v566_v60 = vadd.f32 %v565_v51, %v15324_v43 }
 0x147   : > { %v567_v53 = vpop.f32.mrf.mxu0 }
 0x148   : > { %2917 = vrot.lane.b32.xlu0 %v15329_v48, %s15110_s12  ;;  %759 = vrot.lane.b32.xlu1 %v15336_v52, %s15109_s10  ;;  %v568_v55 = vadd.f32 %v567_v53, %v15321_v40  ;;  %v15356_v1 = vpack.c.bf16 %v566_v60, %v562_v59 }
 0x149   : > { %v571_v54 = vpop.f32.mrf.mxu0 }
 0x14a   : > { %v15350_v61 = vpack.c.bf16 %v568_v55, %v564_v57  ;;  %v572_v8 = vadd.f32 %v571_v54, %v15324_v43 }
 0x14b   : > { %v573_v56 = vpop.f32.mrf.mxu0 }
 0x14c   : > { %775 = vrot.lane.b32.xlu0 %v15336_v52, %s15110_s12  ;;  %791 = vrot.lane.b32.xlu1 %v15336_v52, %s15108_s14  ;;  %v574_v4 = vadd.f32 %v573_v56, %v15321_v40 }
 0x14d   : > { %v575_v58 = vpop.f32.mrf.mxu0 }
 0x14e   : > { %v576_v9 = vadd.f32 %v575_v58, %v15324_v43 }
 0x14f   : > { %v577_v62 = vpop.f32.mrf.mxu0 }
 0x150   : > { %2903 = vrot.lane.b32.xlu0 %v15350_v61, %s15109_s10  ;;  %2919 = vrot.lane.b32.xlu1 %v15350_v61, %s15110_s12  ;;  %v578_v5 = vadd.f32 %v577_v62, %v15321_v40  ;;  %v15376_v12 = vpack.c.bf16 %v576_v9, %v572_v8 }
 0x151   : > { %v581_v63 = vpop.f32.mrf.mxu0 }
 0x152   : > { %v15370_v10 = vpack.c.bf16 %v578_v5, %v574_v4  ;;  %v582_v19 = vadd.f32 %v581_v63, %v15324_v43 }
 0x153   : > { %v583_v2 = vpop.f32.mrf.mxu0 }
 0x154   : > { %2935 = vrot.lane.b32.xlu0 %v15350_v61, %s15108_s14  ;;  %761 = vrot.lane.b32.xlu1 %v15356_v1, %s15109_s10  ;;  %v584_v14 = vadd.f32 %v583_v2, %v15321_v40 }
 0x155   : > { %v585_v3 = vpop.f32.mrf.mxu0 }
 0x156   : > { %v586_v20 = vadd.f32 %v585_v3, %v15324_v43  ;;  %v15114_v3 = vmov 1934713408  }
 0x157   : > { %v587_v6 = vpop.f32.mrf.mxu0  ;;  %v974_v4 = vunpack.c.l.s4 %v15114_v3 }
 0x158   : > { %777 = vrot.lane.b32.xlu0 %v15356_v1, %s15110_s12  ;;  %793 = vrot.lane.b32.xlu1 %v15356_v1, %s15108_s14  ;;  %v588_v15 = vadd.f32 %v587_v6, %v15321_v40  ;;  %v15396_v22 = vpack.c.bf16 %v586_v20, %v582_v19 }
 0x159   : > { %v591_v7 = vpop.f32.mrf.mxu0  ;;  %v975_v8 = vunpack.c.0.s8 %v974_v4 }
 0x15a   : > { %v15384_v17 = vpack.c.bf16 %v588_v15, %v584_v14  ;;  %v592_v26 = vadd.f32 %v591_v7, %v15324_v43 }
 0x15b   : > { %v593_v11 = vpop.f32.mrf.mxu0 }
 0x15c   : > { %2905 = vrot.lane.b32.xlu0 %v15370_v10, %s15109_s10  ;;  %2921 = vrot.lane.b32.xlu1 %v15370_v10, %s15110_s12  ;;  %v594_v23 = vadd.f32 %v593_v11, %v15321_v40 }
 0x15d   : > { %v595_v13 = vpop.f32.mrf.mxu0 }
 0x15e   : > { %v596_v27 = vadd.f32 %v595_v13, %v15324_v43  ;;  %v2953_v13 = vshrl.u32 %v15329_v48, 16 }
 0x15f   : > { %v597_v16 = vpop.f32.mrf.mxu0 }
 0x160   : > { %2937 = vrot.lane.b32.xlu0 %v15370_v10, %s15108_s14  ;;  %763 = vrot.lane.b32.xlu1 %v15376_v12, %s15109_s10  ;;  %v598_v24 = vadd.f32 %v597_v16, %v15321_v40  ;;  %v15414_v32 = vpack.c.bf16 %v596_v27, %v592_v26  ;;  %v15495_v16 = vpack.i.b16 %v15107_v0, %v15107_v0  ;;  %v833_v0 = vshrl.u32 %v15356_v1, 16 }
 0x161   : > { %v601_v18 = vpop.f32.mrf.mxu0 }
 0x162   : > { %v15406_v28 = vpack.c.bf16 %v598_v24, %v594_v23  ;;  %v602_v39 = vadd.f32 %v601_v18, %v15324_v43  ;;  %20058 = vst [vmem:[#allocation17_spill] sm:$0xff] %v15495_v16  ;;  %v811_v24 = vshrl.u32 %v15336_v52, 16 }
 0x163   : > { %v603_v21 = vpop.f32.mrf.mxu0 }
 0x164   : > { %779 = vrot.lane.b32.xlu0 %v15376_v12, %s15110_s12  ;;  %795 = vrot.lane.b32.xlu1 %v15376_v12, %s15108_s14  ;;  %v604_v35 = vadd.f32 %v603_v21, %v15321_v40  ;;  %v15502_v21 = vsub.s32 %v975_v8, %v15311_v34 }
 0x165   : > { %v605_v25 = vpop.f32.mrf.mxu0 }
 0x166   : > { %v606_v41 = vadd.f32 %v605_v25, %v15324_v43  ;;  %20060 = vst [vmem:[#allocation19_spill] sm:$0xff] %v15502_v21 }
 0x167   : > { %v607_v29 = vpop.f32.mrf.mxu0 }
 0x168   : > { %2907 = vrot.lane.b32.xlu0 %v15384_v17, %s15109_s10  ;;  %2923 = vrot.lane.b32.xlu1 %v15384_v17, %s15110_s12  ;;  %v608_v36 = vadd.f32 %v607_v29, %v15321_v40  ;;  %v15434_v45 = vpack.c.bf16 %v606_v41, %v602_v39  ;;  %v2985_v39 = vshrl.u32 %v15370_v10, 16 }
 0x169   : > { %v611_v30 = vpop.f32.mrf.mxu0 }
 0x16a   : > { %v15428_v42 = vpack.c.bf16 %v608_v36, %v604_v35  ;;  %20054 = vst [vmem:[#allocation13_spill] sm:$0xff] %v15434_v45  ;;  %v612_v51 = vadd.f32 %v611_v30, %v15324_v43  ;;  %v849_v30 = vshrl.u32 %v15376_v12, 16 }
 0x16b   : > { %v613_v33 = vpop.f32.mrf.mxu0 }
 0x16c   : > { %2939 = vrot.lane.b32.xlu0 %v15384_v17, %s15108_s14  ;;  %765 = vrot.lane.b32.xlu1 %v15396_v22, %s15109_s10  ;;  %20053 = vst [vmem:[#allocation12_spill] sm:$0xff] %v15428_v42  ;;  %v614_v47 = vadd.f32 %v613_v33, %v15321_v40  ;;  %v336_v33 = vsub.s32 2, %v15311_v34 }
 0x16d   : > { %v615_v38 = vpop.f32.mrf.mxu0 }
 0x16e   : > { %v616_v53 = vadd.f32 %v615_v38, %v15324_v43 }
 0x16f   : > { %v617_v44 = vpop.f32.mrf.mxu0 }
 0x170   : > { %781 = vrot.lane.b32.xlu0 %v15396_v22, %s15110_s12  ;;  %797 = vrot.lane.b32.xlu1 %v15396_v22, %s15108_s14  ;;  %v618_v49 = vadd.f32 %v617_v44, %v15321_v40  ;;  %v15458_v56 = vpack.c.bf16 %v616_v53, %v612_v51 }
 0x171   : > { %v621_v46 = vpop.f32.mrf.mxu0 }
 0x172   : > { %v15448_v54 = vpack.c.bf16 %v618_v49, %v614_v47  ;;  %20055 = vst [vmem:[#allocation14_spill] sm:$0xff] %v15458_v56  ;;  %v622_v60 = vadd.f32 %v621_v46, %v15324_v43 }
 0x173   : > { %v623_v50 = vpop.f32.mrf.mxu0 }
 0x174   : > { %2909 = vrot.lane.b32.xlu0 %v15406_v28, %s15109_s10  ;;  %2925 = vrot.lane.b32.xlu1 %v15406_v28, %s15110_s12  ;;  %v624_v58 = vadd.f32 %v623_v50, %v15321_v40 }
 0x175   : > { %v625_v55 = vpop.f32.mrf.mxu0 }
 0x176   : > { %v626_v62 = vadd.f32 %v625_v55, %v15324_v43 }
 0x177   : > { %v627_v57 = vpop.f32.mrf.mxu0 }
 0x178   : > { %2941 = vrot.lane.b32.xlu0 %v15406_v28, %s15108_s14  ;;  %767 = vrot.lane.b32.xlu1 %v15414_v32, %s15109_s10  ;;  %v628_v59 = vadd.f32 %v627_v57, %v15321_v40  ;;  %v15478_v2 = vpack.c.bf16 %v626_v62, %v622_v60  ;;  %v15113_v40 = vmov 1983009808  }
 0x179   : > { %v943_v43 = vunpack.c.l.s4 %v15113_v40 }
 0x17a   : > { %v15472_v63 = vpack.c.bf16 %v628_v59, %v624_v58  ;;  %20057 = vst [vmem:[#allocation16_spill] sm:$0xff] %v15478_v2  ;;  %v15524_v58 = vrot.slane %v15317_v37, %v336_v33 }
 0x17b   : > { %v944_v7 = vunpack.c.0.s8 %v943_v43 }
 0x17c   : > { %783 = vrot.lane.b32.xlu0 %v15414_v32, %s15110_s12  ;;  %799 = vrot.lane.b32.xlu1 %v15414_v32, %s15108_s14  ;;  %20056 = vst [vmem:[#allocation15_spill] sm:$0xff] %v15472_v63  ;;  %20061 = vst [vmem:[#allocation20_spill] sm:$0xff] %v15524_v58  ;;  %v20070_v58 = vmov 0.0  }
 0x17d   : > { %v15499_v20 = vsub.s32 %v944_v7, %v15311_v34 }
 0x17f   : > { %20059 = vst [vmem:[#allocation18_spill] sm:$0xff] %v15499_v20 }
 0x180   : > { %2911 = vrot.lane.b32.xlu0 %v15428_v42, %s15109_s10  ;;  %2927 = vrot.lane.b32.xlu1 %v15428_v42, %s15110_s12 }
 0x184   : > { %2943 = vrot.lane.b32.xlu0 %v15428_v42, %s15108_s14  ;;  %769 = vrot.lane.b32.xlu1 %v15434_v45, %s15109_s10 }
 0x188   : > { %785 = vrot.lane.b32.xlu0 %v15434_v45, %s15110_s12  ;;  %801 = vrot.lane.b32.xlu1 %v15434_v45, %s15108_s14 }
 0x18c   : > { %2913 = vrot.lane.b32.xlu0 %v15448_v54, %s15109_s10  ;;  %2929 = vrot.lane.b32.xlu1 %v15448_v54, %s15110_s12 }
 0x190   : > { %2945 = vrot.lane.b32.xlu0 %v15448_v54, %s15108_s14  ;;  %771 = vrot.lane.b32.xlu1 %v15458_v56, %s15109_s10 }
 0x194   : > { %787 = vrot.lane.b32.xlu0 %v15458_v56, %s15110_s12  ;;  %803 = vrot.lane.b32.xlu1 %v15458_v56, %s15108_s14 }
 0x198   : > { %2915 = vrot.lane.b32.xlu0 %v15472_v63, %s15109_s10  ;;  %2931 = vrot.lane.b32.xlu1 %v15472_v63, %s15110_s12 }
 0x19c   : > { %2947 = vrot.lane.b32.xlu0 %v15472_v63, %s15108_s14  ;;  %773 = vrot.lane.b32.xlu1 %v15478_v2, %s15109_s10 }
 0x1a0   : > { %789 = vrot.lane.b32.xlu0 %v15478_v2, %s15110_s12  ;;  %805 = vrot.lane.b32.xlu1 %v15478_v2, %s15108_s14 }
 0x1b6   : > { %v2934_v5 = vpop.permute.xlu1 %2933  ;;  %v2902_v6 = vpop.permute.xlu0 %2901 }
 0x1b7   : > { %v2954_v9 = vshrl.u32 %v2902_v6, 16  ;;  %v2951_v18 = vpack.i.b16 %v2902_v6, %v15329_v48  ;;  %v2962_v25 = vshrl.u32 %v2934_v5, 16  ;;  %v2969_v48 = vshrl.u32 %v15350_v61, 16 }
 0x1b9   : > { %v2955_v23 = vpack.i.b16 %v2954_v9, %v2953_v13  ;;  %v3077_v35 = vcombine.high %v2951_v18, %v15495_v16  ;;  %v3084_v47 = vrot.slane %v2951_v18, %v15499_v20 }
 0x1ba   : > { %v2918_v11 = vpop.permute.xlu0 %2917  ;;  %v760_v15 = vpop.permute.xlu1 %759 }
 0x1bb   : > { %v2959_v14 = vpack.i.b16 %v2934_v5, %v2918_v11  ;;  %v2961_v19 = vshrl.u32 %v2918_v11, 16  ;;  %v809_v27 = vpack.i.b16 %v760_v15, %v15336_v52  ;;  %v812_v29 = vshrl.u32 %v760_v15, 16 }
 0x1bc   : > { %v3143_v41 = vcombine.high %v2955_v23, %v15495_v16  ;;  %v3091_v60 = vrot.slane %v3077_v35, %v15499_v20  ;;  %v3150_v3 = vrot.slane %v2955_v23, %v15499_v20 }
 0x1bd   : > { %v3092_v26 = vcombine.high %v2959_v14, %v15495_v16  ;;  %v2963_v36 = vpack.i.b16 %v2962_v25, %v2961_v19  ;;  %v3099_v38 = vrot.slane %v2959_v14, %v15499_v20  ;;  %v941_v34 = vcombine.high %v809_v27, %v15495_v16 }
 0x1be   : > { %v776_v50 = vpop.permute.xlu0 %775  ;;  %v792_v51 = vpop.permute.xlu1 %791  ;;  %v813_v55 = vpack.i.b16 %v812_v29, %v811_v24  ;;  %v15531_v4 = vrot.slane %v3143_v41, %v15499_v20  ;;  %v948_v37 = vrot.slane %v809_v27, %v15499_v20 }
 0x1bf   : > { %v3106_v49 = vrot.slane %v3092_v26, %v15499_v20  ;;  %v3107_v62 = vcombine.low %v3084_v47, %v3099_v38  ;;  %v3108_v40 = vcombine.high %v3084_v47, %v3099_v38  ;;  %v3158_v43 = vcombine.high %v2963_v36, %v15495_v16 }
 0x1c0   : > { %v819_v5 = vshrl.u32 %v776_v50, 16  ;;  %v817_v6 = vpack.i.b16 %v792_v51, %v776_v50  ;;  %v3165_v8 = vrot.slane %v2963_v36, %v15499_v20  ;;  %v955_v9 = vrot.slane %v941_v34, %v15499_v20 }
 0x1c1   : > { %v3123_v7 = vcombine.low %v3091_v60, %v3106_v49  ;;  %v1007_v11 = vcombine.high %v813_v55, %v15495_v16  ;;  %v820_v13 = vshrl.u32 %v792_v51, 16  ;;  %v15540_v18 = vrot.slane %v3107_v62, %v15502_v21 }
 0x1c2   : > { %v956_v14 = vcombine.high %v817_v6, %v15495_v16  ;;  %v963_v15 = vrot.slane %v817_v6, %v15499_v20  ;;  %v15543_v19 = vrot.slane %v3108_v40, %v15502_v21  ;;  %v3124_v23 = vcombine.high %v3091_v60, %v3106_v49  ;;  %v2904_v33 = vpop.permute.xlu0 %2903 }
 0x1c3   : > { %v3172_v24 = vrot.slane %v3158_v43, %v15499_v20  ;;  %v821_v25 = vpack.i.b16 %v820_v13, %v819_v5  ;;  %v15548_v35 = vrot.slane %v3123_v7, %v15502_v21  ;;  %v3173_v36 = vcombine.low %v3150_v3, %v3165_v8 }
 0x1c4   : > { %v970_v26 = vrot.slane %v956_v14, %v15499_v20  ;;  %v971_v27 = vcombine.low %v948_v37, %v963_v15  ;;  %v972_v29 = vcombine.high %v948_v37, %v963_v15  ;;  %v3174_v38 = vcombine.high %v3150_v3, %v3165_v8 }
 0x1c5   : > { %v1014_v41 = vrot.slane %v813_v55, %v15499_v20  ;;  %v15554_v51 = vrot.slane %v3124_v23, %v15502_v21  ;;  %v1022_v62 = vcombine.high %v821_v25, %v15495_v16  ;;  %v1029_v40 = vrot.slane %v821_v25, %v15499_v20  ;;  %v2920_v23 = vpop.permute.xlu1 %2919 }
 0x1c6   : > { %v979_v47 = vrot.slane %v971_v27, %v15502_v21  ;;  %v986_v34 = vrot.slane %v972_v29, %v15502_v21  ;;  %v987_v49 = vcombine.low %v955_v9, %v970_v26  ;;  %v988_v50 = vcombine.high %v955_v9, %v970_v26  ;;  %v2936_v25 = vpop.permute.xlu0 %2935 }
 0x1c7   : > { %v1021_v55 = vrot.slane %v1007_v11, %v15499_v20  ;;  %v1036_v6 = vrot.slane %v1022_v62, %v15499_v20  ;;  %v1037_v7 = vcombine.low %v1014_v41, %v1029_v40  ;;  %v1038_v8 = vcombine.high %v1014_v41, %v1029_v40 }
 0x1c8   : > { %v995_v3 = vrot.slane %v987_v49, %v15502_v21  ;;  %v1002_v5 = vrot.slane %v988_v50, %v15502_v21  ;;  %v2970_v37 = vshrl.u32 %v2904_v33, 16  ;;  %v1997_v9 = vcombine.low %v979_v47, %v986_v34 }
 0x1c9   : > { %v13610_v13 = vcombine.high %v979_v47, %v986_v34  ;;  %v1045_v26 = vrot.slane %v1037_v7, %v15502_v21  ;;  %v1052_v27 = vrot.slane %v1038_v8, %v15502_v21  ;;  %v1053_v11 = vcombine.low %v1021_v55, %v1036_v6 }
 0x1ca   : > { %v2013_v14 = vcombine.low %v995_v3, %v1002_v5  ;;  %v13611_v15 = vcombine.high %v995_v3, %v1002_v5  ;;  %v1054_v29 = vcombine.high %v1021_v55, %v1036_v6  ;;  %v15569_v49 = vrot.slane %v3173_v36, %v15502_v21 }
 0x1cb   : > { %v15572_v50 = vrot.slane %v3174_v38, %v15502_v21  ;;  %v3189_v41 = vcombine.low %v15531_v4, %v3172_v24  ;;  %v2967_v47 = vpack.i.b16 %v2904_v33, %v15350_v61  ;;  %v3190_v34 = vcombine.high %v15531_v4, %v3172_v24 }
 0x1cc   : > { %v1061_v62 = vrot.slane %v1053_v11, %v15502_v21  ;;  %v1068_v40 = vrot.slane %v1054_v29, %v15502_v21  ;;  %v2975_v3 = vpack.i.b16 %v2936_v25, %v2920_v23  ;;  %v2047_v5 = vcombine.low %v1045_v26, %v1052_v27 }
 0x1cd   : > { %v13612_v36 = vcombine.high %v1045_v26, %v1052_v27  ;;  %v2971_v38 = vpack.i.b16 %v2970_v37, %v2969_v48  ;;  %v2004_v6 = vrot.slane %v1997_v9, %v15499_v20  ;;  %v2012_v7 = vrot.slane %v13610_v13, %v15499_v20  ;;  %v762_v27 = vpop.permute.xlu1 %761 }
 0x1ce   : > { %v2020_v33 = vrot.slane %v2013_v14, %v15499_v20  ;;  %v2028_v4 = vrot.slane %v13611_v15, %v15499_v20  ;;  %v15588_v24 = vrot.slane %v3189_v41, %v15502_v21  ;;  %v3209_v11 = vcombine.high %v2967_v47, %v15495_v16 }
 0x1cf   : > { %v2978_v26 = vshrl.u32 %v2936_v25, 16  ;;  %v15594_v61 = vrot.slane %v3190_v34, %v15502_v21  ;;  %v2063_v48 = vcombine.low %v1061_v62, %v1068_v40  ;;  %v3224_v37 = vcombine.high %v2975_v3, %v15495_v16 }
 0x1d0   : > { %v3231_v9 = vrot.slane %v2975_v3, %v15499_v20  ;;  %v2054_v13 = vrot.slane %v2047_v5, %v15499_v20  ;;  %v2062_v14 = vrot.slane %v13612_v36, %v15499_v20  ;;  %v13613_v15 = vcombine.high %v1061_v62, %v1068_v40  ;;  %v778_v36 = vpop.permute.xlu0 %777 }
 0x1d1   : > { %v2977_v29 = vshrl.u32 %v2920_v23, 16  ;;  %v2029_v41 = vcombine.low %v2004_v6, %v2012_v7  ;;  %v2037_v59 = vcombine.low %v2020_v33, %v2028_v4  ;;  %v3216_v57 = vrot.slane %v2967_v47, %v15499_v20  ;;  %v794_v4 = vpop.permute.xlu1 %793 }
 0x1d2   : > { %v3275_v25 = vcombine.high %v2971_v38, %v15495_v16  ;;  %v3223_v3 = vrot.slane %v3209_v11, %v15499_v20  ;;  %v15608_v5 = vrot.slane %v2063_v48, %v15499_v20  ;;  %v3238_v23 = vrot.slane %v3224_v37, %v15499_v20 }
 0x1d3   : > { %v2979_v53 = vpack.i.b16 %v2978_v26, %v2977_v29  ;;  %v3239_v62 = vcombine.low %v3216_v57, %v3231_v9  ;;  %v3240_v40 = vcombine.high %v3216_v57, %v3231_v9  ;;  %v15612_v47 = vrot.slane %v13613_v15, %v15499_v20 }
 0x1d4   : > { %v2079_v6 = vcombine.low %v2054_v13, %v2062_v14  ;;  %v831_v7 = vpack.i.b16 %v762_v27, %v15356_v1  ;;  %v834_v33 = vshrl.u32 %v762_v27, 16  ;;  %v15616_v44 = vrot.slane %v2029_v41, %v15502_v21  ;;  %v2906_v52 = vpop.permute.xlu0 %2905 }
 0x1d5   : > { %v15619_v11 = vrot.slane %v2037_v59, %v15502_v21  ;;  %v15622_v26 = vrot.slane %v2971_v38, %v15499_v20  ;;  %v15625_v57 = vrot.slane %v3275_v25, %v15499_v20  ;;  %v3290_v48 = vcombine.high %v2979_v53, %v15495_v16  ;;  %v2922_v60 = vpop.permute.xlu1 %2921 }
 0x1d6   : > { %v835_v37 = vpack.i.b16 %v834_v33, %v833_v0  ;;  %v1073_v27 = vcombine.high %v831_v7, %v15495_v16  ;;  %v841_v9 = vshrl.u32 %v778_v36, 16  ;;  %v15632_v13 = vrot.slane %v3239_v62, %v15502_v21 }
 0x1d7   : > { %v15635_v59 = vrot.slane %v3240_v40, %v15502_v21  ;;  %v839_v14 = vpack.i.b16 %v794_v4, %v778_v36  ;;  %v842_v38 = vshrl.u32 %v794_v4, 16  ;;  %v15638_v15 = vrot.slane %v2079_v6, %v15502_v21 }
 0x1d8   : > { %v3255_v41 = vcombine.low %v3223_v3, %v3238_v23  ;;  %v3256_v1 = vcombine.high %v3223_v3, %v3238_v23  ;;  %v1080_v0 = vrot.slane %v831_v7, %v15499_v20  ;;  %v3297_v40 = vrot.slane %v2979_v53, %v15499_v20 }
 0x1d9   : > { %v843_v25 = vpack.i.b16 %v842_v38, %v841_v9  ;;  %v1088_v33 = vcombine.high %v839_v14, %v15495_v16  ;;  %v1095_v62 = vrot.slane %v839_v14, %v15499_v20  ;;  %v15647_v36 = vrot.slane %v3290_v48, %v15499_v20 }
 0x1da   : > { %v1087_v6 = vrot.slane %v1073_v27, %v15499_v20  ;;  %v1139_v4 = vcombine.high %v835_v37, %v15495_v16  ;;  %v15654_v9 = vrot.slane %v3255_v41, %v15502_v21  ;;  %v15657_v14 = vrot.slane %v3256_v1, %v15502_v21 }
 0x1db   : > { %v1102_v29 = vrot.slane %v1088_v33, %v15499_v20  ;;  %v1103_v3 = vcombine.low %v1080_v0, %v1095_v62  ;;  %v1104_v23 = vcombine.high %v1080_v0, %v1095_v62  ;;  %v1154_v7 = vcombine.high %v843_v25, %v15495_v16 }
 0x1dc   : > { %v1146_v53 = vrot.slane %v835_v37, %v15499_v20  ;;  %v1161_v48 = vrot.slane %v843_v25, %v15499_v20  ;;  %v1153_v0 = vrot.slane %v1139_v4, %v15499_v20  ;;  %v2986_v25 = vshrl.u32 %v2906_v52, 16 }
 0x1dd   : > { %v1111_v27 = vrot.slane %v1103_v3, %v15502_v21  ;;  %v1118_v38 = vrot.slane %v1104_v23, %v15502_v21  ;;  %v1119_v31 = vcombine.low %v1087_v6, %v1102_v29  ;;  %v1120_v33 = vcombine.high %v1087_v6, %v1102_v29  ;;  %v2938_v6 = vpop.permute.xlu0 %2937 }
 0x1de   : > { %v1168_v62 = vrot.slane %v1154_v7, %v15499_v20  ;;  %v1169_v46 = vcombine.low %v1146_v53, %v1161_v48  ;;  %v1170_v41 = vcombine.high %v1146_v53, %v1161_v48 }
 0x1df   : > { %v1127_v34 = vrot.slane %v1119_v31, %v15502_v21  ;;  %v1134_v37 = vrot.slane %v1120_v33, %v15502_v21  ;;  %v2097_v4 = vcombine.low %v1111_v27, %v1118_v38  ;;  %v13614_v55 = vcombine.high %v1111_v27, %v1118_v38 }
 0x1e0   : > { %v1177_v3 = vrot.slane %v1169_v46, %v15502_v21  ;;  %v1184_v23 = vrot.slane %v1170_v41, %v15502_v21  ;;  %v1185_v8 = vcombine.low %v1153_v0, %v1168_v62  ;;  %v1186_v29 = vcombine.high %v1153_v0, %v1168_v62 }
 0x1e1   : > { %v2113_v7 = vcombine.low %v1127_v34, %v1134_v37  ;;  %v13615_v43 = vcombine.high %v1127_v34, %v1134_v37  ;;  %v3305_v33 = vcombine.low %v15622_v26, %v3297_v40  ;;  %v3306_v46 = vcombine.high %v15622_v26, %v3297_v40 }
 0x1e2   : > { %v1193_v53 = vrot.slane %v1185_v8, %v15502_v21  ;;  %v1200_v48 = vrot.slane %v1186_v29, %v15502_v21  ;;  %v2147_v1 = vcombine.low %v1177_v3, %v1184_v23  ;;  %v13616_v31 = vcombine.high %v1177_v3, %v1184_v23 }
 0x1e3   : > { %v2991_v0 = vpack.i.b16 %v2938_v6, %v2922_v60  ;;  %v3321_v27 = vcombine.low %v15625_v57, %v15647_v36  ;;  %v3322_v34 = vcombine.high %v15625_v57, %v15647_v36  ;;  %v2983_v8 = vpack.i.b16 %v2906_v52, %v15370_v10 }
 0x1e4   : > { %v2987_v38 = vpack.i.b16 %v2986_v25, %v2985_v39  ;;  %v2104_v62 = vrot.slane %v2097_v4, %v15499_v20  ;;  %v2112_v37 = vrot.slane %v13614_v55, %v15499_v20  ;;  %v2120_v26 = vrot.slane %v2113_v7, %v15499_v20 }
 0x1e5   : > { %v2128_v40 = vrot.slane %v13615_v43, %v15499_v20  ;;  %v2154_v3 = vrot.slane %v2147_v1, %v15499_v20  ;;  %v2162_v23 = vrot.slane %v13616_v31, %v15499_v20  ;;  %v2163_v29 = vcombine.low %v1193_v53, %v1200_v48 }
 0x1e6   : > { %v13617_v41 = vcombine.high %v1193_v53, %v1200_v48  ;;  %v2994_v39 = vshrl.u32 %v2938_v6, 16  ;;  %v3356_v57 = vcombine.high %v2991_v0, %v15495_v16  ;;  %v15696_v55 = vrot.slane %v3305_v33, %v15502_v21  ;;  %v764_v6 = vpop.permute.xlu1 %763 }
 0x1e7   : > { %v15699_v43 = vrot.slane %v3306_v46, %v15502_v21  ;;  %v15702_v36 = vrot.slane %v3321_v27, %v15502_v21  ;;  %v3341_v1 = vcombine.high %v2983_v8, %v15495_v16  ;;  %v2129_v25 = vcombine.low %v2104_v62, %v2112_v37 }
 0x1e8   : > { %v3407_v4 = vcombine.high %v2987_v38, %v15495_v16  ;;  %v2993_v7 = vshrl.u32 %v2922_v60, 16  ;;  %v3363_v53 = vrot.slane %v2991_v0, %v15499_v20  ;;  %v2137_v48 = vcombine.low %v2120_v26, %v2128_v40 }
 0x1e9   : > { %v15708_v31 = vrot.slane %v2163_v29, %v15499_v20  ;;  %v15711_v33 = vrot.slane %v13617_v41, %v15499_v20  ;;  %v2179_v46 = vcombine.low %v2154_v3, %v2162_v23  ;;  %v15714_v27 = vrot.slane %v3322_v34, %v15502_v21 }
 0x1ea   : > { %v3348_v10 = vrot.slane %v2983_v8, %v15499_v20  ;;  %v2995_v62 = vpack.i.b16 %v2994_v39, %v2993_v7  ;;  %v15718_v37 = vrot.slane %v3356_v57, %v15499_v20  ;;  %v847_v26 = vpack.i.b16 %v764_v6, %v15376_v12  ;;  %v796_v39 = vpop.permute.xlu1 %795 }
 0x1eb   : > { %v850_v41 = vshrl.u32 %v764_v6, 16  ;;  %v15726_v40 = vrot.slane %v2129_v25, %v15502_v21  ;;  %v15729_v34 = vrot.slane %v3341_v1, %v15499_v20  ;;  %v15732_v8 = vrot.slane %v2987_v38, %v15499_v20 }
 0x1ec   : > { %v3371_v3 = vcombine.low %v3348_v10, %v3363_v53  ;;  %v15735_v23 = vrot.slane %v2137_v48, %v15502_v21  ;;  %v15738_v29 = vrot.slane %v2179_v46, %v15502_v21  ;;  %v15743_v57 = vrot.slane %v3407_v4, %v15499_v20 }
 0x1ed   : > { %v3372_v25 = vcombine.high %v3348_v10, %v3363_v53  ;;  %v3387_v1 = vcombine.low %v15729_v34, %v15718_v37  ;;  %v3422_v38 = vcombine.high %v2995_v62, %v15495_v16  ;;  %v3429_v7 = vrot.slane %v2995_v62, %v15499_v20  ;;  %v780_v53 = vpop.permute.xlu0 %779 }
 0x1ee   : > { %v3388_v6 = vcombine.high %v15729_v34, %v15718_v37  ;;  %v851_v48 = vpack.i.b16 %v850_v41, %v849_v30  ;;  %v1205_v46 = vcombine.high %v847_v26, %v15495_v16  ;;  %v20062_v4 = vcombine.low %v15540_v18, %v15543_v19 }
 0x1ef   : > { %v15759_v0 = vrot.slane %v3371_v3, %v15502_v21  ;;  %v20063_v62 = vcombine.high %v15540_v18, %v15543_v19  ;;  %v20064_v12 = vcombine.low %v15548_v35, %v15554_v51  ;;  %v20065_v41 = vcombine.high %v15548_v35, %v15554_v51 }
 0x1f0   : > { %v4140_v10 = vrot.slane %v20062_v4, %v15499_v20  ;;  %v20066_v3 = vcombine.low %v15569_v49, %v15572_v50  ;;  %v20067_v18 = vcombine.high %v15569_v49, %v15572_v50  ;;  %v857_v35 = vshrl.u32 %v780_v53, 16 }
 0x1f1   : > { %v4148_v37 = vrot.slane %v20063_v62, %v15499_v20  ;;  %v4156_v30 = vrot.slane %v20064_v12, %v15499_v20  ;;  %v4164_v34 = vrot.slane %v20065_v41, %v15499_v20  ;;  %v4199_v62 = vcombine.low %v15588_v24, %v15594_v61 }
 0x1f2   : > { %v4190_v4 = vrot.slane %v20066_v3, %v15499_v20  ;;  %v4198_v19 = vrot.slane %v20067_v18, %v15499_v20  ;;  %v13645_v12 = vcombine.high %v15588_v24, %v15594_v61  ;;  %v855_v51 = vpack.i.b16 %v796_v39, %v780_v53 }
 0x1f3   : > { %v4165_v60 = vcombine.low %v4140_v10, %v4148_v37  ;;  %v4173_v52 = vcombine.low %v4156_v30, %v4164_v34  ;;  %v4206_v41 = vrot.slane %v4199_v62, %v15499_v20  ;;  %v858_v63 = vshrl.u32 %v796_v39, 16 }
 0x1f4   : > { %v4214_v3 = vrot.slane %v13645_v12, %v15499_v20  ;;  %v4215_v2 = vcombine.low %v4190_v4, %v4198_v19  ;;  %v15788_v49 = vrot.slane %v3372_v25, %v15502_v21  ;;  %v1212_v50 = vrot.slane %v847_v26, %v15499_v20 }
 0x1f5   : > { %v1220_v18 = vcombine.high %v855_v51, %v15495_v16  ;;  %v1227_v24 = vrot.slane %v855_v51, %v15499_v20  ;;  %v3436_v61 = vrot.slane %v3422_v38, %v15499_v20  ;;  %v15795_v10 = vrot.slane %v4173_v52, %v15502_v21 }
 0x1f6   : > { %v4223_v53 = vcombine.low %v4206_v41, %v4214_v3  ;;  %v859_v37 = vpack.i.b16 %v858_v63, %v857_v35  ;;  %v15798_v30 = vrot.slane %v4165_v60, %v15502_v21  ;;  %v15802_v26 = vrot.slane %v4215_v2, %v15502_v21 }
 0x1f7   : > { %v1234_v39 = vrot.slane %v1220_v18, %v15499_v20  ;;  %v1235_v25 = vcombine.low %v1212_v50, %v1227_v24  ;;  %v1236_v34 = vcombine.high %v1212_v50, %v1227_v24  ;;  %v15810_v19 = vrot.slane %v3387_v1, %v15502_v21  ;;  %v2908_v24 = vpop.permute.xlu0 %2907 }
 0x1f8   : > { %v15805_v4 = vrot.slane %v4223_v53, %v15502_v21  ;;  %v1286_v38 = vcombine.high %v859_v37, %v15495_v16  ;;  %v1293_v52 = vrot.slane %v859_v37, %v15499_v20  ;;  %v3437_v63 = vcombine.low %v15732_v8, %v3429_v7 }
 0x1f9   : > { %v3438_v60 = vcombine.high %v15732_v8, %v3429_v7  ;;  %v1219_v62 = vrot.slane %v1205_v46, %v15499_v20  ;;  %v1271_v12 = vcombine.high %v851_v48, %v15495_v16  ;;  %v1278_v2 = vrot.slane %v851_v48, %v15499_v20 }
 0x1fa   : > { %v4181_v35 = vcombine.low %v15798_v30, %v15795_v10  ;;  %v4231_v51 = vcombine.low %v15802_v26, %v15805_v4  ;;  %v1243_v41 = vrot.slane %v1235_v25, %v15502_v21  ;;  %v1250_v1 = vrot.slane %v1236_v34, %v15502_v21 }
 0x1fb   : > { %v1251_v3 = vcombine.low %v1219_v62, %v1234_v39  ;;  %v1252_v50 = vcombine.high %v1219_v62, %v1234_v39  ;;  %v1300_v8 = vrot.slane %v1286_v38, %v15499_v20  ;;  %v1301_v7 = vcombine.low %v1278_v2, %v1293_v52 }
 0x1fc   : > { %v4935_v18 = vpack.i.b16 %v4231_v51, %v4181_v35  ;;  %v1302_v46 = vcombine.high %v1278_v2, %v1293_v52  ;;  %v15825_v48 = vrot.slane %v3388_v6, %v15502_v21  ;;  %v15828_v53 = vrot.slane %v3437_v63, %v15502_v21 }
 0x1fd   : > { %v3453_v37 = vcombine.low %v15743_v57, %v3436_v61  ;;  %v3454_v25 = vcombine.high %v15743_v57, %v3436_v61  ;;  %v15833_v34 = vrot.slane %v3438_v60, %v15502_v21  ;;  %v1285_v38 = vrot.slane %v1271_v12, %v15499_v20  ;;  %v2924_v57 = vpop.permute.xlu1 %2923 }
 0x1fe   : > { %20068 = vst [vmem:[#allocation21_spill] sm:$0xff] %v15828_v53  ;;  %v7202_v52 = vsel %vm7197_vm1, %v4935_v18, 0  ;;  %v1259_v63 = vrot.slane %v1251_v3, %v15502_v21  ;;  %v1266_v62 = vrot.slane %v1252_v50, %v15502_v21  ;;  %v2197_v2 = vcombine.low %v1243_v41, %v1250_v1 }
 0x1ff   : > { %20069 = vst [vmem:[#allocation22_spill] sm:$0xff] %v15833_v34  ;;  %14014 = vmatpush3.bf16.xpose.msra.mxu1 %v7202_v52  ;;  %v1309_v61 = vrot.slane %v1301_v7, %v15502_v21  ;;  %v1316_v60 = vrot.slane %v1302_v46, %v15502_v21  ;;  %v1317_v56 = vcombine.low %v1285_v38, %v1300_v8  ;;  %v2940_v46 = vpop.permute.xlu0 %2939  ;;  %v4937_v42 = vshrl.u32 %v4231_v51, 16 }
 0x200   : > { %v13618_v39 = vcombine.high %v1243_v41, %v1250_v1  ;;  %14019 = vmatprep.subr.bf16.mxu1 %v20070_v58  ;;  %v15847_v12 = vrot.slane %v3453_v37, %v15502_v21  ;;  %v1318_v50 = vcombine.high %v1285_v38, %v1300_v8  ;;  %v15854_v52 = vrot.slane %v3454_v25, %v15502_v21 }
 0x201   : > { %v3002_v1 = vshrl.u32 %v2908_v24, 16  ;;  %v15861_v37 = vrot.slane %v2197_v2, %v15499_v20  ;;  %v2213_v6 = vcombine.low %v1259_v63, %v1266_v62  ;;  %v13619_v18 = vcombine.high %v1259_v63, %v1266_v62  ;;  %v766_v63 = vpop.permute.xlu1 %765 }
 0x202   : > { %20071 = vst [vmem:[#allocation23_spill] sm:$0xff] %v15847_v12  ;;  %20072 = vst [vmem:[#allocation24_spill] sm:$0xff] %v15854_v52  ;;  %v2999_v45 = vpack.i.b16 %v2908_v24, %v15384_v17  ;;  %v1325_v8 = vrot.slane %v1317_v56, %v15502_v21  ;;  %v15866_v25 = vrot.slane %v13618_v39, %v15499_v20  ;;  %v4936_v2 = vshrl.u32 %v4181_v35, 16 }
 0x203   : > { %v2247_v38 = vcombine.low %v1309_v61, %v1316_v60  ;;  %v20074_v7 = vcombine.low %v15608_v5, %v15612_v47  ;;  %v1332_v3 = vrot.slane %v1318_v50, %v15502_v21  ;;  %v3007_v12 = vpack.i.b16 %v2940_v46, %v2924_v57 }
 0x204   : > { %20073 = vst [vmem:[#allocation25_spill] sm:$0xff] %v15866_v25  ;;  %v13620_v62 = vcombine.high %v1309_v61, %v1316_v60  ;;  %v20075_v24 = vshrl.u32 %v15384_v17, 16  ;;  %v15879_v39 = vcombine.low %v15616_v44, %v15619_v11  ;;  %v15886_v5 = vrot.slane %v2213_v6, %v15499_v20 }
 0x205   : > { %v15872_v41 = vrot.slane %v20074_v7, %v15502_v21  ;;  %v15889_v47 = vrot.slane %v13619_v18, %v15499_v20  ;;  %v3473_v35 = vcombine.high %v2999_v45, %v15495_v16  ;;  %v4938_v51 = vpack.i.b16 %v4937_v42, %v4936_v2  ;;  %v798_v2 = vpop.permute.xlu1 %797 }
 0x206   : > { %v3003_v56 = vpack.i.b16 %v3002_v1, %v20075_v24  ;;  %20076 = vst [vmem:[#allocation26_spill] sm:$0xff] %v15886_v5  ;;  %v3010_v61 = vshrl.u32 %v2940_v46, 16  ;;  %v863_v60 = vpack.i.b16 %v766_v63, %v15396_v22  ;;  %v866_v50 = vshrl.u32 %v766_v63, 16 }
 0x207   : > { %v15883_v52 = vcombine.low %v15638_v15, %v15872_v41  ;;  %20077 = vst [vmem:[#allocation27_spill] sm:$0xff] %v15889_v47  ;;  %v15896_v7 = vrot.slane %v2247_v38, %v15499_v20  ;;  %v2263_v1 = vcombine.low %v1325_v8, %v1332_v3  ;;  %v13621_v24 = vcombine.high %v1325_v8, %v1332_v3  ;;  %v782_v38 = vpop.permute.xlu0 %781 }
 0x208   : > { %v3495_v6 = vrot.slane %v3007_v12, %v15499_v20  ;;  %v15900_v18 = vrot.slane %v13620_v62, %v15499_v20  ;;  %v3539_v34 = vcombine.high %v3003_v56, %v15495_v16  ;;  %v3009_v42 = vshrl.u32 %v2924_v57, 16 }
 0x209   : > { %v2799_v17 = vpack.i.b16 %v15883_v52, %v15879_v39  ;;  %20078 = vst [vmem:[#allocation28_spill] sm:$0xff] %v15896_v7  ;;  %v7249_v46 = vsel %vm7197_vm1, %v4938_v51, 0  ;;  %v3480_v3 = vrot.slane %v2999_v45, %v15499_v20  ;;  %v3488_v8 = vcombine.high %v3007_v12, %v15495_v16 }
 0x20a   : > { %20079 = vst [vmem:[#allocation29_spill] sm:$0xff] %v15900_v18  ;;  %v3487_v63 = vrot.slane %v3473_v35, %v15499_v20  ;;  %v3011_v62 = vpack.i.b16 %v3010_v61, %v3009_v42  ;;  %v20080_v57 = vshrl.u32 %v15396_v22, 16  ;;  %v1337_v51 = vcombine.high %v863_v60, %v15495_v16 }
 0x20b   : > { %14016 = vmatmul.mubr.msk.bf16.vlgmr.msra.gmra.mxu1 %vm7197_vm1, %v2799_v17  ;;  %v15920_v17 = vrot.slane %v2263_v1, %v15499_v20  ;;  %v15923_v45 = vrot.slane %v13621_v24, %v15499_v20  ;;  %v15926_v12 = vrot.slane %v3003_v56, %v15499_v20  ;;  %v3503_v35 = vcombine.low %v3480_v3, %v3495_v6 }
 0x20c   : > { %14020 = vmatpush3.bf16.xpose.msra.mxu1 %v7249_v46  ;;  %v15914_v53 = vpack.i.b16 %v866_v50, %v20080_v57  ;;  %14021 = vmatprep.mubr.msk.bf16.mxu1 %vm15112_vm0, %v20070_v58  ;;  %v15932_v61 = vrot.slane %v3539_v34, %v15499_v20  ;;  %v20083_v50 = vcombine.low %v15632_v13, %v15635_v59  ;;  %v873_v7 = vshrl.u32 %v782_v38, 16 }
 0x20d   : > { %20081 = vst [vmem:[#allocation30_spill] sm:$0xff] %v15920_v17  ;;  %20082 = vst [vmem:[#allocation31_spill] sm:$0xff] %v15923_v45  ;;  %14025 = vmatprep.subr.bf16.mxu1 %v20070_v58  ;;  %v20084_v24 = vcombine.high %v15632_v13, %v15635_v59  ;;  %v3502_v42 = vrot.slane %v3488_v8, %v15499_v20  ;;  %v3504_v46 = vcombine.high %v3480_v3, %v3495_v6 }
 0x20e   : > { %v4240_v1 = vrot.slane %v20083_v50, %v15499_v20  ;;  %v15944_v57 = vrot.slane %v863_v60, %v15499_v20  ;;  %v20085_v34 = vcombine.low %v15654_v9, %v15657_v14  ;;  %v3554_v50 = vcombine.high %v3011_v62, %v15495_v16 }
 0x20f   : > { %v4248_v56 = vrot.slane %v20084_v24, %v15499_v20  ;;  %v3561_v18 = vrot.slane %v3011_v62, %v15499_v20  ;;  %v15953_v13 = vrot.slane %v1337_v51, %v15499_v20  ;;  %v1403_v59 = vcombine.high %v15914_v53, %v15495_v16 }
 0x210   : > { %v4256_v22 = vrot.slane %v20085_v34, %v15499_v20  ;;  %v15958_v60 = vrot.slane %v3503_v35, %v15502_v21  ;;  %v20086_v6 = vcombine.high %v15654_v9, %v15657_v14  ;;  %v20087_v8 = vcombine.low %v15696_v55, %v15699_v43 }
 0x211   : > { %v20088_v62 = vcombine.high %v15696_v55, %v15699_v43  ;;  %v4299_v34 = vcombine.low %v15702_v36, %v15714_v27  ;;  %v13649_v35 = vcombine.high %v15702_v36, %v15714_v27  ;;  %v871_v17 = vpack.i.b16 %v798_v2, %v782_v38 }
 0x212   : > { %v4264_v3 = vrot.slane %v20086_v6, %v15499_v20  ;;  %v4290_v24 = vrot.slane %v20087_v8, %v15499_v20  ;;  %v15977_v9 = vrot.slane %v3504_v46, %v15502_v21  ;;  %v4265_v14 = vcombine.low %v4240_v1, %v4248_v56 }
 0x213   : > { %v4298_v51 = vrot.slane %v20088_v62, %v15499_v20  ;;  %v874_v45 = vshrl.u32 %v798_v2, 16  ;;  %v4306_v8 = vrot.slane %v4299_v34, %v15499_v20  ;;  %v4314_v47 = vrot.slane %v13649_v35, %v15499_v20 }
 0x214   : > { %v4273_v6 = vcombine.low %v4256_v22, %v4264_v3  ;;  %v1352_v43 = vcombine.high %v871_v17, %v15495_v16  ;;  %v3519_v62 = vcombine.low %v3487_v63, %v3502_v42  ;;  %v3520_v5 = vcombine.high %v3487_v63, %v3502_v42 }
 0x215   : > { %v4315_v55 = vcombine.low %v4290_v24, %v4298_v51  ;;  %v875_v25 = vpack.i.b16 %v874_v45, %v873_v7  ;;  %v1359_v36 = vrot.slane %v871_v17, %v15499_v20  ;;  %v3568_v27 = vrot.slane %v3554_v50, %v15499_v20 }
 0x216   : > { %v3569_v38 = vcombine.low %v15926_v12, %v3561_v18  ;;  %v15986_v1 = vrot.slane %v4273_v6, %v15502_v21  ;;  %v4323_v2 = vcombine.low %v4306_v8, %v4314_v47  ;;  %v3570_v22 = vcombine.high %v15926_v12, %v3561_v18 }
 0x217   : > { %v1410_v56 = vrot.slane %v15914_v53, %v15499_v20  ;;  %v1366_v46 = vrot.slane %v1352_v43, %v15499_v20  ;;  %v1418_v63 = vcombine.high %v875_v25, %v15495_v16  ;;  %v4272_v7 = vrot.slane %v4265_v14, %v15502_v21 }
 0x218   : > { %v4322_v17 = vrot.slane %v4315_v55, %v15502_v21  ;;  %v4330_v45 = vrot.slane %v4323_v2, %v15502_v21  ;;  %v1425_v42 = vrot.slane %v875_v25, %v15499_v20  ;;  %v15998_v50 = vrot.slane %v3519_v62, %v15502_v21  ;;  %v2910_v2 = vpop.permute.xlu0 %2909 }
 0x219   : > { %v16001_v47 = vrot.slane %v3520_v5, %v15502_v21  ;;  %v1367_v18 = vcombine.low %v15944_v57, %v1359_v36  ;;  %v16007_v12 = vcombine.low %v4272_v7, %v15986_v1  ;;  %v1368_v24 = vcombine.high %v15944_v57, %v1359_v36 }
 0x21a   : > { %v16009_v3 = vcombine.low %v4322_v17, %v4330_v45  ;;  %v1432_v25 = vrot.slane %v1418_v63, %v15499_v20  ;;  %v1383_v5 = vcombine.low %v15953_v13, %v1366_v46  ;;  %v1384_v34 = vcombine.high %v15953_v13, %v1366_v46 }
 0x21b   : > { %v2801_v35 = vshrl.u32 %v15883_v52, 16  ;;  %v1417_v14 = vrot.slane %v1403_v59, %v15499_v20  ;;  %v1433_v8 = vcombine.low %v1410_v56, %v1425_v42  ;;  %v1434_v55 = vcombine.high %v1410_v56, %v1425_v42 }
 0x21c   : > { %v4947_v6 = vpack.i.b16 %v16009_v3, %v16007_v12  ;;  %v16022_v57 = vrot.slane %v3569_v38, %v15502_v21  ;;  %v3585_v43 = vcombine.low %v15932_v61, %v3568_v27  ;;  %v3586_v62 = vcombine.high %v15932_v61, %v3568_v27 }
 0x21d   : > { %v2800_v36 = vshrl.u32 %v15879_v39, 16  ;;  %v1375_v52 = vrot.slane %v1367_v18, %v15502_v21  ;;  %v1382_v59 = vrot.slane %v1368_v24, %v15502_v21  ;;  %v1449_v46 = vcombine.low %v1417_v14, %v1432_v25  ;;  %v2926_v24 = vpop.permute.xlu1 %2925 }
 0x21e   : > { %v7390_v13 = vsel %vm7197_vm1, %v4947_v6, 0  ;;  %v16031_v63 = vrot.slane %v3570_v22, %v15502_v21  ;;  %v1391_v38 = vrot.slane %v1383_v5, %v15502_v21  ;;  %v1398_v56 = vrot.slane %v1384_v34, %v15502_v21 }
 0x21f   : > { %14038 = vmatpush3.bf16.xpose.msra.mxu0 %v7390_v13  ;;  %v2802_v42 = vpack.i.b16 %v2801_v35, %v2800_v36  ;;  %v1441_v27 = vrot.slane %v1433_v8, %v15502_v21  ;;  %v1448_v18 = vrot.slane %v1434_v55, %v15502_v21  ;;  %v16043_v22 = vrot.slane %v3585_v43, %v15502_v21  ;;  %v2942_v43 = vpop.permute.xlu0 %2941 }
 0x220   : > { %14049 = vmatprep.subr.bf16.mxu0 %v20070_v58  ;;  %v1450_v5 = vcombine.high %v1417_v14, %v1432_v25  ;;  %v16048_v34 = vcombine.high %v15798_v30, %v15795_v10  ;;  %v16052_v35 = vcombine.high %v15802_v26, %v15805_v4  ;;  %v16055_v6 = vrot.slane %v3586_v62, %v15502_v21 }
 0x221   : > { %14022 = vmatmul.mubr.msk.bf16.vlgmr.msra.gmra.mxu1 %vm7197_vm1, %v2802_v42  ;;  %v1457_v8 = vrot.slane %v1449_v46, %v15502_v21  ;;  %v2297_v55 = vcombine.low %v1375_v52, %v1382_v59  ;;  %v13622_v36 = vcombine.high %v1375_v52, %v1382_v59  ;;  %v2313_v25 = vcombine.low %v1391_v38, %v1398_v56 }
 0x222   : > { %14027 = vmatprep.mubr.msk.bf16.mxu1 %vm15112_vm0, %v20070_v58  ;;  %v13623_v14 = vcombine.high %v1391_v38, %v1398_v56  ;;  %v4941_v10 = vpack.i.b16 %v16052_v35, %v16048_v34  ;;  %v3018_v30 = vshrl.u32 %v2910_v2, 16  ;;  %v2347_v13 = vcombine.low %v1441_v27, %v1448_v18 }
 0x223   : > { %v20089_v26 = vcombine.low %v15708_v31, %v15711_v33  ;;  %v16069_v62 = vcombine.high %v4272_v7, %v15986_v1  ;;  %v16071_v52 = vcombine.high %v4322_v17, %v4330_v45  ;;  %v1464_v59 = vrot.slane %v1450_v5, %v15502_v21  ;;  %v768_v7 = vpop.permute.xlu1 %767 }
 0x224   : > { %v13624_v46 = vcombine.high %v1441_v27, %v1448_v18  ;;  %v7296_v38 = vsel %vm7197_vm1, %v4941_v10, 0  ;;  %v3015_v56 = vpack.i.b16 %v2910_v2, %v15406_v28  ;;  %v16078_v42 = vcombine.low %v15726_v40, %v15735_v23 }
 0x225   : > { %v16066_v4 = vrot.slane %v20089_v26, %v15502_v21  ;;  %14026 = vmatpush3.bf16.xpose.msra.mxu1 %v7296_v38  ;;  %v4953_v33 = vpack.i.b16 %v16071_v52, %v16069_v62  ;;  %v3023_v1 = vpack.i.b16 %v2942_v43, %v2926_v24  ;;  %v16087_v17 = vrot.slane %v2297_v55, %v15499_v20 }
 0x226   : > { %v16090_v45 = vrot.slane %v13622_v36, %v15499_v20  ;;  %v16093_v2 = vrot.slane %v2313_v25, %v15499_v20  ;;  %v20092_v27 = vshrl.u32 %v15406_v28, 16  ;;  %14031 = vmatprep.subr.bf16.mxu1 %v20070_v58  ;;  %v16099_v5 = vrot.slane %v13623_v14, %v15499_v20 }
 0x227   : > { %v16082_v31 = vcombine.low %v15738_v29, %v16066_v4  ;;  %20090 = vst [vmem:[#allocation32_spill] sm:$0xff] %v16087_v17  ;;  %v3025_v10 = vshrl.u32 %v2926_v24, 16  ;;  %v3026_v55 = vshrl.u32 %v2942_v43, 16  ;;  %v16104_v38 = vrot.slane %v2347_v13, %v15499_v20  ;;  %v800_v43 = vpop.permute.xlu1 %799 }
 0x228   : > { %20091 = vst [vmem:[#allocation33_spill] sm:$0xff] %v16090_v45  ;;  %v3019_v18 = vpack.i.b16 %v3018_v30, %v20092_v27  ;;  %v2363_v36 = vcombine.low %v1457_v8, %v1464_v59  ;;  %v3620_v25 = vcombine.high %v3023_v1, %v15495_v16  ;;  %v879_v61 = vpack.i.b16 %v768_v7, %v15414_v32 }
 0x229   : > { %v2811_v26 = vpack.i.b16 %v16082_v31, %v16078_v42  ;;  %v16109_v28 = vrot.slane %v13624_v46, %v15499_v20  ;;  %v13625_v30 = vcombine.high %v1457_v8, %v1464_v59  ;;  %v3605_v14 = vcombine.high %v3015_v56, %v15495_v16  ;;  %v784_v8 = vpop.permute.xlu0 %783 }
 0x22a   : > { %v7484_v24 = vsel %vm7197_vm1, %v4953_v33, 0  ;;  %v3671_v27 = vcombine.high %v3019_v18, %v15495_v16  ;;  %v882_v51 = vshrl.u32 %v768_v7, 16  ;;  %v3027_v59 = vpack.i.b16 %v3026_v55, %v3025_v10 }
 0x22b   : > { %20093 = vst [vmem:[#allocation34_spill] sm:$0xff] %v16109_v28  ;;  %14040 = vmatmul.mubr.msk.bf16.vlgmr.msra.gmra.mxu0 %vm7197_vm1, %v2811_v26  ;;  %v3627_v26 = vrot.slane %v3023_v1, %v15499_v20  ;;  %v16127_v33 = vrot.slane %v2363_v36, %v15499_v20  ;;  %v3634_v13 = vrot.slane %v3620_v25, %v15499_v20 }
 0x22c   : > { %14050 = vmatpush3.bf16.xpose.msra.mxu0 %v7484_v24  ;;  %14051 = vmatprep.mubr.msk.bf16.mxu0 %vm15112_vm0, %v20070_v58  ;;  %v1469_v24 = vcombine.high %v879_v61, %v15495_v16  ;;  %v16133_v7 = vcombine.high %v15638_v15, %v15872_v41  ;;  %v16137_v10 = vrot.slane %v13625_v30, %v15499_v20  ;;  %v20094_v15 = vshrl.u32 %v15414_v32, 16 }
 0x22d   : > { %14061 = vmatprep.subr.bf16.mxu0 %v20070_v58  ;;  %v3612_v55 = vrot.slane %v3015_v56, %v15499_v20  ;;  %v3619_v36 = vrot.slane %v3605_v14, %v15499_v20  ;;  %v3678_v25 = vrot.slane %v3019_v18, %v15499_v20  ;;  %v16145_v46 = vrot.slane %v3671_v27, %v15499_v20 }
 0x22e   : > { %v16149_v41 = vpack.i.b16 %v882_v51, %v20094_v15  ;;  %v16153_v30 = vcombine.high %v15616_v44, %v15619_v11  ;;  %v3686_v56 = vcombine.high %v3027_v59, %v15495_v16  ;;  %v3693_v14 = vrot.slane %v3027_v59, %v15499_v20 }
 0x22f   : > { %v3635_v1 = vcombine.low %v3612_v55, %v3627_v26  ;;  %v1476_v18 = vrot.slane %v879_v61, %v15499_v20  ;;  %v3636_v53 = vcombine.high %v3612_v55, %v3627_v26  ;;  %v3651_v27 = vcombine.low %v3619_v36, %v3634_v13 }
 0x230   : > { %v16159_v39 = vrot.slane %v1469_v24, %v15499_v20  ;;  %v2805_v32 = vpack.i.b16 %v16133_v7, %v16153_v30  ;;  %v4942_v44 = vshrl.u32 %v16048_v34, 16  ;;  %v4943_v11 = vshrl.u32 %v16052_v35, 16 }
 0x231   : > { %v889_v51 = vshrl.u32 %v784_v8, 16  ;;  %v887_v15 = vpack.i.b16 %v800_v43, %v784_v8  ;;  %v3652_v45 = vcombine.high %v3619_v36, %v3634_v13  ;;  %v890_v59 = vshrl.u32 %v800_v43, 16 }
 0x232   : > { %14028 = vmatmul.mubr.msk.bf16.vlgmr.msra.gmra.mxu1 %vm7197_vm1, %v2805_v32  ;;  %v16168_v61 = vcombine.high %v15726_v40, %v15735_v23  ;;  %v16172_v26 = vcombine.high %v15738_v29, %v16066_v4  ;;  %v3700_v24 = vrot.slane %v3686_v56, %v15499_v20  ;;  %v4944_v55 = vpack.i.b16 %v4943_v11, %v4942_v44 }
 0x233   : > { %v1484_v34 = vcombine.high %v887_v15, %v15495_v16  ;;  %v1491_v35 = vrot.slane %v887_v15, %v15499_v20  ;;  %14033 = vmatprep.mubr.msk.bf16.mxu1 %vm15112_vm0, %v20070_v58  ;;  %v3701_v13 = vcombine.low %v3678_v25, %v3693_v14  ;;  %v3702_v43 = vcombine.high %v3678_v25, %v3693_v14 }
 0x234   : > { %v891_v8 = vpack.i.b16 %v890_v59, %v889_v51  ;;  %v2817_v40 = vpack.i.b16 %v16172_v26, %v16168_v61  ;;  %v16182_v23 = vrot.slane %v3635_v1, %v15502_v21  ;;  %v16185_v29 = vrot.slane %v3636_v53, %v15502_v21 }
 0x235   : > { %v1535_v4 = vcombine.high %v16149_v41, %v15495_v16  ;;  %v7343_v36 = vsel %vm7197_vm1, %v4944_v55, 0  ;;  %v1498_v56 = vrot.slane %v1484_v34, %v15499_v20  ;;  %v1499_v32 = vcombine.low %v1476_v18, %v1491_v35 }
 0x236   : > { %20095 = vst [vmem:[#allocation35_spill] sm:$0xff] %v16182_v23  ;;  %20096 = vst [vmem:[#allocation36_spill] sm:$0xff] %v16185_v29  ;;  %14032 = vmatpush3.bf16.xpose.msra.mxu1 %v7343_v36  ;;  %v1500_v25 = vcombine.high %v1476_v18, %v1491_v35  ;;  %14052 = vmatmul.mubr.msk.bf16.vlgmr.msra.gmra.mxu0 %vm7197_vm1, %v2817_v40  ;;  %v16194_v1 = vrot.slane %v3651_v27, %v15502_v21 }
 0x237   : > { %v16197_v53 = vrot.slane %v3652_v45, %v15502_v21  ;;  %v3717_v44 = vcombine.low %v16145_v46, %v3700_v24  ;;  %v1550_v11 = vcombine.high %v891_v8, %v15495_v16  ;;  %14043 = vmatprep.subr.bf16.mxu1 %v20070_v58  ;;  %v16203_v51 = vrot.slane %v3701_v13, %v15502_v21 }
 0x238   : > { %20097 = vst [vmem:[#allocation37_spill] sm:$0xff] %v16194_v1  ;;  %v16206_v18 = vrot.slane %v3702_v43, %v15502_v21  ;;  %v1542_v15 = vrot.slane %v16149_v41, %v15499_v20  ;;  %v1557_v27 = vrot.slane %v891_v8, %v15499_v20  ;;  %14063 = vmatprep.mubr.msk.bf16.mxu0 %vm15112_vm0, %v20070_v58  ;;  %v2928_v1 = vpop.permute.xlu1 %2927 }
 0x239   : > { %20098 = vst [vmem:[#allocation38_spill] sm:$0xff] %v16197_v53  ;;  %20099 = vst [vmem:[#allocation39_spill] sm:$0xff] %v16203_v51  ;;  %v3718_v45 = vcombine.high %v16145_v46, %v3700_v24  ;;  %v20101_v55 = vcombine.low %v15759_v0, %v15788_v49  ;;  %v20102_v35 = vcombine.high %v15759_v0, %v15788_v49 }
 0x23a   : > { %20100 = vst [vmem:[#allocation40_spill] sm:$0xff] %v16206_v18  ;;  %v1507_v13 = vrot.slane %v1499_v32, %v15502_v21  ;;  %v1514_v43 = vrot.slane %v1500_v25, %v15502_v21  ;;  %v1515_v8 = vcombine.low %v16159_v39, %v1498_v56  ;;  %v1516_v46 = vcombine.high %v16159_v39, %v1498_v56 }
 0x23b   : > { %v4340_v34 = vrot.slane %v20101_v55, %v15499_v20  ;;  %v4348_v41 = vrot.slane %v20102_v35, %v15499_v20  ;;  %v16229_v24 = vrot.slane %v3717_v44, %v15502_v21  ;;  %v1564_v0 = vrot.slane %v1550_v11, %v15499_v20 }
 0x23c   : > { %v1565_v49 = vcombine.low %v1542_v15, %v1557_v27  ;;  %v1566_v55 = vcombine.high %v1542_v15, %v1557_v27  ;;  %v20104_v32 = vcombine.low %v15810_v19, %v15825_v48  ;;  %v20105_v39 = vcombine.high %v15810_v19, %v15825_v48  ;;  %v2912_v15 = vpop.permute.xlu0 %2911 }
 0x23d   : > { %20103 = vst [vmem:[#allocation41_spill] sm:$0xff] %v16229_v24  ;;  %v16245_v44 = vrot.slane %v3718_v45, %v15502_v21  ;;  %v1549_v11 = vrot.slane %v1535_v4, %v15499_v20  ;;  %v4365_v36 = vcombine.low %v4340_v34, %v4348_v41  ;;  %v1523_v27 = vrot.slane %v1515_v8, %v15502_v21  ;;  %v20107_v45 = vld [vmem:[#allocation21_spill] sm:$0xff] }
 0x23e   : > { %v4356_v25 = vrot.slane %v20104_v32, %v15499_v20  ;;  %v4364_v56 = vrot.slane %v20105_v39, %v15499_v20  ;;  %v1530_v40 = vrot.slane %v1516_v46, %v15502_v21  ;;  %v2397_v32 = vcombine.low %v1507_v13, %v1514_v43  ;;  %v20108_v39 = vld [vmem:[#allocation22_spill] sm:$0xff] }
 0x23f   : > { %20106 = vst [vmem:[#allocation42_spill] sm:$0xff] %v16245_v44  ;;  %v13626_v59 = vcombine.high %v1507_v13, %v1514_v43  ;;  %v1581_v48 = vcombine.low %v1549_v11, %v1564_v0  ;;  %v20109_v14 = vcombine.low %v20107_v45, %v20108_v39  ;;  %v20110_v4 = vcombine.high %v20107_v45, %v20108_v39  ;;  %v20111_v13 = vld [vmem:[#allocation24_spill] sm:$0xff]  ;;  %v20112_v43 = vld [vmem:[#allocation23_spill] sm:$0xff] }
 0x240   : > { %v1573_v41 = vrot.slane %v1565_v49, %v15502_v21  ;;  %v1580_v8 = vrot.slane %v1566_v55, %v15502_v21  ;;  %v4373_v46 = vcombine.low %v4356_v25, %v4364_v56  ;;  %v4399_v35 = vcombine.low %v20112_v43, %v20111_v13  ;;  %v2944_v39 = vpop.permute.xlu0 %2943 }
 0x241   : > { %v4390_v24 = vrot.slane %v20109_v14, %v15499_v20  ;;  %v4398_v34 = vrot.slane %v20110_v4, %v15499_v20  ;;  %v1582_v19 = vcombine.high %v1549_v11, %v1564_v0  ;;  %v16267_v44 = vrot.slane %v4365_v36, %v15502_v21 }
 0x242   : > { %v13653_v14 = vcombine.high %v20112_v43, %v20111_v13  ;;  %v3034_v53 = vshrl.u32 %v2912_v15, 16  ;;  %v16272_v45 = vrot.slane %v2397_v32, %v15499_v20  ;;  %v16275_v49 = vrot.slane %v13626_v59, %v15499_v20 }
 0x243   : > { %v2413_v55 = vcombine.low %v1523_v27, %v1530_v40  ;;  %v4406_v25 = vrot.slane %v4399_v35, %v15499_v20  ;;  %v1589_v56 = vrot.slane %v1581_v48, %v15502_v21  ;;  %v13627_v0 = vcombine.high %v1523_v27, %v1530_v40 }
 0x244   : > { %20113 = vst [vmem:[#allocation21_spill] sm:$0xff] %v16272_v45  ;;  %20114 = vst [vmem:[#allocation22_spill] sm:$0xff] %v16275_v49  ;;  %v4414_v36 = vrot.slane %v13653_v14, %v15499_v20  ;;  %v4415_v11 = vcombine.low %v4390_v24, %v4398_v34  ;;  %v2447_v4 = vcombine.low %v1573_v41, %v1580_v8  ;;  %v2806_v32 = vshrl.u32 %v16153_v30, 16  ;;  %v20116_v14 = vld [vmem:[#allocation12_spill] sm:$0xff]  ;;  %v786_v49 = vpop.permute.xlu0 %785 }
 0x245   : > { %v16281_v13 = vrot.slane %v4373_v46, %v15502_v21  ;;  %v2807_v43 = vshrl.u32 %v16133_v7, 16  ;;  %v1596_v59 = vrot.slane %v1582_v19, %v15502_v21  ;;  %v4948_v35 = vshrl.u32 %v16007_v12, 16  ;;  %v770_v19 = vpop.permute.xlu1 %769 }
 0x246   : > { %v4423_v29 = vcombine.low %v4406_v25, %v4414_v36  ;;  %v4949_v48 = vshrl.u32 %v16009_v3, 16  ;;  %v16289_v40 = vrot.slane %v2413_v55, %v15499_v20  ;;  %v13628_v24 = vcombine.high %v1573_v41, %v1580_v8 }
 0x247   : > { %v2808_v27 = vpack.i.b16 %v2807_v43, %v2806_v32  ;;  %v3039_v34 = vpack.i.b16 %v2944_v39, %v2928_v1  ;;  %v16292_v46 = vrot.slane %v4415_v11, %v15502_v21  ;;  %v3031_v7 = vpack.i.b16 %v2912_v15, %v20116_v14  ;;  %v20120_v43 = vld [vmem:[#allocation13_spill] sm:$0xff] }
 0x248   : > { %20115 = vst [vmem:[#allocation24_spill] sm:$0xff] %v16289_v40  ;;  %v4430_v30 = vrot.slane %v4423_v29, %v15502_v21  ;;  %v4950_v23 = vpack.i.b16 %v4949_v48, %v4948_v35  ;;  %v16297_v25 = vrot.slane %v13627_v0, %v15499_v20  ;;  %v16300_v12 = vrot.slane %v2447_v4, %v15499_v20  ;;  %v13999_v29 = vpop.f32.mrf.mxu1 }
 0x249   : > { %v16304_v3 = vcombine.low %v16267_v44, %v16281_v13  ;;  %v20119_v41 = vshrl.u32 %v20116_v14, 16  ;;  %14034 = vmatmul.mubr.msk.bf16.vlgmr.msra.gmra.mxu1 %vm7197_vm1, %v2808_v27  ;;  %v3041_v55 = vshrl.u32 %v2928_v1, 16  ;;  %v3042_v36 = vshrl.u32 %v2944_v39, 16  ;;  %v802_v45 = vpop.permute.xlu1 %801 }
 0x24a   : > { %20117 = vst [vmem:[#allocation23_spill] sm:$0xff] %v16297_v25  ;;  %20118 = vst [vmem:[#allocation12_spill] sm:$0xff] %v16300_v12  ;;  %v16310_v15 = vcombine.low %v16292_v46, %v4430_v30  ;;  %v7437_v0 = vsel %vm7197_vm1, %v4950_v23, 0  ;;  %14045 = vmatprep.mubr.msk.bf16.mxu1 %vm15112_vm0, %v20070_v58  ;;  %v2463_v11 = vcombine.low %v1589_v56, %v1596_v59  ;;  %v898_v27 = vshrl.u32 %v770_v19, 16  ;;  %v664_v14 = vpop.f32.mrf.mxu1  ;;  %v20136_v25 = vld [vmem:[#allocation29_spill] sm:$0xff] }
 0x24b   : > { %v3035_v8 = vpack.i.b16 %v3034_v53, %v20119_v41  ;;  %v13629_v4 = vcombine.high %v1589_v56, %v1596_v59  ;;  %14044 = vmatpush3.bf16.xpose.msra.mxu1 %v7437_v0  ;;  %v3759_v32 = vrot.slane %v3039_v34, %v15499_v20  ;;  %v895_v53 = vpack.i.b16 %v770_v19, %v20120_v43 }
 0x24c   : > { %v16318_v35 = vrot.slane %v13628_v24, %v15499_v20  ;;  %v4959_v48 = vpack.i.b16 %v16310_v15, %v16304_v3  ;;  %v3737_v1 = vcombine.high %v3031_v7, %v15495_v16  ;;  %v3752_v23 = vcombine.high %v3039_v34, %v15495_v16  ;;  %14055 = vmatprep.subr.bf16.mxu1 %v20070_v58 }
 0x24d   : > { %v3744_v39 = vrot.slane %v3031_v7, %v15499_v20  ;;  %v3803_v59 = vcombine.high %v3035_v8, %v15495_v16  ;;  %v3043_v34 = vpack.i.b16 %v3042_v36, %v3041_v55  ;;  %v16335_v17 = vrot.slane %v2463_v11, %v15499_v20  ;;  %v20124_v11 = vld [vmem:[#allocation20_spill] sm:$0xff] }
 0x24e   : > { %20121 = vst [vmem:[#allocation13_spill] sm:$0xff] %v16318_v35  ;;  %v7578_v0 = vsel %vm7197_vm1, %v4959_v48, 0  ;;  %v16338_v56 = vrot.slane %v13629_v4, %v15499_v20  ;;  %v1601_v19 = vcombine.high %v895_v53, %v15495_v16  ;;  %v3751_v24 = vrot.slane %v3737_v1, %v15499_v20  ;;  %v20126_v1 = vld [vmem:[#allocation25_spill] sm:$0xff]  ;;  %v14000_v35 = vpop.f32.mrf.mxu1 }
 0x24f   : > { %20122 = vst [vmem:[#allocation43_spill] sm:$0xff] %v16335_v17  ;;  %14062 = vmatpush3.bf16.xpose.msra.mxu0 %v7578_v0  ;;  %v3767_v7 = vcombine.low %v3744_v39, %v3759_v32  ;;  %v16345_v41 = vrot.slane %v3035_v8, %v15499_v20  ;;  %v3766_v55 = vrot.slane %v3752_v23, %v15499_v20  ;;  %v20125_v48 = vshrl.u32 %v20120_v43, 16 }
 0x250   : > { %20123 = vst [vmem:[#allocation44_spill] sm:$0xff] %v16338_v56  ;;  %14073 = vmatprep.subr.bf16.mxu0 %v20070_v58  ;;  %v16350_v36 = vrot.slane %v3803_v59, %v15499_v20  ;;  %v16353_v4 = vadd.f32 %v13999_v29, %v20124_v11  ;;  %v20127_v18 = vcombine.low %v15861_v37, %v20126_v1  ;;  %v20128_v37 = vld [vmem:[#allocation26_spill] sm:$0xff] }
 0x251   : > { %v16357_v0 = vpack.i.b16 %v898_v27, %v20125_v48  ;;  %v3768_v23 = vcombine.high %v3744_v39, %v3759_v32  ;;  %v3818_v12 = vcombine.high %v3043_v34, %v15495_v16  ;;  %v16367_v59 = vrot.slane %v3043_v34, %v15499_v20  ;;  %v20131_v39 = vld [vmem:[#allocation31_spill] sm:$0xff]  ;;  %v20132_v1 = vld [vmem:[#allocation30_spill] sm:$0xff] }
 0x252   : > { %v16363_v8 = vrot.slane %v20127_v18, %v15502_v21  ;;  %v1608_v29 = vrot.slane %v895_v53, %v15499_v20  ;;  %v16371_v43 = vrot.slane %v3767_v7, %v15502_v21  ;;  %v16374_v27 = vrot.slane %v1601_v19, %v15499_v20  ;;  %v20129_v18 = vld [vmem:[#allocation27_spill] sm:$0xff]  ;;  %v20135_v19 = vld [vmem:[#allocation28_spill] sm:$0xff] }
 0x253   : > { %v20130_v48 = vcombine.low %v20128_v37, %v20129_v18  ;;  %v2287_v34 = vcombine.low %v20132_v1, %v20131_v39  ;;  %v3783_v17 = vcombine.low %v3751_v24, %v3766_v55  ;;  %v3784_v56 = vcombine.high %v3751_v24, %v3766_v55  ;;  %v667_v39 = vpop.f32.mrf.mxu1 }
 0x254   : > { %v16386_v53 = vcombine.high %v16267_v44, %v16281_v13  ;;  %v16389_v7 = vcombine.high %v16292_v46, %v4430_v30  ;;  %v20137_v40 = vcombine.low %v20135_v19, %v20136_v25  ;;  %v905_v18 = vshrl.u32 %v786_v49, 16 }
 0x255   : > { %v16380_v32 = vrot.slane %v20130_v48, %v15502_v21  ;;  %v16398_v37 = vrot.slane %v2287_v34, %v15502_v21  ;;  %v903_v48 = vpack.i.b16 %v802_v45, %v786_v49  ;;  %v665_v44 = vadd.f32 %v664_v14, %v20124_v11 }
 0x256   : > { %20133 = vst [vmem:[#allocation25_spill] sm:$0xff] %v16386_v53  ;;  %20134 = vst [vmem:[#allocation26_spill] sm:$0xff] %v16389_v7  ;;  %v16395_v51 = vrot.slane %v20137_v40, %v15502_v21  ;;  %v4965_v13 = vpack.i.b16 %v16389_v7, %v16386_v53  ;;  %v906_v46 = vshrl.u32 %v802_v45, 16  ;;  %v2813_v49 = vshrl.u32 %v16082_v31, 16 }
 0x257   : > { %v16402_v24 = vcombine.low %v16363_v8, %v16380_v32  ;;  %v1616_v30 = vcombine.high %v903_v48, %v15495_v16  ;;  %v1623_v25 = vrot.slane %v903_v48, %v15499_v20  ;;  %v16415_v55 = vrot.slane %v3768_v23, %v15502_v21 }
 0x258   : > { %v16409_v40 = vcombine.low %v16395_v51, %v16398_v37  ;;  %v907_v1 = vpack.i.b16 %v906_v46, %v905_v18  ;;  %v2812_v14 = vshrl.u32 %v16078_v42, 16  ;;  %v668_v34 = vadd.f32 %v667_v39, %v20124_v11 }
 0x259   : > { %v3832_v45 = vrot.slane %v3818_v12, %v15499_v20  ;;  %v1631_v7 = vcombine.low %v1608_v29, %v1623_v25  ;;  %v1632_v53 = vcombine.high %v1608_v29, %v1623_v25  ;;  %v16423_v28 = vrot.slane %v3783_v17, %v15502_v21 }
 0x25a   : > { %v2823_v19 = vpack.i.b16 %v16409_v40, %v16402_v24  ;;  %v3833_v31 = vcombine.low %v16345_v41, %v16367_v59  ;;  %v3834_v23 = vcombine.high %v16345_v41, %v16367_v59  ;;  %v2814_v18 = vpack.i.b16 %v2813_v49, %v2812_v14 }
 0x25b   : > { %v16430_v42 = vrot.slane %v3784_v56, %v15502_v21  ;;  %v7672_v12 = vsel %vm7197_vm1, %v4965_v13, 0  ;;  %v1630_v48 = vrot.slane %v1616_v30, %v15499_v20  ;;  %v16435_v29 = vpack.c.bf16 %v668_v34, %v665_v44  ;;  %v20139_v56 = vld [vmem:[#allocation14_spill] sm:$0xff] }
 0x25c   : > { %14064 = vmatmul.mubr.msk.bf16.vlgmr.msra.gmra.mxu0 %vm7197_vm1, %v2823_v19  ;;  %v1689_v41 = vrot.slane %v907_v1, %v15499_v20  ;;  %14046 = vmatmul.mubr.msk.bf16.vlgmr.msra.gmra.mxu1 %vm7197_vm1, %v2814_v18  ;;  %v1639_v46 = vrot.slane %v1631_v7, %v15502_v21  ;;  %v1646_v13 = vrot.slane %v1632_v53, %v15502_v21  ;;  %v4955_v30 = vshrl.u32 %v16071_v52, 16 }
 0x25d   : > { %20138 = vst [vmem:[#allocation27_spill] sm:$0xff] %v16435_v29  ;;  %14074 = vmatpush3.bf16.xpose.msra.mxu0 %v7672_v12  ;;  %v1682_v44 = vcombine.high %v907_v1, %v15495_v16  ;;  %14075 = vmatprep.mubr.msk.bf16.mxu0 %vm15112_vm0, %v20070_v58  ;;  %v16451_v25 = vrot.slane %v3833_v31, %v15502_v21  ;;  %v4954_v34 = vshrl.u32 %v16069_v62, 16 }
 0x25e   : > { %v3849_v49 = vcombine.low %v16350_v36, %v3832_v45  ;;  %v1667_v14 = vcombine.high %v16357_v0, %v15495_v16  ;;  %v1674_v7 = vrot.slane %v16357_v0, %v15499_v20  ;;  %14085 = vmatprep.subr.bf16.mxu0 %v20070_v58  ;;  %v676_v53 = vadd.f32 %v14000_v35, %v20124_v11 }
 0x25f   : > { %v1647_v52 = vcombine.low %v16374_v27, %v1630_v48  ;;  %v1648_v1 = vcombine.high %v16374_v27, %v1630_v48  ;;  %5037 = vrot.lane.b32.xlu1 %v16435_v29, %s15109_s10  ;;  %v16466_v19 = vrot.slane %v3834_v23, %v15502_v21  ;;  %v3850_v31 = vcombine.high %v16350_v36, %v3832_v45  ;;  %v2914_v48 = vpop.permute.xlu0 %2913 }
 0x260   : > { %v1697_v18 = vcombine.low %v1674_v7, %v1689_v41  ;;  %14057 = vmatprep.mubr.msk.bf16.mxu1 %vm15112_vm0, %v20070_v58  ;;  %v1696_v35 = vrot.slane %v1682_v44, %v15499_v20  ;;  %v1698_v27 = vcombine.high %v1674_v7, %v1689_v41  ;;  %v2497_v12 = vcombine.low %v1639_v46, %v1646_v13 }
 0x261   : > { %v4956_v62 = vpack.i.b16 %v4955_v30, %v4954_v34  ;;  %5053 = vrot.lane.b32.xlu0 %v16435_v29, %s15110_s12  ;;  %v16477_v23 = vrot.slane %v3849_v49, %v15502_v21  ;;  %v1681_v45 = vrot.slane %v1667_v14, %v15499_v20  ;;  %v13630_v0 = vcombine.high %v1639_v46, %v1646_v13 }
 0x262   : > { %v16483_v39 = vpack.c.bf16 %v676_v53, %v16353_v4  ;;  %v1655_v41 = vrot.slane %v1647_v52, %v15502_v21  ;;  %v1662_v44 = vrot.slane %v1648_v1, %v15502_v21  ;;  %v16491_v49 = vrot.slane %v3850_v31, %v15502_v21 }
 0x263   : > { %v7531_v30 = vsel %vm7197_vm1, %v4956_v62, 0  ;;  %5069 = vrot.lane.b32.xlu1 %v16435_v29, %s15108_s14  ;;  %v1705_v4 = vrot.slane %v1697_v18, %v15502_v21  ;;  %v1712_v13 = vrot.slane %v1698_v27, %v15502_v21  ;;  %v1713_v14 = vcombine.low %v1681_v45, %v1696_v35  ;;  %v2946_v62 = vpop.permute.xlu0 %2945 }
 0x264   : > { %20140 = vst [vmem:[#allocation31_spill] sm:$0xff] %v16483_v39  ;;  %14056 = vmatpush3.bf16.xpose.msra.mxu1 %v7531_v30  ;;  %v1714_v53 = vcombine.high %v1681_v45, %v1696_v35  ;;  %v16500_v52 = vrot.slane %v2497_v12, %v15499_v20  ;;  %v16504_v1 = vrot.slane %v13630_v0, %v15499_v20  ;;  %v3050_v45 = vshrl.u32 %v2914_v48, 16  ;;  %v2930_v30 = vpop.permute.xlu1 %2929 }
 0x265   : > { %14067 = vmatprep.subr.bf16.mxu1 %v20070_v58  ;;  %v16508_v34 = vcombine.high %v16363_v8, %v16380_v32  ;;  %v16512_v31 = vcombine.high %v16395_v51, %v16398_v37  ;;  %v20142_v18 = vcombine.low %v15998_v50, %v16001_v47  ;;  %5039 = vrot.lane.b32.xlu0 %v16483_v39, %s15109_s10  ;;  %v2819_v29 = vshrl.u32 %v16172_v26, 16 }
 0x266   : > { %20141 = vst [vmem:[#allocation30_spill] sm:$0xff] %v16504_v1  ;;  %v2513_v27 = vcombine.low %v1655_v41, %v1662_v44  ;;  %v20143_v0 = vcombine.low %v15958_v60, %v15977_v9  ;;  %v20144_v8 = vcombine.high %v15958_v60, %v15977_v9  ;;  %v20145_v32 = vcombine.high %v15998_v50, %v16001_v47 }
 0x267   : > { %v4456_v35 = vrot.slane %v20142_v18, %v15499_v20  ;;  %5055 = vrot.lane.b32.xlu1 %v16483_v39, %s15110_s12  ;;  %v2829_v18 = vpack.i.b16 %v16512_v31, %v16508_v34  ;;  %v20147_v9 = vcombine.high %v16022_v57, %v16031_v63  ;;  %v13631_v47 = vcombine.high %v1655_v41, %v1662_v44 }
 0x268   : > { %v4440_v12 = vrot.slane %v20143_v0, %v15499_v20  ;;  %v4448_v51 = vrot.slane %v20144_v8, %v15499_v20  ;;  %v4464_v37 = vrot.slane %v20145_v32, %v15499_v20  ;;  %v20146_v0 = vcombine.low %v16022_v57, %v16031_v63 }
 0x269   : > { %v4498_v50 = vrot.slane %v20147_v9, %v15499_v20  ;;  %v4499_v32 = vcombine.low %v16043_v22, %v16055_v6  ;;  %v13657_v46 = vcombine.high %v16043_v22, %v16055_v6  ;;  %v1721_v7 = vrot.slane %v1713_v14, %v15502_v21  ;;  %14076 = vmatmul.mubr.msk.bf16.vlgmr.msra.gmra.mxu0 %vm7197_vm1, %v2829_v18 }
 0x26a   : > { %v4490_v60 = vrot.slane %v20146_v0, %v15499_v20  ;;  %v4473_v8 = vcombine.low %v4456_v35, %v4464_v37  ;;  %v1728_v36 = vrot.slane %v1714_v53, %v15502_v21  ;;  %v2547_v17 = vcombine.low %v1705_v4, %v1712_v13  ;;  %14087 = vmatprep.mubr.msk.bf16.mxu0 %vm15112_vm0, %v20070_v58 }
 0x26b   : > { %v3055_v0 = vpack.i.b16 %v2946_v62, %v2930_v30  ;;  %v4465_v59 = vcombine.low %v4440_v12, %v4448_v51  ;;  %v4506_v57 = vrot.slane %v4499_v32, %v15499_v20  ;;  %v4514_v63 = vrot.slane %v13657_v46, %v15499_v20  ;;  %5071 = vrot.lane.b32.xlu1 %v16483_v39, %s15108_s14 }
 0x26c   : > { %v4515_v41 = vcombine.low %v4490_v60, %v4498_v50  ;;  %v16556_v44 = vrot.slane %v2513_v27, %v15499_v20  ;;  %v13632_v22 = vcombine.high %v1705_v4, %v1712_v13  ;;  %v3047_v6 = vpack.i.b16 %v2914_v48, %v15448_v54 }
 0x26d   : > { %v20149_v14 = vshrl.u32 %v15448_v54, 16  ;;  %v16564_v35 = vrot.slane %v13631_v47, %v15499_v20  ;;  %v16569_v12 = vrot.slane %v4473_v8, %v15502_v21  ;;  %v4523_v27 = vcombine.low %v4506_v57, %v4514_v63  ;;  %v772_v54 = vpop.permute.xlu1 %771 }
 0x26e   : > { %20148 = vst [vmem:[#allocation28_spill] sm:$0xff] %v16556_v44  ;;  %v2563_v51 = vcombine.low %v1721_v7, %v1728_v36  ;;  %v3057_v4 = vshrl.u32 %v2930_v30, 16  ;;  %v3058_v13 = vshrl.u32 %v2946_v62, 16  ;;  %v3884_v48 = vcombine.high %v3055_v0, %v15495_v16 }
 0x26f   : > { %v3051_v53 = vpack.i.b16 %v3050_v45, %v20149_v14  ;;  %20150 = vst [vmem:[#allocation29_spill] sm:$0xff] %v16564_v35  ;;  %v13633_v37 = vcombine.high %v1721_v7, %v1728_v36  ;;  %v16573_v45 = vrot.slane %v4465_v59, %v15502_v21  ;;  %v16576_v18 = vrot.slane %v4515_v41, %v15502_v21 }
 0x270   : > { %v16579_v60 = vrot.slane %v4523_v27, %v15502_v21  ;;  %v16582_v9 = vrot.slane %v2547_v17, %v15499_v20  ;;  %v16585_v50 = vrot.slane %v13632_v22, %v15499_v20  ;;  %v3869_v62 = vcombine.high %v3047_v6, %v15495_v16 }
 0x271   : > { %v3935_v30 = vcombine.high %v3051_v53, %v15495_v16  ;;  %v16591_v59 = vcombine.low %v16573_v45, %v16569_v12  ;;  %v3891_v7 = vrot.slane %v3055_v0, %v15499_v20  ;;  %v911_v17 = vpack.i.b16 %v772_v54, %v20139_v56  ;;  %v804_v47 = vpop.permute.xlu1 %803 }
 0x272   : > { %20151 = vst [vmem:[#allocation14_spill] sm:$0xff] %v16582_v9  ;;  %20152 = vst [vmem:[#allocation45_spill] sm:$0xff] %v16585_v50  ;;  %v16595_v36 = vcombine.low %v16576_v18, %v16579_v60  ;;  %v3059_v8 = vpack.i.b16 %v3058_v13, %v3057_v4  ;;  %v3898_v32 = vrot.slane %v3884_v48, %v15499_v20  ;;  %v914_v57 = vshrl.u32 %v772_v54, 16 }
 0x273   : > { %v16603_v63 = vrot.slane %v2563_v51, %v15499_v20  ;;  %v16606_v41 = vrot.slane %v13633_v37, %v15499_v20  ;;  %v3876_v22 = vrot.slane %v3047_v6, %v15499_v20  ;;  %v3883_v27 = vrot.slane %v3869_v62, %v15499_v20  ;;  %v788_v6 = vpop.permute.xlu0 %787 }
 0x274   : > { %v4971_v0 = vpack.i.b16 %v16595_v36, %v16591_v59  ;;  %v3942_v4 = vrot.slane %v3051_v53, %v15499_v20  ;;  %v16616_v13 = vrot.slane %v3935_v30, %v15499_v20  ;;  %v1733_v37 = vcombine.high %v911_v17, %v15495_v16 }
 0x275   : > { %v3899_v48 = vcombine.low %v3876_v22, %v3891_v7  ;;  %v3900_v54 = vcombine.high %v3876_v22, %v3891_v7  ;;  %v3915_v46 = vcombine.low %v3883_v27, %v3898_v32  ;;  %v3950_v39 = vcombine.high %v3059_v8, %v15495_v16 }
 0x276   : > { %v7766_v51 = vsel %vm7197_vm1, %v4971_v0, 0  ;;  %v3957_v14 = vrot.slane %v3059_v8, %v15499_v20  ;;  %v20153_v62 = vshrl.u32 %v20139_v56, 16  ;;  %v2818_v30 = vshrl.u32 %v16168_v61, 16 }
 0x277   : > { %14086 = vmatpush3.bf16.xpose.msra.mxu0 %v7766_v51  ;;  %v4960_v0 = vshrl.u32 %v16304_v3, 16  ;;  %v4961_v7 = vshrl.u32 %v16310_v15, 16  ;;  %v3916_v22 = vcombine.high %v3883_v27, %v3898_v32  ;;  %v921_v51 = vshrl.u32 %v788_v6, 16  ;;  %v14003_v27 = vpop.f32.mrf.mxu1 }
 0x278   : > { %v915_v53 = vpack.i.b16 %v914_v57, %v20153_v62  ;;  %14097 = vmatprep.subr.bf16.mxu0 %v20070_v58  ;;  %v919_v50 = vpack.i.b16 %v804_v47, %v788_v6  ;;  %v922_v9 = vshrl.u32 %v804_v47, 16  ;;  %v16630_v35 = vrot.slane %v3899_v48, %v15502_v21 }
 0x279   : > { %v16633_v56 = vrot.slane %v3900_v54, %v15502_v21  ;;  %v2820_v8 = vpack.i.b16 %v2819_v29, %v2818_v30  ;;  %v4962_v61 = vpack.i.b16 %v4961_v7, %v4960_v0  ;;  %v16636_v26 = vrot.slane %v3950_v39, %v15499_v20  ;;  %v20159_v30 = vld [vmem:[#allocation34_spill] sm:$0xff] }
 0x27a   : > { %20154 = vst [vmem:[#allocation46_spill] sm:$0xff] %v16630_v35  ;;  %v1740_v3 = vrot.slane %v911_v17, %v15499_v20  ;;  %v923_v15 = vpack.i.b16 %v922_v9, %v921_v51  ;;  %v1748_v57 = vcombine.high %v919_v50, %v15495_v16  ;;  %v3965_v32 = vcombine.low %v3942_v4, %v3957_v14  ;;  %v20168_v35 = vld [vmem:[#allocation26_spill] sm:$0xff] }
 0x27b   : > { %20155 = vst [vmem:[#allocation47_spill] sm:$0xff] %v16633_v56  ;;  %14058 = vmatmul.mubr.msk.bf16.vlgmr.msra.gmra.mxu1 %vm7197_vm1, %v2820_v8  ;;  %v7625_v47 = vsel %vm7197_vm1, %v4962_v61, 0  ;;  %v1755_v48 = vrot.slane %v919_v50, %v15499_v20  ;;  %v2387_v29 = vcombine.low %v16127_v33, %v16137_v10  ;;  %v16646_v54 = vrot.slane %v3915_v46, %v15502_v21  ;;  %v20162_v8 = vld [vmem:[#allocation32_spill] sm:$0xff]  ;;  %v20163_v61 = vld [vmem:[#allocation33_spill] sm:$0xff] }
 0x27c   : > { %v16649_v39 = vrot.slane %v3916_v22, %v15502_v21  ;;  %v3966_v9 = vcombine.high %v3942_v4, %v3957_v14  ;;  %14068 = vmatpush3.bf16.xpose.msra.mxu1 %v7625_v47  ;;  %v1762_v17 = vrot.slane %v1748_v57, %v15499_v20  ;;  %v1747_v50 = vrot.slane %v1733_v37, %v15499_v20  ;;  %v680_v57 = vpop.f32.mrf.mxu1 }
 0x27d   : > { %20156 = vst [vmem:[#allocation48_spill] sm:$0xff] %v16646_v54  ;;  %v16658_v33 = vrot.slane %v2387_v29, %v15502_v21  ;;  %14069 = vmatprep.mubr.msk.bf16.mxu1 %vm15112_vm0, %v20070_v58  ;;  %v1799_v10 = vcombine.high %v915_v53, %v15495_v16  ;;  %v1814_v46 = vcombine.high %v923_v15, %v15495_v16 }
 0x27e   : > { %20157 = vst [vmem:[#allocation49_spill] sm:$0xff] %v16649_v39  ;;  %v20158_v14 = vcombine.low %v16093_v2, %v16099_v5  ;;  %v20160_v37 = vcombine.low %v16104_v38, %v20159_v30  ;;  %14079 = vmatprep.subr.bf16.mxu1 %v20070_v58  ;;  %v16678_v7 = vrot.slane %v3965_v32, %v15502_v21  ;;  %v4967_v39 = vshrl.u32 %v20168_v35, 16 }
 0x27f   : > { %v1763_v22 = vcombine.low %v1740_v3, %v1755_v48  ;;  %v1821_v51 = vrot.slane %v923_v15, %v15499_v20  ;;  %v20164_v2 = vcombine.low %v20162_v8, %v20163_v61  ;;  %v1764_v47 = vcombine.high %v1740_v3, %v1755_v48 }
 0x280   : > { %v16668_v4 = vrot.slane %v20158_v14, %v15502_v21  ;;  %v16674_v0 = vrot.slane %v20160_v37, %v15502_v21  ;;  %20161 = vst [vmem:[#allocation34_spill] sm:$0xff] %v16678_v7  ;;  %v1779_v29 = vcombine.low %v1747_v50, %v1762_v17  ;;  %v1780_v38 = vcombine.high %v1747_v50, %v1762_v17  ;;  %v2932_v7 = vpop.permute.xlu1 %2931 }
 0x281   : > { %v16685_v5 = vrot.slane %v20164_v2, %v15502_v21  ;;  %v16692_v32 = vrot.slane %v3966_v9, %v15502_v21  ;;  %v3981_v15 = vcombine.low %v16616_v13, %v16636_v26  ;;  %v1806_v37 = vrot.slane %v915_v53, %v15499_v20  ;;  %v14004_v53 = vpop.f32.mrf.mxu1 }
 0x282   : > { %v16689_v14 = vcombine.low %v16674_v0, %v16658_v33  ;;  %v1813_v8 = vrot.slane %v1799_v10, %v15499_v20  ;;  %v1828_v3 = vrot.slane %v1814_v46, %v15499_v20  ;;  %v16707_v9 = vcombine.high %v16576_v18, %v16579_v60  ;;  %v2916_v18 = vpop.permute.xlu0 %2915 }
 0x283   : > { %20165 = vst [vmem:[#allocation32_spill] sm:$0xff] %v16692_v32  ;;  %v16703_v48 = vcombine.low %v16685_v5, %v16668_v4  ;;  %v1771_v17 = vrot.slane %v1763_v22, %v15502_v21  ;;  %v1829_v50 = vcombine.low %v1806_v37, %v1821_v51  ;;  %v1830_v61 = vcombine.high %v1806_v37, %v1821_v51  ;;  %v683_v30 = vpop.f32.mrf.mxu1 }
 0x284   : > { %v16712_v2 = vcombine.high %v16573_v45, %v16569_v12  ;;  %v1778_v10 = vrot.slane %v1764_v47, %v15502_v21  ;;  %v1787_v46 = vrot.slane %v1779_v29, %v15502_v21  ;;  %v1794_v62 = vrot.slane %v1780_v38, %v15502_v21 }
 0x285   : > { %v2835_v6 = vpack.i.b16 %v16689_v14, %v16703_v48  ;;  %v16720_v60 = vrot.slane %v3981_v15, %v15502_v21  ;;  %v689_v47 = vadd.f32 %v14003_v27, %v20124_v11  ;;  %v1845_v29 = vcombine.low %v1813_v8, %v1828_v3 }
 0x286   : > { %v4977_v38 = vpack.i.b16 %v16707_v9, %v16712_v2  ;;  %v1837_v15 = vrot.slane %v1829_v50, %v15502_v21  ;;  %v1844_v37 = vrot.slane %v1830_v61, %v15502_v21  ;;  %v1846_v22 = vcombine.high %v1813_v8, %v1828_v3  ;;  %v20167_v3 = vld [vmem:[#allocation25_spill] sm:$0xff] }
 0x287   : > { %20166 = vst [vmem:[#allocation33_spill] sm:$0xff] %v16720_v60  ;;  %14088 = vmatmul.mubr.msk.bf16.vlgmr.msra.gmra.mxu0 %vm7197_vm1, %v2835_v6  ;;  %v681_v12 = vadd.f32 %v680_v57, %v20124_v11  ;;  %v2597_v51 = vcombine.low %v1771_v17, %v1778_v10  ;;  %v13634_v45 = vcombine.high %v1771_v17, %v1778_v10  ;;  %v3066_v32 = vshrl.u32 %v2916_v18, 16  ;;  %v2948_v17 = vpop.permute.xlu0 %2947 }
 0x288   : > { %14099 = vmatprep.mubr.msk.bf16.mxu0 %vm15112_vm0, %v20070_v58  ;;  %v2613_v27 = vcombine.low %v1787_v46, %v1794_v62  ;;  %v7860_v60 = vsel %vm7197_vm1, %v4977_v38, 0  ;;  %v13635_v6 = vcombine.high %v1787_v46, %v1794_v62  ;;  %v2824_v50 = vshrl.u32 %v16402_v24, 16  ;;  %v20169_v46 = vld [vmem:[#allocation15_spill] sm:$0xff] }
 0x289   : > { %14098 = vmatpush3.bf16.xpose.msra.mxu0 %v7860_v60  ;;  %v2825_v61 = vshrl.u32 %v16409_v40, 16  ;;  %v1853_v8 = vrot.slane %v1845_v29, %v15502_v21  ;;  %v684_v57 = vadd.f32 %v683_v30, %v20124_v11  ;;  %v4966_v56 = vshrl.u32 %v20167_v3, 16 }
 0x28a   : > { %14109 = vmatprep.subr.bf16.mxu0 %v20070_v58  ;;  %v1860_v62 = vrot.slane %v1846_v22, %v15502_v21  ;;  %v2647_v10 = vcombine.low %v1837_v15, %v1844_v37  ;;  %v3065_v60 = vshrl.u32 %v20169_v46, 16  ;;  %v13636_v24 = vcombine.high %v1837_v15, %v1844_v37 }
 0x28b   : > { %v2826_v38 = vpack.i.b16 %v2825_v61, %v2824_v50  ;;  %v3063_v40 = vpack.i.b16 %v2916_v18, %v20169_v46  ;;  %v16750_v54 = vpack.c.bf16 %v684_v57, %v681_v12  ;;  %v4968_v29 = vpack.i.b16 %v4967_v39, %v4966_v56  ;;  %v20178_v57 = vld [vmem:[#allocation16_spill] sm:$0xff] }
 0x28c   : > { %v16753_v30 = vrot.slane %v2597_v51, %v15499_v20  ;;  %v16756_v35 = vrot.slane %v13634_v45, %v15499_v20  ;;  %v3067_v3 = vpack.i.b16 %v3066_v32, %v3065_v60  ;;  %v3071_v22 = vpack.i.b16 %v2948_v17, %v2932_v7 }
 0x28d   : > { %20170 = vst [vmem:[#allocation25_spill] sm:$0xff] %v16750_v54  ;;  %14070 = vmatmul.mubr.msk.bf16.vlgmr.msra.gmra.mxu1 %vm7197_vm1, %v2826_v38  ;;  %v692_v44 = vadd.f32 %v14004_v53, %v20124_v11  ;;  %v3073_v1 = vshrl.u32 %v2932_v7, 16  ;;  %v7719_v15 = vsel %vm7197_vm1, %v4968_v29, 0  ;;  %v3074_v37 = vshrl.u32 %v2948_v17, 16  ;;  %5041 = vrot.lane.b32.xlu1 %v16750_v54, %s15109_s10  ;;  %v774_v53 = vpop.permute.xlu1 %773 }
 0x28e   : > { %20171 = vst [vmem:[#allocation26_spill] sm:$0xff] %v16753_v30  ;;  %20172 = vst [vmem:[#allocation15_spill] sm:$0xff] %v16756_v35  ;;  %14081 = vmatprep.mubr.msk.bf16.mxu1 %vm15112_vm0, %v20070_v58  ;;  %v16766_v56 = vrot.slane %v2613_v27, %v15499_v20  ;;  %v16769_v39 = vrot.slane %v13635_v6, %v15499_v20  ;;  %v2663_v32 = vcombine.low %v1853_v8, %v1860_v62 }
 0x28f   : > { %v13637_v18 = vcombine.high %v1853_v8, %v1860_v62  ;;  %14080 = vmatpush3.bf16.xpose.msra.mxu1 %v7719_v15  ;;  %v20174_v7 = vcombine.high %v16616_v13, %v16636_v26  ;;  %v16778_v45 = vrot.slane %v2647_v10, %v15499_v20  ;;  %v16781_v51 = vrot.slane %v13636_v24, %v15499_v20 }
 0x290   : > { %20173 = vst [vmem:[#allocation50_spill] sm:$0xff] %v16769_v39  ;;  %v4001_v27 = vcombine.high %v3063_v40, %v15495_v16  ;;  %14091 = vmatprep.subr.bf16.mxu1 %v20070_v58  ;;  %v4067_v50 = vcombine.high %v3067_v3, %v15495_v16  ;;  %v4016_v61 = vcombine.high %v3071_v22, %v15495_v16  ;;  %v930_v62 = vshrl.u32 %v774_v53, 16 }
 0x291   : > { %v16775_v12 = vrot.slane %v20174_v7, %v15502_v21  ;;  %20175 = vst [vmem:[#allocation51_spill] sm:$0xff] %v16778_v45  ;;  %20176 = vst [vmem:[#allocation52_spill] sm:$0xff] %v16781_v51  ;;  %v4023_v13 = vrot.slane %v3071_v22, %v15499_v20  ;;  %5057 = vrot.lane.b32.xlu0 %v16750_v54, %s15110_s12  ;;  %v16792_v26 = vpack.c.bf16 %v692_v44, %v689_v47 }
 0x292   : > { %v3075_v8 = vpack.i.b16 %v3074_v37, %v3073_v1  ;;  %v927_v17 = vpack.i.b16 %v774_v53, %v20178_v57  ;;  %5073 = vrot.lane.b32.xlu1 %v16750_v54, %s15108_s14  ;;  %v16800_v46 = vrot.slane %v2663_v32, %v15499_v20  ;;  %v16803_v60 = vrot.slane %v13637_v18, %v15499_v20  ;;  %v20187_v1 = vld [vmem:[#allocation39_spill] sm:$0xff] }
 0x293   : > { %20177 = vst [vmem:[#allocation53_spill] sm:$0xff] %v16792_v26  ;;  %v4008_v38 = vrot.slane %v3063_v40, %v15499_v20  ;;  %v4015_v44 = vrot.slane %v4001_v27, %v15499_v20  ;;  %v16810_v47 = vrot.slane %v3067_v3, %v15499_v20  ;;  %v929_v24 = vshrl.u32 %v20178_v57, 16  ;;  %v790_v57 = vpop.permute.xlu0 %789 }
 0x294   : > { %v16814_v29 = vrot.slane %v4067_v50, %v15499_v20  ;;  %v4030_v22 = vrot.slane %v4016_v61, %v15499_v20  ;;  %v4082_v40 = vcombine.high %v3075_v8, %v15495_v16  ;;  %v4089_v32 = vrot.slane %v3075_v8, %v15499_v20  ;;  %v20179_v50 = vld [vmem:[#allocation35_spill] sm:$0xff]  ;;  %v20180_v61 = vld [vmem:[#allocation36_spill] sm:$0xff] }
 0x295   : > { %v4031_v15 = vcombine.low %v4008_v38, %v4023_v13  ;;  %v4032_v37 = vcombine.high %v4008_v38, %v4023_v13  ;;  %5043 = vrot.lane.b32.xlu0 %v16792_v26, %s15109_s10  ;;  %v16821_v18 = vpack.i.b16 %v930_v62, %v929_v24  ;;  %v1865_v3 = vcombine.high %v927_v17, %v15495_v16  ;;  %v806_v62 = vpop.permute.xlu1 %805  ;;  %v20183_v24 = vld [vmem:[#allocation37_spill] sm:$0xff] }
 0x296   : > { %5059 = vrot.lane.b32.xlu1 %v16792_v26, %s15110_s12  ;;  %v16827_v53 = vrot.slane %v927_v17, %v15499_v20  ;;  %v16831_v7 = vcombine.high %v16685_v5, %v16668_v4  ;;  %v16835_v27 = vcombine.high %v16674_v0, %v16658_v33  ;;  %v20181_v13 = vcombine.low %v20179_v50, %v20180_v61  ;;  %v20184_v4 = vld [vmem:[#allocation38_spill] sm:$0xff] }
 0x297   : > { %v20182_v17 = vcombine.high %v20179_v50, %v20180_v61  ;;  %v20185_v5 = vcombine.low %v20183_v24, %v20184_v4  ;;  %v20186_v33 = vcombine.high %v20183_v24, %v20184_v4  ;;  %v937_v51 = vshrl.u32 %v790_v57, 16 }
 0x298   : > { %v4540_v8 = vrot.slane %v20181_v13, %v15499_v20  ;;  %v20188_v13 = vld [vmem:[#allocation40_spill] sm:$0xff]  ;;  %v2841_v35 = vpack.i.b16 %v16835_v27, %v16831_v7  ;;  %v935_v45 = vpack.i.b16 %v806_v62, %v790_v57  ;;  %v16873_v39 = vrot.slane %v4031_v15, %v15502_v21 }
 0x299   : > { %v4548_v38 = vrot.slane %v20182_v17, %v15499_v20  ;;  %v4556_v6 = vrot.slane %v20185_v5, %v15499_v20  ;;  %v4564_v0 = vrot.slane %v20186_v33, %v15499_v20  ;;  %v20189_v10 = vcombine.low %v20187_v1, %v20188_v13  ;;  %v20191_v17 = vld [vmem:[#allocation42_spill] sm:$0xff]  ;;  %v20192_v5 = vld [vmem:[#allocation41_spill] sm:$0xff] }
 0x29a   : > { %v20190_v50 = vcombine.high %v20187_v1, %v20188_v13  ;;  %v4599_v30 = vcombine.low %v20192_v5, %v20191_v17  ;;  %v13661_v24 = vcombine.high %v20192_v5, %v20191_v17  ;;  %5075 = vrot.lane.b32.xlu1 %v16792_v26, %s15108_s14  ;;  %14100 = vmatmul.mubr.msk.bf16.vlgmr.msra.gmra.mxu0 %vm7197_vm1, %v2841_v35 }
 0x29b   : > { %v4590_v54 = vrot.slane %v20189_v10, %v15499_v20  ;;  %v4565_v4 = vcombine.low %v4540_v8, %v4548_v38  ;;  %v4573_v33 = vcombine.low %v4556_v6, %v4564_v0  ;;  %20193 = vst [vmem:[#allocation16_spill] sm:$0xff] %v16873_v39  ;;  %v16876_v17 = vrot.slane %v4032_v37, %v15502_v21  ;;  %v16888_v0 = vpop.f32.mrf.mxu1 }
 0x29c   : > { %v4598_v61 = vrot.slane %v20190_v50, %v15499_v20  ;;  %v4606_v10 = vrot.slane %v4599_v30, %v15499_v20  ;;  %v4614_v1 = vrot.slane %v13661_v24, %v15499_v20  ;;  %v938_v50 = vshrl.u32 %v806_v62, 16  ;;  %14111 = vmatprep.mubr.msk.bf16.mxu0 %vm15112_vm0, %v20070_v58 }
 0x29d   : > { %20194 = vst [vmem:[#allocation35_spill] sm:$0xff] %v16876_v17  ;;  %v4047_v6 = vcombine.low %v4015_v44, %v4030_v22  ;;  %v4048_v8 = vcombine.high %v4015_v44, %v4030_v22  ;;  %v4097_v57 = vcombine.low %v16810_v47, %v4089_v32  ;;  %v16882_v35 = vrot.slane %v4573_v33, %v15502_v21 }
 0x29e   : > { %v4615_v13 = vcombine.low %v4590_v54, %v4598_v61  ;;  %v4623_v30 = vcombine.low %v4606_v10, %v4614_v1  ;;  %v1880_v54 = vcombine.high %v935_v45, %v15495_v16  ;;  %v4096_v62 = vrot.slane %v4082_v40, %v15499_v20 }
 0x29f   : > { %v4098_v15 = vcombine.high %v16810_v47, %v4089_v32  ;;  %v939_v38 = vpack.i.b16 %v938_v50, %v937_v51  ;;  %v1887_v37 = vrot.slane %v935_v45, %v15499_v20  ;;  %v1879_v44 = vrot.slane %v1865_v3, %v15499_v20  ;;  %v696_v50 = vpop.f32.mrf.mxu1 }
 0x2a0   : > { %v16892_v22 = vrot.slane %v4565_v4, %v15502_v21  ;;  %v4622_v61 = vrot.slane %v4615_v13, %v15502_v21  ;;  %v4630_v5 = vrot.slane %v4623_v30, %v15502_v21  ;;  %v16897_v24 = vrot.slane %v4047_v6, %v15502_v21 }
 0x2a1   : > { %v16900_v40 = vrot.slane %v4048_v8, %v15502_v21  ;;  %v16907_v47 = vrot.slane %v4097_v57, %v15502_v21  ;;  %v1894_v4 = vrot.slane %v1880_v54, %v15499_v20  ;;  %v16917_v33 = vrot.slane %v4098_v15, %v15502_v21 }
 0x2a2   : > { %v16911_v32 = vcombine.low %v16892_v22, %v16882_v35  ;;  %v16913_v3 = vcombine.low %v4622_v61, %v4630_v5  ;;  %v1895_v10 = vcombine.low %v16827_v53, %v1887_v37  ;;  %v1896_v1 = vcombine.high %v16827_v53, %v1887_v37 }
 0x2a3   : > { %v1953_v13 = vrot.slane %v939_v38, %v15499_v20  ;;  %v4113_v6 = vcombine.low %v16814_v29, %v4096_v62  ;;  %v4114_v8 = vcombine.high %v16814_v29, %v4096_v62  ;;  %v2831_v30 = vshrl.u32 %v16512_v31, 16 }
 0x2a4   : > { %v4983_v57 = vpack.i.b16 %v16913_v3, %v16911_v32  ;;  %v1931_v15 = vcombine.high %v16821_v18, %v15495_v16  ;;  %v1938_v53 = vrot.slane %v16821_v18, %v15499_v20  ;;  %v1946_v37 = vcombine.high %v939_v38, %v15495_v16  ;;  %v14008_v18 = vpop.f32.mrf.mxu1 }
 0x2a5   : > { %v1911_v45 = vcombine.low %v1879_v44, %v1894_v4  ;;  %v1912_v29 = vcombine.high %v1879_v44, %v1894_v4  ;;  %v2830_v62 = vshrl.u32 %v16508_v34, 16  ;;  %v16939_v54 = vrot.slane %v1895_v10, %v15502_v21 }
 0x2a6   : > { %v7954_v51 = vsel %vm7197_vm1, %v4983_v57, 0  ;;  %v16942_v26 = vrot.slane %v1896_v1, %v15502_v21  ;;  %v1961_v17 = vcombine.low %v1938_v53, %v1953_v13  ;;  %v16945_v38 = vrot.slane %v4113_v6, %v15502_v21  ;;  %v20199_v6 = vld [vmem:[#allocation44_spill] sm:$0xff] }
 0x2a7   : > { %14110 = vmatpush3.bf16.xpose.msra.mxu0 %v7954_v51  ;;  %v16948_v57 = vrot.slane %v4114_v8, %v15502_v21  ;;  %v1962_v44 = vcombine.high %v1938_v53, %v1953_v13  ;;  %v2832_v34 = vpack.i.b16 %v2831_v30, %v2830_v62  ;;  %v16954_v4 = vrot.slane %v1946_v37, %v15499_v20  ;;  %v20197_v62 = vld [vmem:[#allocation23_spill] sm:$0xff] }
 0x2a8   : > { %20195 = vst [vmem:[#allocation36_spill] sm:$0xff] %v16945_v38  ;;  %14121 = vmatprep.subr.bf16.mxu0 %v20070_v58  ;;  %v4972_v10 = vshrl.u32 %v16591_v59, 16  ;;  %v4973_v1 = vshrl.u32 %v16595_v36, 16  ;;  %v16961_v8 = vrot.slane %v1931_v15, %v15499_v20  ;;  %v16964_v13 = vrot.slane %v1911_v45, %v15502_v21  ;;  %v699_v45 = vpop.f32.mrf.mxu1  ;;  %v20200_v51 = vld [vmem:[#allocation43_spill] sm:$0xff] }
 0x2a9   : > { %v16967_v30 = vrot.slane %v1912_v29, %v15502_v21  ;;  %14082 = vmatmul.mubr.msk.bf16.vlgmr.msra.gmra.mxu1 %vm7197_vm1, %v2832_v34  ;;  %v16971_v53 = vrot.slane %v1961_v17, %v15502_v21  ;;  %v2697_v59 = vcombine.low %v16939_v54, %v16942_v26  ;;  %v13638_v36 = vcombine.high %v16939_v54, %v16942_v26  ;;  %v20196_v29 = vld [vmem:[#allocation24_spill] sm:$0xff] }
 0x2aa   : > { %v4974_v37 = vpack.i.b16 %v4973_v1, %v4972_v10  ;;  %14093 = vmatprep.mubr.msk.bf16.mxu1 %vm15112_vm0, %v20070_v58  ;;  %v16980_v15 = vrot.slane %v1962_v44, %v15502_v21  ;;  %v20198_v34 = vcombine.low %v20196_v29, %v20197_v62  ;;  %v2487_v31 = vcombine.low %v20200_v51, %v20199_v6  ;;  %v20201_v10 = vld [vmem:[#allocation21_spill] sm:$0xff]  ;;  %v20202_v1 = vld [vmem:[#allocation22_spill] sm:$0xff]  ;;  %v20204_v29 = vld [vmem:[#allocation12_spill] sm:$0xff] }
 0x2ab   : > { %v697_v16 = vadd.f32 %v696_v50, %v20124_v11  ;;  %v1977_v26 = vcombine.low %v16961_v8, %v16954_v4  ;;  %v20203_v44 = vcombine.low %v20201_v10, %v20202_v1  ;;  %v16996_v38 = vcombine.high %v4622_v61, %v4630_v5  ;;  %v20205_v62 = vld [vmem:[#allocation13_spill] sm:$0xff] }
 0x2ac   : > { %v2444_v17 = vrot.slane %v20198_v34, %v15502_v21  ;;  %v7813_v54 = vsel %vm7197_vm1, %v4974_v37, 0  ;;  %v20206_v34 = vcombine.low %v20204_v29, %v20205_v62  ;;  %v2494_v50 = vrot.slane %v2487_v31, %v15502_v21 }
 0x2ad   : > { %v2436_v39 = vrot.slane %v20203_v44, %v15502_v21  ;;  %14092 = vmatpush3.bf16.xpose.msra.mxu1 %v7813_v54  ;;  %v17005_v6 = vcombine.high %v16892_v22, %v16882_v35  ;;  %v700_v37 = vadd.f32 %v699_v45, %v20124_v11  ;;  %v705_v10 = vadd.f32 %v16888_v0, %v20124_v11 }
 0x2ae   : > { %v2486_v51 = vrot.slane %v20206_v34, %v15502_v21  ;;  %v2837_v61 = vshrl.u32 %v16689_v14, 16  ;;  %14103 = vmatprep.subr.bf16.mxu1 %v20070_v58  ;;  %v4978_v5 = vshrl.u32 %v16712_v2, 16  ;;  %v4979_v54 = vshrl.u32 %v16707_v9, 16 }
 0x2af   : > { %v17014_v1 = vcombine.low %v2436_v39, %v2444_v17  ;;  %v4989_v35 = vpack.i.b16 %v16996_v38, %v17005_v6  ;;  %v17020_v22 = vpack.c.bf16 %v700_v37, %v697_v16  ;;  %v708_v45 = vadd.f32 %v14008_v18, %v20124_v11 }
 0x2b0   : > { %v17016_v31 = vcombine.low %v2486_v51, %v2494_v50  ;;  %v2836_v0 = vshrl.u32 %v16703_v48, 16  ;;  %v4980_v14 = vpack.i.b16 %v4979_v54, %v4978_v5  ;;  %v20208_v2 = vcombine.low %v16371_v43, %v16415_v55 }
 0x2b1   : > { %20207 = vst [vmem:[#allocation37_spill] sm:$0xff] %v17020_v22  ;;  %v20209_v29 = vcombine.high %v16371_v43, %v16415_v55  ;;  %v20210_v16 = vcombine.low %v16423_v28, %v16430_v42  ;;  %v20211_v48 = vcombine.high %v16423_v28, %v16430_v42  ;;  %5045 = vrot.lane.b32.xlu1 %v17020_v22, %s15109_s10  ;;  %v8048_v42 = vsel %vm7197_vm1, %v4989_v35, 0 }
 0x2b2   : > { %v4640_v44 = vrot.slane %v20208_v2, %v15499_v20  ;;  %v2847_v9 = vpack.i.b16 %v17016_v31, %v17014_v1  ;;  %v1978_v37 = vcombine.high %v16961_v8, %v16954_v4  ;;  %v2838_v5 = vpack.i.b16 %v2837_v61, %v2836_v0  ;;  %5061 = vrot.lane.b32.xlu0 %v17020_v22, %s15110_s12  ;;  %v17065_v61 = vpop.f32.mrf.mxu1 }
 0x2b3   : > { %v4648_v62 = vrot.slane %v20209_v29, %v15499_v20  ;;  %v4656_v18 = vrot.slane %v20210_v16, %v15499_v20  ;;  %v4664_v34 = vrot.slane %v20211_v48, %v15499_v20  ;;  %v20212_v43 = vcombine.low %v16451_v25, %v16466_v19  ;;  %20214 = vst [vmem:[#allocation38_spill] sm:$0xff] %v17065_v61 }
 0x2b4   : > { %v20213_v54 = vcombine.high %v16451_v25, %v16466_v19  ;;  %v17057_v28 = vrot.slane %v2697_v59, %v15499_v20  ;;  %14112 = vmatmul.mubr.msk.bf16.vlgmr.msra.gmra.mxu0 %vm7197_vm1, %v2847_v9  ;;  %v4699_v4 = vcombine.low %v16477_v23, %v16491_v49  ;;  %v13665_v8 = vcombine.high %v16477_v23, %v16491_v49 }
 0x2b5   : > { %v4690_v55 = vrot.slane %v20212_v43, %v15499_v20  ;;  %v17068_v25 = vrot.slane %v13638_v36, %v15499_v20  ;;  %14122 = vmatpush3.bf16.xpose.msra.mxu0 %v8048_v42  ;;  %v17070_v19 = vpack.c.bf16 %v708_v45, %v705_v10  ;;  %14094 = vmatmul.mubr.msk.bf16.vlgmr.msra.gmra.mxu1 %vm7197_vm1, %v2838_v5  ;;  %v7907_v59 = vsel %vm7197_vm1, %v4980_v14, 0 }
 0x2b6   : > { %v4698_v2 = vrot.slane %v20213_v54, %v15499_v20  ;;  %v4673_v0 = vcombine.low %v4656_v18, %v4664_v34  ;;  %14104 = vmatpush3.bf16.xpose.msra.mxu1 %v7907_v59  ;;  %14123 = vmatprep.mubr.msk.bf16.mxu0 %vm15112_vm0, %v20070_v58  ;;  %v17076_v35 = vcombine.high %v2486_v51, %v2494_v50  ;;  %v4985_v36 = vshrl.u32 %v16913_v3, 16  ;;  %v712_v3 = vpop.f32.mrf.mxu1 }
 0x2b7   : > { %20215 = vst [vmem:[#allocation39_spill] sm:$0xff] %v17070_v19  ;;  %v4665_v23 = vcombine.low %v4640_v44, %v4648_v62  ;;  %v4706_v49 = vrot.slane %v4699_v4, %v15499_v20  ;;  %14133 = vmatprep.subr.bf16.mxu0 %v20070_v58  ;;  %v4714_v10 = vrot.slane %v13665_v8, %v15499_v20  ;;  %v2843_v14 = vshrl.u32 %v16835_v27, 16  ;;  %v20220_v8 = vld [vmem:[#allocation29_spill] sm:$0xff] }
 0x2b8   : > { %v4715_v45 = vcombine.low %v4690_v55, %v4698_v2  ;;  %14105 = vmatprep.mubr.msk.bf16.mxu1 %vm15112_vm0, %v20070_v58  ;;  %v4984_v9 = vshrl.u32 %v16911_v32, 16  ;;  %v17087_v51 = vrot.slane %v1977_v26, %v15502_v21  ;;  %v2713_v50 = vcombine.low %v16964_v13, %v16967_v30  ;;  %14115 = vmatprep.subr.bf16.mxu1 %v20070_v58  ;;  %v17122_v2 = vpop.f32.mrf.mxu1 }
 0x2b9   : > { %v17091_v44 = vcombine.high %v2436_v39, %v2444_v17  ;;  %5077 = vrot.lane.b32.xlu1 %v17020_v22, %s15108_s14  ;;  %v4680_v29 = vrot.slane %v4673_v0, %v15502_v21  ;;  %v4723_v62 = vcombine.low %v4706_v49, %v4714_v10  ;;  %v2842_v27 = vshrl.u32 %v16831_v7, 16  ;;  %5047 = vrot.lane.b32.xlu0 %v17070_v19, %s15109_s10  ;;  %v20223_v49 = vld [vmem:[#allocation45_spill] sm:$0xff] }
 0x2ba   : > { %v4986_v32 = vpack.i.b16 %v4985_v36, %v4984_v9  ;;  %v13639_v26 = vcombine.high %v16964_v13, %v16967_v30  ;;  %v2747_v39 = vcombine.low %v16971_v53, %v16980_v15  ;;  %v4672_v16 = vrot.slane %v4665_v23, %v15502_v21  ;;  %20216 = vst [vmem:[#allocation40_spill] sm:$0xff] %v17122_v2  ;;  %v20222_v23 = vld [vmem:[#allocation14_spill] sm:$0xff] }
 0x2bb   : > { %v2853_v17 = vpack.i.b16 %v17076_v35, %v17091_v44  ;;  %v4722_v18 = vrot.slane %v4715_v45, %v15502_v21  ;;  %v4730_v48 = vrot.slane %v4723_v62, %v15502_v21  ;;  %v2844_v7 = vpack.i.b16 %v2843_v14, %v2842_v27 }
 0x2bc   : > { %v2587_v34 = vcombine.low %v16603_v63, %v16606_v41  ;;  %v17112_v5 = vrot.slane %v1978_v37, %v15502_v21  ;;  %v17115_v43 = vrot.slane %v2713_v50, %v15499_v20  ;;  %v2848_v55 = vshrl.u32 %v17014_v1, 16  ;;  %v20217_v37 = vld [vmem:[#allocation30_spill] sm:$0xff] }
 0x2bd   : > { %14124 = vmatmul.mubr.msk.bf16.vlgmr.msra.gmra.mxu0 %vm7197_vm1, %v2853_v17  ;;  %5063 = vrot.lane.b32.xlu1 %v17070_v19, %s15110_s12  ;;  %v4991_v54 = vshrl.u32 %v16996_v38, 16  ;;  %v17124_v42 = vcombine.low %v4672_v16, %v4680_v29  ;;  %v17126_v63 = vcombine.low %v4722_v18, %v4730_v48  ;;  %v8001_v41 = vsel %vm7197_vm1, %v4986_v32, 0  ;;  %v20219_v38 = vld [vmem:[#allocation28_spill] sm:$0xff] }
 0x2be   : > { %14106 = vmatmul.mubr.msk.bf16.vlgmr.msra.gmra.mxu1 %vm7197_vm1, %v2844_v7  ;;  %14135 = vmatprep.mubr.msk.bf16.mxu0 %vm15112_vm0, %v20070_v58  ;;  %v20218_v4 = vcombine.low %v16500_v52, %v20217_v37  ;;  %v20221_v59 = vcombine.low %v20219_v38, %v20220_v8  ;;  %v20224_v36 = vcombine.low %v20222_v23, %v20223_v49  ;;  %v2849_v45 = vshrl.u32 %v17016_v31, 16  ;;  %v20225_v31 = vld [vmem:[#allocation48_spill] sm:$0xff]  ;;  %v20233_v38 = vld [vmem:[#allocation34_spill] sm:$0xff] }
 0x2bf   : > { %14116 = vmatpush3.bf16.xpose.msra.mxu1 %v8001_v41  ;;  %14117 = vmatprep.mubr.msk.bf16.mxu1 %vm15112_vm0, %v20070_v58  ;;  %v4990_v52 = vshrl.u32 %v17005_v6, 16  ;;  %v4995_v14 = vpack.i.b16 %v17126_v63, %v17124_v42  ;;  %v2594_v9 = vrot.slane %v2587_v34, %v15502_v21  ;;  %v17153_v50 = vcombine.high %v4672_v16, %v4680_v29  ;;  %v20226_v6 = vld [vmem:[#allocation49_spill] sm:$0xff]  ;;  %v715_v34 = vpop.f32.mrf.mxu1  ;;  %v20234_v8 = vld [vmem:[#allocation32_spill] sm:$0xff] }
 0x2c0   : > { %v17136_v1 = vrot.slane %v20218_v4, %v15502_v21  ;;  %v2544_v0 = vrot.slane %v20221_v59, %v15502_v21  ;;  %v2586_v10 = vrot.slane %v20224_v36, %v15502_v21  ;;  %14127 = vmatprep.subr.bf16.mxu1 %v20070_v58  ;;  %v713_v62 = vadd.f32 %v712_v3, %v20124_v11  ;;  %v20229_v3 = vld [vmem:[#allocation46_spill] sm:$0xff] }
 0x2c1   : > { %v17157_v27 = vcombine.high %v4722_v18, %v4730_v48  ;;  %v4992_v32 = vpack.i.b16 %v4991_v54, %v4990_v52  ;;  %5079 = vrot.lane.b32.xlu1 %v17070_v19, %s15108_s14  ;;  %v20227_v17 = vcombine.low %v20225_v31, %v20226_v6  ;;  %v20228_v29 = vcombine.high %v20225_v31, %v20226_v6  ;;  %v20230_v18 = vld [vmem:[#allocation47_spill] sm:$0xff] }
 0x2c2   : > { %v8142_v41 = vsel %vm7197_vm1, %v4995_v14, 0  ;;  %v20231_v48 = vcombine.low %v20229_v3, %v20230_v18  ;;  %v20232_v37 = vcombine.high %v20229_v3, %v20230_v18  ;;  %v20235_v59 = vcombine.low %v20233_v38, %v20234_v8  ;;  %v20237_v14 = vld [vmem:[#allocation33_spill] sm:$0xff] }
 0x2c3   : > { %v4756_v7 = vrot.slane %v20227_v17, %v15499_v20  ;;  %v4764_v16 = vrot.slane %v20228_v29, %v15499_v20  ;;  %14134 = vmatpush3.bf16.xpose.msra.mxu0 %v8142_v41  ;;  %v2850_v49 = vpack.i.b16 %v2849_v45, %v2848_v55  ;;  %v20236_v36 = vcombine.high %v20233_v38, %v20234_v8 }
 0x2c4   : > { %v4740_v54 = vrot.slane %v20231_v48, %v15499_v20  ;;  %v4748_v4 = vrot.slane %v20232_v37, %v15499_v20  ;;  %v4790_v23 = vrot.slane %v20235_v59, %v15499_v20  ;;  %v4799_v31 = vcombine.low %v20237_v14, %v16775_v12  ;;  %14145 = vmatprep.subr.bf16.mxu0 %v20070_v58 }
 0x2c5   : > { %v4798_v52 = vrot.slane %v20236_v36, %v15499_v20  ;;  %v13669_v6 = vcombine.high %v20237_v14, %v16775_v12  ;;  %v17191_v17 = vcombine.low %v17136_v1, %v2544_v0  ;;  %v17193_v29 = vcombine.low %v2586_v10, %v2594_v9 }
 0x2c6   : > { %v4773_v41 = vcombine.low %v4756_v7, %v4764_v16  ;;  %v716_v55 = vadd.f32 %v715_v34, %v20124_v11  ;;  %v5001_v45 = vpack.i.b16 %v17157_v27, %v17153_v50  ;;  %v4806_v3 = vrot.slane %v4799_v31, %v15499_v20  ;;  %14118 = vmatmul.mubr.msk.bf16.vlgmr.msra.gmra.mxu1 %vm7197_vm1, %v2850_v49 }
 0x2c7   : > { %v4814_v18 = vrot.slane %v13669_v6, %v15499_v20  ;;  %v4815_v48 = vcombine.low %v4790_v23, %v4798_v52  ;;  %v8095_v12 = vsel %vm7197_vm1, %v4992_v32, 0  ;;  %v4765_v37 = vcombine.low %v4740_v54, %v4748_v4  ;;  %14129 = vmatprep.mubr.msk.bf16.mxu1 %vm15112_vm0, %v20070_v58 }
 0x2c8   : > { %v17203_v38 = vpack.c.bf16 %v716_v55, %v713_v62  ;;  %v4997_v8 = vshrl.u32 %v17126_v63, 16  ;;  %v2729_v7 = vcombine.low %v17057_v28, %v17068_v25  ;;  %v13640_v16 = vcombine.high %v16971_v53, %v16980_v15  ;;  %14128 = vmatpush3.bf16.xpose.msra.mxu1 %v8095_v12  ;;  %v20256_v28 = vld [vmem:[#allocation27_spill] sm:$0xff] }
 0x2c9   : > { %v4823_v34 = vcombine.low %v4806_v3, %v4814_v18  ;;  %v2859_v59 = vpack.i.b16 %v17193_v29, %v17191_v17  ;;  %v4780_v32 = vrot.slane %v4773_v41, %v15502_v21  ;;  %v2855_v62 = vshrl.u32 %v17076_v35, 16  ;;  %14139 = vmatprep.subr.bf16.mxu1 %v20070_v58 }
 0x2ca   : > { %20238 = vst [vmem:[#allocation42_spill] sm:$0xff] %v17203_v38  ;;  %v4996_v63 = vshrl.u32 %v17124_v42, 16  ;;  %v17218_v54 = vcombine.high %v2586_v10, %v2594_v9  ;;  %v4822_v4 = vrot.slane %v4815_v48, %v15502_v21  ;;  %5049 = vrot.lane.b32.xlu1 %v17203_v38, %s15109_s10  ;;  %5065 = vrot.lane.b32.xlu0 %v17203_v38, %s15110_s12  ;;  %v8236_v35 = vsel %vm7197_vm1, %v5001_v45, 0 }
 0x2cb   : > { %v4830_v23 = vrot.slane %v4823_v34, %v15502_v21  ;;  %14136 = vmatmul.mubr.msk.bf16.vlgmr.msra.gmra.mxu0 %vm7197_vm1, %v2859_v59  ;;  %v4772_v49 = vrot.slane %v4765_v37, %v15502_v21  ;;  %v2854_v42 = vshrl.u32 %v17091_v44, 16  ;;  %v17233_v9 = vcombine.high %v17136_v1, %v2544_v0  ;;  %v17250_v0 = vpop.f32.mrf.mxu1 }
 0x2cc   : > { %v4998_v10 = vpack.i.b16 %v4997_v8, %v4996_v63  ;;  %14146 = vmatpush3.bf16.xpose.msra.mxu0 %v8236_v35  ;;  %14147 = vmatprep.mubr.msk.bf16.mxu0 %vm15112_vm0, %v20070_v58  ;;  %v2687_v52 = vcombine.low %v16800_v46, %v16803_v60  ;;  %v17243_v14 = vrot.slane %v13639_v26, %v15499_v20  ;;  %v2860_v60 = vshrl.u32 %v17191_v17, 16  ;;  %v20245_v8 = vld [vmem:[#allocation36_spill] sm:$0xff] }
 0x2cd   : > { %v17235_v36 = vcombine.low %v4822_v4, %v4830_v23  ;;  %v2763_v44 = vcombine.low %v17087_v51, %v17112_v5  ;;  %14157 = vmatprep.subr.bf16.mxu0 %v20070_v58  ;;  %v17248_v31 = vcombine.low %v4772_v49, %v4780_v32  ;;  %v2856_v1 = vpack.i.b16 %v2855_v62, %v2854_v42  ;;  %v14017_v17 = vpop.f32.mrf.mxu1  ;;  %v20247_v62 = vld [vmem:[#allocation52_spill] sm:$0xff] }
 0x2ce   : > { %v13641_v6 = vcombine.high %v17087_v51, %v17112_v5  ;;  %v2865_v46 = vpack.i.b16 %v17218_v54, %v17233_v9  ;;  %v5003_v13 = vshrl.u32 %v17157_v27, 16  ;;  %5081 = vrot.lane.b32.xlu1 %v17203_v38, %s15108_s14  ;;  %v8189_v26 = vsel %vm7197_vm1, %v4998_v10, 0  ;;  %v20239_v51 = vld [vmem:[#allocation50_spill] sm:$0xff]  ;;  %v20254_v17 = vld [vmem:[#allocation15_spill] sm:$0xff] }
 0x2cf   : > { %v5007_v30 = vpack.i.b16 %v17235_v36, %v17248_v31  ;;  %14130 = vmatmul.mubr.msk.bf16.vlgmr.msra.gmra.mxu1 %vm7197_vm1, %v2856_v1  ;;  %v20240_v5 = vcombine.low %v16766_v56, %v20239_v51  ;;  %v2861_v55 = vshrl.u32 %v17193_v29, 16  ;;  %v2694_v27 = vrot.slane %v2687_v52, %v15502_v21  ;;  %v20249_v52 = vld [vmem:[#allocation16_spill] sm:$0xff] }
 0x2d0   : > { %14140 = vmatpush3.bf16.xpose.msra.mxu1 %v8189_v26  ;;  %14141 = vmatprep.mubr.msk.bf16.mxu1 %vm15112_vm0, %v20070_v58  ;;  %v5002_v45 = vshrl.u32 %v17153_v50, 16  ;;  %v20241_v3 = vcombine.low %v16897_v24, %v16900_v40  ;;  %v20242_v56 = vcombine.high %v16897_v24, %v16900_v40  ;;  %v20243_v29 = vcombine.low %v16907_v47, %v16917_v33  ;;  %v17294_v24 = vpop.f32.mrf.mxu1  ;;  %v20246_v40 = vld [vmem:[#allocation51_spill] sm:$0xff] }
 0x2d1   : > { %v2644_v41 = vrot.slane %v20240_v5, %v15502_v21  ;;  %14151 = vmatprep.subr.bf16.mxu1 %v20070_v58  ;;  %v20244_v50 = vcombine.high %v16907_v47, %v16917_v33  ;;  %v4899_v34 = vcombine.low %v20245_v8, %v16948_v57  ;;  %v13673_v59 = vcombine.high %v20245_v8, %v16948_v57  ;;  %v20250_v47 = vld [vmem:[#allocation35_spill] sm:$0xff] }
 0x2d2   : > { %v4856_v18 = vrot.slane %v20241_v3, %v15499_v20  ;;  %v4864_v48 = vrot.slane %v20242_v56, %v15499_v20  ;;  %v4890_v12 = vrot.slane %v20243_v29, %v15499_v20  ;;  %v20248_v63 = vcombine.low %v20246_v40, %v20247_v62 }
 0x2d3   : > { %v4898_v37 = vrot.slane %v20244_v50, %v15499_v20  ;;  %v17300_v42 = vcombine.high %v4822_v4, %v4830_v23  ;;  %v5004_v10 = vpack.i.b16 %v5003_v13, %v5002_v45  ;;  %v20251_v33 = vcombine.low %v20249_v52, %v20250_v47  ;;  %14148 = vmatmul.mubr.msk.bf16.vlgmr.msra.gmra.mxu0 %vm7197_vm1, %v2865_v46  ;;  %v14018_v23 = vpop.f32.mrf.mxu1  ;;  %v20253_v13 = vld [vmem:[#allocation26_spill] sm:$0xff] }
 0x2d4   : > { %v2686_v35 = vrot.slane %v20248_v63, %v15502_v21  ;;  %v8330_v26 = vsel %vm7197_vm1, %v5007_v30, 0  ;;  %v20252_v57 = vcombine.high %v20249_v52, %v20250_v47  ;;  %v4906_v5 = vrot.slane %v4899_v34, %v15499_v20  ;;  %14159 = vmatprep.mubr.msk.bf16.mxu0 %vm15112_vm0, %v20070_v58 }
 0x2d5   : > { %v4840_v1 = vrot.slane %v20251_v33, %v15499_v20  ;;  %v4914_v4 = vrot.slane %v13673_v59, %v15499_v20  ;;  %14158 = vmatpush3.bf16.xpose.msra.mxu0 %v8330_v26  ;;  %v20255_v46 = vcombine.low %v20253_v13, %v20254_v17  ;;  %v17320_v30 = vcombine.high %v4772_v49, %v4780_v32 }
 0x2d6   : > { %v4848_v51 = vrot.slane %v20252_v57, %v15499_v20  ;;  %v2862_v3 = vpack.i.b16 %v2861_v55, %v2860_v60  ;;  %v17322_v56 = vcombine.low %v2686_v35, %v2694_v27  ;;  %14169 = vmatprep.subr.bf16.mxu0 %v20070_v58  ;;  %v4873_v29 = vcombine.low %v4856_v18, %v4864_v48 }
 0x2d7   : > { %v2636_v45 = vrot.slane %v20255_v46, %v15502_v21  ;;  %v4915_v50 = vcombine.low %v4890_v12, %v4898_v37  ;;  %v4923_v8 = vcombine.low %v4906_v5, %v4914_v4  ;;  %v2754_v34 = vrot.slane %v2747_v39, %v15499_v20  ;;  %v5054_v46 = vpop.permute.xlu0 %5053 }
 0x2d8   : > { %v2762_v59 = vrot.slane %v13640_v16, %v15499_v20  ;;  %v5009_v49 = vshrl.u32 %v17235_v36, 16  ;;  %v5013_v60 = vpack.i.b16 %v17300_v42, %v17320_v30  ;;  %14142 = vmatmul.mubr.msk.bf16.vlgmr.msra.gmra.mxu1 %vm7197_vm1, %v2862_v3  ;;  %v8283_v55 = vsel %vm7197_vm1, %v5004_v10, 0 }
 0x2d9   : > { %v17333_v32 = vcombine.low %v2636_v45, %v2644_v41  ;;  %v4865_v18 = vcombine.low %v4840_v1, %v4848_v51  ;;  %v4930_v48 = vrot.slane %v4923_v8, %v15502_v21  ;;  %v2770_v39 = vrot.slane %v2763_v44, %v15499_v20  ;;  %14152 = vmatpush3.bf16.xpose.msra.mxu1 %v8283_v55  ;;  %v5038_v44 = vpop.permute.xlu1 %5037 }
 0x2da   : > { %v2778_v12 = vrot.slane %v13641_v6, %v15499_v20  ;;  %v17343_v53 = vcombine.high %v2686_v35, %v2694_v27  ;;  %14153 = vmatprep.mubr.msk.bf16.mxu1 %vm15112_vm0, %v20070_v58  ;;  %v5008_v15 = vshrl.u32 %v17248_v31, 16  ;;  %v4880_v36 = vrot.slane %v4873_v29, %v15502_v21  ;;  %14163 = vmatprep.subr.bf16.mxu1 %v20070_v58 }
 0x2db   : > { %v2871_v16 = vpack.i.b16 %v17322_v56, %v17333_v32  ;;  %v4922_v37 = vrot.slane %v4915_v50, %v15502_v21  ;;  %v2867_v40 = vshrl.u32 %v17218_v54, 16  ;;  %v2737_v6 = vcombine.low %v17115_v43, %v17243_v14 }
 0x2dc   : > { %v2779_v27 = vcombine.low %v2754_v34, %v2762_v59  ;;  %v2866_v62 = vshrl.u32 %v17233_v9, 16  ;;  %v5010_v63 = vpack.i.b16 %v5009_v49, %v5008_v15  ;;  %v8424_v31 = vsel %vm7197_vm1, %v5013_v60, 0 }
 0x2dd   : > { %14160 = vmatmul.mubr.msk.bf16.vlgmr.msra.gmra.mxu0 %vm7197_vm1, %v2871_v16  ;;  %v17359_v35 = vcombine.high %v2636_v45, %v2644_v41  ;;  %v4872_v10 = vrot.slane %v4865_v18, %v15502_v21  ;;  %v17362_v52 = vcombine.low %v4922_v37, %v4930_v48  ;;  %v2787_v54 = vcombine.low %v2770_v39, %v2778_v12  ;;  %v5070_v5 = vpop.permute.xlu1 %5069  ;;  %v20257_v45 = vld [vmem:[#allocation17_spill] sm:$0xff] }
 0x2de   : > { %14170 = vmatpush3.bf16.xpose.msra.mxu0 %v8424_v31  ;;  %14171 = vmatprep.mubr.msk.bf16.mxu0 %vm15112_vm0, %v20070_v58  ;;  %v2868_v14 = vpack.i.b16 %v2867_v40, %v2866_v62  ;;  %v17375_v41 = vrot.slane %v2729_v7, %v15502_v21  ;;  %v8377_v47 = vsel %vm7197_vm1, %v5010_v63, 0  ;;  %v17379_v33 = vrot.slane %v2737_v6, %v15502_v21 }
 0x2df   : > { %v2877_v43 = vpack.i.b16 %v17343_v53, %v17359_v35  ;;  %14181 = vmatprep.subr.bf16.mxu0 %v20070_v58  ;;  %v17369_v9 = vcombine.low %v4872_v10, %v4880_v36  ;;  %v17382_v1 = vrot.slane %v2779_v27, %v15502_v21  ;;  %v2872_v26 = vshrl.u32 %v17333_v32, 16 }
 0x2e0   : > { %14154 = vmatmul.mubr.msk.bf16.vlgmr.msra.gmra.mxu1 %vm7197_vm1, %v2868_v14  ;;  %v5015_v51 = vshrl.u32 %v17300_v42, 16  ;;  %v5089_v25 = vshrl.u32 %v20256_v28, 16  ;;  %v5087_v7 = vpack.i.b16 %v5038_v44, %v20256_v28  ;;  %v2794_v4 = vrot.slane %v2787_v54, %v15502_v21 }
 0x2e1   : > { %v5019_v57 = vpack.i.b16 %v17362_v52, %v17369_v9  ;;  %14164 = vmatpush3.bf16.xpose.msra.mxu1 %v8377_v47  ;;  %14165 = vmatprep.mubr.msk.bf16.mxu1 %vm15112_vm0, %v20070_v58  ;;  %v2873_v23 = vshrl.u32 %v17322_v56, 16  ;;  %v5090_v13 = vshrl.u32 %v5038_v44, 16  ;;  %v5098_v17 = vshrl.u32 %v5070_v5, 16  ;;  %v17412_v39 = vpop.f32.mrf.mxu1 }
 0x2e2   : > { %14175 = vmatprep.subr.bf16.mxu1 %v20070_v58  ;;  %v5014_v42 = vshrl.u32 %v17320_v30, 16  ;;  %v5213_v3 = vcombine.high %v5087_v7, %v20257_v45  ;;  %v5220_v29 = vrot.slane %v5087_v7, %v15499_v20  ;;  %v5095_v50 = vpack.i.b16 %v5070_v5, %v5054_v46 }
 0x2e3   : > { %v17399_v8 = vcombine.high %v4872_v10, %v4880_v36  ;;  %v17401_v34 = vcombine.high %v4922_v37, %v4930_v48  ;;  %v5091_v59 = vpack.i.b16 %v5090_v13, %v5089_v25  ;;  %v5097_v32 = vshrl.u32 %v5054_v46, 16  ;;  %v14023_v6 = vpop.f32.mrf.mxu1 }
 0x2e4   : > { %v8518_v56 = vsel %vm7197_vm1, %v5019_v57, 0  ;;  %v5016_v49 = vpack.i.b16 %v5015_v51, %v5014_v42  ;;  %v5228_v60 = vcombine.high %v5095_v50, %v20257_v45  ;;  %v5235_v30 = vrot.slane %v5095_v50, %v15499_v20 }
 0x2e5   : > { %14172 = vmatmul.mubr.msk.bf16.vlgmr.msra.gmra.mxu0 %vm7197_vm1, %v2877_v43  ;;  %v17410_v55 = vcombine.low %v17382_v1, %v2794_v4  ;;  %v2874_v18 = vpack.i.b16 %v2873_v23, %v2872_v26  ;;  %v5099_v48 = vpack.i.b16 %v5098_v17, %v5097_v32  ;;  %v5227_v12 = vrot.slane %v5213_v3, %v15499_v20  ;;  %v17436_v47 = vpop.f32.mrf.mxu1 }
 0x2e6   : > { %14182 = vmatpush3.bf16.xpose.msra.mxu0 %v8518_v56  ;;  %14183 = vmatprep.mubr.msk.bf16.mxu0 %vm15112_vm0, %v20070_v58  ;;  %v5242_v15 = vrot.slane %v5228_v60, %v15499_v20  ;;  %v5243_v16 = vcombine.low %v5220_v29, %v5235_v30  ;;  %v5244_v36 = vcombine.high %v5220_v29, %v5235_v30  ;;  %v8471_v62 = vsel %vm7197_vm1, %v5016_v49, 0 }
 0x2e7   : > { %14193 = vmatprep.subr.bf16.mxu0 %v20070_v58  ;;  %v17419_v37 = vcombine.low %v17375_v41, %v17379_v33  ;;  %v5279_v40 = vcombine.high %v5091_v59, %v20257_v45  ;;  %v5294_v44 = vcombine.high %v5099_v48, %v20257_v45  ;;  %v5025_v27 = vpack.i.b16 %v17401_v34, %v17399_v8  ;;  %v14024_v25 = vpop.f32.mrf.mxu1 }
 0x2e8   : > { %14166 = vmatmul.mubr.msk.bf16.vlgmr.msra.gmra.mxu1 %vm7197_vm1, %v2874_v18  ;;  %v2879_v63 = vshrl.u32 %v17343_v53, 16  ;;  %v5021_v31 = vshrl.u32 %v17362_v52, 16  ;;  %v5020_v54 = vshrl.u32 %v17369_v9, 16  ;;  %v5286_v43 = vrot.slane %v5091_v59, %v15499_v20 }
 0x2e9   : > { %v2883_v10 = vpack.i.b16 %v17410_v55, %v17419_v37  ;;  %14176 = vmatpush3.bf16.xpose.msra.mxu1 %v8471_v62  ;;  %14177 = vmatprep.mubr.msk.bf16.mxu1 %vm15112_vm0, %v20070_v58  ;;  %v5301_v14 = vrot.slane %v5099_v48, %v15499_v20  ;;  %v5251_v53 = vrot.slane %v5243_v16, %v15502_v21  ;;  %v2878_v51 = vshrl.u32 %v17359_v35, 16 }
 0x2ea   : > { %14187 = vmatprep.subr.bf16.mxu1 %v20070_v58  ;;  %v5258_v52 = vrot.slane %v5244_v36, %v15502_v21  ;;  %v5259_v26 = vcombine.low %v5227_v12, %v5242_v15  ;;  %v5260_v57 = vcombine.high %v5227_v12, %v5242_v15  ;;  %v5293_v28 = vrot.slane %v5279_v40, %v15499_v20 }
 0x2eb   : > { %v5308_v9 = vrot.slane %v5294_v44, %v15499_v20  ;;  %v8612_v7 = vsel %vm7197_vm1, %v5025_v27, 0  ;;  %v17448_v5 = vcombine.high %v17375_v41, %v17379_v33  ;;  %v17451_v23 = vcombine.high %v17382_v1, %v2794_v4  ;;  %v17458_v41 = vpop.f32.mrf.mxu0 }
 0x2ec   : > { %v5022_v13 = vpack.i.b16 %v5021_v31, %v5020_v54  ;;  %v2880_v35 = vpack.i.b16 %v2879_v63, %v2878_v51  ;;  %v5309_v17 = vcombine.low %v5286_v43, %v5301_v14  ;;  %v5310_v46 = vcombine.high %v5286_v43, %v5301_v14 }
 0x2ed   : > { %14184 = vmatmul.mubr.msk.bf16.vlgmr.msra.gmra.mxu0 %vm7197_vm1, %v2883_v10  ;;  %v5267_v42 = vrot.slane %v5259_v26, %v15502_v21  ;;  %v5274_v3 = vrot.slane %v5260_v57, %v15502_v21  ;;  %v6269_v29 = vcombine.low %v5251_v53, %v5258_v52  ;;  %v13674_v50 = vcombine.high %v5251_v53, %v5258_v52  ;;  %v14041_v56 = vpop.f32.mrf.mxu0 }
 0x2ee   : > { %14194 = vmatpush3.bf16.xpose.msra.mxu0 %v8612_v7  ;;  %14195 = vmatprep.mubr.msk.bf16.mxu0 %vm15112_vm0, %v20070_v58  ;;  %v5325_v33 = vcombine.low %v5293_v28, %v5308_v9  ;;  %v5326_v1 = vcombine.high %v5293_v28, %v5308_v9  ;;  %v2889_v4 = vpack.i.b16 %v17451_v23, %v17448_v5  ;;  %v8565_v59 = vsel %vm7197_vm1, %v5022_v13, 0 }
 0x2ef   : > { %14205 = vmatprep.subr.bf16.mxu0 %v20070_v58  ;;  %v5027_v32 = vshrl.u32 %v17401_v34, 16  ;;  %v2885_v49 = vshrl.u32 %v17410_v55, 16  ;;  %v5026_v60 = vshrl.u32 %v17399_v8, 16  ;;  %v5317_v30 = vrot.slane %v5309_v17, %v15502_v21  ;;  %v17474_v16 = vpop.f32.mrf.mxu0 }
 0x2f0   : > { %14178 = vmatmul.mubr.msk.bf16.vlgmr.msra.gmra.mxu1 %vm7197_vm1, %v2880_v35  ;;  %v5324_v18 = vrot.slane %v5310_v46, %v15502_v21  ;;  %v6276_v48 = vrot.slane %v6269_v29, %v15499_v20  ;;  %v6284_v12 = vrot.slane %v13674_v50, %v15499_v20  ;;  %v6285_v34 = vcombine.low %v5267_v42, %v5274_v3 }
 0x2f1   : > { %14188 = vmatpush3.bf16.xpose.msra.mxu1 %v8565_v59  ;;  %14189 = vmatprep.mubr.msk.bf16.mxu1 %vm15112_vm0, %v20070_v58  ;;  %v13675_v15 = vcombine.high %v5267_v42, %v5274_v3  ;;  %v5333_v36 = vrot.slane %v5325_v33, %v15502_v21  ;;  %v5340_v55 = vrot.slane %v5326_v1, %v15502_v21  ;;  %v2884_v8 = vshrl.u32 %v17419_v37, 16  ;;  %v14042_v44 = vpop.f32.mrf.mxu0 }
 0x2f2   : > { %14199 = vmatprep.subr.bf16.mxu1 %v20070_v58  ;;  %v5028_v40 = vpack.i.b16 %v5027_v32, %v5026_v60  ;;  %v6319_v6 = vcombine.low %v5317_v30, %v5324_v18  ;;  %v6292_v62 = vrot.slane %v6285_v34, %v15499_v20  ;;  %v6301_v31 = vcombine.low %v6276_v48, %v6284_v12  ;;  %v17484_v14 = vpop.f32.mrf.mxu1 }
 0x2f3   : > { %v2886_v27 = vpack.i.b16 %v2885_v49, %v2884_v8  ;;  %v6300_v63 = vrot.slane %v13675_v15, %v15499_v20  ;;  %v13676_v10 = vcombine.high %v5317_v30, %v5324_v18  ;;  %v6335_v54 = vcombine.low %v5333_v36, %v5340_v55 }
 0x2f4   : > { %v13677_v43 = vcombine.high %v5333_v36, %v5340_v55  ;;  %v8659_v37 = vsel %vm7197_vm1, %v5028_v40, 0  ;;  %v6326_v53 = vrot.slane %v6319_v6, %v15499_v20  ;;  %v14029_v52 = vpop.f32.mrf.mxu1  ;;  %v2891_v26 = vshrl.u32 %v17451_v23, 16 }
 0x2f5   : > { %14196 = vmatmul.mubr.msk.bf16.vlgmr.msra.gmra.mxu0 %vm7197_vm1, %v2889_v4  ;;  %v6308_v57 = vrot.slane %v6301_v31, %v15502_v21  ;;  %v6309_v51 = vcombine.low %v6292_v62, %v6300_v63  ;;  %v6334_v28 = vrot.slane %v13676_v10, %v15499_v20  ;;  %v6342_v9 = vrot.slane %v6335_v54, %v15499_v20 }
 0x2f6   : > { %14207 = vmatprep.mubr.msk.bf16.mxu0 %vm15112_vm0, %v20070_v58  ;;  %v6350_v25 = vrot.slane %v13677_v43, %v15499_v20  ;;  %v8703_v7 = vsel %vm8702_vm2, %v17250_v0, -inf  ;;  %v17499_v13 = vpop.f32.mrf.mxu0  ;;  %v17501_v35 = vpop.f32.mrf.mxu1  ;;  %v2890_v23 = vshrl.u32 %v17448_v5, 16  ;;  %v8706_v46 = vsel %vm8702_vm2, %v17294_v24, -inf }
 0x2f7   : > { %v6316_v17 = vrot.slane %v6309_v51, %v15502_v21  ;;  %8704 = vmax.xlane.f32.xlu0 %v8703_v7  ;;  %v6351_v42 = vcombine.low %v6326_v53, %v6334_v28  ;;  %8707 = vmax.xlane.f32.xlu1 %v8706_v46  ;;  %v8709_v29 = vsel %vm8702_vm2, %v17412_v39, -inf  ;;  %v8727_v59 = vsel %vm8702_vm2, %v17458_v41, -inf }
 0x2f8   : > { %14190 = vmatmul.mubr.msk.bf16.vlgmr.msra.gmra.mxu1 %vm7197_vm1, %v2886_v27  ;;  %v6359_v3 = vcombine.low %v6342_v9, %v6350_v25  ;;  %v14053_v50 = vpop.f32.mrf.mxu0  ;;  %v14030_v33 = vpop.f32.mrf.mxu1  ;;  %v2892_v1 = vpack.i.b16 %v2891_v26, %v2890_v23  ;;  %v8712_v18 = vsel %vm8702_vm2, %v17436_v47, -inf  ;;  %v8715_v34 = vsel %vm8702_vm2, %v17484_v14, -inf }
 0x2f9   : > { %14200 = vmatpush3.bf16.xpose.msra.mxu1 %v8659_v37  ;;  %14201 = vmatprep.mubr.msk.bf16.mxu1 %vm15112_vm0, %v20070_v58  ;;  %v6317_v4 = vcombine.low %v6308_v57, %v6316_v17  ;;  %v6358_v5 = vrot.slane %v6351_v42, %v15502_v21  ;;  %v17516_v49 = vcombine.high %v6308_v57, %v6316_v17  ;;  %v8730_v6 = vsel %vm8702_vm2, %v17474_v16, -inf }
 0x2fa   : > { %14211 = vmatprep.subr.bf16.mxu1 %v20070_v58  ;;  %v6366_v32 = vrot.slane %v6359_v3, %v15502_v21  ;;  %v17513_v56 = vpop.f32.mrf.mxu0  ;;  %v8739_v62 = vsel %vm8702_vm2, %v17499_v13, -inf  ;;  %v8718_v63 = vsel %vm8702_vm2, %v17501_v35, -inf }
 0x2fb   : > { %8710 = vmax.xlane.f32.xlu0 %v8709_v29  ;;  %20258 = vst [vmem:[#allocation41_spill] sm:$0xff] %v17516_v49  ;;  %v7073_v30 = vshrl.u32 %v6317_v4, 16  ;;  %8728 = vmax.xlane.f32.xlu1 %v8727_v59  ;;  %v7081_v15 = vshrl.u32 %v17516_v49, 16  ;;  %v8742_v10 = vsel %vm8702_vm2, %v17513_v56, -inf }
 0x2fc   : > { %v6367_v60 = vcombine.low %v6358_v5, %v6366_v32  ;;  %v14054_v48 = vpop.f32.mrf.mxu0  ;;  %v17520_v12 = vcombine.high %v6358_v5, %v6366_v32 }
 0x2fe   : > { %20259 = vst [vmem:[#allocation24_spill] sm:$0xff] %v17520_v12  ;;  %v7071_v36 = vpack.i.b16 %v6367_v60, %v6317_v4  ;;  %v7074_v55 = vshrl.u32 %v6367_v60, 16  ;;  %v7082_v40 = vshrl.u32 %v17520_v12, 16 }
 0x2ff   : > { %8713 = vmax.xlane.f32.xlu0 %v8712_v18  ;;  %8716 = vmax.xlane.f32.xlu1 %v8715_v34 }
 0x300   : > { %14202 = vmatmul.mubr.msk.bf16.vlgmr.msra.gmra.mxu1 %vm7197_vm1, %v2892_v1  ;;  %14206 = vmatpush3.bf16.msra.mxu0 %v7071_v36  ;;  %v7075_v44 = vpack.i.b16 %v7074_v55, %v7073_v30  ;;  %v17532_v27 = vpack.i.b16 %v7082_v40, %v7081_v15 }
 0x301   : > { %14213 = vmatprep.mubr.msk.bf16.mxu1 %vm15112_vm0, %v20070_v58  ;;  %14217 = vmatprep.subr.bf16.mxu0 %v20070_v58 }
 0x302   : > { %20260 = vst [vmem:[#allocation23_spill] sm:$0xff] %v17532_v27  ;;  %14212 = vmatpush3.bf16.msra.mxu1 %v7075_v44 }
 0x303   : > { %8731 = vmax.xlane.f32.xlu0 %v8730_v6  ;;  %14223 = vmatprep.subr.bf16.mxu1 %v20070_v58 }
 0x304   : > { %8740 = vmax.xlane.f32.xlu1 %v8739_v62 }
 0x307   : > { %8719 = vmax.xlane.f32.xlu0 %v8718_v63 }
 0x309   : > { %v17540_v31 = vpop.f32.mrf.mxu1 }
 0x30a   : > { %v8721_v53 = vsel %vm8702_vm2, %v17540_v31, -inf }
 0x30b   : > { %v14035_v54 = vpop.f32.mrf.mxu1  ;;  %8743 = vmax.xlane.f32.xlu0 %v8742_v10  ;;  %8722 = vmax.xlane.f32.xlu1 %v8721_v53 }
 0x30d   : > { %v17544_v43 = vpop.f32.mrf.mxu1 }
 0x30e   : > { %v8724_v52 = vsel %vm8702_vm2, %v17544_v43, -inf }
 0x30f   : > { %v14036_v37 = vpop.f32.mrf.mxu1  ;;  %8725 = vmax.xlane.f32.xlu0 %v8724_v52 }
 0x310   : > { %v17598_v37 = vpop.permute.xlu1 %5055 }
 0x311   : > { %20261 = vst [vmem:[#allocation44_spill] sm:$0xff] %v17598_v37 }
 0x314   : > { %v17600_v52 = vpop.permute.xlu1 %5071 }
 0x315   : > { %20262 = vst [vmem:[#allocation43_spill] sm:$0xff] %v17600_v52 }
 0x31c   : > { %v17550_v26 = vpop.f32.mrf.mxu0  ;;  %v17552_v57 = vpop.f32.mrf.mxu1 }
 0x31d   : > { %v8751_v28 = vsel %vm8702_vm2, %v17550_v26, -inf  ;;  %v8733_v23 = vsel %vm8702_vm2, %v17552_v57, -inf }
 0x31e   : > { %v14065_v51 = vpop.f32.mrf.mxu0  ;;  %v14047_v9 = vpop.f32.mrf.mxu1  ;;  %8752 = vmax.xlane.f32.xlu1 %v8751_v28 }
 0x320   : > { %v17556_v25 = vpop.f32.mrf.mxu0  ;;  %v17562_v17 = vpop.f32.mrf.mxu1 }
 0x321   : > { %v8754_v7 = vsel %vm8702_vm2, %v17556_v25, -inf  ;;  %v8736_v42 = vsel %vm8702_vm2, %v17562_v17, -inf }
 0x322   : > { %v14066_v46 = vpop.f32.mrf.mxu0  ;;  %8755 = vmax.xlane.f32.xlu0 %v8754_v7  ;;  %v14048_v3 = vpop.f32.mrf.mxu1  ;;  %8734 = vmax.xlane.f32.xlu1 %v8733_v23 }
 0x323   : > { %v17606_v7 = vpop.permute.xlu1 %5041 }
 0x324   : > { %20263 = vst [vmem:[#allocation21_spill] sm:$0xff] %v17606_v7 }
 0x326   : > { %8737 = vmax.xlane.f32.xlu0 %v8736_v42 }
 0x327   : > { %v17612_v3 = vpop.permute.xlu1 %5073 }
 0x328   : > { %20264 = vst [vmem:[#allocation22_spill] sm:$0xff] %v17612_v3 }
 0x329   : > { %v17566_v29 = vpop.f32.mrf.mxu0 }
 0x32a   : > { %v8763_v50 = vsel %vm8702_vm2, %v17566_v29, -inf }
 0x32b   : > { %v14077_v33 = vpop.f32.mrf.mxu0  ;;  %8764 = vmax.xlane.f32.xlu1 %v8763_v50 }
 0x32d   : > { %v17570_v1 = vpop.f32.mrf.mxu0 }
 0x32e   : > { %v8766_v59 = vsel %vm8702_vm2, %v17570_v1, -inf }
 0x32f   : > { %v14078_v4 = vpop.f32.mrf.mxu0  ;;  %8767 = vmax.xlane.f32.xlu0 %v8766_v59 }
 0x330   : > { %v17618_v4 = vpop.permute.xlu1 %5059 }
 0x331   : > { %20265 = vst [vmem:[#allocation12_spill] sm:$0xff] %v17618_v4 }
 0x33b   : > { %v17574_v5 = vpop.f32.mrf.mxu1 }
 0x33c   : > { %v8745_v18 = vsel %vm8702_vm2, %v17574_v5, -inf }
 0x33d   : > { %v14059_v32 = vpop.f32.mrf.mxu1  ;;  %8746 = vmax.xlane.f32.xlu1 %v8745_v18 }
 0x33f   : > { %v17576_v60 = vpop.f32.mrf.mxu1 }
 0x340   : > { %v8748_v48 = vsel %vm8702_vm2, %v17576_v60, -inf }
 0x341   : > { %v14060_v30 = vpop.f32.mrf.mxu1  ;;  %8749 = vmax.xlane.f32.xlu0 %v8748_v48  ;;  %v17624_v48 = vpop.permute.xlu1 %5075 }
 0x342   : > { %20266 = vst [vmem:[#allocation13_spill] sm:$0xff] %v17624_v48 }
 0x347   : > { %v17582_v34 = vpop.f32.mrf.mxu0 }
 0x348   : > { %v8775_v36 = vsel %vm8702_vm2, %v17582_v34, -inf }
 0x349   : > { %v14089_v15 = vpop.f32.mrf.mxu0  ;;  %8776 = vmax.xlane.f32.xlu1 %v8775_v36 }
 0x34b   : > { %v17586_v55 = vpop.f32.mrf.mxu0 }
 0x34c   : > { %v8778_v6 = vsel %vm8702_vm2, %v17586_v55, -inf }
 0x34d   : > { %v14090_v40 = vpop.f32.mrf.mxu0  ;;  %v17588_v44 = vpop.f32.mrf.mxu1  ;;  %8779 = vmax.xlane.f32.xlu0 %v8778_v6 }
 0x34e   : > { %v8757_v62 = vsel %vm8702_vm2, %v17588_v44, -inf }
 0x34f   : > { %v14071_v63 = vpop.f32.mrf.mxu1  ;;  %8758 = vmax.xlane.f32.xlu1 %v8757_v62 }
 0x351   : > { %v17594_v10 = vpop.f32.mrf.mxu1 }
 0x352   : > { %v8760_v54 = vsel %vm8702_vm2, %v17594_v10, -inf }
 0x353   : > { %v14072_v53 = vpop.f32.mrf.mxu1  ;;  %8761 = vmax.xlane.f32.xlu0 %v8760_v54  ;;  %v17634_v54 = vpop.permute.xlu1 %5045 }
 0x354   : > { %20267 = vst [vmem:[#allocation30_spill] sm:$0xff] %v17634_v54 }
 0x35a   : > { %v17602_v51 = vpop.f32.mrf.mxu0 }
 0x35b   : > { %v8787_v28 = vsel %vm8702_vm2, %v17602_v51, -inf }
 0x35c   : > { %v14101_v9 = vpop.f32.mrf.mxu0  ;;  %8788 = vmax.xlane.f32.xlu1 %v8787_v28 }
 0x35e   : > { %v17608_v23 = vpop.f32.mrf.mxu0 }
 0x35f   : > { %v8790_v46 = vsel %vm8702_vm2, %v17608_v23, -inf }
 0x360   : > { %v14102_v42 = vpop.f32.mrf.mxu0  ;;  %8791 = vmax.xlane.f32.xlu0 %v8790_v46 }
 0x369   : > { %v17614_v50 = vpop.f32.mrf.mxu1 }
 0x36a   : > { %v8769_v33 = vsel %vm8702_vm2, %v17614_v50, -inf }
 0x36b   : > { %8770 = vmax.xlane.f32.xlu1 %v8769_v33  ;;  %v14083_v59 = vpop.f32.mrf.mxu1 }
 0x36c   : > { %v17644_v59 = vpop.permute.xlu0 %5039 }
 0x36d   : > { %v17620_v32 = vpop.f32.mrf.mxu1  ;;  %20268 = vst [vmem:[#allocation28_spill] sm:$0xff] %v17644_v59 }
 0x36e   : > { %v8772_v30 = vsel %vm8702_vm2, %v17620_v32, -inf }
 0x36f   : > { %8773 = vmax.xlane.f32.xlu0 %v8772_v30  ;;  %v14084_v18 = vpop.f32.mrf.mxu1 }
 0x374   : > { %v17626_v15 = vpop.f32.mrf.mxu0 }
 0x375   : > { %v8799_v36 = vsel %vm8702_vm2, %v17626_v15, -inf  ;;  %v17630_v40 = vpop.f32.mrf.mxu1 }
 0x376   : > { %v14113_v6 = vpop.f32.mrf.mxu0  ;;  %8800 = vmax.xlane.f32.xlu1 %v8799_v36  ;;  %v8781_v62 = vsel %vm8702_vm2, %v17630_v40, -inf }
 0x377   : > { %v14095_v63 = vpop.f32.mrf.mxu1  ;;  %v17652_v6 = vpop.permute.xlu1 %5077 }
 0x378   : > { %v17636_v53 = vpop.f32.mrf.mxu0  ;;  %20269 = vst [vmem:[#allocation29_spill] sm:$0xff] %v17652_v6 }
 0x379   : > { %v8802_v28 = vsel %vm8702_vm2, %v17636_v53, -inf  ;;  %v17640_v9 = vpop.f32.mrf.mxu1 }
 0x37a   : > { %v14114_v46 = vpop.f32.mrf.mxu0  ;;  %8803 = vmax.xlane.f32.xlu0 %v8802_v28  ;;  %8782 = vmax.xlane.f32.xlu1 %v8781_v62  ;;  %v8784_v42 = vsel %vm8702_vm2, %v17640_v9, -inf }
 0x37b   : > { %v14096_v33 = vpop.f32.mrf.mxu1  ;;  %v17656_v46 = vpop.permute.xlu0 %5057 }
 0x37c   : > { %20270 = vst [vmem:[#allocation14_spill] sm:$0xff] %v17656_v46 }
 0x37d   : > { %v17646_v30 = vpop.f32.mrf.mxu0 }
 0x37e   : > { %v8811_v18 = vsel %vm8702_vm2, %v17646_v30, -inf  ;;  %v17650_v36 = vpop.f32.mrf.mxu1  ;;  %8785 = vmax.xlane.f32.xlu0 %v8784_v42 }
 0x37f   : > { %v14125_v63 = vpop.f32.mrf.mxu0  ;;  %8812 = vmax.xlane.f32.xlu1 %v8811_v18  ;;  %v8793_v62 = vsel %vm8702_vm2, %v17650_v36, -inf }
 0x380   : > { %v14107_v28 = vpop.f32.mrf.mxu1  ;;  %v17666_v63 = vpop.permute.xlu1 %5063 }
 0x381   : > { %v17658_v33 = vpop.f32.mrf.mxu0  ;;  %20271 = vst [vmem:[#allocation45_spill] sm:$0xff] %v17666_v63  ;;  %v17670_v28 = vpop.permute.xlu0 %5043 }
 0x382   : > { %v8814_v8 = vsel %vm8702_vm2, %v17658_v33, -inf  ;;  %v17662_v38 = vpop.f32.mrf.mxu1  ;;  %20272 = vst [vmem:[#allocation48_spill] sm:$0xff] %v17670_v28 }
 0x383   : > { %v14126_v27 = vpop.f32.mrf.mxu0  ;;  %8815 = vmax.xlane.f32.xlu0 %v8814_v8  ;;  %8794 = vmax.xlane.f32.xlu1 %v8793_v62  ;;  %v8796_v18 = vsel %vm8702_vm2, %v17662_v38, -inf }
 0x384   : > { %v14108_v42 = vpop.f32.mrf.mxu1  ;;  %v17678_v8 = vpop.permute.xlu1 %5079 }
 0x385   : > { %v17676_v12 = vpop.permute.xlu0 %5061  ;;  %20274 = vst [vmem:[#allocation46_spill] sm:$0xff] %v17678_v8 }
 0x386   : > { %v17668_v6 = vpop.f32.mrf.mxu1  ;;  %20273 = vst [vmem:[#allocation49_spill] sm:$0xff] %v17676_v12 }
 0x387   : > { %8797 = vmax.xlane.f32.xlu0 %v8796_v18  ;;  %v8805_v63 = vsel %vm8702_vm2, %v17668_v6, -inf }
 0x388   : > { %v14119_v54 = vpop.f32.mrf.mxu1  ;;  %v17688_v18 = vpop.permute.xlu1 %5049 }
 0x389   : > { %20276 = vst [vmem:[#allocation34_spill] sm:$0xff] %v17688_v18  ;;  %v17692_v19 = vpop.permute.xlu0 %5047 }
 0x38a   : > { %v17674_v49 = vpop.f32.mrf.mxu1  ;;  %20277 = vst [vmem:[#allocation32_spill] sm:$0xff] %v17692_v19 }
 0x38b   : > { %v17672_v58 = vpop.f32.mrf.mxu0 }
 0x38c   : > { %v8823_v27 = vsel %vm8702_vm2, %v17672_v58, -inf  ;;  %v14120_v42 = vpop.f32.mrf.mxu1 }
 0x38d   : > { %v14137_v62 = vpop.f32.mrf.mxu0  ;;  %8824 = vmax.xlane.f32.xlu1 %v8823_v27  ;;  %v8808_v27 = vsel %vm8702_vm2, %v17674_v49, -inf }
 0x38f   : > { %v17684_v48 = vpop.f32.mrf.mxu0  ;;  %v17686_v54 = vpop.f32.mrf.mxu1 }
 0x390   : > { %20275 = vst [vmem:[#allocation47_spill] sm:$0xff] %v17686_v54  ;;  %v8826_v12 = vsel %vm8702_vm2, %v17684_v48, -inf }
 0x391   : > { %v14138_v4 = vpop.f32.mrf.mxu0  ;;  %8827 = vmax.xlane.f32.xlu0 %v8826_v12  ;;  %8806 = vmax.xlane.f32.xlu1 %v8805_v63  ;;  %v14131_v8 = vpop.f32.mrf.mxu1  ;;  %v8817_v63 = vsel %vm8702_vm2, %v17686_v54, -inf }
 0x392   : > { %v17702_v4 = vpop.permute.xlu0 %5065  ;;  %v17704_v12 = vpop.permute.xlu1 %5081 }
 0x393   : > { %v17696_v62 = vpop.f32.mrf.mxu0  ;;  %v17698_v42 = vpop.f32.mrf.mxu1  ;;  %20279 = vst [vmem:[#allocation50_spill] sm:$0xff] %v17702_v4  ;;  %20280 = vst [vmem:[#allocation36_spill] sm:$0xff] %v17704_v12 }
 0x394   : > { %20278 = vst [vmem:[#allocation33_spill] sm:$0xff] %v17698_v42  ;;  %v8835_v28 = vsel %vm8702_vm2, %v17696_v62, -inf }
 0x395   : > { %v14149_v18 = vpop.f32.mrf.mxu0  ;;  %8836 = vmax.xlane.f32.xlu1 %v8835_v28  ;;  %8809 = vmax.xlane.f32.xlu0 %v8808_v27  ;;  %v14132_v22 = vpop.f32.mrf.mxu1 }
 0x396   : > { %v8820_v22 = vsel %vm8702_vm2, %v17698_v42, -inf  ;;  %v8705_v18 = vpop.xlane.xlu0 %8704  ;;  %v17716_v27 = vpop.xlane.xlu1 %8707 }
 0x397   : > { %v17708_v8 = vpop.f32.mrf.mxu0 }
 0x398   : > { %20281 = vst [vmem:[#allocation51_spill] sm:$0xff] %v17708_v8  ;;  %v17710_v19 = vpop.f32.mrf.mxu1  ;;  %v8838_v2 = vsel %vm8702_vm2, %v17708_v8, -inf }
 0x399   : > { %20282 = vst [vmem:[#allocation52_spill] sm:$0xff] %v17710_v19  ;;  %v14150_v61 = vpop.f32.mrf.mxu0  ;;  %8839 = vmax.xlane.f32.xlu0 %v8838_v2  ;;  %8818 = vmax.xlane.f32.xlu1 %v8817_v63  ;;  %v8829_v2 = vsel %vm8702_vm2, %v17710_v19, -inf }
 0x39a   : > { %v14143_v28 = vpop.f32.mrf.mxu1  ;;  %v8711_v63 = vpop.xlane.xlu0 %8710 }
 0x39b   : > { %v17726_v28 = vpop.xlane.xlu1 %8728 }
 0x39c   : > { %v17720_v4 = vpop.f32.mrf.mxu1 }
 0x39d   : > { %v17718_v12 = vpop.f32.mrf.mxu0  ;;  %20284 = vst [vmem:[#allocation35_spill] sm:$0xff] %v17720_v4  ;;  %8821 = vmax.xlane.f32.xlu0 %v8820_v22 }
 0x39e   : > { %20283 = vst [vmem:[#allocation16_spill] sm:$0xff] %v17718_v12  ;;  %v8847_v11 = vsel %vm8702_vm2, %v17718_v12, -inf  ;;  %v14144_v61 = vpop.f32.mrf.mxu1  ;;  %v17740_v45 = vpop.xlane.xlu0 %8713 }
 0x39f   : > { %v14161_v46 = vpop.f32.mrf.mxu0  ;;  %8848 = vmax.xlane.f32.xlu1 %v8847_v11  ;;  %v17742_v19 = vpop.xlane.xlu1 %8716 }
 0x3a0   : > { %v17730_v7 = vpop.f32.mrf.mxu1 }
 0x3a1   : > { %v17728_v3 = vpop.f32.mrf.mxu0 }
 0x3a2   : > { %20285 = vst [vmem:[#allocation26_spill] sm:$0xff] %v17728_v3  ;;  %v8850_v21 = vsel %vm8702_vm2, %v17728_v3, -inf  ;;  %v14155_v46 = vpop.f32.mrf.mxu1  ;;  %v8895_v3 = vsub.f32 %v17250_v0, %v8705_v18  ;;  %v8732_v42 = vpop.xlane.xlu0 %8731 }
 0x3a3   : > { %v14162_v20 = vpop.f32.mrf.mxu0  ;;  %8851 = vmax.xlane.f32.xlu0 %v8850_v21  ;;  %8830 = vmax.xlane.f32.xlu1 %v8829_v2  ;;  %v8832_v2 = vsel %vm8702_vm2, %v17720_v4, -inf }
 0x3a4   : > { %v17736_v22 = vpop.f32.mrf.mxu1 }
 0x3a5   : > { %v17734_v11 = vpop.f32.mrf.mxu0  ;;  %20287 = vst [vmem:[#allocation27_spill] sm:$0xff] %v17736_v22 }
 0x3a6   : > { %20286 = vst [vmem:[#allocation15_spill] sm:$0xff] %v17734_v11  ;;  %v8859_v61 = vsel %vm8702_vm2, %v17734_v11, -inf  ;;  %v14156_v59 = vpop.f32.mrf.mxu1  ;;  %v8720_v4 = vpop.xlane.xlu0 %8719 }
 0x3a7   : > { %v14173_v52 = vpop.f32.mrf.mxu0  ;;  %8860 = vmax.xlane.f32.xlu0 %v8859_v61 }
 0x3a8   : > { %v17746_v20 = vpop.f32.mrf.mxu1  ;;  %v8741_v52 = vpop.xlane.xlu1 %8740 }
 0x3a9   : > { %v17744_v37 = vpop.f32.mrf.mxu0 }
 0x3aa   : > { %20288 = vst [vmem:[#allocation54_spill] sm:$0xff] %v17744_v37  ;;  %v8862_v21 = vsel %vm8702_vm2, %v17744_v37, -inf  ;;  %v14167_v11 = vpop.f32.mrf.mxu1  ;;  %v8841_v37 = vsel %vm8702_vm2, %v17730_v7, -inf }
 0x3ab   : > { %v14174_v46 = vpop.f32.mrf.mxu0  ;;  %8863 = vmax.xlane.f32.xlu1 %v8862_v21  ;;  %8833 = vmax.xlane.f32.xlu0 %v8832_v2  ;;  %v8959_v2 = vmul.f32 1.442695, %v8895_v3  ;;  %v8897_v11 = vsub.f32 %v17412_v39, %v8711_v63  ;;  %v8896_v39 = vsub.f32 %v17294_v24, %v17716_v27  ;;  %v8903_v24 = vsub.f32 %v17458_v41, %v17726_v28  ;;  %v8744_v27 = vpop.xlane.xlu0 %8743 }
 0x3ac   : > { %v17755_v59 = vpop.f32.mrf.mxu1  ;;  %v17770_v8 = vpop.xlane.xlu1 %8722 }
 0x3ad   : > { %v17753_v61 = vpop.f32.mrf.mxu0  ;;  %14694 = vpow2.f32 %v8959_v2  ;;  %v8963_v3 = vmul.f32 1.442695, %v8897_v11  ;;  %v8975_v28 = vmul.f32 1.442695, %v8903_v24 }
 0x3ae   : > { %20289 = vst [vmem:[#allocation55_spill] sm:$0xff] %v17753_v61  ;;  %v8871_v12 = vsel %vm8702_vm2, %v17753_v61, -inf  ;;  %v14168_v21 = vpop.f32.mrf.mxu1  ;;  %v8844_v61 = vsel %vm8702_vm2, %v17736_v22, -inf }
 0x3af   : > { %v14185_v54 = vpop.f32.mrf.mxu0  ;;  %8872 = vmax.xlane.f32.xlu0 %v8871_v12  ;;  %8842 = vmax.xlane.f32.xlu1 %v8841_v37  ;;  %v8904_v12 = vsub.f32 %v17474_v16, %v8732_v42  ;;  %14696 = vpow2.f32 %v8963_v3  ;;  %v8907_v42 = vsub.f32 %v17499_v13, %v8741_v52 }
 0x3b0   : > { %v17764_v18 = vpop.f32.mrf.mxu1  ;;  %v8753_v2 = vpop.xlane.xlu1 %8752 }
 0x3b1   : > { %v17762_v0 = vpop.f32.mrf.mxu0  ;;  %v8977_v16 = vmul.f32 1.442695, %v8904_v12  ;;  %v8983_v52 = vmul.f32 1.442695, %v8907_v42  ;;  %v8898_v12 = vsub.f32 %v17436_v47, %v17740_v45  ;;  %v8911_v42 = vsub.f32 %v17550_v26, %v8753_v2 }
 0x3b2   : > { %v8874_v46 = vsel %vm8702_vm2, %v17762_v0, -inf  ;;  %v14179_v37 = vpop.f32.mrf.mxu1 }
 0x3b3   : > { %v14186_v54 = vpop.f32.mrf.mxu0  ;;  %8875 = vmax.xlane.f32.xlu1 %v8874_v46  ;;  %8845 = vmax.xlane.f32.xlu0 %v8844_v61  ;;  %v8961_v37 = vmul.f32 1.442695, %v8896_v39  ;;  %v8965_v47 = vmul.f32 1.442695, %v8898_v12 }
 0x3b4   : > { %v17777_v21 = vpop.f32.mrf.mxu1  ;;  %v8853_v54 = vsel %vm8702_vm2, %v17746_v20, -inf  ;;  %v17803_v24 = vpop.xlane.xlu1 %8734 }
 0x3b5   : > { %v17775_v63 = vpop.f32.mrf.mxu0  ;;  %14698 = vpow2.f32 %v8961_v37  ;;  %v8868_v13 = vsel %vm8702_vm2, %v17777_v21, -inf }
 0x3b6   : > { %20290 = vst [vmem:[#allocation56_spill] sm:$0xff] %v17775_v63  ;;  %v8883_v22 = vsel %vm8702_vm2, %v17775_v63, -inf  ;;  %v14180_v61 = vpop.f32.mrf.mxu1  ;;  %14700 = vpow2.f32 %v8977_v16 }
 0x3b7   : > { %v14197_v46 = vpop.f32.mrf.mxu0  ;;  %8884 = vmax.xlane.f32.xlu1 %v8883_v22  ;;  %8854 = vmax.xlane.f32.xlu0 %v8853_v54  ;;  %v8856_v22 = vsel %vm8702_vm2, %v17755_v59, -inf  ;;  %v8865_v54 = vsel %vm8702_vm2, %v17764_v18, -inf  ;;  %v8900_v61 = vsub.f32 %v17501_v35, %v8720_v4  ;;  %14702 = vpow2.f32 %v8975_v28 }
 0x3b8   : > { %v17788_v63 = vpop.f32.mrf.mxu1  ;;  %14704 = vpow2.f32 %v8983_v52  ;;  %v8899_v4 = vsub.f32 %v17484_v14, %v17742_v19  ;;  %v8908_v28 = vsub.f32 %v17513_v56, %v8744_v27  ;;  %v8765_v19 = vpop.xlane.xlu1 %8764 }
 0x3b9   : > { %v17786_v11 = vpop.f32.mrf.mxu0  ;;  %v8877_v16 = vsel %vm8702_vm2, %v17788_v63, -inf  ;;  %14706 = vpow2.f32 %v8965_v47  ;;  %v8915_v47 = vsub.f32 %v17566_v29, %v8765_v19 }
 0x3ba   : > { %20291 = vst [vmem:[#allocation57_spill] sm:$0xff] %v17786_v11  ;;  %v8886_v46 = vsel %vm8702_vm2, %v17786_v11, -inf  ;;  %v14191_v41 = vpop.f32.mrf.mxu1  ;;  %v8967_v14 = vmul.f32 1.442695, %v8899_v4  ;;  %v8985_v27 = vmul.f32 1.442695, %v8908_v28 }
 0x3bb   : > { %v14198_v39 = vpop.f32.mrf.mxu0  ;;  %8887 = vmax.xlane.f32.xlu0 %v8886_v46  ;;  %8857 = vmax.xlane.f32.xlu1 %v8856_v22  ;;  %v8726_v46 = vpop.xlane.xlu0 %8725 }
 0x3bc   : > { %v17796_v3 = vpop.f32.mrf.mxu1  ;;  %v17808_v22 = vpop.eup %14694  ;;  %v8969_v39 = vmul.f32 1.442695, %v8900_v61  ;;  %v8902_v61 = vsub.f32 %v17544_v43, %v8726_v46  ;;  %v8901_v43 = vsub.f32 %v17540_v31, %v17770_v8 }
 0x3bd   : > { %v8880_v26 = vsel %vm8702_vm2, %v17796_v3, -inf  ;;  %v9087_v2 = vsel %vm8702_vm2, %v17808_v22, 0.0  ;;  %v17821_v12 = vpop.eup %14696 }
 0x3be   : > { %v14192_v37 = vpop.f32.mrf.mxu1  ;;  %14708 = vpow2.f32 %v8969_v39  ;;  %v8973_v46 = vmul.f32 1.442695, %v8902_v61 }
 0x3bf   : > { %8866 = vmax.xlane.f32.xlu0 %v8865_v54  ;;  %8869 = vmax.xlane.f32.xlu1 %v8868_v13  ;;  %v8991_v13 = vmul.f32 1.442695, %v8911_v42  ;;  %v8756_v52 = vpop.xlane.xlu0 %8755  ;;  %v9093_v42 = vsel %vm8702_vm2, %v17821_v12, 0.0 }
 0x3c0   : > { %v17810_v45 = vpop.f32.mrf.mxu1  ;;  %v8912_v28 = vsub.f32 %v17556_v25, %v8756_v52  ;;  %v8905_v52 = vsub.f32 %v17552_v57, %v17803_v24 }
 0x3c1   : > { %20292 = vst [vmem:[#allocation58_spill] sm:$0xff] %v17810_v45  ;;  %v8889_v35 = vsel %vm8702_vm2, %v17810_v45, -inf  ;;  %14710 = vpow2.f32 %v8991_v13  ;;  %v8971_v13 = vmul.f32 1.442695, %v8901_v43 }
 0x3c2   : > { %v14203_v41 = vpop.f32.mrf.mxu1  ;;  %v17826_v37 = vpop.eup %14698  ;;  %14712 = vpow2.f32 %v8967_v14  ;;  %v8993_v8 = vmul.f32 1.442695, %v8912_v28  ;;  %v8979_v43 = vmul.f32 1.442695, %v8905_v52 }
 0x3c3   : > { %8878 = vmax.xlane.f32.xlu0 %v8877_v16  ;;  %8890 = vmax.xlane.f32.xlu1 %v8889_v35  ;;  %v17833_v35 = vpop.eup %14700  ;;  %v9090_v4 = vsel %vm8702_vm2, %v17826_v37, 0.0  ;;  %v8738_v39 = vpop.xlane.xlu0 %8737  ;;  %14714 = vpow2.f32 %v8985_v27 }
 0x3c4   : > { %v17823_v54 = vpop.f32.mrf.mxu1  ;;  %v17839_v41 = vpop.eup %14702  ;;  %v9114_v29 = vsel %vm8702_vm2, %v17833_v35, 0.0  ;;  %14716 = vpow2.f32 %v8973_v46  ;;  %v8906_v31 = vsub.f32 %v17562_v17, %v8738_v39 }
 0x3c5   : > { %20293 = vst [vmem:[#allocation59_spill] sm:$0xff] %v17823_v54  ;;  %v8892_v16 = vsel %vm8702_vm2, %v17823_v54, -inf  ;;  %v9111_v19 = vsel %vm8702_vm2, %v17839_v41, 0.0 }
 0x3c6   : > { %v14204_v56 = vpop.f32.mrf.mxu1  ;;  %v8747_v17 = vpop.xlane.xlu1 %8746 }
 0x3c7   : > { %8881 = vmax.xlane.f32.xlu0 %v8880_v26  ;;  %9088 = vadd.xlane.f32.xlu1 %v9087_v2  ;;  %v8999_v26 = vmul.f32 1.442695, %v8915_v47  ;;  %v17844_v2 = vpop.eup %14704  ;;  %v8768_v14 = vpop.xlane.xlu0 %8767  ;;  %v8981_v56 = vmul.f32 1.442695, %v8906_v31 }
 0x3c8   : > { %20294 = vst [vmem:[#allocation60_spill] sm:$0xff] %v17844_v2  ;;  %v9123_v25 = vsel %vm8702_vm2, %v17844_v2, 0.0  ;;  %v17853_v61 = vpop.eup %14706 }
 0x3c9   : > { %14718 = vpow2.f32 %v8999_v26  ;;  %v9096_v57 = vsel %vm8702_vm2, %v17853_v61, 0.0 }
 0x3ca   : > { %14720 = vpow2.f32 %v8971_v13 }
 0x3cb   : > { %8893 = vmax.xlane.f32.xlu0 %v8892_v16  ;;  %9094 = vadd.xlane.f32.xlu1 %v9093_v42  ;;  %v17855_v27 = vpop.eup %14708  ;;  %14722 = vpow2.f32 %v8993_v8  ;;  %v8916_v16 = vsub.f32 %v17570_v1, %v8768_v14  ;;  %v8909_v42 = vsub.f32 %v17574_v5, %v8747_v17  ;;  %v8750_v5 = vpop.xlane.xlu0 %8749 }
 0x3cc   : > { %14724 = vpow2.f32 %v8981_v56  ;;  %v9102_v46 = vsel %vm8702_vm2, %v17855_v27, 0.0 }
 0x3cd   : > { %v8987_v24 = vmul.f32 1.442695, %v8909_v42  ;;  %v9001_v28 = vmul.f32 1.442695, %v8916_v16  ;;  %14726 = vpow2.f32 %v8979_v43 }
 0x3ce   : > { %v17859_v47 = vpop.eup %14710 }
 0x3cf   : > { %9091 = vadd.xlane.f32.xlu0 %v9090_v4  ;;  %9115 = vadd.xlane.f32.xlu1 %v9114_v29  ;;  %20295 = vst [vmem:[#allocation61_spill] sm:$0xff] %v17859_v47  ;;  %v17865_v4 = vpop.eup %14712  ;;  %v9135_v26 = vsel %vm8702_vm2, %v17859_v47, 0.0  ;;  %14728 = vpow2.f32 %v8987_v24 }
 0x3d0   : > { %v17870_v29 = vpop.eup %14714  ;;  %v9099_v13 = vsel %vm8702_vm2, %v17865_v4, 0.0  ;;  %14730 = vpow2.f32 %v9001_v28 }
 0x3d1   : > { %20296 = vst [vmem:[#allocation62_spill] sm:$0xff] %v17870_v29  ;;  %v17874_v31 = vpop.eup %14716 }
 0x3d2   : > { %v8777_v39 = vpop.xlane.xlu1 %8776  ;;  %v9108_v56 = vsel %vm8702_vm2, %v17874_v31, 0.0 }
 0x3d3   : > { %9112 = vadd.xlane.f32.xlu0 %v9111_v19  ;;  %9124 = vadd.xlane.f32.xlu1 %v9123_v25  ;;  %v8919_v1 = vsub.f32 %v17582_v34, %v8777_v39  ;;  %v9126_v34 = vsel %vm8702_vm2, %v17870_v29, 0.0  ;;  %v8910_v25 = vsub.f32 %v17576_v60, %v8750_v5 }
 0x3d5   : > { %v9007_v8 = vmul.f32 1.442695, %v8919_v1 }
 0x3d6   : > { %v17878_v19 = vpop.eup %14718  ;;  %v8780_v52 = vpop.xlane.xlu0 %8779 }
 0x3d7   : > { %9097 = vadd.xlane.f32.xlu0 %v9096_v57  ;;  %9103 = vadd.xlane.f32.xlu1 %v9102_v46  ;;  %20297 = vst [vmem:[#allocation63_spill] sm:$0xff] %v17878_v19  ;;  %v17883_v17 = vpop.eup %14720  ;;  %v8920_v16 = vsub.f32 %v17586_v55, %v8780_v52  ;;  %14732 = vpow2.f32 %v9007_v8  ;;  %v9147_v43 = vsel %vm8702_vm2, %v17878_v19, 0.0  ;;  %v8989_v46 = vmul.f32 1.442695, %v8910_v25 }
 0x3d8   : > { %v8759_v14 = vpop.xlane.xlu1 %8758  ;;  %v17889_v57 = vpop.eup %14722  ;;  %v9105_v39 = vsel %vm8702_vm2, %v17883_v17, 0.0 }
 0x3d9   : > { %v8913_v42 = vsub.f32 %v17588_v44, %v8759_v14  ;;  %20298 = vst [vmem:[#allocation64_spill] sm:$0xff] %v17889_v57  ;;  %v9009_v60 = vmul.f32 1.442695, %v8920_v16  ;;  %v17893_v28 = vpop.eup %14724  ;;  %v9138_v55 = vsel %vm8702_vm2, %v17889_v57, 0.0 }
 0x3da   : > { %20299 = vst [vmem:[#allocation65_spill] sm:$0xff] %v17893_v28  ;;  %v17897_v44 = vpop.eup %14726  ;;  %v9120_v1 = vsel %vm8702_vm2, %v17893_v28, 0.0 }
 0x3db   : > { %9100 = vadd.xlane.f32.xlu0 %v9099_v13  ;;  %9136 = vadd.xlane.f32.xlu1 %v9135_v26  ;;  %v8995_v24 = vmul.f32 1.442695, %v8913_v42  ;;  %14734 = vpow2.f32 %v9009_v60  ;;  %20300 = vst [vmem:[#allocation66_spill] sm:$0xff] %v17897_v44 }
 0x3dc   : > { %v17901_v5 = vpop.eup %14728  ;;  %v8762_v26 = vpop.xlane.xlu0 %8761 }
 0x3dd   : > { %14736 = vpow2.f32 %v8995_v24  ;;  %20301 = vst [vmem:[#allocation67_spill] sm:$0xff] %v17901_v5  ;;  %v17903_v13 = vpop.eup %14730  ;;  %v8914_v8 = vsub.f32 %v17594_v10, %v8762_v26  ;;  %v9129_v25 = vsel %vm8702_vm2, %v17901_v5, 0.0 }
 0x3de   : > { %14738 = vpow2.f32 %v8989_v46  ;;  %20302 = vst [vmem:[#allocation68_spill] sm:$0xff] %v17903_v13 }
 0x3df   : > { %9127 = vadd.xlane.f32.xlu0 %v9126_v34  ;;  %9109 = vadd.xlane.f32.xlu1 %v9108_v56  ;;  %v9117_v34 = vsel %vm8702_vm2, %v17897_v44, 0.0  ;;  %v9150_v56 = vsel %vm8702_vm2, %v17903_v13, 0.0 }
 0x3e3   : > { %9106 = vadd.xlane.f32.xlu0 %v9105_v39  ;;  %9148 = vadd.xlane.f32.xlu1 %v9147_v43  ;;  %v8997_v43 = vmul.f32 1.442695, %v8914_v8 }
 0x3e4   : > { %v17913_v16 = vpop.eup %14732 }
 0x3e5   : > { %v8789_v52 = vpop.xlane.xlu1 %8788  ;;  %20303 = vst [vmem:[#allocation69_spill] sm:$0xff] %v17913_v16  ;;  %v9159_v46 = vsel %vm8702_vm2, %v17913_v16, 0.0 }
 0x3e6   : > { %v8923_v14 = vsub.f32 %v17602_v51, %v8789_v52 }
 0x3e7   : > { %9139 = vadd.xlane.f32.xlu0 %v9138_v55  ;;  %9121 = vadd.xlane.f32.xlu1 %v9120_v1 }
 0x3e8   : > { %v9015_v42 = vmul.f32 1.442695, %v8923_v14  ;;  %v17915_v10 = vpop.eup %14734 }
 0x3e9   : > { %v8792_v60 = vpop.xlane.xlu0 %8791  ;;  %20304 = vst [vmem:[#allocation70_spill] sm:$0xff] %v17915_v10  ;;  %v9162_v51 = vsel %vm8702_vm2, %v17915_v10, 0.0 }
 0x3ea   : > { %14740 = vpow2.f32 %v9015_v42  ;;  %v8924_v24 = vsub.f32 %v17608_v23, %v8792_v60  ;;  %v17922_v39 = vpop.eup %14736 }
 0x3eb   : > { %9118 = vadd.xlane.f32.xlu0 %v9117_v34  ;;  %9130 = vadd.xlane.f32.xlu1 %v9129_v25  ;;  %20305 = vst [vmem:[#allocation71_spill] sm:$0xff] %v17922_v39  ;;  %14742 = vpow2.f32 %v8997_v43  ;;  %v17924_v1 = vpop.eup %14738  ;;  %v9141_v26 = vsel %vm8702_vm2, %v17922_v39, 0.0  ;;  %v20361_v39 = vld [vmem:[#allocation38_spill] sm:$0xff] }
 0x3ec   : > { %v9017_v55 = vmul.f32 1.442695, %v8924_v24  ;;  %20306 = vst [vmem:[#allocation72_spill] sm:$0xff] %v17924_v1  ;;  %v9132_v23 = vsel %vm8702_vm2, %v17924_v1, 0.0 }
 0x3ee   : > { %14744 = vpow2.f32 %v9017_v55 }
 0x3ef   : > { %9151 = vadd.xlane.f32.xlu0 %v9150_v56  ;;  %9163 = vadd.xlane.f32.xlu1 %v9162_v51 }
 0x3f3   : > { %9160 = vadd.xlane.f32.xlu0 %v9159_v46  ;;  %9142 = vadd.xlane.f32.xlu1 %v9141_v26 }
 0x3f4   : > { %v8771_v8 = vpop.xlane.xlu1 %8770 }
 0x3f5   : > { %v8917_v34 = vsub.f32 %v17614_v50, %v8771_v8 }
 0x3f7   : > { %9133 = vadd.xlane.f32.xlu0 %v9132_v23  ;;  %v9003_v25 = vmul.f32 1.442695, %v8917_v34  ;;  %v17931_v52 = vpop.eup %14740 }
 0x3f8   : > { %20307 = vst [vmem:[#allocation73_spill] sm:$0xff] %v17931_v52  ;;  %v9171_v14 = vsel %vm8702_vm2, %v17931_v52, 0.0  ;;  %v17935_v56 = vpop.eup %14742  ;;  %v8774_v42 = vpop.xlane.xlu0 %8773 }
 0x3f9   : > { %14746 = vpow2.f32 %v9003_v25  ;;  %20308 = vst [vmem:[#allocation74_spill] sm:$0xff] %v17935_v56  ;;  %v8918_v60 = vsub.f32 %v17620_v32, %v8774_v42  ;;  %v9144_v50 = vsel %vm8702_vm2, %v17935_v56, 0.0 }
 0x3fb   : > { %9172 = vadd.xlane.f32.xlu0 %v9171_v14  ;;  %v17937_v43 = vpop.eup %14744  ;;  %v9005_v26 = vmul.f32 1.442695, %v8918_v60 }
 0x3fc   : > { %20309 = vst [vmem:[#allocation75_spill] sm:$0xff] %v17937_v43  ;;  %v9174_v24 = vsel %vm8702_vm2, %v17937_v43, 0.0 }
 0x3fd   : > { %9175 = vadd.xlane.f32.xlu1 %v9174_v24 }
 0x3ff   : > { %v8801_v46 = vpop.xlane.xlu1 %8800  ;;  %9145 = vadd.xlane.f32.xlu0 %v9144_v50 }
 0x400   : > { %v8927_v51 = vsub.f32 %v17626_v15, %v8801_v46 }
 0x402   : > { %v9023_v55 = vmul.f32 1.442695, %v8927_v51 }
 0x403   : > { %v8804_v23 = vpop.xlane.xlu0 %8803  ;;  %v8783_v8 = vpop.xlane.xlu1 %8782 }
 0x404   : > { %14748 = vpow2.f32 %v9023_v55  ;;  %v8928_v34 = vsub.f32 %v17636_v53, %v8804_v23  ;;  %v8921_v32 = vsub.f32 %v17630_v40, %v8783_v8 }
 0x405   : > { %14750 = vpow2.f32 %v9005_v26 }
 0x406   : > { %v9025_v25 = vmul.f32 1.442695, %v8928_v34  ;;  %v9011_v14 = vmul.f32 1.442695, %v8921_v32  ;;  %v17947_v42 = vpop.eup %14746 }
 0x407   : > { %20310 = vst [vmem:[#allocation76_spill] sm:$0xff] %v17947_v42  ;;  %v8786_v52 = vpop.xlane.xlu0 %8785  ;;  %v9153_v60 = vsel %vm8702_vm2, %v17947_v42, 0.0 }
 0x408   : > { %v8813_v11 = vpop.xlane.xlu1 %8812  ;;  %14752 = vpow2.f32 %v9025_v25  ;;  %v8922_v15 = vsub.f32 %v17640_v9, %v8786_v52  ;;  %9154 = vadd.xlane.f32.xlu0 %v9153_v60 }
 0x409   : > { %v8931_v24 = vsub.f32 %v17646_v30, %v8813_v11  ;;  %14754 = vpow2.f32 %v9011_v14 }
 0x40a   : > { %v9013_v50 = vmul.f32 1.442695, %v8922_v15 }
 0x40b   : > { %v9031_v53 = vmul.f32 1.442695, %v8931_v24 }
 0x40c   : > { %v8816_v40 = vpop.xlane.xlu0 %8815  ;;  %v8795_v46 = vpop.xlane.xlu1 %8794 }
 0x40d   : > { %14756 = vpow2.f32 %v9031_v53  ;;  %v8932_v51 = vsub.f32 %v17658_v33, %v8816_v40  ;;  %v8925_v55 = vsub.f32 %v17650_v36, %v8795_v46 }
 0x40e   : > { %14758 = vpow2.f32 %v9013_v50 }
 0x40f   : > { %v9033_v26 = vmul.f32 1.442695, %v8932_v51  ;;  %v9019_v23 = vmul.f32 1.442695, %v8925_v55 }
 0x410   : > { %v8798_v30 = vpop.xlane.xlu0 %8797 }
 0x411   : > { %14760 = vpow2.f32 %v9033_v26  ;;  %v17955_v9 = vpop.eup %14748  ;;  %v8926_v11 = vsub.f32 %v17662_v38, %v8798_v30 }
 0x412   : > { %20311 = vst [vmem:[#allocation77_spill] sm:$0xff] %v17955_v9  ;;  %14762 = vpow2.f32 %v9019_v23  ;;  %v9183_v52 = vsel %vm8702_vm2, %v17955_v9, 0.0  ;;  %v17960_v8 = vpop.eup %14750 }
 0x413   : > { %20312 = vst [vmem:[#allocation78_spill] sm:$0xff] %v17960_v8  ;;  %9184 = vadd.xlane.f32.xlu1 %v9183_v52  ;;  %v9021_v32 = vmul.f32 1.442695, %v8926_v11  ;;  %v9156_v25 = vsel %vm8702_vm2, %v17960_v8, 0.0 }
 0x415   : > { %v17962_v33 = vpop.eup %14752 }
 0x416   : > { %v8825_v34 = vpop.xlane.xlu1 %8824  ;;  %20313 = vst [vmem:[#allocation79_spill] sm:$0xff] %v17962_v33  ;;  %v9186_v14 = vsel %vm8702_vm2, %v17962_v33, 0.0  ;;  %v17969_v24 = vpop.eup %14754 }
 0x417   : > { %v8935_v36 = vsub.f32 %v17672_v58, %v8825_v34  ;;  %20314 = vst [vmem:[#allocation80_spill] sm:$0xff] %v17969_v24  ;;  %9157 = vadd.xlane.f32.xlu1 %v9156_v25  ;;  %9187 = vadd.xlane.f32.xlu0 %v9186_v14  ;;  %v9165_v46 = vsel %vm8702_vm2, %v17969_v24, 0.0 }
 0x419   : > { %v9039_v38 = vmul.f32 1.442695, %v8935_v36 }
 0x41a   : > { %v8828_v15 = vpop.xlane.xlu0 %8827  ;;  %v8807_v60 = vpop.xlane.xlu1 %8806 }
 0x41b   : > { %v17971_v53 = vpop.eup %14756  ;;  %14764 = vpow2.f32 %v9039_v38  ;;  %v8936_v50 = vsub.f32 %v17684_v48, %v8828_v15  ;;  %v8929_v58 = vsub.f32 %v17668_v6, %v8807_v60  ;;  %9166 = vadd.xlane.f32.xlu0 %v9165_v46  ;;  %v20319_v15 = vld [vmem:[#allocation51_spill] sm:$0xff] }
 0x41c   : > { %20315 = vst [vmem:[#allocation81_spill] sm:$0xff] %v17971_v53  ;;  %14766 = vpow2.f32 %v9021_v32  ;;  %v9195_v40 = vsel %vm8702_vm2, %v17971_v53, 0.0  ;;  %v17979_v51 = vpop.eup %14758  ;;  %v20320_v60 = vld [vmem:[#allocation47_spill] sm:$0xff] }
 0x41d   : > { %20316 = vst [vmem:[#allocation82_spill] sm:$0xff] %v17979_v51  ;;  %v9041_v55 = vmul.f32 1.442695, %v8936_v50  ;;  %v9027_v26 = vmul.f32 1.442695, %v8929_v58  ;;  %9196 = vadd.xlane.f32.xlu1 %v9195_v40  ;;  %v9168_v52 = vsel %vm8702_vm2, %v17979_v51, 0.0 }
 0x41e   : > { %v8837_v23 = vpop.xlane.xlu1 %8836  ;;  %v8810_v30 = vpop.xlane.xlu0 %8809 }
 0x41f   : > { %v17981_v11 = vpop.eup %14760  ;;  %14768 = vpow2.f32 %v9041_v55  ;;  %v8939_v48 = vsub.f32 %v17696_v62, %v8837_v23  ;;  %v8930_v6 = vsub.f32 %v17674_v49, %v8810_v30  ;;  %v20322_v30 = vld [vmem:[#allocation33_spill] sm:$0xff] }
 0x420   : > { %20317 = vst [vmem:[#allocation83_spill] sm:$0xff] %v17981_v11  ;;  %v9198_v34 = vsel %vm8702_vm2, %v17981_v11, 0.0  ;;  %v17989_v36 = vpop.eup %14762  ;;  %14770 = vpow2.f32 %v9027_v26  ;;  %v20321_v26 = vld [vmem:[#allocation16_spill] sm:$0xff] }
 0x421   : > { %20318 = vst [vmem:[#allocation84_spill] sm:$0xff] %v17989_v36  ;;  %v9047_v32 = vmul.f32 1.442695, %v8939_v48  ;;  %v9029_v25 = vmul.f32 1.442695, %v8930_v6  ;;  %9169 = vadd.xlane.f32.xlu1 %v9168_v52  ;;  %9199 = vadd.xlane.f32.xlu0 %v9198_v34  ;;  %v9177_v50 = vsel %vm8702_vm2, %v17989_v36, 0.0 }
 0x422   : > { %v8840_v14 = vpop.xlane.xlu0 %8839  ;;  %v8819_v38 = vpop.xlane.xlu1 %8818  ;;  %v20324_v52 = vld [vmem:[#allocation44_spill] sm:$0xff]  ;;  %v20329_v36 = vld [vmem:[#allocation26_spill] sm:$0xff] }
 0x423   : > { %14772 = vpow2.f32 %v9047_v32  ;;  %v8940_v62 = vsub.f32 %v20319_v15, %v8840_v14  ;;  %v8933_v49 = vsub.f32 %v20320_v60, %v8819_v38  ;;  %v5113_v34 = vshrl.u32 %v20324_v52, 16  ;;  %v20325_v32 = vld [vmem:[#allocation31_spill] sm:$0xff]  ;;  %v20326_v38 = vld [vmem:[#allocation28_spill] sm:$0xff] }
 0x424   : > { %14774 = vpow2.f32 %v9029_v25  ;;  %v5105_v14 = vshrl.u32 %v20325_v32, 16  ;;  %v5106_v15 = vshrl.u32 %v20326_v38, 16  ;;  %v20327_v60 = vld [vmem:[#allocation43_spill] sm:$0xff]  ;;  %v20330_v11 = vld [vmem:[#allocation52_spill] sm:$0xff] }
 0x425   : > { %v9049_v58 = vmul.f32 1.442695, %v8940_v62  ;;  %v9035_v40 = vmul.f32 1.442695, %v8933_v49  ;;  %9178 = vadd.xlane.f32.xlu0 %v9177_v50  ;;  %v5114_v25 = vshrl.u32 %v20327_v60, 16 }
 0x426   : > { %v8822_v55 = vpop.xlane.xlu0 %8821 }
 0x427   : > { %14776 = vpow2.f32 %v9049_v58  ;;  %v8934_v48 = vsub.f32 %v20322_v30, %v8822_v55  ;;  %v5111_v55 = vpack.i.b16 %v20327_v60, %v20324_v52 }
 0x428   : > { %v8849_v46 = vpop.xlane.xlu1 %8848  ;;  %v17997_v6 = vpop.eup %14764  ;;  %14778 = vpow2.f32 %v9035_v40 }
 0x429   : > { %v8943_v23 = vsub.f32 %v20321_v26, %v8849_v46  ;;  %20323 = vst [vmem:[#allocation51_spill] sm:$0xff] %v17997_v6  ;;  %v18003_v62 = vpop.eup %14766  ;;  %v9037_v50 = vmul.f32 1.442695, %v8934_v48  ;;  %v9207_v58 = vsel %vm8702_vm2, %v17997_v6, 0.0  ;;  %v5103_v46 = vpack.i.b16 %v20326_v38, %v20325_v32 }
 0x42a   : > { %20328 = vst [vmem:[#allocation47_spill] sm:$0xff] %v18003_v62  ;;  %9208 = vadd.xlane.f32.xlu0 %v9207_v58  ;;  %v5115_v48 = vpack.i.b16 %v5114_v25, %v5113_v34  ;;  %v9180_v6 = vsel %vm8702_vm2, %v18003_v62, 0.0 }
 0x42b   : > { %v9055_v49 = vmul.f32 1.442695, %v8943_v23  ;;  %v5107_v23 = vpack.i.b16 %v5106_v15, %v5105_v14  ;;  %v20334_v14 = vld [vmem:[#allocation18_spill] sm:$0xff]  ;;  %v20335_v15 = vld [vmem:[#allocation15_spill] sm:$0xff] }
 0x42c   : > { %v8852_v26 = vpop.xlane.xlu0 %8851  ;;  %v8831_v30 = vpop.xlane.xlu1 %8830  ;;  %v5352_v34 = vrot.slane %v5103_v46, %v20334_v14 }
 0x42d   : > { %14780 = vpow2.f32 %v9055_v49  ;;  %v8944_v53 = vsub.f32 %v20329_v36, %v8852_v26  ;;  %v8937_v51 = vsub.f32 %v20330_v11, %v8831_v30  ;;  %v18013_v40 = vpop.eup %14768  ;;  %v20333_v49 = vld [vmem:[#allocation17_spill] sm:$0xff]  ;;  %v5367_v26 = vrot.slane %v5111_v55, %v20334_v14 }
 0x42e   : > { %20331 = vst [vmem:[#allocation16_spill] sm:$0xff] %v18013_v40  ;;  %14782 = vpow2.f32 %v9037_v50  ;;  %v9210_v52 = vsel %vm8702_vm2, %v18013_v40, 0.0  ;;  %v18019_v60 = vpop.eup %14770  ;;  %v5345_v58 = vcombine.high %v5103_v46, %v20333_v49  ;;  %v5360_v36 = vcombine.high %v5111_v55, %v20333_v49  ;;  %9181 = vadd.xlane.f32.xlu0 %v9180_v6  ;;  %v20339_v40 = vld [vmem:[#allocation35_spill] sm:$0xff] }
 0x42f   : > { %v9057_v32 = vmul.f32 1.442695, %v8944_v53  ;;  %v9043_v38 = vmul.f32 1.442695, %v8937_v51  ;;  %20332 = vst [vmem:[#allocation33_spill] sm:$0xff] %v18019_v60  ;;  %9211 = vadd.xlane.f32.xlu1 %v9210_v52  ;;  %v5411_v53 = vcombine.high %v5107_v23, %v20333_v49  ;;  %v5418_v51 = vrot.slane %v5107_v23, %v20334_v14 }
 0x430   : > { %v8861_v11 = vpop.xlane.xlu0 %8860  ;;  %v18025_v50 = vpop.eup %14772  ;;  %v5426_v30 = vcombine.high %v5115_v48, %v20333_v49  ;;  %v9189_v6 = vsel %vm8702_vm2, %v18019_v60, 0.0  ;;  %v5359_v52 = vrot.slane %v5345_v58, %v20334_v14  ;;  %v5433_v23 = vrot.slane %v5115_v48, %v20334_v14 }
 0x431   : > { %14784 = vpow2.f32 %v9057_v32  ;;  %v8947_v25 = vsub.f32 %v20335_v15, %v8861_v11  ;;  %20336 = vst [vmem:[#allocation44_spill] sm:$0xff] %v18025_v50  ;;  %v9219_v46 = vsel %vm8702_vm2, %v18025_v50, 0.0  ;;  %v18035_v32 = vpop.eup %14774  ;;  %v5374_v11 = vrot.slane %v5360_v36, %v20334_v14 }
 0x432   : > { %14786 = vpow2.f32 %v9043_v38  ;;  %20337 = vst [vmem:[#allocation31_spill] sm:$0xff] %v18035_v32  ;;  %9220 = vadd.xlane.f32.xlu0 %v9219_v46  ;;  %v20338_v38 = vld [vmem:[#allocation54_spill] sm:$0xff]  ;;  %v5425_v50 = vrot.slane %v5411_v53, %v20334_v14  ;;  %v5375_v9 = vcombine.low %v5352_v34, %v5367_v26  ;;  %v5440_v58 = vrot.slane %v5426_v30, %v20334_v14  ;;  %v20342_v30 = vld [vmem:[#allocation55_spill] sm:$0xff] }
 0x433   : > { %v9063_v62 = vmul.f32 1.442695, %v8947_v25  ;;  %9190 = vadd.xlane.f32.xlu1 %v9189_v6  ;;  %v9192_v6 = vsel %vm8702_vm2, %v18035_v32, 0.0  ;;  %v5376_v46 = vcombine.high %v5352_v34, %v5367_v26  ;;  %v5392_v53 = vcombine.high %v5359_v52, %v5374_v11 }
 0x434   : > { %v8864_v15 = vpop.xlane.xlu1 %8863  ;;  %v8834_v55 = vpop.xlane.xlu0 %8833  ;;  %v5457_v42 = vcombine.low %v5425_v50, %v5440_v58  ;;  %v5458_v32 = vcombine.high %v5425_v50, %v5440_v58 }
 0x435   : > { %14788 = vpow2.f32 %v9063_v62  ;;  %v8948_v25 = vsub.f32 %v20338_v38, %v8864_v15  ;;  %v8938_v60 = vsub.f32 %v20339_v40, %v8834_v55  ;;  %v18042_v24 = vpop.eup %14776  ;;  %v5391_v15 = vcombine.low %v5359_v52, %v5374_v11 }
 0x436   : > { %20340 = vst [vmem:[#allocation28_spill] sm:$0xff] %v18042_v24  ;;  %v9222_v48 = vsel %vm8702_vm2, %v18042_v24, 0.0  ;;  %v18050_v62 = vpop.eup %14778  ;;  %v5441_v40 = vcombine.low %v5418_v51, %v5433_v23  ;;  %9193 = vadd.xlane.f32.xlu0 %v9192_v6  ;;  %v5442_v24 = vcombine.high %v5418_v51, %v5433_v23 }
 0x437   : > { %v9065_v33 = vmul.f32 1.442695, %v8948_v25  ;;  %v9045_v36 = vmul.f32 1.442695, %v8938_v60  ;;  %20341 = vst [vmem:[#allocation43_spill] sm:$0xff] %v18050_v62  ;;  %9223 = vadd.xlane.f32.xlu1 %v9222_v48  ;;  %v9201_v26 = vsel %vm8702_vm2, %v18050_v62, 0.0 }
 0x438   : > { %v8873_v55 = vpop.xlane.xlu0 %8872  ;;  %v8843_v38 = vpop.xlane.xlu1 %8842 }
 0x439   : > { %14790 = vpow2.f32 %v9065_v33  ;;  %v8951_v25 = vsub.f32 %v20342_v30, %v8873_v55  ;;  %v8941_v60 = vsub.f32 %v17730_v7, %v8843_v38  ;;  %v20345_v33 = vld [vmem:[#allocation19_spill] sm:$0xff] }
 0x43a   : > { %v18054_v8 = vpop.eup %14780  ;;  %14792 = vpow2.f32 %v9045_v36  ;;  %v5383_v52 = vrot.slane %v5375_v9, %v20345_v33  ;;  %v5390_v11 = vrot.slane %v5376_v46, %v20345_v33  ;;  %v5449_v7 = vrot.slane %v5441_v40, %v20345_v33  ;;  %9202 = vadd.xlane.f32.xlu0 %v9201_v26  ;;  %v20346_v55 = vld [vmem:[#allocation27_spill] sm:$0xff] }
 0x43b   : > { %20343 = vst [vmem:[#allocation26_spill] sm:$0xff] %v18054_v8  ;;  %v9051_v43 = vmul.f32 1.442695, %v8941_v60  ;;  %v9231_v34 = vsel %vm8702_vm2, %v18054_v8, 0.0  ;;  %v18060_v48 = vpop.eup %14782  ;;  %v9071_v6 = vmul.f32 1.442695, %v8951_v25  ;;  %v5399_v50 = vrot.slane %v5391_v15, %v20345_v33 }
 0x43c   : > { %20344 = vst [vmem:[#allocation52_spill] sm:$0xff] %v18060_v48  ;;  %v8876_v51 = vpop.xlane.xlu1 %8875  ;;  %v8846_v23 = vpop.xlane.xlu0 %8845  ;;  %9232 = vadd.xlane.f32.xlu1 %v9231_v34  ;;  %v5406_v58 = vrot.slane %v5392_v53, %v20345_v33  ;;  %v5456_v9 = vrot.slane %v5442_v24, %v20345_v33  ;;  %v5465_v46 = vrot.slane %v5457_v42, %v20345_v33  ;;  %v9204_v60 = vsel %vm8702_vm2, %v18060_v48, 0.0 }
 0x43d   : > { %v8952_v36 = vsub.f32 %v17762_v0, %v8876_v51  ;;  %v8942_v38 = vsub.f32 %v20346_v55, %v8846_v23  ;;  %v5472_v40 = vrot.slane %v5458_v32, %v20345_v33  ;;  %14794 = vpow2.f32 %v9051_v43 }
 0x43e   : > { %v18069_v30 = vpop.eup %14784  ;;  %v6369_v0 = vcombine.low %v5383_v52, %v5390_v11  ;;  %14796 = vpow2.f32 %v9071_v6  ;;  %v13678_v42 = vcombine.high %v5383_v52, %v5390_v11  ;;  %v6385_v32 = vcombine.low %v5399_v50, %v5406_v58 }
 0x43f   : > { %20347 = vst [vmem:[#allocation17_spill] sm:$0xff] %v18069_v30  ;;  %v9073_v25 = vmul.f32 1.442695, %v8952_v36  ;;  %v9234_v15 = vsel %vm8702_vm2, %v18069_v30, 0.0  ;;  %v18078_v53 = vpop.eup %14786  ;;  %v9053_v34 = vmul.f32 1.442695, %v8942_v38  ;;  %v13679_v23 = vcombine.high %v5399_v50, %v5406_v58 }
 0x440   : > { %20348 = vst [vmem:[#allocation18_spill] sm:$0xff] %v18078_v53  ;;  %v18080_v26 = vpop.xlane.xlu1 %8884  ;;  %v8855_v24 = vpop.xlane.xlu0 %8854  ;;  %9205 = vadd.xlane.f32.xlu1 %v9204_v60  ;;  %9235 = vadd.xlane.f32.xlu0 %v9234_v15  ;;  %v6419_v36 = vcombine.low %v5449_v7, %v5456_v9  ;;  %v13680_v55 = vcombine.high %v5449_v7, %v5456_v9  ;;  %v9213_v38 = vsel %vm8702_vm2, %v18078_v53, 0.0 }
 0x441   : > { %14798 = vpow2.f32 %v9073_v25  ;;  %v8945_v43 = vsub.f32 %v17746_v20, %v8855_v24  ;;  %v6435_v30 = vcombine.low %v5465_v46, %v5472_v40  ;;  %v13681_v8 = vcombine.high %v5465_v46, %v5472_v40  ;;  %v20353_v24 = vld [vmem:[#allocation25_spill] sm:$0xff] }
 0x442   : > { %v18083_v51 = vpop.eup %14788  ;;  %14800 = vpow2.f32 %v9053_v34  ;;  %v6376_v20 = vrot.slane %v6369_v0, %v20334_v14  ;;  %v6384_v50 = vrot.slane %v13678_v42, %v20334_v14  ;;  %v6392_v58 = vrot.slane %v6385_v32, %v20334_v14  ;;  %v20354_v32 = vld [vmem:[#allocation21_spill] sm:$0xff] }
 0x443   : > { %20349 = vst [vmem:[#allocation15_spill] sm:$0xff] %v18083_v51  ;;  %v9059_v48 = vmul.f32 1.442695, %v8945_v43  ;;  %v9243_v6 = vsel %vm8702_vm2, %v18083_v51, 0.0  ;;  %v6400_v46 = vrot.slane %v13679_v23, %v20334_v14  ;;  %v6426_v40 = vrot.slane %v6419_v36, %v20334_v14 }
 0x444   : > { %v18089_v52 = vpop.xlane.xlu0 %8887  ;;  %v8858_v11 = vpop.xlane.xlu1 %8857  ;;  %9244 = vadd.xlane.f32.xlu1 %v9243_v6  ;;  %9214 = vadd.xlane.f32.xlu0 %v9213_v38  ;;  %v6434_v25 = vrot.slane %v13680_v55, %v20334_v14  ;;  %v6442_v34 = vrot.slane %v6435_v30, %v20334_v14  ;;  %v5121_v42 = vshrl.u32 %v20353_v24, 16  ;;  %v20355_v55 = vld [vmem:[#allocation22_spill] sm:$0xff]  ;;  %v6401_v30 = vcombine.low %v6376_v20, %v6384_v50  ;;  %v20362_v20 = vld [vmem:[#allocation40_spill] sm:$0xff] }
 0x445   : > { %20350 = vst [vmem:[#allocation54_spill] sm:$0xff] %v18089_v52  ;;  %v8946_v7 = vsub.f32 %v17755_v59, %v8858_v11  ;;  %14802 = vpow2.f32 %v9059_v48  ;;  %v6450_v59 = vrot.slane %v13681_v8, %v20334_v14  ;;  %v5122_v48 = vshrl.u32 %v20354_v32, 16  ;;  %v20356_v38 = vld [vmem:[#allocation14_spill] sm:$0xff] }
 0x446   : > { %v18095_v9 = vpop.eup %14790  ;;  %v5130_v6 = vshrl.u32 %v20355_v55, 16  ;;  %v5129_v11 = vshrl.u32 %v20356_v38, 16  ;;  %v5119_v8 = vpack.i.b16 %v20354_v32, %v20353_v24 }
 0x447   : > { %20351 = vst [vmem:[#allocation35_spill] sm:$0xff] %v18095_v9  ;;  %v18100_v60 = vpop.eup %14792  ;;  %v9061_v15 = vmul.f32 1.442695, %v8946_v7  ;;  %v9246_v0 = vsel %vm8702_vm2, %v18095_v9, 0.0  ;;  %v6409_v7 = vcombine.low %v6392_v58, %v6400_v46  ;;  %v6451_v9 = vcombine.low %v6426_v40, %v6434_v25 }
 0x448   : > { %20352 = vst [vmem:[#allocation55_spill] sm:$0xff] %v18100_v60  ;;  %v18108_v43 = vpop.xlane.xlu0 %8866  ;;  %v18110_v23 = vpop.xlane.xlu1 %8869  ;;  %v9216_v36 = vsel %vm8702_vm2, %v18100_v60, 0.0  ;;  %9247 = vadd.xlane.f32.xlu0 %v9246_v0  ;;  %v6459_v53 = vcombine.low %v6442_v34, %v6450_v59  ;;  %v5123_v62 = vpack.i.b16 %v5122_v48, %v5121_v42  ;;  %v5127_v58 = vpack.i.b16 %v20355_v55, %v20356_v38 }
 0x449   : > { %9217 = vadd.xlane.f32.xlu1 %v9216_v36  ;;  %14804 = vpow2.f32 %v9061_v15  ;;  %v20360_v36 = vld [vmem:[#allocation20_spill] sm:$0xff]  ;;  %v5131_v46 = vpack.i.b16 %v5130_v6, %v5129_v11  ;;  %v5477_v25 = vcombine.high %v5119_v8, %v20333_v49  ;;  %v5484_v15 = vrot.slane %v5119_v8, %v20334_v14 }
 0x44a   : > { %v18118_v51 = vpop.eup %14794  ;;  %v721_v24 = vadd.f32 %v20361_v39, %v20360_v36  ;;  %v724_v50 = vadd.f32 %v20362_v20, %v20360_v36  ;;  %v6408_v34 = vrot.slane %v6401_v30, %v20345_v33  ;;  %v6416_v59 = vrot.slane %v6409_v7, %v20345_v33  ;;  %v20365_v36 = vld [vmem:[#allocation53_spill] sm:$0xff] }
 0x44b   : > { %20357 = vst [vmem:[#allocation19_spill] sm:$0xff] %v18118_v51  ;;  %v9225_v0 = vsel %vm8702_vm2, %v18118_v51, 0.0  ;;  %v18126_v56 = vpop.eup %14796  ;;  %v5499_v39 = vrot.slane %v5127_v58, %v20334_v14  ;;  %v6458_v32 = vrot.slane %v6451_v9, %v20345_v33  ;;  %v6466_v48 = vrot.slane %v6459_v53, %v20345_v33 }
 0x44c   : > { %v18120_v52 = vpop.xlane.xlu0 %8878  ;;  %v18124_v60 = vpop.xlane.xlu1 %8890  ;;  %20359 = vst [vmem:[#allocation25_spill] sm:$0xff] %v18126_v56  ;;  %9226 = vadd.xlane.f32.xlu0 %v9225_v0  ;;  %v5543_v55 = vcombine.high %v5123_v62, %v20333_v49  ;;  %v9255_v38 = vsel %vm8702_vm2, %v18126_v56, 0.0  ;;  %v18152_v30 = vpack.c.bf16 %v724_v50, %v721_v24  ;;  %v5492_v7 = vcombine.high %v5127_v58, %v20333_v49  ;;  %v20367_v24 = vld [vmem:[#allocation37_spill] sm:$0xff]  ;;  %v20369_v50 = vld [vmem:[#allocation48_spill] sm:$0xff] }
 0x44d   : > { %20358 = vst [vmem:[#allocation27_spill] sm:$0xff] %v18124_v60  ;;  %v5558_v0 = vcombine.high %v5131_v46, %v20333_v49  ;;  %v5550_v53 = vrot.slane %v5123_v62, %v20334_v14  ;;  %v5565_v9 = vrot.slane %v5131_v46, %v20334_v14  ;;  %v5137_v20 = vshrl.u32 %v20365_v36, 16 }
 0x44e   : > { %v18134_v40 = vpop.eup %14798  ;;  %v5491_v56 = vrot.slane %v5477_v25, %v20334_v14  ;;  %v18165_v16 = vcombine.low %v6458_v32, %v6466_v48  ;;  %v5557_v58 = vrot.slane %v5543_v55, %v20334_v14  ;;  %v5506_v13 = vrot.slane %v5492_v7, %v20334_v14  ;;  %v20373_v7 = vld [vmem:[#allocation12_spill] sm:$0xff] }
 0x44f   : > { %20363 = vst [vmem:[#allocation21_spill] sm:$0xff] %v18134_v40  ;;  %v9258_v42 = vsel %vm8702_vm2, %v18134_v40, 0.0  ;;  %v18150_v8 = vpop.eup %14800  ;;  %v5507_v40 = vcombine.low %v5484_v15, %v5499_v39  ;;  %v5572_v25 = vrot.slane %v5558_v0, %v20334_v14  ;;  %v5135_v1 = vpack.i.b16 %v20369_v50, %v20365_v36  ;;  %v20374_v36 = vld [vmem:[#allocation13_spill] sm:$0xff] }
 0x450   : > { %v18146_v6 = vpop.xlane.xlu0 %8881  ;;  %9259 = vadd.xlane.f32.xlu1 %v9258_v42  ;;  %v9089_v11 = vpop.xlane.xlu1 %9088  ;;  %20364 = vst [vmem:[#allocation22_spill] sm:$0xff] %v18150_v8  ;;  %9256 = vadd.xlane.f32.xlu0 %v9255_v38  ;;  %v18159_v42 = vcombine.low %v6408_v34, %v6416_v59  ;;  %v5508_v38 = vcombine.high %v5484_v15, %v5499_v39  ;;  %v9228_v46 = vsel %vm8702_vm2, %v18150_v8, 0.0  ;;  %v5145_v54 = vshrl.u32 %v20373_v7, 16 }
 0x451   : > { %v5573_v15 = vcombine.low %v5550_v53, %v5565_v9  ;;  %v5574_v39 = vcombine.high %v5550_v53, %v5565_v9  ;;  %v5515_v57 = vrot.slane %v5507_v40, %v20345_v33  ;;  %v5138_v0 = vshrl.u32 %v20369_v50, 16 }
 0x452   : > { %v18161_v51 = vpop.eup %14802  ;;  %14806 = vrcp.f32 %v9089_v11  ;;  %v5523_v9 = vcombine.low %v5491_v56, %v5506_v13  ;;  %v5524_v40 = vcombine.high %v5491_v56, %v5506_v13  ;;  %v5589_v47 = vcombine.low %v5557_v58, %v5572_v25 }
 0x453   : > { %20366 = vst [vmem:[#allocation14_spill] sm:$0xff] %v18161_v51  ;;  %v9237_v62 = vsel %vm8702_vm2, %v18161_v51, 0.0  ;;  %v18180_v51 = vcombine.high %v6408_v34, %v6416_v59  ;;  %v5609_v55 = vcombine.high %v5135_v1, %v20333_v49  ;;  %v18197_v50 = vrot.slane %v5573_v15, %v20345_v33 }
 0x454   : > { %v18172_v10 = vpop.xlane.xlu0 %8893  ;;  %v9095_v19 = vpop.xlane.xlu1 %9094  ;;  %9238 = vadd.xlane.f32.xlu1 %v9237_v62  ;;  %9229 = vadd.xlane.f32.xlu0 %v9228_v46  ;;  %v5522_v62 = vrot.slane %v5508_v38, %v20345_v33  ;;  %v5146_v46 = vshrl.u32 %v20374_v36, 16  ;;  %v18200_v38 = vrot.slane %v5574_v39, %v20345_v33  ;;  %v18205_v2 = vcombine.high %v6458_v32, %v6466_v48 }
 0x455   : > { %20368 = vst [vmem:[#allocation20_spill] sm:$0xff] %v18172_v10  ;;  %20371 = vst [vmem:[#allocation38_spill] sm:$0xff] %v18180_v51  ;;  %v5143_v10 = vpack.i.b16 %v20374_v36, %v20373_v7  ;;  %v5590_v7 = vcombine.high %v5557_v58, %v5572_v25  ;;  %v5616_v36 = vrot.slane %v5135_v1, %v20334_v14 }
 0x456   : > { %v18182_v8 = vpop.eup %14804  ;;  %20375 = vst [vmem:[#allocation53_spill] sm:$0xff] %v18205_v2  ;;  %v6469_v13 = vcombine.low %v5515_v57, %v5522_v62  ;;  %v13682_v56 = vcombine.high %v5515_v57, %v5522_v62  ;;  %v5139_v44 = vpack.i.b16 %v5138_v0, %v5137_v20  ;;  %v5531_v39 = vrot.slane %v5523_v9, %v20345_v33 }
 0x457   : > { %20372 = vst [vmem:[#allocation40_spill] sm:$0xff] %v18182_v8  ;;  %v9240_v53 = vsel %vm8702_vm2, %v18182_v8, 0.0  ;;  %v5624_v11 = vcombine.high %v5143_v10, %v20333_v49  ;;  %v5631_v8 = vrot.slane %v5143_v10, %v20334_v14  ;;  %v5538_v58 = vrot.slane %v5524_v40, %v20345_v33 }
 0x458   : > { %v9092_v34 = vpop.xlane.xlu0 %9091  ;;  %v18193_v59 = vpop.xlane.xlu1 %9115  ;;  %9241 = vadd.xlane.f32.xlu0 %v9240_v53  ;;  %v5147_v53 = vpack.i.b16 %v5146_v46, %v5145_v54  ;;  %v18214_v1 = vrot.slane %v5589_v47, %v20345_v33  ;;  %v18219_v32 = vrot.slane %v5590_v7, %v20345_v33  ;;  %v5623_v48 = vrot.slane %v5609_v55, %v20334_v14 }
 0x459   : > { %14808 = vrcp.f32 %v9092_v34  ;;  %v5638_v20 = vrot.slane %v5624_v11, %v20334_v14  ;;  %v5639_v25 = vcombine.low %v5616_v36, %v5631_v8  ;;  %v5640_v0 = vcombine.high %v5616_v36, %v5631_v8 }
 0x45a   : > { %14810 = vrcp.f32 %v9095_v19  ;;  %v6476_v47 = vrot.slane %v6469_v13, %v20334_v14  ;;  %v6484_v62 = vrot.slane %v13682_v56, %v20334_v14  ;;  %v5675_v46 = vcombine.high %v5139_v44, %v20333_v49 }
 0x45b   : > { %v5690_v34 = vcombine.high %v5147_v53, %v20333_v49  ;;  %v5682_v7 = vrot.slane %v5139_v44, %v20334_v14  ;;  %v5697_v10 = vrot.slane %v5147_v53, %v20334_v14  ;;  %v7090_v55 = vshrl.u32 %v18165_v16, 16 }
 0x45c   : > { %v18207_v5 = vpop.xlane.xlu0 %9112  ;;  %v18209_v15 = vpop.xlane.xlu1 %9124  ;;  %v6485_v11 = vcombine.low %v5531_v39, %v5538_v58  ;;  %v13683_v8 = vcombine.high %v5531_v39, %v5538_v58  ;;  %v5647_v36 = vrot.slane %v5639_v25, %v20345_v33  ;;  %v5654_v13 = vrot.slane %v5640_v0, %v20345_v33 }
 0x45d   : > { %v5655_v56 = vcombine.low %v5623_v48, %v5638_v20  ;;  %v5656_v57 = vcombine.high %v5623_v48, %v5638_v20  ;;  %v13685_v44 = vcombine.high %v18214_v1, %v18219_v32  ;;  %v5689_v53 = vrot.slane %v5675_v46, %v20334_v14 }
 0x45e   : > { %v5706_v25 = vcombine.high %v5682_v7, %v5697_v10  ;;  %v20376_v0 = vshrl.u32 %v18159_v42, 16  ;;  %v7097_v20 = vshrl.u32 %v18180_v51, 16  ;;  %v7098_v46 = vshrl.u32 %v18205_v2, 16 }
 0x45f   : > { %v14807_v58 = vpop.eup %14806  ;;  %v6500_v19 = vrot.slane %v13683_v8, %v20334_v14  ;;  %v5663_v28 = vrot.slane %v5655_v56, %v20345_v33  ;;  %v13686_v8 = vcombine.high %v5647_v36, %v5654_v13 }
 0x460   : > { %v9098_v9 = vpop.xlane.xlu0 %9097  ;;  %v9104_v40 = vpop.xlane.xlu1 %9103  ;;  %v18248_v48 = vpack.i.b16 %v7090_v55, %v20376_v0 }
 0x461   : > { %14812 = vrcp.f32 %v9098_v9  ;;  %v5704_v9 = vrot.slane %v5690_v34, %v20334_v14  ;;  %v6492_v34 = vrot.slane %v6485_v11, %v20334_v14  ;;  %v18264_v11 = vrot.slane %v5706_v25, %v20345_v33  ;;  %v20381_v25 = vld [vmem:[#allocation41_spill] sm:$0xff] }
 0x462   : > { %14814 = vrcp.f32 %v9104_v40  ;;  %v5705_v40 = vcombine.low %v5682_v7, %v5697_v10  ;;  %20377 = vst [vmem:[#allocation37_spill] sm:$0xff] %v18248_v48  ;;  %v5670_v10 = vrot.slane %v5656_v57, %v20345_v33  ;;  %v6501_v7 = vcombine.low %v6476_v47, %v6484_v62 }
 0x463   : > { %v5721_v55 = vcombine.low %v5689_v53, %v5704_v9  ;;  %v5722_v0 = vcombine.high %v5689_v53, %v5704_v9  ;;  %v9343_v48 = vmul.f32 %v14807_v58, %v17808_v22  ;;  %v18267_v47 = vpack.i.b16 %v7098_v46, %v7097_v20 }
 0x464   : > { %v9101_v54 = vpop.xlane.xlu0 %9100  ;;  %v18242_v29 = vpop.xlane.xlu1 %9136  ;;  %v18261_v2 = vrot.slane %v5705_v40, %v20345_v33  ;;  %v6509_v62 = vcombine.low %v6492_v34, %v6500_v19  ;;  %v6585_v56 = vcombine.low %v5663_v28, %v5670_v10  ;;  %v13687_v22 = vcombine.high %v5663_v28, %v5670_v10  ;;  %v20380_v40 = vld [vmem:[#allocation24_spill] sm:$0xff] }
 0x465   : > { %14816 = vrcp.f32 %v9101_v54  ;;  %5067 = vrot.lane.b32.xlu1 %v18152_v30, %s15110_s12  ;;  %v6569_v54 = vcombine.low %v5647_v36, %v5654_v13  ;;  %v18272_v9 = vrot.slane %v5721_v55, %v20345_v33  ;;  %v20378_v28 = vcombine.low %v18197_v50, %v18200_v38 }
 0x466   : > { %v14809_v39 = vpop.eup %14808  ;;  %14818 = vrcp.f32 %v18193_v59  ;;  %v6584_v13 = vrot.slane %v13686_v8, %v20334_v14  ;;  %v6619_v58 = vcombine.low %v18261_v2, %v18264_v11  ;;  %v20383_v20 = vmov 0.0  }
 0x467   : > { %v9344_v45 = vmul.f32 %v14809_v39, %v17826_v37  ;;  %v6508_v37 = vrot.slane %v6501_v7, %v20345_v33  ;;  %v14811_v53 = vpop.eup %14810  ;;  %v18275_v39 = vrot.slane %v5722_v0, %v20345_v33  ;;  %v6526_v59 = vrot.slane %v20378_v28, %v20334_v14 }
 0x468   : > { %v9128_v51 = vpop.xlane.xlu0 %9127  ;;  %v9110_v60 = vpop.xlane.xlu1 %9109  ;;  %v6576_v36 = vrot.slane %v6569_v54, %v20334_v14  ;;  %v20384_v34 = vcombine.low %v18214_v1, %v18219_v32  ;;  %v6550_v54 = vrot.slane %v13685_v44, %v20334_v14  ;;  %v9345_v55 = vmul.f32 %v14811_v53, %v17821_v12 }
 0x469   : > { %v9407_v57 = vpack.c.bf16 %v9344_v45, %v9343_v48  ;;  %14820 = vrcp.f32 %v9110_v60  ;;  %v20382_v48 = vpack.i.b16 %v20380_v40, %v20381_v25  ;;  %v6635_v8 = vcombine.low %v18272_v9, %v18275_v39 }
 0x46a   : > { %14822 = vrcp.f32 %v18207_v5  ;;  %v20379_v5 = vcombine.high %v18197_v50, %v18200_v38  ;;  %v13688_v50 = vcombine.high %v18261_v2, %v18264_v11  ;;  %v6516_v38 = vrot.slane %v6509_v62, %v20345_v33 }
 0x46b   : > { %14208 = vmatmul.mubr.msk.bf16.vlgmr.msra.gmra.mxu0 %vm8702_vm2, %v9407_v57  ;;  %v6542_v10 = vrot.slane %v20384_v34, %v20334_v14  ;;  %v6592_v2 = vrot.slane %v6585_v56, %v20334_v14  ;;  %v6600_v11 = vrot.slane %v13687_v22, %v20334_v14  ;;  %v13689_v1 = vcombine.high %v18272_v9, %v18275_v39 }
 0x46c   : > { %v9107_v45 = vpop.xlane.xlu0 %9106  ;;  %v18278_v60 = vpop.xlane.xlu1 %9148  ;;  %v6534_v19 = vrot.slane %v20379_v5, %v20334_v14  ;;  %14218 = vmatpush3.bf16.msra.mxu0 %v20382_v48  ;;  %14219 = vmatprep.mubr.msk.bf16.mxu0 %vm15112_vm0, %v20383_v20  ;;  %v8950_v32 = vsub.f32 %v17777_v21, %v18110_v23  ;;  %v6601_v53 = vcombine.low %v6576_v36, %v6584_v13  ;;  %v20386_v36 = vld [vmem:[#allocation23_spill] sm:$0xff] }
 0x46d   : > { %14824 = vrcp.f32 %v9107_v45  ;;  %14229 = vmatprep.subr.bf16.mxu0 %v20383_v20  ;;  %v18319_v22 = vcombine.low %v6508_v37, %v6516_v38  ;;  %v6559_v45 = vcombine.low %v6542_v10, %v6550_v54  ;;  %v18321_v28 = vcombine.high %v6508_v37, %v6516_v38 }
 0x46e   : > { %v14813_v46 = vpop.eup %14812  ;;  %5051 = vrot.lane.b32.xlu0 %v18152_v30, %s15109_s10  ;;  %v6551_v62 = vcombine.low %v6526_v59, %v6534_v19  ;;  %14826 = vrcp.f32 %v9128_v51  ;;  %v6609_v23 = vcombine.low %v6592_v2, %v6600_v11  ;;  %v18327_v51 = vrot.slane %v6619_v58, %v20334_v14 }
 0x46f   : > { %v14815_v7 = vpop.eup %14814  ;;  %v9346_v0 = vmul.f32 %v14813_v46, %v17853_v61  ;;  %v8949_v19 = vsub.f32 %v17764_v18, %v18108_v43  ;;  %v9069_v37 = vmul.f32 1.442695, %v8950_v32  ;;  %v8953_v18 = vsub.f32 %v17788_v63, %v18120_v52 }
 0x470   : > { %v9140_v44 = vpop.xlane.xlu0 %9139  ;;  %v9122_v57 = vpop.xlane.xlu1 %9121  ;;  %v9348_v61 = vmul.f32 %v14815_v7, %v17855_v27  ;;  %v20385_v27 = vld [vmem:[#allocation30_spill] sm:$0xff]  ;;  %v6558_v58 = vrot.slane %v6551_v62, %v20345_v33  ;;  %v6566_v43 = vrot.slane %v6559_v45, %v20345_v33  ;;  %v18345_v25 = vrot.slane %v6601_v53, %v20345_v33 }
 0x471   : > { %v9408_v12 = vpack.c.bf16 %v9346_v0, %v9345_v55  ;;  %14828 = vrcp.f32 %v9122_v57  ;;  %v5151_v59 = vpack.i.b16 %v20385_v27, %v20367_v24  ;;  %v5154_v5 = vshrl.u32 %v20385_v27, 16  ;;  %v20390_v57 = vld [vmem:[#allocation29_spill] sm:$0xff] }
 0x472   : > { %v14817_v56 = vpop.eup %14816  ;;  %14830 = vrcp.f32 %v18209_v15  ;;  %v18348_v48 = vrot.slane %v13688_v50, %v20334_v14  ;;  %v7105_v38 = vshrl.u32 %v18319_v22, 16  ;;  %v18354_v34 = vrot.slane %v6609_v23, %v20345_v33 }
 0x473   : > { %14214 = vmatmul.mubr.msk.bf16.vlgmr.msra.gmra.mxu1 %vm8702_vm2, %v9408_v12  ;;  %v9347_v21 = vmul.f32 %v14817_v56, %v17865_v4  ;;  %v8954_v4 = vsub.f32 %v17796_v3, %v18146_v6  ;;  %v14819_v40 = vpop.eup %14818  ;;  %v20387_v3 = vld [vmem:[#allocation49_spill] sm:$0xff]  ;;  %v18357_v63 = vrot.slane %v6635_v8, %v20334_v14  ;;  %v20388_v10 = vshrl.u32 %v20367_v24, 16 }
 0x474   : > { %14224 = vmatpush3.bf16.msra.mxu1 %v20386_v36  ;;  %v9119_v15 = vpop.xlane.xlu0 %9118  ;;  %14225 = vmatprep.mubr.msk.bf16.mxu1 %vm15112_vm0, %v20383_v20  ;;  %v5161_v6 = vshrl.u32 %v20387_v3, 16  ;;  %v5741_v50 = vcombine.high %v5151_v59, %v20333_v49  ;;  %v9067_v7 = vmul.f32 1.442695, %v8949_v19  ;;  %v20389_v0 = vpack.i.b16 %v18165_v16, %v18159_v42  ;;  %v20393_v36 = vld [vmem:[#allocation58_spill] sm:$0xff] }
 0x475   : > { %14832 = vrcp.f32 %v9119_v15  ;;  %v9409_v13 = vpack.c.bf16 %v9348_v61, %v9347_v21  ;;  %14235 = vmatprep.subr.bf16.mxu1 %v20383_v20  ;;  %v18361_v54 = vpack.i.b16 %v5154_v5, %v20388_v10  ;;  %v9077_v2 = vmul.f32 1.442695, %v8954_v4 }
 0x476   : > { %v14821_v46 = vpop.eup %14820  ;;  %14834 = vpow2.f32 %v9069_v37  ;;  %v9352_v11 = vmul.f32 %v14819_v40, %v17833_v35  ;;  %v18373_v32 = vrot.slane %v5151_v59, %v20334_v14  ;;  %v5162_v62 = vshrl.u32 %v20390_v57, 16  ;;  %v20396_v40 = vld [vmem:[#allocation38_spill] sm:$0xff] }
 0x477   : > { %14220 = vmatmul.mubr.msk.bf16.vlgmr.msra.gmra.mxu0 %vm8702_vm2, %v9409_v13  ;;  %v14823_v52 = vpop.eup %14822  ;;  %14836 = vrcp.f32 %v9140_v44  ;;  %v9350_v24 = vmul.f32 %v14821_v46, %v17874_v31  ;;  %v9075_v12 = vmul.f32 1.442695, %v8953_v18  ;;  %v18376_v16 = vcombine.low %v6558_v58, %v6566_v43  ;;  %v9131_v31 = vpop.xlane.xlu1 %9130  ;;  %v20394_v13 = vld [vmem:[#allocation37_spill] sm:$0xff] }
 0x478   : > { %v9152_v55 = vpop.xlane.xlu0 %9151  ;;  %14230 = vmatpush3.bf16.msra.mxu0 %v20389_v0  ;;  %14231 = vmatprep.mubr.msk.bf16.mxu0 %vm15112_vm0, %v20383_v20  ;;  %14838 = vrcp.f32 %v18242_v29  ;;  %v9351_v44 = vmul.f32 %v14823_v52, %v17839_v41  ;;  %v18381_v61 = vcombine.high %v6558_v58, %v6566_v43  ;;  %v5159_v35 = vpack.i.b16 %v20390_v57, %v20387_v3  ;;  %v20391_v41 = vld [vmem:[#allocation56_spill] sm:$0xff]  ;;  %v20395_v58 = vld [vmem:[#allocation53_spill] sm:$0xff] }
 0x479   : > { %14241 = vmatprep.subr.bf16.mxu0 %v20383_v20  ;;  %14840 = vpow2.f32 %v9067_v7  ;;  %v18389_v56 = vcombine.low %v18345_v25, %v18354_v34  ;;  %v18395_v29 = vrot.slane %v13689_v1, %v20334_v14  ;;  %v18400_v27 = vrot.slane %v5741_v50, %v20334_v14  ;;  %v20398_v46 = vld [vmem:[#allocation65_spill] sm:$0xff]  ;;  %v20400_v50 = vld [vmem:[#allocation39_spill] sm:$0xff]  ;;  %v20401_v7 = vld [vmem:[#allocation32_spill] sm:$0xff] }
 0x47a   : > { %v14825_v8 = vpop.eup %14824  ;;  %14842 = vpow2.f32 %v9077_v2  ;;  %v9411_v21 = vpack.c.bf16 %v9352_v11, %v9351_v44  ;;  %v5163_v59 = vpack.i.b16 %v5162_v62, %v5161_v6  ;;  %v6651_v5 = vcombine.low %v18327_v51, %v18348_v48  ;;  %v20392_v51 = vld [vmem:[#allocation27_spill] sm:$0xff]  ;;  %v20399_v6 = vld [vmem:[#allocation62_spill] sm:$0xff]  ;;  %v20403_v62 = vld [vmem:[#allocation60_spill] sm:$0xff] }
 0x47b   : > { %v9349_v42 = vmul.f32 %v14825_v8, %v17883_v17  ;;  %v8955_v17 = vsub.f32 %v20391_v41, %v18080_v26  ;;  %v14827_v23 = vpop.eup %14826  ;;  %14844 = vpow2.f32 %v9075_v12  ;;  %v5807_v9 = vcombine.high %v18361_v54, %v20333_v49  ;;  %v9164_v0 = vpop.xlane.xlu1 %9163  ;;  %v20402_v8 = vld [vmem:[#allocation66_spill] sm:$0xff] }
 0x47c   : > { %v18385_v53 = vpop.xlane.xlu0 %9160  ;;  %v18408_v39 = vrot.slane %v18361_v54, %v20334_v14  ;;  %14846 = vrcp.f32 %v9131_v31  ;;  %v7103_v26 = vpack.i.b16 %v18376_v16, %v18319_v22  ;;  %v5756_v37 = vcombine.high %v5159_v35, %v20333_v49 }
 0x47d   : > { %v9410_v45 = vpack.c.bf16 %v9350_v24, %v9349_v42  ;;  %v8957_v15 = vsub.f32 %v20393_v36, %v20392_v51  ;;  %14848 = vrcp.f32 %v9152_v55  ;;  %v20397_v18 = vpack.i.b16 %v20395_v58, %v20396_v40 }
 0x47e   : > { %v14829_v19 = vpop.eup %14828  ;;  %v7111_v43 = vpack.i.b16 %v18381_v61, %v18321_v28  ;;  %v9079_v48 = vmul.f32 1.442695, %v8955_v17  ;;  %v9356_v52 = vmul.f32 %v14827_v23, %v20399_v6  ;;  %v5822_v54 = vcombine.high %v5163_v59, %v20333_v49 }
 0x47f   : > { %14226 = vmatmul.mubr.msk.bf16.vlgmr.msra.gmra.mxu1 %vm8702_vm2, %v9410_v45  ;;  %14232 = vmatmul.mubr.msk.bf16.vlgmr.msra.gmra.mxu0 %vm8702_vm2, %v9411_v21  ;;  %v14831_v1 = vpop.eup %14830  ;;  %v9354_v3 = vmul.f32 %v14829_v19, %v20398_v46  ;;  %v18432_v55 = vpack.i.b16 %v20401_v7, %v20400_v50  ;;  %v7106_v2 = vshrl.u32 %v18376_v16, 16  ;;  %v6659_v24 = vcombine.low %v18357_v63, %v18395_v29  ;;  %v20404_v63 = vld [vmem:[#allocation20_spill] sm:$0xff]  ;;  %v20405_v29 = vld [vmem:[#allocation59_spill] sm:$0xff] }
 0x480   : > { %v9134_v4 = vpop.xlane.xlu0 %9133  ;;  %14236 = vmatpush3.bf16.msra.mxu1 %v20394_v13  ;;  %14242 = vmatpush3.bf16.msra.mxu0 %v20397_v18  ;;  %v5763_v11 = vrot.slane %v5159_v35, %v20334_v14  ;;  %v9355_v12 = vmul.f32 %v14831_v1, %v20403_v62  ;;  %v5770_v42 = vrot.slane %v5756_v37, %v20334_v14  ;;  %v9083_v31 = vmul.f32 1.442695, %v8957_v15  ;;  %v9143_v15 = vpop.xlane.xlu1 %9142 }
 0x481   : > { %14850 = vrcp.f32 %v9134_v4  ;;  %14237 = vmatprep.mubr.msk.bf16.mxu1 %vm15112_vm0, %v20383_v20  ;;  %14243 = vmatprep.mubr.msk.bf16.mxu0 %vm15112_vm0, %v20383_v20  ;;  %v5829_v44 = vrot.slane %v5163_v59, %v20334_v14  ;;  %v18446_v41 = vrot.slane %v6651_v5, %v20345_v33  ;;  %v8958_v35 = vsub.f32 %v20405_v29, %v20404_v63 }
 0x482   : > { %v14833_v10 = vpop.eup %14832  ;;  %14247 = vmatprep.subr.bf16.mxu1 %v20383_v20  ;;  %14253 = vmatprep.subr.bf16.mxu0 %v20383_v20  ;;  %14852 = vrcp.f32 %v18278_v60  ;;  %v9413_v60 = vpack.c.bf16 %v9356_v52, %v9355_v12  ;;  %v5821_v21 = vrot.slane %v5807_v9, %v20334_v14  ;;  %v5836_v23 = vrot.slane %v5822_v54, %v20334_v14 }
 0x483   : > { %v9353_v57 = vmul.f32 %v14833_v10, %v20402_v8  ;;  %v18448_v16 = vpop.eup %14834  ;;  %14854 = vpow2.f32 %v9079_v48  ;;  %v5873_v59 = vcombine.high %v18432_v55, %v20333_v49  ;;  %v18458_v5 = vpack.i.b16 %v7106_v2, %v7105_v38  ;;  %v20407_v10 = vld [vmem:[#allocation61_spill] sm:$0xff] }
 0x484   : > { %v14837_v45 = vpop.eup %14836  ;;  %v5771_v19 = vcombine.low %v18373_v32, %v5763_v11  ;;  %v5772_v1 = vcombine.high %v18373_v32, %v5763_v11  ;;  %v7113_v37 = vshrl.u32 %v18321_v28, 16  ;;  %v18466_v9 = vrot.slane %v6659_v24, %v20345_v33  ;;  %v18471_v4 = vpop.xlane.xlu0 %9172 }
 0x485   : > { %v9412_v17 = vpack.c.bf16 %v9354_v3, %v9353_v57  ;;  %v14839_v51 = vpop.eup %14838  ;;  %v5787_v36 = vcombine.low %v18400_v27, %v5770_v42  ;;  %v5788_v22 = vcombine.high %v18400_v27, %v5770_v42  ;;  %v5837_v38 = vcombine.low %v18408_v39, %v5829_v44  ;;  %v20406_v27 = vld [vmem:[#allocation64_spill] sm:$0xff] }
 0x486   : > { %14856 = vpow2.f32 %v9083_v31  ;;  %v18474_v32 = vpop.eup %14840  ;;  %v9085_v13 = vmul.f32 1.442695, %v8958_v35  ;;  %v9252_v58 = vsel %vm8702_vm2, %v18448_v16, 0.0  ;;  %v9360_v40 = vmul.f32 %v14837_v45, %v20406_v27  ;;  %v9176_v63 = vpop.xlane.xlu1 %9175  ;;  %v20409_v45 = vld [vmem:[#allocation72_spill] sm:$0xff] }
 0x487   : > { %14238 = vmatmul.mubr.msk.bf16.vlgmr.msra.gmra.mxu1 %vm8702_vm2, %v9412_v17  ;;  %14244 = vmatmul.mubr.msk.bf16.vlgmr.msra.gmra.mxu0 %vm8702_vm2, %v9413_v60  ;;  %14858 = vrcp.f32 %v9164_v0  ;;  %v18483_v18 = vpop.eup %14842  ;;  %v5854_v48 = vcombine.high %v5821_v21, %v5836_v23  ;;  %v7114_v46 = vshrl.u32 %v18381_v61, 16  ;;  %v5779_v6 = vrot.slane %v5771_v19, %v20345_v33  ;;  %v20408_v17 = vld [vmem:[#allocation67_spill] sm:$0xff] }
 0x488   : > { %14248 = vmatpush3.bf16.msra.mxu1 %v18267_v47  ;;  %14254 = vmatpush3.bf16.msra.mxu0 %v7103_v26  ;;  %v5838_v47 = vcombine.high %v18408_v39, %v5829_v44  ;;  %v5853_v26 = vcombine.low %v5821_v21, %v5836_v23  ;;  %v18488_v3 = vpop.eup %14844  ;;  %v5786_v52 = vrot.slane %v5772_v1, %v20345_v33  ;;  %14860 = vrcp.f32 %v18385_v53  ;;  %v9146_v11 = vpop.xlane.xlu0 %9145 }
 0x489   : > { %14249 = vmatprep.mubr.msk.bf16.mxu1 %vm15112_vm0, %v20383_v20  ;;  %14255 = vmatprep.mubr.msk.bf16.mxu0 %vm15112_vm0, %v20383_v20  ;;  %v9359_v54 = vmul.f32 %v14839_v51, %v20407_v10  ;;  %v14847_v39 = vpop.eup %14846  ;;  %v5795_v0 = vrot.slane %v5787_v36, %v20345_v33  ;;  %v5802_v2 = vrot.slane %v5788_v22, %v20345_v33  ;;  %14862 = vrcp.f32 %v9143_v15  ;;  %v20410_v15 = vld [vmem:[#allocation68_spill] sm:$0xff] }
 0x48a   : > { %9253 = vadd.xlane.f32.xlu1 %v9252_v58  ;;  %14259 = vmatprep.subr.bf16.mxu1 %v20383_v20  ;;  %v5845_v24 = vrot.slane %v5837_v38, %v20345_v33  ;;  %v14849_v8 = vpop.eup %14848  ;;  %14864 = vpow2.f32 %v9085_v13  ;;  %v9264_v57 = vsel %vm8702_vm2, %v18483_v18, 0.0  ;;  %v9249_v53 = vsel %vm8702_vm2, %v18474_v32, 0.0 }
 0x48b   : > { %14265 = vmatprep.subr.bf16.mxu0 %v20383_v20  ;;  %v9415_v62 = vpack.c.bf16 %v9360_v40, %v9359_v54  ;;  %v5852_v42 = vrot.slane %v5838_v47, %v20345_v33  ;;  %v5861_v44 = vrot.slane %v5853_v26, %v20345_v33  ;;  %v5868_v31 = vrot.slane %v5854_v48, %v20345_v33  ;;  %v20411_v47 = vld [vmem:[#allocation45_spill] sm:$0xff]  ;;  %v20412_v48 = vld [vmem:[#allocation46_spill] sm:$0xff] }
 0x48c   : > { %14866 = vrcp.f32 %v9146_v11  ;;  %v6669_v29 = vcombine.low %v5779_v6, %v5786_v52  ;;  %v13690_v35 = vcombine.high %v5779_v6, %v5786_v52  ;;  %v9357_v60 = vmul.f32 %v14847_v39, %v20408_v17  ;;  %v20413_v52 = vld [vmem:[#allocation63_spill] sm:$0xff] }
 0x48d   : > { %9250 = vadd.xlane.f32.xlu0 %v9249_v53  ;;  %v6685_v19 = vcombine.low %v5795_v0, %v5802_v2  ;;  %v13691_v1 = vcombine.high %v5795_v0, %v5802_v2  ;;  %v5170_v51 = vshrl.u32 %v20401_v7, 16  ;;  %v18516_v36 = vcombine.low %v18446_v41, %v18466_v9 }
 0x48e   : > { %v14851_v12 = vpop.eup %14850  ;;  %9265 = vadd.xlane.f32.xlu1 %v9264_v57  ;;  %v9261_v22 = vsel %vm8702_vm2, %v18488_v3, 0.0  ;;  %14868 = vrcp.f32 %v9176_v63  ;;  %v9364_v7 = vmul.f32 %v14849_v8, %v20410_v15  ;;  %v6719_v58 = vcombine.low %v5845_v24, %v5852_v42 }
 0x48f   : > { %v9358_v21 = vmul.f32 %v14851_v12, %v20409_v45  ;;  %14256 = vmatmul.mubr.msk.bf16.vlgmr.msra.gmra.mxu0 %vm8702_vm2, %v9415_v62  ;;  %v14853_v23 = vpop.eup %14852  ;;  %v6735_v27 = vcombine.low %v5861_v44, %v5868_v31  ;;  %v13693_v40 = vcombine.high %v5861_v44, %v5868_v31  ;;  %v5177_v26 = vshrl.u32 %v20411_v47, 16 }
 0x490   : > { %14266 = vmatpush3.bf16.msra.mxu0 %v7111_v43  ;;  %14267 = vmatprep.mubr.msk.bf16.mxu0 %vm15112_vm0, %v20383_v20  ;;  %v18522_v13 = vpop.eup %14854  ;;  %v13692_v43 = vcombine.high %v5845_v24, %v5852_v42  ;;  %v5175_v6 = vpack.i.b16 %v20412_v48, %v20411_v47  ;;  %14870 = vrcp.f32 %v18471_v4  ;;  %v9363_v10 = vmul.f32 %v14853_v23, %v20413_v52  ;;  %v20415_v23 = vld [vmem:[#allocation70_spill] sm:$0xff] }
 0x491   : > { %v9414_v38 = vpack.c.bf16 %v9358_v21, %v9357_v60  ;;  %14277 = vmatprep.subr.bf16.mxu0 %v20383_v20  ;;  %9262 = vadd.xlane.f32.xlu0 %v9261_v22  ;;  %v6676_v54 = vrot.slane %v6669_v29, %v20334_v14  ;;  %v6684_v39 = vrot.slane %v13690_v35, %v20334_v14  ;;  %v5178_v0 = vshrl.u32 %v20412_v48, 16 }
 0x492   : > { %v7119_v2 = vpack.i.b16 %v18516_v36, %v18389_v56  ;;  %v9267_v4 = vsel %vm8702_vm2, %v18522_v13, 0.0  ;;  %v9417_v11 = vpack.c.bf16 %v9364_v7, %v9363_v10  ;;  %v6692_v8 = vrot.slane %v6685_v19, %v20334_v14  ;;  %v9155_v10 = vpop.xlane.xlu0 %9154 }
 0x493   : > { %14250 = vmatmul.mubr.msk.bf16.vlgmr.msra.gmra.mxu1 %vm8702_vm2, %v9414_v38  ;;  %v18538_v24 = vpop.eup %14856  ;;  %v6700_v57 = vrot.slane %v13691_v1, %v20334_v14  ;;  %v6734_v62 = vrot.slane %v13692_v43, %v20334_v14  ;;  %v6742_v12 = vrot.slane %v6735_v27, %v20334_v14  ;;  %v6750_v42 = vrot.slane %v13693_v40, %v20334_v14  ;;  %v20417_v27 = vld [vmem:[#allocation71_spill] sm:$0xff] }
 0x494   : > { %14260 = vmatpush3.bf16.msra.mxu1 %v18458_v5  ;;  %14261 = vmatprep.mubr.msk.bf16.mxu1 %vm15112_vm0, %v20383_v20  ;;  %v14859_v53 = vpop.eup %14858  ;;  %v6726_v5 = vrot.slane %v6719_v58, %v20334_v14  ;;  %v20414_v44 = vshrl.u32 %v20400_v50, 16  ;;  %v5880_v63 = vrot.slane %v18432_v55, %v20334_v14  ;;  %v5888_v29 = vcombine.high %v5175_v6, %v20333_v49  ;;  %v20418_v55 = vld [vmem:[#allocation74_spill] sm:$0xff] }
 0x495   : > { %14271 = vmatprep.subr.bf16.mxu1 %v20383_v20  ;;  %9268 = vadd.xlane.f32.xlu0 %v9267_v4  ;;  %v5895_v35 = vrot.slane %v5175_v6, %v20334_v14  ;;  %v14861_v17 = vpop.eup %14860  ;;  %v5179_v60 = vpack.i.b16 %v5178_v0, %v5177_v26  ;;  %v7115_v45 = vpack.i.b16 %v7114_v46, %v7113_v37  ;;  %v9273_v1 = vsel %vm8702_vm2, %v18538_v24, 0.0 }
 0x496   : > { %v5171_v31 = vpack.i.b16 %v5170_v51, %v20414_v44  ;;  %v18564_v50 = vcombine.high %v18345_v25, %v18354_v34  ;;  %v14863_v21 = vpop.eup %14862  ;;  %v9368_v19 = vmul.f32 %v14859_v53, %v20415_v23  ;;  %v18572_v28 = vcombine.high %v18446_v41, %v18466_v9  ;;  %v20416_v9 = vld [vmem:[#allocation69_spill] sm:$0xff]  ;;  %v20422_v23 = vld [vmem:[#allocation50_spill] sm:$0xff] }
 0x497   : > { %14268 = vmatmul.mubr.msk.bf16.vlgmr.msra.gmra.mxu0 %vm8702_vm2, %v9417_v11  ;;  %v6701_v61 = vcombine.low %v6676_v54, %v6684_v39  ;;  %v18574_v37 = vpop.eup %14864  ;;  %v18580_v25 = vrot.slane %v5873_v59, %v20334_v14  ;;  %v6709_v34 = vcombine.low %v6692_v8, %v6700_v57  ;;  %v6751_v46 = vcombine.low %v6726_v5, %v6734_v62  ;;  %v20419_v62 = vld [vmem:[#allocation42_spill] sm:$0xff] }
 0x498   : > { %14278 = vmatpush3.bf16.msra.mxu0 %v7119_v2  ;;  %14279 = vmatprep.mubr.msk.bf16.mxu0 %vm15112_vm0, %v20383_v20  ;;  %v6759_v51 = vcombine.low %v6742_v12, %v6750_v42  ;;  %v5939_v38 = vcombine.high %v5171_v31, %v20333_v49  ;;  %v5902_v15 = vrot.slane %v5888_v29, %v20334_v14  ;;  %v9276_v26 = vsel %vm8702_vm2, %v18574_v37, 0.0  ;;  %v20420_v42 = vld [vmem:[#allocation34_spill] sm:$0xff] }
 0x499   : > { %14289 = vmatprep.subr.bf16.mxu0 %v20383_v20  ;;  %9274 = vadd.xlane.f32.xlu0 %v9273_v1  ;;  %v14867_v22 = vpop.eup %14866  ;;  %v5903_v41 = vcombine.low %v5880_v63, %v5895_v35  ;;  %v9367_v7 = vmul.f32 %v14861_v17, %v20416_v9  ;;  %v5904_v58 = vcombine.high %v5880_v63, %v5895_v35  ;;  %v5185_v12 = vshrl.u32 %v20419_v62, 16  ;;  %v20421_v17 = vld [vmem:[#allocation75_spill] sm:$0xff] }
 0x49a   : > { %v5954_v43 = vcombine.high %v5179_v60, %v20333_v49  ;;  %v9361_v40 = vmul.f32 %v14863_v21, %v20417_v27  ;;  %v9362_v59 = vmul.f32 %v14867_v22, %v20418_v55  ;;  %v7127_v48 = vpack.i.b16 %v18572_v28, %v18564_v50  ;;  %v20424_v27 = vld [vmem:[#allocation36_spill] sm:$0xff] }
 0x49b   : > { %v9419_v47 = vpack.c.bf16 %v9368_v19, %v9367_v7  ;;  %v18593_v6 = vrot.slane %v6701_v61, %v20345_v33  ;;  %v14869_v52 = vpop.eup %14868  ;;  %v18596_v39 = vrot.slane %v6709_v34, %v20345_v33  ;;  %v18599_v0 = vrot.slane %v6751_v46, %v20345_v33  ;;  %v20423_v46 = vld [vmem:[#allocation73_spill] sm:$0xff] }
 0x49c   : > { %v9416_v54 = vpack.c.bf16 %v9362_v59, %v9361_v40  ;;  %v18602_v2 = vrot.slane %v6759_v51, %v20345_v33  ;;  %v5946_v4 = vrot.slane %v5171_v31, %v20334_v14  ;;  %v5953_v11 = vrot.slane %v5939_v38, %v20334_v14  ;;  %v9185_v31 = vpop.xlane.xlu1 %9184 }
 0x49d   : > { %9277 = vadd.xlane.f32.xlu0 %v9276_v26  ;;  %v5961_v8 = vrot.slane %v5179_v60, %v20334_v14  ;;  %v14871_v57 = vpop.eup %14870  ;;  %v5919_v53 = vcombine.low %v18580_v25, %v5902_v15  ;;  %v5968_v5 = vrot.slane %v5954_v43, %v20334_v14  ;;  %v18615_v44 = vpack.i.b16 %v20420_v42, %v20419_v62 }
 0x49e   : > { %14262 = vmatmul.mubr.msk.bf16.vlgmr.msra.gmra.mxu1 %vm8702_vm2, %v9416_v54  ;;  %v5911_v63 = vrot.slane %v5903_v41, %v20345_v33  ;;  %v5918_v29 = vrot.slane %v5904_v58, %v20345_v33  ;;  %v5186_v35 = vshrl.u32 %v20420_v42, 16  ;;  %v9372_v60 = vmul.f32 %v14869_v52, %v20421_v17  ;;  %v20425_v42 = vld [vmem:[#allocation54_spill] sm:$0xff] }
 0x49f   : > { %5083 = vrot.lane.b32.xlu1 %v18152_v30, %s15108_s14  ;;  %14280 = vmatmul.mubr.msk.bf16.vlgmr.msra.gmra.mxu0 %vm8702_vm2, %v9419_v47  ;;  %v5920_v21 = vcombine.high %v18580_v25, %v5902_v15  ;;  %v5193_v19 = vshrl.u32 %v20422_v23, 16  ;;  %v18631_v1 = vcombine.low %v18593_v6, %v18596_v39  ;;  %v18635_v61 = vcombine.low %v18599_v0, %v18602_v2 }
 0x4a0   : > { %14290 = vmatpush3.bf16.msra.mxu0 %v7127_v48  ;;  %14272 = vmatpush3.bf16.msra.mxu1 %v7115_v45  ;;  %v5969_v45 = vcombine.low %v5946_v4, %v5961_v8  ;;  %v5970_v34 = vcombine.high %v5946_v4, %v5961_v8  ;;  %v9371_v51 = vmul.f32 %v14871_v57, %v20423_v46  ;;  %14872 = vrcp.f32 %v9155_v10  ;;  %v9158_v15 = vpop.xlane.xlu1 %9157  ;;  %v9188_v41 = vpop.xlane.xlu0 %9187 }
 0x4a1   : > { %14273 = vmatprep.mubr.msk.bf16.mxu1 %vm15112_vm0, %v20383_v20  ;;  %14283 = vmatprep.subr.bf16.mxu1 %v20383_v20  ;;  %v5927_v25 = vrot.slane %v5919_v53, %v20345_v33  ;;  %v5985_v22 = vcombine.low %v5953_v11, %v5968_v5  ;;  %v5986_v38 = vcombine.high %v5953_v11, %v5968_v5  ;;  %14874 = vrcp.f32 %v9185_v31  ;;  %v20426_v31 = vld [vmem:[#allocation57_spill] sm:$0xff] }
 0x4a2   : > { %14291 = vmatprep.mubr.msk.bf16.mxu0 %vm15112_vm0, %v20383_v20  ;;  %14301 = vmatprep.subr.bf16.mxu0 %v20383_v20  ;;  %v6769_v9 = vcombine.low %v5911_v63, %v5918_v29  ;;  %v13694_v7 = vcombine.high %v5911_v63, %v5918_v29  ;;  %v9421_v58 = vpack.c.bf16 %v9372_v60, %v9371_v51  ;;  %14876 = vrcp.f32 %v9158_v15 }
 0x4a3   : > { %v5934_v43 = vrot.slane %v5920_v21, %v20345_v33  ;;  %v5194_v40 = vshrl.u32 %v20424_v27, 16  ;;  %14878 = vrcp.f32 %v9188_v41  ;;  %v7135_v55 = vpack.i.b16 %v18635_v61, %v18631_v1 }
 0x4a4   : > { %v5977_v59 = vrot.slane %v5969_v45, %v20345_v33  ;;  %v5984_v47 = vrot.slane %v5970_v34, %v20345_v33  ;;  %v5187_v26 = vpack.i.b16 %v5186_v35, %v5185_v12  ;;  %v5191_v48 = vpack.i.b16 %v20424_v27, %v20422_v23  ;;  %v9167_v4 = vpop.xlane.xlu0 %9166 }
 0x4a5   : > { %v5993_v52 = vrot.slane %v5985_v22, %v20345_v33  ;;  %v6000_v10 = vrot.slane %v5986_v38, %v20345_v33  ;;  %v7121_v11 = vshrl.u32 %v18389_v56, 16  ;;  %v7122_v8 = vshrl.u32 %v18516_v36, 16 }
 0x4a6   : > { %v9197_v54 = vpop.xlane.xlu1 %9196  ;;  %v18656_v57 = vrot.slane %v6769_v9, %v20334_v14  ;;  %v18659_v53 = vrot.slane %v13694_v7, %v20334_v14  ;;  %v6012_v5 = vrot.slane %v18615_v44, %v20334_v14  ;;  %v6027_v62 = vrot.slane %v5191_v48, %v20334_v14 }
 0x4a7   : > { %14292 = vmatmul.mubr.msk.bf16.vlgmr.msra.gmra.mxu0 %vm8702_vm2, %v9421_v58  ;;  %v6785_v56 = vcombine.low %v5927_v25, %v5934_v43  ;;  %v13695_v12 = vcombine.high %v5927_v25, %v5934_v43  ;;  %v5195_v36 = vpack.i.b16 %v5194_v40, %v5193_v19  ;;  %v8956_v63 = vsub.f32 %v20426_v31, %v20425_v42  ;;  %v20428_v42 = vld [vmem:[#allocation78_spill] sm:$0xff] }
 0x4a8   : > { %14302 = vmatpush3.bf16.msra.mxu0 %v7135_v55  ;;  %14303 = vmatprep.mubr.msk.bf16.mxu0 %vm15112_vm0, %v20383_v20  ;;  %v6819_v29 = vcombine.low %v5977_v59, %v5984_v47  ;;  %v6005_v35 = vcombine.high %v18615_v44, %v20333_v49  ;;  %v6071_v17 = vcombine.high %v5187_v26, %v20333_v49  ;;  %14880 = vrcp.f32 %v9167_v4 }
 0x4a9   : > { %14313 = vmatprep.subr.bf16.mxu0 %v20383_v20  ;;  %v13696_v60 = vcombine.high %v5977_v59, %v5984_v47  ;;  %v6835_v21 = vcombine.low %v5993_v52, %v6000_v10  ;;  %v13697_v23 = vcombine.high %v5993_v52, %v6000_v10  ;;  %14882 = vrcp.f32 %v9197_v54 }
 0x4aa   : > { %v9170_v45 = vpop.xlane.xlu1 %9169  ;;  %v9200_v34 = vpop.xlane.xlu0 %9199  ;;  %v18671_v46 = vrot.slane %v5187_v26, %v20334_v14  ;;  %v6020_v19 = vcombine.high %v5191_v48, %v20333_v49  ;;  %v6035_v51 = vcombine.low %v6012_v5, %v6027_v62  ;;  %v6036_v25 = vcombine.high %v6012_v5, %v6027_v62 }
 0x4ab   : > { %14884 = vrcp.f32 %v9170_v45  ;;  %v6086_v22 = vcombine.high %v5195_v36, %v20333_v49  ;;  %v9081_v44 = vmul.f32 1.442695, %v8956_v63  ;;  %v6019_v38 = vrot.slane %v6005_v35, %v20334_v14 }
 0x4ac   : > { %14886 = vrcp.f32 %v9200_v34  ;;  %v18677_v15 = vrot.slane %v6071_v17, %v20334_v14  ;;  %v6792_v41 = vrot.slane %v6785_v56, %v20334_v14  ;;  %v6800_v9 = vrot.slane %v13695_v12, %v20334_v14  ;;  %v20427_v56 = vld [vmem:[#allocation76_spill] sm:$0xff] }
 0x4ad   : > { %v14873_v7 = vpop.eup %14872  ;;  %v6826_v43 = vrot.slane %v6819_v29, %v20334_v14  ;;  %v6834_v27 = vrot.slane %v13696_v60, %v20334_v14  ;;  %v6842_v40 = vrot.slane %v6835_v21, %v20334_v14  ;;  %v6850_v55 = vrot.slane %v13697_v23, %v20334_v14 }
 0x4ae   : > { %v9179_v58 = vpop.xlane.xlu0 %9178  ;;  %v14875_v59 = vpop.eup %14874  ;;  %v6034_v47 = vrot.slane %v6020_v19, %v20334_v14  ;;  %v18687_v26 = vrot.slane %v6035_v51, %v20345_v33  ;;  %v6093_v48 = vrot.slane %v5195_v36, %v20334_v14  ;;  %v7123_v52 = vpack.i.b16 %v7122_v8, %v7121_v11  ;;  %v20429_v8 = vld [vmem:[#allocation79_spill] sm:$0xff] }
 0x4af   : > { %v14877_v10 = vpop.eup %14876  ;;  %v18691_v54 = vrot.slane %v6036_v25, %v20345_v33  ;;  %v6100_v4 = vrot.slane %v6086_v22, %v20334_v14  ;;  %14888 = vpow2.f32 %v9081_v44  ;;  %v6801_v5 = vcombine.low %v18656_v57, %v18659_v53  ;;  %v20430_v53 = vld [vmem:[#allocation77_spill] sm:$0xff] }
 0x4b0   : > { %v14879_v62 = vpop.eup %14878  ;;  %v9365_v12 = vmul.f32 %v14873_v7, %v20427_v56  ;;  %v9366_v31 = vmul.f32 %v14877_v10, %v20428_v42  ;;  %v18700_v63 = vcombine.high %v18593_v6, %v18596_v39  ;;  %v6809_v11 = vcombine.low %v6792_v41, %v6800_v9 }
 0x4b1   : > { %v9376_v36 = vmul.f32 %v14879_v62, %v20429_v8  ;;  %v18705_v29 = vcombine.high %v18599_v0, %v18602_v2  ;;  %v6851_v35 = vcombine.low %v6826_v43, %v6834_v27  ;;  %v6859_v17 = vcombine.low %v6842_v40, %v6850_v55 }
 0x4b2   : > { %v6051_v60 = vcombine.low %v6019_v38, %v6034_v47  ;;  %v6052_v57 = vcombine.high %v6019_v38, %v6034_v47  ;;  %v9375_v21 = vmul.f32 %v14875_v59, %v20430_v53  ;;  %v9418_v45 = vpack.c.bf16 %v9366_v31, %v9365_v12 }
 0x4b3   : > { %v9209_v23 = vpop.xlane.xlu0 %9208  ;;  %v6101_v34 = vcombine.low %v18671_v46, %v6093_v48  ;;  %v6102_v6 = vcombine.high %v18671_v46, %v6093_v48  ;;  %v6117_v39 = vcombine.low %v18677_v15, %v6100_v4  ;;  %v6118_v19 = vcombine.high %v18677_v15, %v6100_v4  ;;  %v20431_v48 = vld [vmem:[#allocation80_spill] sm:$0xff] }
 0x4b4   : > { %14890 = vrcp.f32 %v9209_v23  ;;  %v9423_v51 = vpack.c.bf16 %v9376_v36, %v9375_v21  ;;  %14274 = vmatmul.mubr.msk.bf16.vlgmr.msra.gmra.mxu1 %vm8702_vm2, %v9418_v45  ;;  %v18714_v0 = vrot.slane %v6801_v5, %v20345_v33  ;;  %v18717_v2 = vrot.slane %v6809_v11, %v20345_v33  ;;  %v20433_v5 = vld [vmem:[#allocation83_spill] sm:$0xff]  ;;  %v20434_v11 = vld [vmem:[#allocation81_spill] sm:$0xff] }
 0x4b5   : > { %v14881_v25 = vpop.eup %14880  ;;  %14284 = vmatpush3.bf16.msra.mxu1 %v7123_v52  ;;  %14285 = vmatprep.mubr.msk.bf16.mxu1 %vm15112_vm0, %v20383_v20  ;;  %v7129_v46 = vshrl.u32 %v18564_v50, 16  ;;  %v7143_v22 = vpack.i.b16 %v18705_v29, %v18700_v63  ;;  %v18725_v44 = vrot.slane %v6851_v35, %v20345_v33  ;;  %v18728_v38 = vrot.slane %v6859_v17, %v20345_v33 }
 0x4b6   : > { %v14883_v15 = vpop.eup %14882  ;;  %v6059_v41 = vrot.slane %v6051_v60, %v20345_v33  ;;  %v6066_v9 = vrot.slane %v6052_v57, %v20345_v33  ;;  %14892 = vrcp.f32 %v9179_v58  ;;  %14295 = vmatprep.subr.bf16.mxu1 %v20383_v20  ;;  %v7130_v50 = vshrl.u32 %v18572_v28, 16  ;;  %14304 = vmatmul.mubr.msk.bf16.vlgmr.msra.gmra.mxu0 %vm8702_vm2, %v9423_v51  ;;  %v20432_v28 = vld [vmem:[#allocation82_spill] sm:$0xff] }
 0x4b7   : > { %v9182_v43 = vpop.xlane.xlu0 %9181  ;;  %v6109_v40 = vrot.slane %v6101_v34, %v20345_v33  ;;  %v6116_v55 = vrot.slane %v6102_v6, %v20345_v33  ;;  %v6125_v59 = vrot.slane %v6117_v39, %v20345_v33  ;;  %14314 = vmatpush3.bf16.msra.mxu0 %v7143_v22  ;;  %14315 = vmatprep.mubr.msk.bf16.mxu0 %vm15112_vm0, %v20383_v20 }
 0x4b8   : > { %v9212_v7 = vpop.xlane.xlu1 %9211  ;;  %v14885_v27 = vpop.eup %14884  ;;  %v6132_v47 = vrot.slane %v6118_v19, %v20345_v33  ;;  %v9369_v52 = vmul.f32 %v14881_v25, %v20431_v48  ;;  %14325 = vmatprep.subr.bf16.mxu0 %v20383_v20  ;;  %v6869_v4 = vcombine.low %v18687_v26, %v18691_v54  ;;  %v18749_v56 = vcombine.low %v18714_v0, %v18717_v2 }
 0x4b9   : > { %14894 = vrcp.f32 %v9212_v7  ;;  %v14887_v58 = vpop.eup %14886  ;;  %v9370_v10 = vmul.f32 %v14885_v27, %v20432_v28  ;;  %v18753_v12 = vcombine.low %v18725_v44, %v18728_v38  ;;  %v13698_v42 = vcombine.high %v18687_v26, %v18691_v54 }
 0x4ba   : > { %14896 = vrcp.f32 %v9182_v43  ;;  %v9380_v62 = vmul.f32 %v14887_v58, %v20433_v5  ;;  %v6885_v31 = vcombine.low %v6059_v41, %v6066_v9  ;;  %v9379_v8 = vmul.f32 %v14883_v15, %v20434_v11 }
 0x4bb   : > { %v9420_v36 = vpack.c.bf16 %v9370_v10, %v9369_v52  ;;  %v9221_v17 = vpop.xlane.xlu0 %9220  ;;  %v13699_v60 = vcombine.high %v6059_v41, %v6066_v9  ;;  %v6919_v57 = vcombine.low %v6109_v40, %v6116_v55  ;;  %v13700_v53 = vcombine.high %v6109_v40, %v6116_v55 }
 0x4bc   : > { %v9191_v35 = vpop.xlane.xlu1 %9190  ;;  %v7131_v21 = vpack.i.b16 %v7130_v50, %v7129_v46  ;;  %v18758_v23 = vpop.eup %14888  ;;  %v6935_v45 = vcombine.low %v6125_v59, %v6132_v47  ;;  %v13701_v34 = vcombine.high %v6125_v59, %v6132_v47  ;;  %v9425_v6 = vpack.c.bf16 %v9380_v62, %v9379_v8  ;;  %v20435_v59 = vld [vmem:[#allocation51_spill] sm:$0xff]  ;;  %v20436_v62 = vld [vmem:[#allocation16_spill] sm:$0xff] }
 0x4bd   : > { %14898 = vrcp.f32 %v9221_v17  ;;  %14286 = vmatmul.mubr.msk.bf16.vlgmr.msra.gmra.mxu1 %vm8702_vm2, %v9420_v36  ;;  %v7151_v26 = vpack.i.b16 %v18753_v12, %v18749_v56  ;;  %v6876_v54 = vrot.slane %v6869_v4, %v20334_v14  ;;  %v6884_v39 = vrot.slane %v13698_v42, %v20334_v14  ;;  %v20437_v8 = vld [vmem:[#allocation84_spill] sm:$0xff] }
 0x4be   : > { %14296 = vmatpush3.bf16.msra.mxu1 %v7131_v21  ;;  %14297 = vmatprep.mubr.msk.bf16.mxu1 %vm15112_vm0, %v20383_v20  ;;  %14900 = vrcp.f32 %v9191_v35  ;;  %v6892_v25 = vrot.slane %v6885_v31, %v20334_v14  ;;  %v9270_v46 = vsel %vm8702_vm2, %v18758_v23, 0.0  ;;  %v6900_v22 = vrot.slane %v13699_v60, %v20334_v14 }
 0x4bf   : > { %v9194_v51 = vpop.xlane.xlu0 %9193  ;;  %14307 = vmatprep.subr.bf16.mxu1 %v20383_v20  ;;  %14316 = vmatmul.mubr.msk.bf16.vlgmr.msra.gmra.mxu0 %vm8702_vm2, %v9425_v6  ;;  %v6926_v15 = vrot.slane %v6919_v57, %v20334_v14  ;;  %v6934_v9 = vrot.slane %v13700_v53, %v20334_v14  ;;  %v6942_v7 = vrot.slane %v6935_v45, %v20334_v14  ;;  %v7137_v31 = vshrl.u32 %v18631_v1, 16 }
 0x4c0   : > { %v9224_v19 = vpop.xlane.xlu1 %9223  ;;  %14326 = vmatpush3.bf16.msra.mxu0 %v7151_v26  ;;  %14327 = vmatprep.mubr.msk.bf16.mxu0 %vm15112_vm0, %v20383_v20  ;;  %v6950_v43 = vrot.slane %v13701_v34, %v20334_v14  ;;  %v6901_v40 = vcombine.low %v6876_v54, %v6884_v39  ;;  %v18783_v47 = vcombine.high %v18714_v0, %v18717_v2  ;;  %v7138_v11 = vshrl.u32 %v18635_v61, 16  ;;  %v20438_v0 = vld [vmem:[#allocation47_spill] sm:$0xff]  ;;  %v20439_v54 = vld [vmem:[#allocation44_spill] sm:$0xff] }
 0x4c1   : > { %14902 = vrcp.f32 %v9224_v19  ;;  %v14891_v41 = vpop.eup %14890  ;;  %14337 = vmatprep.subr.bf16.mxu0 %v20383_v20  ;;  %v18787_v48 = vcombine.high %v18725_v44, %v18728_v38  ;;  %v6909_v52 = vcombine.low %v6892_v25, %v6900_v22  ;;  %v6951_v10 = vcombine.low %v6926_v15, %v6934_v9  ;;  %v20440_v22 = vld [vmem:[#allocation28_spill] sm:$0xff] }
 0x4c2   : > { %14904 = vrcp.f32 %v9194_v51  ;;  %v9383_v58 = vmul.f32 %v14891_v41, %v20435_v59  ;;  %v6959_v4 = vcombine.low %v6942_v7, %v6950_v43  ;;  %v6908_v38 = vrot.slane %v6901_v40, %v20345_v33  ;;  %v20441_v7 = vld [vmem:[#allocation33_spill] sm:$0xff] }
 0x4c3   : > { %9271 = vadd.xlane.f32.xlu1 %v9270_v46  ;;  %v9203_v27 = vpop.xlane.xlu0 %9202  ;;  %v14893_v55 = vpop.eup %14892  ;;  %v7159_v60 = vpack.i.b16 %v18787_v48, %v18783_v47  ;;  %v6916_v57 = vrot.slane %v6909_v52, %v20345_v33  ;;  %v6958_v1 = vrot.slane %v6951_v10, %v20345_v33  ;;  %v7139_v45 = vpack.i.b16 %v7138_v11, %v7137_v31  ;;  %v20444_v31 = vld [vmem:[#allocation52_spill] sm:$0xff] }
 0x4c4   : > { %14906 = vrcp.f32 %v9203_v27  ;;  %v9373_v36 = vmul.f32 %v14893_v55, %v20437_v8  ;;  %v6966_v61 = vrot.slane %v6959_v4, %v20345_v33  ;;  %v7145_v41 = vshrl.u32 %v18700_v63, 16 }
 0x4c5   : > { %v9233_v50 = vpop.xlane.xlu1 %9232  ;;  %v18808_v51 = vcombine.low %v6908_v38, %v6916_v57  ;;  %v7146_v9 = vshrl.u32 %v18705_v29, 16  ;;  %v7153_v8 = vshrl.u32 %v18749_v56, 16 }
 0x4c6   : > { %v14895_v28 = vpop.eup %14894  ;;  %14908 = vrcp.f32 %v9233_v50  ;;  %v18810_v25 = vcombine.low %v6958_v1, %v6966_v61  ;;  %v20442_v50 = vld [vmem:[#allocation31_spill] sm:$0xff] }
 0x4c7   : > { %v14897_v5 = vpop.eup %14896  ;;  %v9384_v42 = vmul.f32 %v14895_v28, %v20436_v62  ;;  %v7147_v63 = vpack.i.b16 %v7146_v9, %v7145_v41  ;;  %v20450_v9 = vld [vmem:[#allocation55_spill] sm:$0xff] }
 0x4c8   : > { %v9374_v2 = vmul.f32 %v14897_v5, %v20438_v0  ;;  %v7167_v52 = vpack.i.b16 %v18810_v25, %v18808_v51  ;;  %v20443_v5 = vld [vmem:[#allocation43_spill] sm:$0xff]  ;;  %v20445_v0 = vld [vmem:[#allocation26_spill] sm:$0xff] }
 0x4c9   : > { %v9206_v35 = vpop.xlane.xlu1 %9205  ;;  %v9236_v44 = vpop.xlane.xlu0 %9235  ;;  %v9427_v17 = vpack.c.bf16 %v9384_v42, %v9383_v58 }
 0x4ca   : > { %14910 = vrcp.f32 %v9206_v35  ;;  %v9422_v53 = vpack.c.bf16 %v9374_v2, %v9373_v36  ;;  %v14899_v21 = vpop.eup %14898  ;;  %v7154_v36 = vshrl.u32 %v18753_v12, 16  ;;  %v20446_v35 = vld [vmem:[#allocation17_spill] sm:$0xff] }
 0x4cb   : > { %14912 = vrcp.f32 %v9236_v44  ;;  %14328 = vmatmul.mubr.msk.bf16.vlgmr.msra.gmra.mxu0 %vm8702_vm2, %v9427_v17  ;;  %v14901_v26 = vpop.eup %14900  ;;  %v9387_v39 = vmul.f32 %v14899_v21, %v20439_v54 }
 0x4cc   : > { %14298 = vmatmul.mubr.msk.bf16.vlgmr.msra.gmra.mxu1 %vm8702_vm2, %v9422_v53  ;;  %14338 = vmatpush3.bf16.msra.mxu0 %v7159_v60  ;;  %v9377_v43 = vmul.f32 %v14901_v26, %v20441_v7  ;;  %v18834_v60 = vcombine.high %v6908_v38, %v6916_v57  ;;  %v18836_v53 = vcombine.high %v6958_v1, %v6966_v61  ;;  %v20447_v1 = vld [vmem:[#allocation18_spill] sm:$0xff] }
 0x4cd   : > { %v9245_v34 = vpop.xlane.xlu1 %9244  ;;  %v9215_v6 = vpop.xlane.xlu0 %9214  ;;  %14308 = vmatpush3.bf16.msra.mxu1 %v7139_v45  ;;  %14309 = vmatprep.mubr.msk.bf16.mxu1 %vm15112_vm0, %v20383_v20  ;;  %v7155_v56 = vpack.i.b16 %v7154_v36, %v7153_v8 }
 0x4ce   : > { %v14903_v19 = vpop.eup %14902  ;;  %14914 = vrcp.f32 %v9215_v6  ;;  %14319 = vmatprep.subr.bf16.mxu1 %v20383_v20  ;;  %14339 = vmatprep.mubr.msk.bf16.mxu0 %vm15112_vm0, %v20383_v20  ;;  %v7175_v12 = vpack.i.b16 %v18836_v53, %v18834_v60 }
 0x4cf   : > { %v14905_v46 = vpop.eup %14904  ;;  %v9388_v15 = vmul.f32 %v14903_v19, %v20440_v22  ;;  %14349 = vmatprep.subr.bf16.mxu0 %v20383_v20  ;;  %14916 = vrcp.f32 %v9245_v34  ;;  %v7162_v22 = vshrl.u32 %v18787_v48, 16 }
 0x4d0   : > { %v9378_v27 = vmul.f32 %v14905_v46, %v20442_v50  ;;  %v7161_v46 = vshrl.u32 %v18783_v47, 16 }
 0x4d1   : > { %v9248_v40 = vpop.xlane.xlu0 %9247  ;;  %v9429_v55 = vpack.c.bf16 %v9388_v15, %v9387_v39  ;;  %v14907_v28 = vpop.eup %14906  ;;  %v20448_v39 = vld [vmem:[#allocation35_spill] sm:$0xff] }
 0x4d2   : > { %v9218_v59 = vpop.xlane.xlu1 %9217  ;;  %14918 = vrcp.f32 %v9248_v40  ;;  %v9424_v58 = vpack.c.bf16 %v9378_v27, %v9377_v43  ;;  %v9381_v62 = vmul.f32 %v14907_v28, %v20443_v5  ;;  %v20449_v15 = vld [vmem:[#allocation15_spill] sm:$0xff]  ;;  %v7170_v5 = vshrl.u32 %v18810_v25, 16 }
 0x4d3   : > { %14920 = vrcp.f32 %v9218_v59  ;;  %14340 = vmatmul.mubr.msk.bf16.vlgmr.msra.gmra.mxu0 %vm8702_vm2, %v9429_v55  ;;  %v14909_v29 = vpop.eup %14908  ;;  %v7163_v55 = vpack.i.b16 %v7162_v22, %v7161_v46  ;;  %v20451_v59 = vld [vmem:[#allocation21_spill] sm:$0xff]  ;;  %v7178_v25 = vshrl.u32 %v18836_v53, 16 }
 0x4d4   : > { %14310 = vmatmul.mubr.msk.bf16.vlgmr.msra.gmra.mxu1 %vm8702_vm2, %v9424_v58  ;;  %14350 = vmatpush3.bf16.msra.mxu0 %v7167_v52  ;;  %v9391_v2 = vmul.f32 %v14909_v29, %v20445_v0  ;;  %v20452_v52 = vld [vmem:[#allocation25_spill] sm:$0xff] }
 0x4d5   : > { %14320 = vmatpush3.bf16.msra.mxu1 %v7147_v63  ;;  %v9227_v10 = vpop.xlane.xlu0 %9226  ;;  %14321 = vmatprep.mubr.msk.bf16.mxu1 %vm15112_vm0, %v20383_v20 }
 0x4d6   : > { %14331 = vmatprep.subr.bf16.mxu1 %v20383_v20  ;;  %14351 = vmatprep.mubr.msk.bf16.mxu0 %vm15112_vm0, %v20383_v20 }
 0x4d7   : > { %v14911_v4 = vpop.eup %14910  ;;  %14361 = vmatprep.subr.bf16.mxu0 %v20383_v20 }
 0x4d8   : > { %v14913_v42 = vpop.eup %14912  ;;  %v9382_v11 = vmul.f32 %v14911_v4, %v20444_v31  ;;  %v7169_v4 = vshrl.u32 %v18808_v51, 16  ;;  %v20454_v31 = vld [vmem:[#allocation22_spill] sm:$0xff]  ;;  %v7177_v51 = vshrl.u32 %v18834_v60, 16 }
 0x4d9   : > { %v9392_v44 = vmul.f32 %v14913_v42, %v20446_v35  ;;  %v9260_v17 = vpop.xlane.xlu1 %9259  ;;  %v9257_v21 = vpop.xlane.xlu0 %9256  ;;  %v20455_v35 = vld [vmem:[#allocation40_spill] sm:$0xff] }
 0x4da   : > { %14922 = vrcp.f32 %v9260_v17  ;;  %v9426_v45 = vpack.c.bf16 %v9382_v11, %v9381_v62  ;;  %v20453_v62 = vld [vmem:[#allocation19_spill] sm:$0xff]  ;;  %v7171_v0 = vpack.i.b16 %v7170_v5, %v7169_v4  ;;  %v20456_v17 = vld [vmem:[#allocation14_spill] sm:$0xff] }
 0x4db   : > { %v9431_v34 = vpack.c.bf16 %v9392_v44, %v9391_v2  ;;  %14924 = vrcp.f32 %v9257_v21  ;;  %v14915_v6 = vpop.eup %14914 }
 0x4dc   : > { %14322 = vmatmul.mubr.msk.bf16.vlgmr.msra.gmra.mxu1 %vm8702_vm2, %v9426_v45  ;;  %v14917_v26 = vpop.eup %14916  ;;  %14926 = vrcp.f32 %v9227_v10  ;;  %v9385_v61 = vmul.f32 %v14915_v6, %v20447_v1 }
 0x4dd   : > { %14352 = vmatmul.mubr.msk.bf16.vlgmr.msra.gmra.mxu0 %vm8702_vm2, %v9431_v34  ;;  %14332 = vmatpush3.bf16.msra.mxu1 %v7155_v56  ;;  %v9230_v38 = vpop.xlane.xlu0 %9229  ;;  %v9395_v41 = vmul.f32 %v14917_v26, %v20449_v15  ;;  %v9239_v40 = vpop.xlane.xlu1 %9238  ;;  %v7179_v34 = vpack.i.b16 %v7178_v25, %v7177_v51 }
 0x4de   : > { %14333 = vmatprep.mubr.msk.bf16.mxu1 %vm15112_vm0, %v20383_v20  ;;  %14343 = vmatprep.subr.bf16.mxu1 %v20383_v20  ;;  %14928 = vrcp.f32 %v9230_v38 }
 0x4df   : > { %v14919_v57 = vpop.eup %14918  ;;  %14362 = vmatpush3.bf16.msra.mxu0 %v7175_v12  ;;  %14363 = vmatprep.mubr.msk.bf16.mxu0 %vm15112_vm0, %v20383_v20 }
 0x4e0   : > { %v14921_v54 = vpop.eup %14920  ;;  %v9396_v19 = vmul.f32 %v14919_v57, %v20448_v39  ;;  %14373 = vmatprep.subr.bf16.mxu0 %v20383_v20  ;;  %v5201_v57 = vshrl.u32 %v18152_v30, 16 }
 0x4e1   : > { %v9386_v7 = vmul.f32 %v14921_v54, %v20450_v9  ;;  %v9242_v43 = vpop.xlane.xlu0 %9241  ;;  %v5068_v6 = vpop.permute.xlu1 %5067 }
 0x4e2   : > { %v9433_v27 = vpack.c.bf16 %v9396_v19, %v9395_v41  ;;  %14930 = vrcp.f32 %v9242_v43  ;;  %v5209_v19 = vshrl.u32 %v5068_v6, 16 }
 0x4e3   : > { %v9428_v50 = vpack.c.bf16 %v9386_v7, %v9385_v61  ;;  %14932 = vrcp.f32 %v9239_v40 }
 0x4e5   : > { %14334 = vmatmul.mubr.msk.bf16.vlgmr.msra.gmra.mxu1 %vm8702_vm2, %v9428_v50  ;;  %14364 = vmatmul.mubr.msk.bf16.vlgmr.msra.gmra.mxu0 %vm8702_vm2, %v9433_v27  ;;  %v5052_v56 = vpop.permute.xlu0 %5051 }
 0x4e6   : > { %14344 = vmatpush3.bf16.msra.mxu1 %v7163_v55  ;;  %14345 = vmatprep.mubr.msk.bf16.mxu1 %vm15112_vm0, %v20383_v20  ;;  %v5202_v26 = vshrl.u32 %v5052_v56, 16  ;;  %v5199_v60 = vpack.i.b16 %v5052_v56, %v18152_v30 }
 0x4e7   : > { %v14923_v47 = vpop.eup %14922  ;;  %14355 = vmatprep.subr.bf16.mxu1 %v20383_v20  ;;  %14375 = vmatprep.mubr.msk.bf16.mxu0 %vm15112_vm0, %v20383_v20 }
 0x4e8   : > { %v14925_v48 = vpop.eup %14924  ;;  %v18862_v58 = vmul.f32 %v14923_v47, %v20451_v59  ;;  %v5203_v1 = vpack.i.b16 %v5202_v26, %v5201_v57  ;;  %v6137_v61 = vcombine.high %v5199_v60, %v20333_v49  ;;  %v6144_v15 = vrot.slane %v5199_v60, %v20334_v14 }
 0x4e9   : > { %v18865_v28 = vmul.f32 %v14925_v48, %v20452_v52  ;;  %v14927_v63 = vpop.eup %14926 }
 0x4ea   : > { %v9389_v42 = vmul.f32 %v14927_v63, %v20453_v62  ;;  %v6203_v41 = vcombine.high %v5203_v1, %v20333_v49  ;;  %v6151_v30 = vrot.slane %v6137_v61, %v20334_v14  ;;  %v6210_v48 = vrot.slane %v5203_v1, %v20334_v14 }
 0x4eb   : > { %v9435_v29 = vpack.c.bf16 %v18862_v58, %v18865_v28  ;;  %v14929_v10 = vpop.eup %14928 }
 0x4ec   : > { %v9390_v11 = vmul.f32 %v14929_v10, %v20454_v31  ;;  %v6217_v52 = vrot.slane %v6203_v41, %v20334_v14 }
 0x4ee   : > { %v9430_v8 = vpack.c.bf16 %v9390_v11, %v9389_v42 }
 0x4ef   : > { %v14931_v36 = vpop.eup %14930 }
 0x4f0   : > { %14346 = vmatmul.mubr.msk.bf16.vlgmr.msra.gmra.mxu1 %vm8702_vm2, %v9430_v8  ;;  %v14933_v2 = vpop.eup %14932  ;;  %v9394_v44 = vmul.f32 %v14931_v36, %v20455_v35 }
 0x4f1   : > { %14356 = vmatpush3.bf16.msra.mxu1 %v7171_v0  ;;  %14357 = vmatprep.mubr.msk.bf16.mxu1 %vm15112_vm0, %v20383_v20  ;;  %v9393_v21 = vmul.f32 %v14933_v2, %v20456_v17 }
 0x4f2   : > { %14367 = vmatprep.subr.bf16.mxu1 %v20383_v20 }
 0x4f3   : > { %v9432_v45 = vpack.c.bf16 %v9394_v44, %v9393_v21 }
 0x4f8   : > { %14358 = vmatmul.mubr.msk.bf16.vlgmr.msra.gmra.mxu1 %vm8702_vm2, %v9432_v45 }
 0x4f9   : > { %14368 = vmatpush3.bf16.msra.mxu1 %v7179_v34  ;;  %14369 = vmatprep.mubr.msk.bf16.mxu1 %vm15112_vm0, %v20383_v20 }
 0x4fa   : > { %14379 = vmatprep.subr.bf16.mxu1 %v20383_v20 }
 0x513   : > { %v9254_v12 = vpop.xlane.xlu1 %9253 }
 0x514   : > { %14934 = vrcp.f32 %v9254_v12 }
 0x516   : > { %v9251_v53 = vpop.xlane.xlu0 %9250 }
 0x517   : > { %v9266_v38 = vpop.xlane.xlu1 %9265  ;;  %14936 = vrcp.f32 %v9251_v53 }
 0x51a   : > { %v9263_v39 = vpop.xlane.xlu0 %9262 }
 0x51b   : > { %v5084_v54 = vpop.permute.xlu1 %5083  ;;  %14938 = vrcp.f32 %v9263_v39 }
 0x51c   : > { %v5207_v46 = vpack.i.b16 %v5084_v54, %v5068_v6  ;;  %v5210_v22 = vshrl.u32 %v5084_v54, 16  ;;  %14940 = vrcp.f32 %v9266_v38 }
 0x51e   : > { %v5211_v9 = vpack.i.b16 %v5210_v22, %v5209_v19  ;;  %v6152_v7 = vcombine.high %v5207_v46, %v20333_v49  ;;  %v6159_v43 = vrot.slane %v5207_v46, %v20334_v14  ;;  %v18893_v50 = vpop.xlane.xlu0 %9268 }
 0x520   : > { %v6166_v27 = vrot.slane %v6152_v7, %v20334_v14  ;;  %v6167_v40 = vcombine.low %v6144_v15, %v6159_v43  ;;  %v6168_v55 = vcombine.high %v6144_v15, %v6159_v43  ;;  %v6218_v47 = vcombine.high %v5211_v9, %v20333_v49 }
 0x521   : > { %v6225_v59 = vrot.slane %v5211_v9, %v20334_v14  ;;  %v14935_v0 = vpop.eup %14934 }
 0x522   : > { %v6175_v63 = vrot.slane %v6167_v40, %v20345_v33  ;;  %v6182_v10 = vrot.slane %v6168_v55, %v20345_v33  ;;  %v6183_v4 = vcombine.low %v6151_v30, %v6166_v27  ;;  %v6184_v5 = vcombine.high %v6151_v30, %v6166_v27  ;;  %v9275_v36 = vpop.xlane.xlu0 %9274 }
 0x523   : > { %v6232_v62 = vrot.slane %v6218_v47, %v20334_v14  ;;  %v6233_v42 = vcombine.low %v6210_v48, %v6225_v59  ;;  %v6234_v31 = vcombine.high %v6210_v48, %v6225_v59  ;;  %v9398_v26 = vmul.f32 %v14935_v0, %v18448_v16 }
 0x524   : > { %v6191_v11 = vrot.slane %v6183_v4, %v20345_v33  ;;  %v6969_v8 = vcombine.low %v6175_v63, %v6182_v10  ;;  %v13702_v49 = vcombine.high %v6175_v63, %v6182_v10  ;;  %v6198_v2 = vrot.slane %v6184_v5, %v20345_v33  ;;  %v14937_v25 = vpop.eup %14936 }
 0x525   : > { %v6241_v35 = vrot.slane %v6233_v42, %v20345_v33  ;;  %v6248_v44 = vrot.slane %v6234_v31, %v20345_v33  ;;  %v6249_v51 = vcombine.low %v6217_v52, %v6232_v62  ;;  %v6250_v17 = vcombine.high %v6217_v52, %v6232_v62 }
 0x526   : > { %v6976_v21 = vrot.slane %v6969_v8, %v20334_v14  ;;  %v6984_v45 = vrot.slane %v13702_v49, %v20334_v14  ;;  %v6985_v6 = vcombine.low %v6191_v11, %v6198_v2  ;;  %v13703_v56 = vcombine.high %v6191_v11, %v6198_v2  ;;  %v9278_v15 = vpop.xlane.xlu0 %9277 }
 0x527   : > { %v6257_v34 = vrot.slane %v6249_v51, %v20345_v33  ;;  %v7019_v12 = vcombine.low %v6241_v35, %v6248_v44  ;;  %v6264_v60 = vrot.slane %v6250_v17, %v20345_v33  ;;  %v13704_v53 = vcombine.high %v6241_v35, %v6248_v44 }
 0x528   : > { %v9397_v57 = vmul.f32 %v14937_v25, %v18474_v32  ;;  %v6992_v1 = vrot.slane %v6985_v6, %v20334_v14  ;;  %v7000_v38 = vrot.slane %v13703_v56, %v20334_v14  ;;  %v7001_v54 = vcombine.low %v6976_v21, %v6984_v45  ;;  %v14939_v52 = vpop.eup %14938 }
 0x529   : > { %v7026_v61 = vrot.slane %v7019_v12, %v20334_v14  ;;  %v7034_v39 = vrot.slane %v13704_v53, %v20334_v14  ;;  %v7035_v19 = vcombine.low %v6257_v34, %v6264_v60  ;;  %v13705_v46 = vcombine.high %v6257_v34, %v6264_v60  ;;  %v14941_v5 = vpop.eup %14940 }
 0x52a   : > { %v9434_v22 = vpack.c.bf16 %v9398_v26, %v9397_v57  ;;  %v7009_v41 = vcombine.low %v6992_v1, %v7000_v38  ;;  %14942 = vrcp.f32 %v9278_v15  ;;  %v7008_v30 = vrot.slane %v7001_v54, %v20345_v33 }
 0x52b   : > { %v7042_v16 = vrot.slane %v7035_v19, %v20334_v14  ;;  %v7050_v32 = vrot.slane %v13705_v46, %v20334_v14  ;;  %v7051_v9 = vcombine.low %v7026_v61, %v7034_v39  ;;  %v9476_v7 = vpop.f32.mrf.mxu0  ;;  %14944 = vrcp.f32 %v9275_v36 }
 0x52c   : > { %14370 = vmatmul.mubr.msk.bf16.vlgmr.msra.gmra.mxu1 %vm8702_vm2, %v9434_v22  ;;  %v7016_v43 = vrot.slane %v7009_v41, %v20345_v33  ;;  %v9401_v49 = vmul.f32 %v14939_v52, %v18488_v3  ;;  %v9402_v35 = vmul.f32 %v14941_v5, %v18483_v18  ;;  %14946 = vrcp.f32 %v18893_v50 }
 0x52d   : > { %14381 = vmatprep.mubr.msk.bf16.mxu1 %vm15112_vm0, %v20383_v20  ;;  %v7059_v27 = vcombine.low %v7042_v16, %v7050_v32  ;;  %v14209_v40 = vpop.f32.mrf.mxu0  ;;  %v7058_v47 = vrot.slane %v7051_v9, %v20345_v33 }
 0x52e   : > { %v7017_v55 = vcombine.low %v7008_v30, %v7016_v43  ;;  %v7018_v8 = vcombine.high %v7008_v30, %v7016_v43  ;;  %v9436_v21 = vpack.c.bf16 %v9402_v35, %v9401_v49 }
 0x52f   : > { %v7066_v48 = vrot.slane %v7059_v27, %v20345_v33  ;;  %v18926_v59 = vpop.f32.mrf.mxu0 }
 0x530   : > { %v7185_v31 = vshrl.u32 %v7017_v55, 16  ;;  %v7193_v17 = vshrl.u32 %v7018_v8, 16 }
 0x531   : > { %v7067_v63 = vcombine.low %v7058_v47, %v7066_v48  ;;  %v7068_v10 = vcombine.high %v7058_v47, %v7066_v48  ;;  %v14210_v4 = vpop.f32.mrf.mxu0 }
 0x533   : > { %v9520_v62 = vpop.f32.mrf.mxu1  ;;  %v7183_v42 = vpack.i.b16 %v7067_v63, %v7017_v55  ;;  %v7186_v11 = vshrl.u32 %v7067_v63, 16  ;;  %v7194_v2 = vshrl.u32 %v7068_v10, 16  ;;  %v7191_v25 = vpack.i.b16 %v7068_v10, %v7018_v8 }
 0x535   : > { %v14215_v36 = vpop.f32.mrf.mxu1  ;;  %14374 = vmatpush3.bf16.msra.mxu0 %v7183_v42  ;;  %v7187_v0 = vpack.i.b16 %v7186_v11, %v7185_v31  ;;  %v7195_v18 = vpack.i.b16 %v7194_v2, %v7193_v17 }
 0x536   : > { %14385 = vmatprep.subr.bf16.mxu0 %v20383_v20 }
 0x537   : > { %v9523_v44 = vpop.f32.mrf.mxu1  ;;  %v9564_v51 = vpop.f32.mrf.mxu0  ;;  %14380 = vmatpush3.bf16.msra.mxu1 %v7187_v0 }
 0x538   : > { %14376 = vmatmul.mubr.msk.bf16.vlgmr.msra.gmra.mxu0 %vm8702_vm2, %v9435_v29  ;;  %14391 = vmatprep.subr.bf16.mxu1 %v20383_v20  ;;  %v14943_v34 = vpop.eup %14942  ;;  %v10847_v29 = vcombine.low %v9476_v7, %v9564_v51  ;;  %v10848_v12 = vcombine.high %v9476_v7, %v9564_v51 }
 0x539   : > { %v14216_v3 = vpop.f32.mrf.mxu1  ;;  %v14221_v45 = vpop.f32.mrf.mxu0  ;;  %14386 = vmatpush3.bf16.msra.mxu0 %v7191_v25  ;;  %14387 = vmatprep.mubr.msk.bf16.mxu0 %vm15112_vm0, %v20383_v20  ;;  %v9406_v58 = vmul.f32 %v14943_v34, %v18574_v37 }
 0x53a   : > { %14382 = vmatmul.mubr.msk.bf16.vlgmr.msra.gmra.mxu1 %vm8702_vm2, %v9436_v21  ;;  %v14945_v56 = vpop.eup %14944  ;;  %v10855_v39 = vrot.slane %v10847_v29, %v20334_v14  ;;  %v10862_v19 = vrot.slane %v10848_v12, %v20334_v14 }
 0x53b   : > { %v9567_v6 = vpop.f32.mrf.mxu0  ;;  %14392 = vmatpush3.bf16.msra.mxu1 %v7195_v18  ;;  %14393 = vmatprep.mubr.msk.bf16.mxu1 %vm15112_vm0, %v20383_v20  ;;  %v9405_v26 = vmul.f32 %v14945_v56, %v18538_v24 }
 0x53c   : > { %v10915_v24 = vcombine.low %v18926_v59, %v9567_v6  ;;  %v10916_v46 = vcombine.high %v18926_v59, %v9567_v6 }
 0x53d   : > { %v14222_v28 = vpop.f32.mrf.mxu0  ;;  %v9438_v38 = vpack.c.bf16 %v9406_v58, %v9405_v26 }
 0x53e   : > { %v10923_v59 = vrot.slane %v10915_v24, %v20334_v14  ;;  %v10930_v52 = vrot.slane %v10916_v46, %v20334_v14 }
 0x53f   : > { %v9608_v60 = vpop.f32.mrf.mxu1  ;;  %v18943_v53 = vpop.f32.mrf.mxu0 }
 0x540   : > { %v10863_v57 = vcombine.low %v9520_v62, %v9608_v60  ;;  %v10864_v1 = vcombine.high %v9520_v62, %v9608_v60 }
 0x541   : > { %v14227_v61 = vpop.f32.mrf.mxu1  ;;  %v14233_v54 = vpop.f32.mrf.mxu0 }
 0x542   : > { %v10871_v20 = vrot.slane %v10863_v57, %v20334_v14  ;;  %v10878_v37 = vrot.slane %v10864_v1, %v20334_v14  ;;  %14394 = vmatmul.mubr.msk.bf16.vlgmr.msra.gmra.mxu1 %vm8702_vm2, %v9438_v38 }
 0x543   : > { %v9611_v22 = vpop.f32.mrf.mxu1  ;;  %v18952_v15 = vpop.f32.mrf.mxu0 }
 0x544   : > { %v10879_v41 = vcombine.low %v10855_v39, %v10871_v20  ;;  %v10880_v16 = vcombine.high %v10855_v39, %v10871_v20  ;;  %v10895_v32 = vcombine.low %v10862_v19, %v10878_v37  ;;  %v10896_v9 = vcombine.high %v10862_v19, %v10878_v37 }
 0x545   : > { %v10931_v7 = vcombine.low %v9523_v44, %v9611_v22  ;;  %v10932_v43 = vcombine.high %v9523_v44, %v9611_v22  ;;  %v14228_v30 = vpop.f32.mrf.mxu1  ;;  %v14234_v27 = vpop.f32.mrf.mxu0 }
 0x546   : > { %v10887_v40 = vrot.slane %v10879_v41, %v20345_v33  ;;  %v10894_v55 = vrot.slane %v10880_v16, %v20345_v33  ;;  %v10903_v47 = vrot.slane %v10895_v32, %v20345_v33  ;;  %v10910_v48 = vrot.slane %v10896_v9, %v20345_v33  ;;  %v14947_v41 = vpop.eup %14946 }
 0x547   : > { %v10939_v63 = vrot.slane %v10931_v7, %v20334_v14  ;;  %v10946_v50 = vrot.slane %v10932_v43, %v20334_v14  ;;  %v18963_v10 = vpop.f32.mrf.mxu1  ;;  %v18965_v4 = vpop.f32.mrf.mxu0 }
 0x548   : > { %v11935_v5 = vcombine.low %v10887_v40, %v10894_v55  ;;  %v13770_v62 = vcombine.high %v10887_v40, %v10894_v55  ;;  %v11951_v42 = vcombine.low %v10903_v47, %v10910_v48  ;;  %v13771_v31 = vcombine.high %v10903_v47, %v10910_v48 }
 0x549   : > { %v10947_v11 = vcombine.low %v10923_v59, %v10939_v63  ;;  %v10948_v8 = vcombine.high %v10923_v59, %v10939_v63  ;;  %v10963_v49 = vcombine.low %v10930_v52, %v10946_v50  ;;  %v10964_v36 = vcombine.high %v10930_v52, %v10946_v50  ;;  %v14239_v0 = vpop.f32.mrf.mxu1  ;;  %v14245_v2 = vpop.f32.mrf.mxu0 }
 0x54a   : > { %v11942_v45 = vrot.slane %v11935_v5, %v20334_v14  ;;  %v11950_v34 = vrot.slane %v13770_v62, %v20334_v14  ;;  %v11958_v18 = vrot.slane %v11951_v42, %v20334_v14  ;;  %v11966_v6 = vrot.slane %v13771_v31, %v20334_v14 }
 0x54b   : > { %v10955_v35 = vrot.slane %v10947_v11, %v20345_v33  ;;  %v10962_v44 = vrot.slane %v10948_v8, %v20345_v33  ;;  %v10971_v51 = vrot.slane %v10963_v49, %v20345_v33  ;;  %v10978_v25 = vrot.slane %v10964_v36, %v20345_v33  ;;  %v18971_v17 = vpop.f32.mrf.mxu1  ;;  %v9743_v21 = vpop.f32.mrf.mxu0 }
 0x54c   : > { %v9272_v3 = vpop.xlane.xlu1 %9271  ;;  %v11968_v54 = vcombine.high %v11942_v45, %v11950_v34  ;;  %v11984_v39 = vcombine.high %v11958_v18, %v11966_v6  ;;  %v11967_v19 = vcombine.low %v11942_v45, %v11950_v34  ;;  %v10983_v20 = vcombine.low %v18943_v53, %v18965_v4 }
 0x54d   : > { %14948 = vrcp.f32 %v9272_v3  ;;  %v12003_v56 = vcombine.low %v10955_v35, %v10962_v44  ;;  %v13772_v58 = vcombine.high %v10955_v35, %v10962_v44  ;;  %v12019_v28 = vcombine.low %v10971_v51, %v10978_v25  ;;  %v14240_v29 = vpop.f32.mrf.mxu1  ;;  %v14246_v12 = vpop.f32.mrf.mxu0  ;;  %v19031_v44 = vld [vmem:[#allocation7 + $0x30] sm:$0xff]  }
 0x54e   : > { %v13773_v26 = vcombine.high %v10971_v51, %v10978_v25  ;;  %v11983_v46 = vcombine.low %v11958_v18, %v11966_v6  ;;  %v10984_v16 = vcombine.high %v18943_v53, %v18965_v4  ;;  %v11051_v32 = vcombine.low %v18952_v15, %v9743_v21 }
 0x54f   : > { %v12010_v60 = vrot.slane %v12003_v56, %v20334_v14  ;;  %v12018_v57 = vrot.slane %v13772_v58, %v20334_v14  ;;  %v12026_v1 = vrot.slane %v12019_v28, %v20334_v14  ;;  %v18980_v38 = vpop.f32.mrf.mxu0  ;;  %v18989_v7 = vrot.slane %v11967_v19, %v20345_v33 }
 0x550   : > { %v12034_v61 = vrot.slane %v13773_v26, %v20334_v14  ;;  %v11052_v43 = vcombine.high %v18952_v15, %v9743_v21  ;;  %v18995_v40 = vrot.slane %v11983_v46, %v20345_v33  ;;  %v19003_v59 = vrot.slane %v11968_v54, %v20345_v33  ;;  %v19008_v15 = vld [vmem:[#allocation7 + $0x38] sm:$0xff]  }
 0x551   : > { %v14257_v37 = vpop.f32.mrf.mxu0  ;;  %v12036_v24 = vcombine.high %v12010_v60, %v12018_v57  ;;  %v12035_v22 = vcombine.low %v12010_v60, %v12018_v57  ;;  %v19006_v52 = vrot.slane %v11984_v39, %v20345_v33  ;;  %v10991_v42 = vrot.slane %v10983_v20, %v20334_v14  ;;  %14397 = vmatprep.subr.bf16.mxu0 %v19008_v15  ;;  %v19055_v39 = vld [vmem:[#allocation7 + $0x28] sm:$0xff]  }
 0x552   : > { %v12052_v9 = vcombine.high %v12026_v1, %v12034_v61  ;;  %v12051_v47 = vcombine.low %v12026_v1, %v12034_v61  ;;  %v10998_v31 = vrot.slane %v10984_v16, %v20334_v14  ;;  %v9403_v49 = vmul.f32 %v14947_v41, %v18522_v13  ;;  %14429 = vmatprep.subr.bf16.mxu1 %v19008_v15 }
 0x553   : > { %v9784_v30 = vpop.f32.mrf.mxu1  ;;  %v18992_v27 = vpop.f32.mrf.mxu0  ;;  %v18998_v55 = vrot.slane %v12035_v22, %v20345_v33  ;;  %v19011_v4 = vrot.slane %v12036_v24, %v20345_v33  ;;  %v11059_v36 = vrot.slane %v11051_v32, %v20334_v14  ;;  %v11066_v0 = vrot.slane %v11052_v43, %v20334_v14  ;;  %14437 = vmatpush3.bf16.msra.mxu1 %v19008_v15 }
 0x554   : > { %v10999_v53 = vcombine.low %v18963_v10, %v9784_v30  ;;  %v11000_v48 = vcombine.high %v18963_v10, %v9784_v30  ;;  %v19014_v5 = vrot.slane %v12052_v9, %v20345_v33  ;;  %v19017_v62 = vrot.slane %v12051_v47, %v20345_v33  ;;  %14430 = vmatprep.subr.bf16.mxu1 %v19031_v44 }
 0x555   : > { %v14251_v63 = vpop.f32.mrf.mxu1  ;;  %v14258_v50 = vpop.f32.mrf.mxu0  ;;  %v11999_v10 = vcombine.low %v18989_v7, %v18995_v40  ;;  %v12001_v6 = vcombine.low %v19003_v59, %v19006_v52  ;;  %v12000_v43 = vcombine.high %v18989_v7, %v18995_v40 }
 0x556   : > { %v11007_v11 = vrot.slane %v10999_v53, %v20334_v14  ;;  %v11014_v8 = vrot.slane %v11000_v48, %v20334_v14  ;;  %v12067_v51 = vcombine.low %v18998_v55, %v19017_v62  ;;  %v12069_v56 = vcombine.low %v19011_v4, %v19014_v5 }
 0x557   : > { %v9787_v2 = vpop.f32.mrf.mxu1  ;;  %v19029_v35 = vpop.f32.mrf.mxu0  ;;  %v12068_v61 = vcombine.high %v18998_v55, %v19017_v62  ;;  %14438 = vmatpush3.bf16.msra.mxu1 %v19031_v44  ;;  %v12070_v30 = vcombine.high %v19011_v4, %v19014_v5 }
 0x558   : > { %v11015_v25 = vcombine.low %v10991_v42, %v11007_v11  ;;  %v11016_v21 = vcombine.high %v10991_v42, %v11007_v11  ;;  %v11031_v3 = vcombine.low %v10998_v31, %v11014_v8  ;;  %v11032_v45 = vcombine.high %v10998_v31, %v11014_v8  ;;  %14431 = vmatprep.subr.bf16.mxu1 %v19055_v39 }
 0x559   : > { %v11067_v13 = vcombine.low %v18971_v17, %v9787_v2  ;;  %v11068_v34 = vcombine.high %v18971_v17, %v9787_v2  ;;  %v14252_v18 = vpop.f32.mrf.mxu1  ;;  %v14269_v58 = vpop.f32.mrf.mxu0  ;;  %v14531_v8 = vpack.i.bf16 %v12069_v56, %v12001_v6 }
 0x55a   : > { %v14949_v28 = vpop.eup %14948  ;;  %v11023_v29 = vrot.slane %v11015_v25, %v20345_v33  ;;  %v11030_v12 = vrot.slane %v11016_v21, %v20345_v33  ;;  %v11039_v26 = vrot.slane %v11031_v3, %v20345_v33  ;;  %v11046_v60 = vrot.slane %v11032_v45, %v20345_v33 }
 0x55b   : > { %v9404_v17 = vmul.f32 %v14949_v28, %v18758_v23  ;;  %v11075_v57 = vrot.slane %v11067_v13, %v20334_v14  ;;  %v11082_v1 = vrot.slane %v11068_v34, %v20334_v14  ;;  %v19053_v54 = vpop.f32.mrf.mxu0  ;;  %14532 = vrot.lane.b32.xlu0 %v14531_v8, %s15110_s12  ;;  %v12002_v25 = vcombine.high %v19003_v59, %v19006_v52 }
 0x55c   : > { %v12071_v19 = vcombine.low %v11023_v29, %v11030_v12  ;;  %v13774_v20 = vcombine.high %v11023_v29, %v11030_v12  ;;  %v12087_v37 = vcombine.low %v11039_v26, %v11046_v60  ;;  %v13775_v24 = vcombine.high %v11039_v26, %v11046_v60  ;;  %14439 = vmatpush3.bf16.msra.mxu1 %v19055_v39 }
 0x55d   : > { %v9437_v46 = vpack.c.bf16 %v9404_v17, %v9403_v49  ;;  %v11083_v22 = vcombine.low %v11059_v36, %v11075_v57  ;;  %v11084_v23 = vcombine.high %v11059_v36, %v11075_v57  ;;  %v11099_v41 = vcombine.low %v11066_v0, %v11082_v1  ;;  %v14270_v16 = vpop.f32.mrf.mxu0 }
 0x55e   : > { %v12078_v32 = vrot.slane %v12071_v19, %v20334_v14  ;;  %v12086_v9 = vrot.slane %v13774_v20, %v20334_v14  ;;  %v11100_v48 = vcombine.high %v11066_v0, %v11082_v1  ;;  %v12094_v42 = vrot.slane %v12087_v37, %v20334_v14  ;;  %v19073_v11 = vpop.f32.mrf.mxu1 }
 0x55f   : > { %14388 = vmatmul.mubr.msk.bf16.vlgmr.msra.gmra.mxu0 %vm8702_vm2, %v9437_v46  ;;  %v11091_v47 = vrot.slane %v11083_v22, %v20345_v33  ;;  %v11098_v53 = vrot.slane %v11084_v23, %v20345_v33  ;;  %v11107_v63 = vrot.slane %v11099_v41, %v20345_v33  ;;  %v19069_v50 = vpop.f32.mrf.mxu0  ;;  %v12102_v31 = vrot.slane %v13775_v24, %v20334_v14 }
 0x560   : > { %v14526_v49 = vpack.i.bf16 %v12068_v61, %v12000_v43  ;;  %14398 = vmatpush3.bf16.msra.mxu0 %v19008_v15  ;;  %v11114_v4 = vrot.slane %v11100_v48, %v20345_v33  ;;  %v14263_v0 = vpop.f32.mrf.mxu1  ;;  %v12104_v21 = vcombine.high %v12078_v32, %v12086_v9  ;;  %v14536_v6 = vpack.i.bf16 %v12070_v30, %v12002_v25 }
 0x561   : > { %v12139_v5 = vcombine.low %v11091_v47, %v11098_v53  ;;  %v13776_v36 = vcombine.high %v11091_v47, %v11098_v53  ;;  %v14281_v2 = vpop.f32.mrf.mxu0  ;;  %14399 = vmatprep.subr.bf16.mxu0 %v19031_v44  ;;  %v12120_v56 = vcombine.high %v12094_v42, %v12102_v31  ;;  %v12103_v58 = vcombine.low %v12078_v32, %v12086_v9 }
 0x562   : > { %14527 = vrot.lane.b32.xlu1 %v14526_v49, %s15108_s14  ;;  %v12155_v45 = vcombine.low %v11107_v63, %v11114_v4  ;;  %v13777_v13 = vcombine.high %v11107_v63, %v11114_v4  ;;  %v19087_v18 = vpop.f32.mrf.mxu1  ;;  %v12119_v12 = vcombine.low %v12094_v42, %v12102_v31  ;;  %14537 = vrot.lane.b32.xlu0 %v14536_v6, %s15109_s10 }
 0x563   : > { %v12146_v3 = vrot.slane %v12139_v5, %v20334_v14  ;;  %v12154_v15 = vrot.slane %v13776_v36, %v20334_v14  ;;  %v19084_v34 = vpop.f32.mrf.mxu0  ;;  %v12118_v60 = vrot.slane %v12104_v21, %v20345_v33  ;;  %v12134_v17 = vrot.slane %v12120_v56, %v20345_v33  ;;  %v14689_v5 = vld [vmem:[#allocation7 + $0x20] sm:$0xff]  }
 0x564   : > { %14400 = vmatpush3.bf16.msra.mxu0 %v19031_v44  ;;  %v12162_v59 = vrot.slane %v12155_v45, %v20334_v14  ;;  %v12170_v52 = vrot.slane %v13777_v13, %v20334_v14  ;;  %v14264_v26 = vpop.f32.mrf.mxu1  ;;  %v19097_v57 = vrot.slane %v12103_v58, %v20345_v33  ;;  %v19103_v20 = vrot.slane %v12119_v12, %v20345_v33 }
 0x565   : > { %v14282_v28 = vpop.f32.mrf.mxu0  ;;  %v12172_v29 = vcombine.high %v12146_v3, %v12154_v15  ;;  %14401 = vmatprep.subr.bf16.mxu0 %v19055_v39  ;;  %v12171_v44 = vcombine.low %v12146_v3, %v12154_v15  ;;  %v12137_v41 = vcombine.low %v12118_v60, %v12134_v17  ;;  %v12138_v42 = vcombine.high %v12118_v60, %v12134_v17 }
 0x566   : > { %v12188_v19 = vcombine.high %v12162_v59, %v12170_v52  ;;  %v12187_v37 = vcombine.low %v12162_v59, %v12170_v52  ;;  %v12135_v16 = vcombine.low %v19097_v57, %v19103_v20  ;;  %v12136_v9 = vcombine.high %v19097_v57, %v19103_v20  ;;  %14432 = vmatprep.subr.bf16.mxu1 %v14689_v5  ;;  %v14690_v52 = vld [vmem:[#allocation7 + $0x18] sm:$0xff]   ;;  %v14691_v28 = vld [vmem:[#allocation7 + $0x10] sm:$0xff]  }
 0x567   : > { %v19099_v1 = vpop.f32.mrf.mxu0  ;;  %v12186_v61 = vrot.slane %v12172_v29, %v20345_v33  ;;  %v19106_v24 = vrot.slane %v12171_v44, %v20345_v33  ;;  %v11119_v8 = vcombine.low %v18980_v38, %v19029_v35  ;;  %v11120_v49 = vcombine.high %v18980_v38, %v19029_v35  ;;  %14440 = vmatpush3.bf16.msra.mxu1 %v14689_v5 }
 0x568   : > { %14402 = vmatpush3.bf16.msra.mxu0 %v19055_v39  ;;  %v12202_v46 = vrot.slane %v12188_v19, %v20345_v33  ;;  %v19111_v22 = vrot.slane %v12187_v37, %v20345_v33  ;;  %v11187_v25 = vcombine.low %v18992_v27, %v19053_v54  ;;  %14433 = vmatprep.subr.bf16.mxu1 %v14690_v52 }
 0x569   : > { %v14293_v23 = vpop.f32.mrf.mxu0  ;;  %v11127_v0 = vrot.slane %v11119_v8, %v20334_v14  ;;  %14403 = vmatprep.subr.bf16.mxu0 %v14689_v5  ;;  %v11134_v15 = vrot.slane %v11120_v49, %v20334_v14 }
 0x56a   : > { %v12205_v32 = vcombine.low %v12186_v61, %v12202_v46  ;;  %v12204_v43 = vcombine.high %v19106_v24, %v19111_v22  ;;  %v12203_v39 = vcombine.low %v19106_v24, %v19111_v22  ;;  %v12206_v48 = vcombine.high %v12186_v61, %v12202_v46 }
 0x56b   : > { %v19119_v30 = vpop.f32.mrf.mxu0  ;;  %v11195_v29 = vrot.slane %v11187_v25, %v20334_v14  ;;  %14441 = vmatpush3.bf16.msra.mxu1 %v14690_v52 }
 0x56c   : > { %v14546_v47 = vpack.i.bf16 %v12205_v32, %v12137_v41  ;;  %v14541_v53 = vpack.i.bf16 %v12204_v43, %v12136_v9  ;;  %v14551_v31 = vpack.i.bf16 %v12206_v48, %v12138_v42  ;;  %14404 = vmatpush3.bf16.msra.mxu0 %v14689_v5  ;;  %14434 = vmatprep.subr.bf16.mxu1 %v14691_v28 }
 0x56d   : > { %v14294_v63 = vpop.f32.mrf.mxu0  ;;  %14405 = vmatprep.subr.bf16.mxu0 %v14690_v52 }
 0x56e   : > { %14547 = vrot.lane.b32.xlu0 %v14546_v47, %s15110_s12  ;;  %14542 = vrot.lane.b32.xlu1 %v14541_v53, %s15108_s14  ;;  %v14692_v47 = vld [vmem:[#allocation7 + $0x8] sm:$0xff]  }
 0x56f   : > { %14442 = vmatpush3.bf16.msra.mxu1 %v14691_v28 }
 0x570   : > { %14406 = vmatpush3.bf16.msra.mxu0 %v14690_v52  ;;  %14435 = vmatprep.subr.bf16.mxu1 %v14692_v47 }
 0x571   : > { %14407 = vmatprep.subr.bf16.mxu0 %v14691_v28 }
 0x572   : > { %14552 = vrot.lane.b32.xlu0 %v14551_v31, %s15109_s10 }
 0x573   : > { %14443 = vmatpush3.bf16.msra.mxu1 %v14692_v47 }
 0x574   : > { %v9960_v4 = vpop.f32.mrf.mxu1  ;;  %14408 = vmatpush3.bf16.msra.mxu0 %v14691_v28 }
 0x575   : > { %v11135_v36 = vcombine.low %v19073_v11, %v9960_v4  ;;  %v11136_v2 = vcombine.high %v19073_v11, %v9960_v4  ;;  %v11188_v11 = vcombine.high %v18992_v27, %v19053_v54  ;;  %14409 = vmatprep.subr.bf16.mxu0 %v14692_v47 }
 0x576   : > { %v14275_v21 = vpop.f32.mrf.mxu1  ;;  %v19135_v3 = vpop.f32.mrf.mxu0 }
 0x577   : > { %v11143_v38 = vrot.slane %v11135_v36, %v20334_v14  ;;  %v11150_v35 = vrot.slane %v11136_v2, %v20334_v14  ;;  %v11202_v19 = vrot.slane %v11188_v11, %v20334_v14 }
 0x578   : > { %v9963_v45 = vpop.f32.mrf.mxu1  ;;  %v14305_v13 = vpop.f32.mrf.mxu0  ;;  %14410 = vmatpush3.bf16.msra.mxu0 %v14692_v47 }
 0x579   : > { %v11151_v6 = vcombine.low %v11127_v0, %v11143_v38  ;;  %v11152_v56 = vcombine.high %v11127_v0, %v11143_v38  ;;  %v11167_v58 = vcombine.low %v11134_v15, %v11150_v35  ;;  %v11168_v59 = vcombine.high %v11134_v15, %v11150_v35 }
 0x57a   : > { %v11203_v12 = vcombine.low %v19087_v18, %v9963_v45  ;;  %v11204_v26 = vcombine.high %v19087_v18, %v9963_v45  ;;  %v14276_v60 = vpop.f32.mrf.mxu1  ;;  %v19145_v17 = vpop.f32.mrf.mxu0  ;;  %v14693_v45 = vld [vmem:[#allocation7] sm:$0xff]  }
 0x57b   : > { %v11159_v44 = vrot.slane %v11151_v6, %v20345_v33  ;;  %v11166_v27 = vrot.slane %v11152_v56, %v20345_v33  ;;  %v11175_v54 = vrot.slane %v11167_v58, %v20345_v33  ;;  %v11182_v61 = vrot.slane %v11168_v59, %v20345_v33  ;;  %14411 = vmatprep.subr.bf16.mxu0 %v14693_v45 }
 0x57c   : > { %v11211_v37 = vrot.slane %v11203_v12, %v20334_v14  ;;  %v11218_v46 = vrot.slane %v11204_v26, %v20334_v14  ;;  %v14306_v18 = vpop.f32.mrf.mxu0  ;;  %14436 = vmatprep.subr.bf16.mxu1 %v14693_v45  ;;  %14412 = vmatpush3.bf16.msra.mxu0 %v14693_v45 }
 0x57d   : > { %v19154_v23 = vpop.f32.mrf.mxu1  ;;  %v12207_v41 = vcombine.low %v11159_v44, %v11166_v27  ;;  %v13778_v32 = vcombine.high %v11159_v44, %v11166_v27  ;;  %v12223_v9 = vcombine.low %v11175_v54, %v11182_v61  ;;  %v13779_v43 = vcombine.high %v11175_v54, %v11182_v61  ;;  %14444 = vmatpush3.bf16.msra.mxu1 %v14693_v45 }
 0x57e   : > { %v11219_v53 = vcombine.low %v11195_v29, %v11211_v37  ;;  %v11220_v48 = vcombine.high %v11195_v29, %v11211_v37  ;;  %v11235_v63 = vcombine.low %v11202_v19, %v11218_v46  ;;  %v11236_v42 = vcombine.high %v11202_v19, %v11218_v46 }
 0x57f   : > { %v14287_v31 = vpop.f32.mrf.mxu1  ;;  %v19156_v8 = vpop.f32.mrf.mxu0  ;;  %v12214_v49 = vrot.slane %v12207_v41, %v20334_v14  ;;  %v12222_v4 = vrot.slane %v13778_v32, %v20334_v14  ;;  %v12230_v5 = vrot.slane %v12223_v9, %v20334_v14  ;;  %v12238_v36 = vrot.slane %v13779_v43, %v20334_v14 }
 0x580   : > { %v11227_v2 = vrot.slane %v11219_v53, %v20345_v33  ;;  %v11234_v0 = vrot.slane %v11220_v48, %v20345_v33  ;;  %v11243_v25 = vrot.slane %v11235_v63, %v20345_v33  ;;  %v11250_v21 = vrot.slane %v11236_v42, %v20345_v33 }
 0x581   : > { %v19166_v15 = vpop.f32.mrf.mxu1  ;;  %v14317_v38 = vpop.f32.mrf.mxu0  ;;  %v12239_v35 = vcombine.low %v12214_v49, %v12222_v4  ;;  %v12255_v11 = vcombine.low %v12230_v5, %v12238_v36  ;;  %v12240_v61 = vcombine.high %v12214_v49, %v12222_v4  ;;  %v12256_v37 = vcombine.high %v12230_v5, %v12238_v36 }
 0x582   : > { %v12275_v13 = vcombine.low %v11227_v2, %v11234_v0  ;;  %v13780_v6 = vcombine.high %v11227_v2, %v11234_v0  ;;  %v12291_v56 = vcombine.low %v11243_v25, %v11250_v21  ;;  %v13781_v58 = vcombine.high %v11243_v25, %v11250_v21 }
 0x583   : > { %v14288_v59 = vpop.f32.mrf.mxu1  ;;  %v19168_v52 = vpop.f32.mrf.mxu0  ;;  %v19175_v27 = vrot.slane %v12239_v35, %v20345_v33  ;;  %v19178_v54 = vrot.slane %v12255_v11, %v20345_v33  ;;  %v11255_v18 = vcombine.low %v19069_v50, %v19099_v1  ;;  %v11256_v41 = vcombine.high %v19069_v50, %v19099_v1 }
 0x584   : > { %v12282_v29 = vrot.slane %v12275_v13, %v20334_v14  ;;  %v12290_v12 = vrot.slane %v13780_v6, %v20334_v14  ;;  %v12298_v26 = vrot.slane %v12291_v56, %v20334_v14  ;;  %v12306_v60 = vrot.slane %v13781_v58, %v20334_v14 }
 0x585   : > { %v14318_v44 = vpop.f32.mrf.mxu0  ;;  %v11323_v32 = vcombine.low %v19084_v34, %v19119_v30  ;;  %v11324_v43 = vcombine.high %v19084_v34, %v19119_v30  ;;  %v11391_v50 = vcombine.low %v19135_v3, %v19156_v8  ;;  %v12272_v1 = vcombine.high %v19175_v27, %v19178_v54 }
 0x586   : > { %v12307_v28 = vcombine.low %v12282_v29, %v12290_v12  ;;  %v12323_v19 = vcombine.low %v12298_v26, %v12306_v60  ;;  %v12308_v46 = vcombine.high %v12282_v29, %v12290_v12  ;;  %v12324_v9 = vcombine.high %v12298_v26, %v12306_v60 }
 0x587   : > { %v19211_v49 = vrot.slane %v12240_v61, %v20345_v33  ;;  %v19214_v4 = vrot.slane %v12256_v37, %v20345_v33  ;;  %v11263_v25 = vrot.slane %v11255_v18, %v20334_v14  ;;  %v11392_v38 = vcombine.high %v19135_v3, %v19156_v8 }
 0x588   : > { %v19189_v53 = vrot.slane %v12307_v28, %v20345_v33  ;;  %v19192_v48 = vrot.slane %v12323_v19, %v20345_v33  ;;  %v19195_v47 = vrot.slane %v12308_v46, %v20345_v33  ;;  %v19202_v63 = vrot.slane %v12324_v9, %v20345_v33 }
 0x589   : > { %v11270_v13 = vrot.slane %v11256_v41, %v20334_v14  ;;  %v11331_v6 = vrot.slane %v11323_v32, %v20334_v14  ;;  %v11338_v58 = vrot.slane %v11324_v43, %v20334_v14  ;;  %v19233_v29 = vrot.slane %v11391_v50, %v20334_v14 }
 0x58a   : > { %v12340_v31 = vcombine.high %v19189_v53, %v19192_v48  ;;  %v12341_v11 = vcombine.low %v19195_v47, %v19202_v63  ;;  %v11459_v3 = vcombine.low %v19145_v17, %v19168_v52  ;;  %v12273_v8 = vcombine.low %v19211_v49, %v19214_v4 }
 0x58b   : > { %v19204_v34 = vpop.f32.mrf.mxu0  ;;  %v19243_v37 = vrot.slane %v11392_v38, %v20334_v14 }
 0x58c   : > { %v10136_v42 = vpop.f32.mrf.mxu1  ;;  %v14556_v35 = vpack.i.bf16 %v12340_v31, %v12272_v1  ;;  %v14561_v18 = vpack.i.bf16 %v12341_v11, %v12273_v8 }
 0x58d   : > { %v11271_v36 = vcombine.low %v19154_v23, %v10136_v42  ;;  %v11272_v2 = vcombine.high %v19154_v23, %v10136_v42  ;;  %v14329_v0 = vpop.f32.mrf.mxu0 }
 0x58e   : > { %v14299_v21 = vpop.f32.mrf.mxu1  ;;  %14557 = vrot.lane.b32.xlu0 %v14556_v35, %s15108_s14 }
 0x58f   : > { %v11279_v45 = vrot.slane %v11271_v36, %v20334_v14  ;;  %v11286_v56 = vrot.slane %v11272_v2, %v20334_v14  ;;  %v19229_v23 = vpop.f32.mrf.mxu0  ;;  %v19254_v36 = vrot.slane %v11459_v3, %v20334_v14 }
 0x590   : > { %v10139_v59 = vpop.f32.mrf.mxu1 }
 0x591   : > { %v11287_v12 = vcombine.low %v11263_v25, %v11279_v45  ;;  %v11288_v26 = vcombine.high %v11263_v25, %v11279_v45  ;;  %v11303_v60 = vcombine.low %v11270_v13, %v11286_v56  ;;  %v11304_v44 = vcombine.high %v11270_v13, %v11286_v56  ;;  %v14330_v61 = vpop.f32.mrf.mxu0 }
 0x592   : > { %v11339_v28 = vcombine.low %v19166_v15, %v10139_v59  ;;  %v11340_v19 = vcombine.high %v19166_v15, %v10139_v59  ;;  %v14300_v46 = vpop.f32.mrf.mxu1  ;;  %v11460_v15 = vcombine.high %v19145_v17, %v19168_v52  ;;  %14562 = vrot.lane.b32.xlu0 %v14561_v18, %s15110_s12 }
 0x593   : > { %v11295_v41 = vrot.slane %v11287_v12, %v20345_v33  ;;  %v11302_v32 = vrot.slane %v11288_v26, %v20345_v33  ;;  %v11311_v9 = vrot.slane %v11303_v60, %v20345_v33  ;;  %v11318_v43 = vrot.slane %v11304_v44, %v20345_v33  ;;  %v10444_v50 = vpop.f32.mrf.mxu0 }
 0x594   : > { %v11347_v1 = vrot.slane %v11339_v28, %v20334_v14  ;;  %v11354_v42 = vrot.slane %v11340_v19, %v20334_v14  ;;  %v10224_v31 = vpop.f32.mrf.mxu1  ;;  %v19276_v44 = vrot.slane %v11460_v15, %v20334_v14  ;;  %v11527_v61 = vcombine.low %v19204_v34, %v10444_v50 }
 0x595   : > { %v12343_v2 = vcombine.low %v11295_v41, %v11302_v32  ;;  %v13782_v0 = vcombine.high %v11295_v41, %v11302_v32  ;;  %v12359_v25 = vcombine.low %v11311_v9, %v11318_v43  ;;  %v13783_v21 = vcombine.high %v11311_v9, %v11318_v43  ;;  %v14341_v38 = vpop.f32.mrf.mxu0 }
 0x596   : > { %v11355_v35 = vcombine.low %v11331_v6, %v11347_v1  ;;  %v11356_v11 = vcombine.high %v11331_v6, %v11347_v1  ;;  %v11371_v13 = vcombine.low %v11338_v58, %v11354_v42  ;;  %v11372_v45 = vcombine.high %v11338_v58, %v11354_v42  ;;  %v14311_v56 = vpop.f32.mrf.mxu1 }
 0x597   : > { %v19258_v59 = vrot.slane %v12343_v2, %v20334_v14  ;;  %v19261_v17 = vrot.slane %v13782_v0, %v20334_v14  ;;  %v19264_v52 = vrot.slane %v12359_v25, %v20334_v14  ;;  %v19267_v3 = vrot.slane %v13783_v21, %v20334_v14  ;;  %v19269_v8 = vpop.f32.mrf.mxu0 }
 0x598   : > { %v11363_v12 = vrot.slane %v11355_v35, %v20345_v33  ;;  %v11370_v6 = vrot.slane %v11356_v11, %v20345_v33  ;;  %v11379_v58 = vrot.slane %v11371_v13, %v20345_v33  ;;  %v11386_v26 = vrot.slane %v11372_v45, %v20345_v33  ;;  %v10227_v60 = vpop.f32.mrf.mxu1 }
 0x599   : > { %v14342_v28 = vpop.f32.mrf.mxu0  ;;  %v12274_v19 = vcombine.high %v19211_v49, %v19214_v4  ;;  %v12342_v46 = vcombine.high %v19195_v47, %v19202_v63  ;;  %v11528_v1 = vcombine.high %v19204_v34, %v10444_v50  ;;  %v11595_v42 = vcombine.low %v19229_v23, %v19269_v8 }
 0x59a   : > { %v12411_v18 = vcombine.low %v11363_v12, %v11370_v6  ;;  %v13784_v41 = vcombine.high %v11363_v12, %v11370_v6  ;;  %v12427_v32 = vcombine.low %v11379_v58, %v11386_v26  ;;  %v13785_v9 = vcombine.high %v11379_v58, %v11386_v26  ;;  %v14312_v43 = vpop.f32.mrf.mxu1 }
 0x59b   : > { %v12375_v15 = vcombine.low %v19258_v59, %v19261_v17  ;;  %v12391_v2 = vcombine.low %v19264_v52, %v19267_v3  ;;  %v19305_v21 = vrot.slane %v11527_v61, %v20334_v14  ;;  %v19307_v38 = vpack.i.bf16 %v12342_v46, %v12274_v19 }
 0x59c   : > { %v19291_v49 = vrot.slane %v12411_v18, %v20334_v14  ;;  %v19294_v47 = vrot.slane %v13784_v41, %v20334_v14  ;;  %v19297_v63 = vrot.slane %v12427_v32, %v20334_v14  ;;  %v19300_v34 = vrot.slane %v13785_v9, %v20334_v14  ;;  %v10312_v4 = vpop.f32.mrf.mxu1 }
 0x59d   : > { %v19302_v50 = vpop.f32.mrf.mxu0  ;;  %v11407_v0 = vcombine.low %v10224_v31, %v10312_v4  ;;  %v11408_v25 = vcombine.high %v10224_v31, %v10312_v4  ;;  %v19310_v11 = vrot.slane %v12375_v15, %v20345_v33  ;;  %v19313_v13 = vrot.slane %v12391_v2, %v20345_v33 }
 0x59e   : > { %v14323_v35 = vpop.f32.mrf.mxu1  ;;  %v12443_v45 = vcombine.low %v19291_v49, %v19294_v47  ;;  %v12459_v56 = vcombine.low %v19297_v63, %v19300_v34  ;;  %v19322_v58 = vrot.slane %v11528_v1, %v20334_v14  ;;  %v11596_v26 = vcombine.high %v19229_v23, %v19269_v8 }
 0x59f   : > { %v14353_v12 = vpop.f32.mrf.mxu0  ;;  %v11415_v31 = vrot.slane %v11407_v0, %v20334_v14  ;;  %v11422_v6 = vrot.slane %v11408_v25, %v20334_v14  ;;  %v19327_v28 = vrot.slane %v11595_v42, %v20334_v14  ;;  %v12376_v41 = vcombine.high %v19258_v59, %v19261_v17 }
 0x5a0   : > { %v10315_v61 = vpop.f32.mrf.mxu1  ;;  %v19330_v19 = vrot.slane %v12443_v45, %v20345_v33  ;;  %v19333_v46 = vrot.slane %v12459_v56, %v20345_v33  ;;  %v12408_v15 = vcombine.high %v19310_v11, %v19313_v13  ;;  %v12392_v56 = vcombine.high %v19264_v52, %v19267_v3 }
 0x5a1   : > { %v19335_v18 = vpop.f32.mrf.mxu0  ;;  %v11423_v32 = vcombine.low %v19233_v29, %v11415_v31  ;;  %v11424_v9 = vcombine.high %v19233_v29, %v11415_v31  ;;  %v11439_v23 = vcombine.low %v19243_v37, %v11422_v6  ;;  %v11440_v8 = vcombine.high %v19243_v37, %v11422_v6 }
 0x5a2   : > { %v11475_v43 = vcombine.low %v10227_v60, %v10315_v61  ;;  %v11476_v1 = vcombine.high %v10227_v60, %v10315_v61  ;;  %v14324_v42 = vpop.f32.mrf.mxu1  ;;  %v12476_v2 = vcombine.high %v19330_v19, %v19333_v46 }
 0x5a3   : > { %v14354_v4 = vpop.f32.mrf.mxu0  ;;  %v11431_v59 = vrot.slane %v11423_v32, %v20345_v33  ;;  %v11438_v17 = vrot.slane %v11424_v9, %v20345_v33  ;;  %v11447_v29 = vrot.slane %v11439_v23, %v20345_v33  ;;  %v11454_v0 = vrot.slane %v11440_v8, %v20345_v33 }
 0x5a4   : > { %v11483_v37 = vrot.slane %v11475_v43, %v20334_v14  ;;  %v11490_v60 = vrot.slane %v11476_v1, %v20334_v14  ;;  %v14566_v35 = vpack.i.bf16 %v12476_v2, %v12408_v15 }
 0x5a5   : > { %v19353_v25 = vpop.f32.mrf.mxu1  ;;  %v19355_v45 = vpop.f32.mrf.mxu0  ;;  %v12479_v12 = vcombine.low %v11431_v59, %v11438_v17  ;;  %v13786_v31 = vcombine.high %v11431_v59, %v11438_v17  ;;  %v12495_v6 = vcombine.low %v11447_v29, %v11454_v0  ;;  %v13787_v61 = vcombine.high %v11447_v29, %v11454_v0 }
 0x5a6   : > { %v11491_v32 = vcombine.low %v19254_v36, %v11483_v37  ;;  %v11492_v9 = vcombine.high %v19254_v36, %v11483_v37  ;;  %v11507_v23 = vcombine.low %v19276_v44, %v11490_v60  ;;  %v11508_v8 = vcombine.high %v19276_v44, %v11490_v60  ;;  %14567 = vrot.lane.b32.xlu0 %v14566_v35, %s15108_s14 }
 0x5a7   : > { %v14335_v43 = vpop.f32.mrf.mxu1  ;;  %v14365_v1 = vpop.f32.mrf.mxu0  ;;  %v12486_v42 = vrot.slane %v12479_v12, %v20334_v14  ;;  %v12494_v52 = vrot.slane %v13786_v31, %v20334_v14  ;;  %v12502_v3 = vrot.slane %v12495_v6, %v20334_v14  ;;  %v12510_v15 = vrot.slane %v13787_v61, %v20334_v14 }
 0x5a8   : > { %v11499_v2 = vrot.slane %v11491_v32, %v20345_v33  ;;  %v11506_v36 = vrot.slane %v11492_v9, %v20345_v33  ;;  %v11515_v4 = vrot.slane %v11507_v23, %v20345_v33  ;;  %v11522_v44 = vrot.slane %v11508_v8, %v20345_v33 }
 0x5a9   : > { %v19372_v59 = vpop.f32.mrf.mxu1  ;;  %v19374_v17 = vpop.f32.mrf.mxu0  ;;  %v11663_v29 = vcombine.low %v19302_v50, %v19355_v45  ;;  %v11664_v0 = vcombine.high %v19302_v50, %v19355_v45  ;;  %v19385_v9 = vrot.slane %v11596_v26, %v20334_v14  ;;  %v19388_v23 = vrot.slane %v12376_v41, %v20345_v33 }
 0x5aa   : > { %v12547_v35 = vcombine.low %v11499_v2, %v11506_v36  ;;  %v13788_v12 = vcombine.high %v11499_v2, %v11506_v36  ;;  %v12563_v31 = vcombine.low %v11515_v4, %v11522_v44  ;;  %v13789_v6 = vcombine.high %v11515_v4, %v11522_v44 }
 0x5ab   : > { %v14336_v61 = vpop.f32.mrf.mxu1  ;;  %v14366_v32 = vpop.f32.mrf.mxu0  ;;  %v19391_v8 = vrot.slane %v12392_v56, %v20345_v33  ;;  %v12444_v43 = vcombine.high %v19291_v49, %v19294_v47  ;;  %v12512_v44 = vcombine.high %v12486_v42, %v12494_v52  ;;  %v12528_v26 = vcombine.high %v12502_v3, %v12510_v15 }
 0x5ac   : > { %v12554_v1 = vrot.slane %v12547_v35, %v20334_v14  ;;  %v12562_v2 = vrot.slane %v13788_v12, %v20334_v14  ;;  %v12570_v36 = vrot.slane %v12563_v31, %v20334_v14  ;;  %v12578_v4 = vrot.slane %v13789_v6, %v20334_v14 }
 0x5ad   : > { %v12511_v61 = vcombine.low %v12486_v42, %v12494_v52  ;;  %v12527_v32 = vcombine.low %v12502_v3, %v12510_v15  ;;  %v12526_v60 = vrot.slane %v12512_v44, %v20345_v33  ;;  %v12542_v49 = vrot.slane %v12528_v26, %v20345_v33 }
 0x5ae   : > { %v12580_v41 = vcombine.high %v12554_v1, %v12562_v2  ;;  %v12596_v5 = vcombine.high %v12570_v36, %v12578_v4  ;;  %v12579_v30 = vcombine.low %v12554_v1, %v12562_v2  ;;  %v12595_v56 = vcombine.low %v12570_v36, %v12578_v4 }
 0x5af   : > { %v19402_v47 = vrot.slane %v12511_v61, %v20345_v33  ;;  %v19405_v35 = vrot.slane %v12527_v32, %v20345_v33  ;;  %v12545_v15 = vcombine.low %v12526_v60, %v12542_v49  ;;  %v19418_v1 = vrot.slane %v12444_v43, %v20345_v33 }
 0x5b0   : > { %v12594_v12 = vrot.slane %v12580_v41, %v20345_v33  ;;  %v12610_v31 = vrot.slane %v12596_v5, %v20345_v33  ;;  %v19410_v42 = vrot.slane %v12579_v30, %v20345_v33  ;;  %v19413_v52 = vrot.slane %v12595_v56, %v20345_v33  ;;  %v10488_v3 = vpop.f32.mrf.mxu1 }
 0x5b1   : > { %v12544_v6 = vcombine.high %v19402_v47, %v19405_v35  ;;  %v12460_v2 = vcombine.high %v19297_v63, %v19300_v34  ;;  %v11543_v36 = vcombine.low %v19353_v25, %v10488_v3  ;;  %v11544_v5 = vcombine.high %v19353_v25, %v10488_v3 }
 0x5b2   : > { %v12613_v30 = vcombine.low %v12594_v12, %v12610_v31  ;;  %v12612_v4 = vcombine.high %v19410_v42, %v19413_v52  ;;  %v14347_v44 = vpop.f32.mrf.mxu1  ;;  %v12546_v26 = vcombine.high %v12526_v60, %v12542_v49  ;;  %v12614_v61 = vcombine.high %v12594_v12, %v12610_v31 }
 0x5b3   : > { %v12474_v32 = vrot.slane %v12460_v2, %v20345_v33  ;;  %v12407_v43 = vcombine.low %v19310_v11, %v19313_v13  ;;  %v11551_v41 = vrot.slane %v11543_v36, %v20334_v14  ;;  %v11558_v63 = vrot.slane %v11544_v5, %v20334_v14 }
 0x5b4   : > { %v14586_v34 = vpack.i.bf16 %v12613_v30, %v12545_v15  ;;  %v14571_v56 = vpack.i.bf16 %v12612_v4, %v12544_v6  ;;  %v10491_v37 = vpop.f32.mrf.mxu1  ;;  %v14591_v25 = vpack.i.bf16 %v12614_v61, %v12546_v26  ;;  %v12409_v3 = vcombine.low %v19388_v23, %v19391_v8 }
 0x5b5   : > { %v12477_v44 = vcombine.low %v19418_v1, %v12474_v32  ;;  %v12475_v60 = vcombine.low %v19330_v19, %v19333_v46  ;;  %v11559_v49 = vcombine.low %v19305_v21, %v11551_v41  ;;  %v11560_v12 = vcombine.high %v19305_v21, %v11551_v41 }
 0x5b6   : > { %v11575_v31 = vcombine.low %v19322_v58, %v11558_v63  ;;  %v11576_v2 = vcombine.high %v19322_v58, %v11558_v63  ;;  %14587 = vrot.lane.b32.xlu1 %v14586_v34, %s15110_s12  ;;  %v11611_v15 = vcombine.low %v19372_v59, %v10491_v37  ;;  %v11612_v6 = vcombine.high %v19372_v59, %v10491_v37  ;;  %v14348_v36 = vpop.f32.mrf.mxu1 }
 0x5b7   : > { %14572 = vrot.lane.b32.xlu0 %v14571_v56, %s15108_s14  ;;  %v14576_v5 = vpack.i.bf16 %v12477_v44, %v12409_v3  ;;  %v12478_v30 = vcombine.high %v19418_v1, %v12474_v32  ;;  %v11567_v4 = vrot.slane %v11559_v49, %v20345_v33  ;;  %v11574_v21 = vrot.slane %v11560_v12, %v20345_v33 }
 0x5b8   : > { %v11583_v26 = vrot.slane %v11575_v31, %v20345_v33  ;;  %v11590_v58 = vrot.slane %v11576_v2, %v20345_v33  ;;  %v11619_v61 = vrot.slane %v11611_v15, %v20334_v14  ;;  %v11626_v41 = vrot.slane %v11612_v6, %v20334_v14  ;;  %v19451_v63 = vpop.f32.mrf.mxu1 }
 0x5b9   : > { %v12543_v59 = vcombine.low %v19402_v47, %v19405_v35  ;;  %v12611_v37 = vcombine.low %v19410_v42, %v19413_v52  ;;  %v12615_v1 = vcombine.low %v11567_v4, %v11574_v21  ;;  %v13790_v32 = vcombine.high %v11567_v4, %v11574_v21 }
 0x5ba   : > { %v12631_v34 = vcombine.low %v11583_v26, %v11590_v58  ;;  %v13791_v56 = vcombine.high %v11583_v26, %v11590_v58  ;;  %14592 = vrot.lane.b32.xlu1 %v14591_v25, %s15109_s10  ;;  %v11627_v3 = vcombine.low %v19327_v28, %v11619_v61  ;;  %v11628_v44 = vcombine.high %v19327_v28, %v11619_v61  ;;  %v14359_v31 = vpop.f32.mrf.mxu1 }
 0x5bb   : > { %v11643_v49 = vcombine.low %v19385_v9, %v11626_v41  ;;  %v11644_v12 = vcombine.high %v19385_v9, %v11626_v41  ;;  %14577 = vrot.lane.b32.xlu0 %v14576_v5, %s15110_s12  ;;  %v12622_v2 = vrot.slane %v12615_v1, %v20334_v14  ;;  %v12630_v15 = vrot.slane %v13790_v32, %v20334_v14 }
 0x5bc   : > { %v12638_v6 = vrot.slane %v12631_v34, %v20334_v14  ;;  %v12646_v36 = vrot.slane %v13791_v56, %v20334_v14  ;;  %v11635_v25 = vrot.slane %v11627_v3, %v20345_v33  ;;  %v11642_v4 = vrot.slane %v11628_v44, %v20345_v33  ;;  %v19471_v9 = vpop.f32.mrf.mxu1 }
 0x5bd   : > { %v11651_v28 = vrot.slane %v11643_v49, %v20345_v33  ;;  %v11658_v21 = vrot.slane %v11644_v12, %v20345_v33  ;;  %v12410_v5 = vcombine.high %v19388_v23, %v19391_v8  ;;  %v12647_v26 = vcombine.low %v12622_v2, %v12630_v15 }
 0x5be   : > { %v12663_v58 = vcombine.low %v12638_v6, %v12646_v36  ;;  %v12683_v61 = vcombine.low %v11635_v25, %v11642_v4  ;;  %v13792_v41 = vcombine.high %v11635_v25, %v11642_v4  ;;  %v14360_v34 = vpop.f32.mrf.mxu1  ;;  %v12648_v31 = vcombine.high %v12622_v2, %v12630_v15 }
 0x5bf   : > { %v12699_v1 = vcombine.low %v11651_v28, %v11658_v21  ;;  %v13793_v32 = vcombine.high %v11651_v28, %v11658_v21  ;;  %14582 = vrot.lane.b32.xlu0 %v19307_v38, %s15109_s10  ;;  %v14636_v56 = vpack.i.bf16 %v12478_v30, %v12410_v5  ;;  %v19478_v3 = vrot.slane %v12647_v26, %v20345_v33 }
 0x5c0   : > { %v19481_v44 = vrot.slane %v12663_v58, %v20345_v33  ;;  %v12690_v49 = vrot.slane %v12683_v61, %v20334_v14  ;;  %v12698_v23 = vrot.slane %v13792_v41, %v20334_v14  ;;  %v12664_v25 = vcombine.high %v12638_v6, %v12646_v36 }
 0x5c1   : > { %v12706_v8 = vrot.slane %v12699_v1, %v20334_v14  ;;  %v12714_v12 = vrot.slane %v13793_v32, %v20334_v14  ;;  %v12662_v15 = vrot.slane %v12648_v31, %v20345_v33 }
 0x5c2   : > { %v12679_v38 = vcombine.low %v19478_v3, %v19481_v44  ;;  %v12715_v30 = vcombine.low %v12690_v49, %v12698_v23  ;;  %v12716_v28 = vcombine.high %v12690_v49, %v12698_v23  ;;  %v12680_v6 = vcombine.high %v19478_v3, %v19481_v44 }
 0x5c3   : > { %14637 = vrot.lane.b32.xlu0 %v14636_v56, %s15109_s10  ;;  %v12731_v4 = vcombine.low %v12706_v8, %v12714_v12  ;;  %v12732_v21 = vcombine.high %v12706_v8, %v12714_v12  ;;  %v12678_v61 = vrot.slane %v12664_v25, %v20345_v33 }
 0x5c4   : > { %v19491_v5 = vrot.slane %v12715_v30, %v20345_v33  ;;  %v12730_v58 = vrot.slane %v12716_v28, %v20345_v33 }
 0x5c5   : > { %v19494_v26 = vrot.slane %v12731_v4, %v20345_v33  ;;  %v12746_v2 = vrot.slane %v12732_v21, %v20345_v33  ;;  %v12681_v34 = vcombine.low %v12662_v15, %v12678_v61  ;;  %v12682_v23 = vcombine.high %v12662_v15, %v12678_v61 }
 0x5c7   : > { %v12748_v36 = vcombine.high %v19491_v5, %v19494_v26  ;;  %v12747_v41 = vcombine.low %v19491_v5, %v19494_v26  ;;  %v12749_v32 = vcombine.low %v12730_v58, %v12746_v2  ;;  %v12750_v49 = vcombine.high %v12730_v58, %v12746_v2 }
 0x5c9   : > { %v14596_v1 = vpack.i.bf16 %v12748_v36, %v12680_v6  ;;  %v14601_v56 = vpack.i.bf16 %v12749_v32, %v12681_v34  ;;  %v14606_v8 = vpack.i.bf16 %v12750_v49, %v12682_v23 }
 0x5cb   : > { %14597 = vrot.lane.b32.xlu1 %v14596_v1, %s15108_s14 }
 0x5cd   : > { %v14533_v12 = vpop.permute.xlu0 %14532 }
 0x5ce   : > { %v14535_v4 = vunpack.i.h.bf16 %v14533_v12  ;;  %v14534_v28 = vunpack.i.l.bf16 %v14533_v12 }
 0x5cf   : > { %14602 = vrot.lane.b32.xlu1 %v14601_v56, %s15110_s12 }
 0x5d3   : > { %14607 = vrot.lane.b32.xlu1 %v14606_v8, %s15109_s10 }
 0x5d4   : > { %v14528_v31 = vpop.permute.xlu1 %14527  ;;  %v14538_v2 = vpop.permute.xlu0 %14537 }
 0x5d5   : > { %v14530_v30 = vunpack.i.h.bf16 %v14528_v31  ;;  %v14529_v25 = vunpack.i.l.bf16 %v14528_v31  ;;  %v14540_v15 = vunpack.i.h.bf16 %v14538_v2  ;;  %v14539_v6 = vunpack.i.l.bf16 %v14538_v2 }
 0x5d7   : > { %v13215_v21 = vsel %vm7197_vm1, %v11999_v10, %v14529_v25  ;;  %v13216_v58 = vsel %vm7197_vm1, %v12067_v51, %v14530_v30 }
 0x5d8   : > { %v13232_v36 = vsel %vm13231_vm3, %v13215_v21, %v14534_v28  ;;  %v13233_v61 = vsel %vm13231_vm3, %v13216_v58, %v14535_v4 }
 0x5d9   : > { %v13249_v1 = vsel %vm13248_vm4, %v13232_v36, %v14539_v6  ;;  %v13250_v7 = vsel %vm13248_vm4, %v13233_v61, %v14540_v15 }
 0x5da   : > { %v13265_v40 = vpack.c.bf16 %v13250_v7, %v13249_v1 }
 0x5dc   : > { %14413 = vmatprep.mubr.bf16.mxu0 %v13265_v40 }
 0x5e0   : > { %v14548_v10 = vpop.permute.xlu0 %14547  ;;  %v14543_v32 = vpop.permute.xlu1 %14542 }
 0x5e1   : > { %v14545_v55 = vunpack.i.h.bf16 %v14543_v32  ;;  %v14544_v62 = vunpack.i.l.bf16 %v14543_v32  ;;  %v14550_v51 = vunpack.i.h.bf16 %v14548_v10  ;;  %v14549_v34 = vunpack.i.l.bf16 %v14548_v10 }
 0x5e2   : > { %v20458_v32 = vcombine.high %v19335_v18, %v19374_v17 }
 0x5e3   : > { %v13217_v56 = vsel %vm7197_vm1, %v12135_v16, %v14544_v62  ;;  %v13218_v49 = vsel %vm7197_vm1, %v12203_v39, %v14545_v55  ;;  %v11671_v16 = vrot.slane %v11663_v29, %v20334_v14  ;;  %v11678_v39 = vrot.slane %v11664_v0, %v20334_v14 }
 0x5e4   : > { %v14553_v23 = vpop.permute.xlu0 %14552  ;;  %v13234_v31 = vsel %vm13231_vm3, %v13217_v56, %v14549_v34  ;;  %v13235_v30 = vsel %vm13231_vm3, %v13218_v49, %v14550_v51  ;;  %v20457_v0 = vcombine.low %v19335_v18, %v19374_v17  ;;  %v11746_v55 = vrot.slane %v20458_v32, %v20334_v14 }
 0x5e5   : > { %v14555_v8 = vunpack.i.h.bf16 %v14553_v23  ;;  %v14554_v12 = vunpack.i.l.bf16 %v14553_v23 }
 0x5e6   : > { %v11739_v10 = vrot.slane %v20457_v0, %v20334_v14 }
 0x5e7   : > { %v13251_v25 = vsel %vm13248_vm4, %v13234_v31, %v14554_v12  ;;  %v13252_v4 = vsel %vm13248_vm4, %v13235_v30, %v14555_v8 }
 0x5e8   : > { %v13266_v28 = vpack.c.bf16 %v13252_v4, %v13251_v25 }
 0x5ea   : > { %14414 = vmatmul.mubr.bf16.vlgmr.msra.gmra.mxu0 %v13266_v28 }
 0x5ec   : > { %v10664_v57 = vpop.f32.mrf.mxu1 }
 0x5ed   : > { %v11679_v20 = vcombine.low %v19451_v63, %v10664_v57  ;;  %v11680_v24 = vcombine.high %v19451_v63, %v10664_v57 }
 0x5ee   : > { %v14371_v22 = vpop.f32.mrf.mxu1 }
 0x5ef   : > { %v11687_v21 = vrot.slane %v11679_v20, %v20334_v14  ;;  %v11694_v58 = vrot.slane %v11680_v24, %v20334_v14 }
 0x5f0   : > { %v10667_v2 = vpop.f32.mrf.mxu1 }
 0x5f1   : > { %v11695_v15 = vcombine.low %v11671_v16, %v11687_v21  ;;  %v11696_v6 = vcombine.high %v11671_v16, %v11687_v21  ;;  %v11711_v36 = vcombine.low %v11678_v39, %v11694_v58  ;;  %v11712_v63 = vcombine.high %v11678_v39, %v11694_v58 }
 0x5f2   : > { %v11747_v61 = vcombine.low %v19471_v9, %v10667_v2  ;;  %v11748_v1 = vcombine.high %v19471_v9, %v10667_v2  ;;  %v14372_v7 = vpop.f32.mrf.mxu1 }
 0x5f3   : > { %v11703_v29 = vrot.slane %v11695_v15, %v20345_v33  ;;  %v11710_v40 = vrot.slane %v11696_v6, %v20345_v33  ;;  %v11719_v50 = vrot.slane %v11711_v36, %v20345_v33  ;;  %v11726_v45 = vrot.slane %v11712_v63, %v20345_v33 }
 0x5f4   : > { %v11755_v9 = vrot.slane %v11747_v61, %v20334_v14  ;;  %v11762_v62 = vrot.slane %v11748_v1, %v20334_v14 }
 0x5f5   : > { %v12751_v51 = vcombine.low %v11703_v29, %v11710_v40  ;;  %v13794_v34 = vcombine.high %v11703_v29, %v11710_v40  ;;  %v12767_v56 = vcombine.low %v11719_v50, %v11726_v45  ;;  %v13795_v49 = vcombine.high %v11719_v50, %v11726_v45 }
 0x5f6   : > { %v11763_v23 = vcombine.low %v11739_v10, %v11755_v9  ;;  %v11764_v8 = vcombine.high %v11739_v10, %v11755_v9  ;;  %v11779_v12 = vcombine.low %v11746_v55, %v11762_v62  ;;  %v11780_v31 = vcombine.high %v11746_v55, %v11762_v62 }
 0x5f7   : > { %v12758_v30 = vrot.slane %v12751_v51, %v20334_v14  ;;  %v12766_v25 = vrot.slane %v13794_v34, %v20334_v14  ;;  %v12774_v4 = vrot.slane %v12767_v56, %v20334_v14  ;;  %v12782_v18 = vrot.slane %v13795_v49, %v20334_v14 }
 0x5f8   : > { %v11771_v17 = vrot.slane %v11763_v23, %v20345_v33  ;;  %v11778_v28 = vrot.slane %v11764_v8, %v20345_v33  ;;  %v11787_v57 = vrot.slane %v11779_v12, %v20345_v33  ;;  %v11794_v20 = vrot.slane %v11780_v31, %v20345_v33  ;;  %v19569_v24 = vpop.f32.mrf.mxu0 }
 0x5f9   : > { %v12783_v22 = vcombine.low %v12758_v30, %v12766_v25  ;;  %v12799_v16 = vcombine.low %v12774_v4, %v12782_v18  ;;  %v12784_v39 = vcombine.high %v12758_v30, %v12766_v25  ;;  %v12800_v21 = vcombine.high %v12774_v4, %v12782_v18 }
 0x5fa   : > { %v12819_v58 = vcombine.low %v11771_v17, %v11778_v28  ;;  %v13796_v2 = vcombine.high %v11771_v17, %v11778_v28  ;;  %v12835_v15 = vcombine.low %v11787_v57, %v11794_v20  ;;  %v13797_v6 = vcombine.high %v11787_v57, %v11794_v20  ;;  %v14377_v36 = vpop.f32.mrf.mxu0  ;;  %v10752_v63 = vpop.f32.mrf.mxu1 }
 0x5fb   : > { %v19572_v61 = vrot.slane %v12783_v22, %v20345_v33  ;;  %v19575_v1 = vrot.slane %v12799_v16, %v20345_v33  ;;  %v12798_v7 = vrot.slane %v12784_v39, %v20345_v33  ;;  %v12814_v29 = vrot.slane %v12800_v21, %v20345_v33 }
 0x5fc   : > { %v12826_v40 = vrot.slane %v12819_v58, %v20334_v14  ;;  %v12834_v50 = vrot.slane %v13796_v2, %v20334_v14  ;;  %v12842_v45 = vrot.slane %v12835_v15, %v20334_v14  ;;  %v12850_v0 = vrot.slane %v13797_v6, %v20334_v14  ;;  %v19583_v10 = vpop.f32.mrf.mxu0  ;;  %v14383_v32 = vpop.f32.mrf.mxu1 }
 0x5fd   : > { %v12816_v55 = vcombine.high %v19572_v61, %v19575_v1  ;;  %v12817_v9 = vcombine.low %v12798_v7, %v12814_v29  ;;  %v12818_v62 = vcombine.high %v12798_v7, %v12814_v29  ;;  %v12815_v51 = vcombine.low %v19572_v61, %v19575_v1  ;;  %v19749_v61 = vld [vmem:[%s19851_s4] ss:$0 sm:$0xff] }
 0x5fe   : > { %v12851_v34 = vcombine.low %v12826_v40, %v12834_v50  ;;  %v12867_v56 = vcombine.low %v12842_v45, %v12850_v0  ;;  %v12852_v49 = vcombine.high %v12826_v40, %v12834_v50  ;;  %v12868_v23 = vcombine.high %v12842_v45, %v12850_v0  ;;  %v14378_v8 = vpop.f32.mrf.mxu0  ;;  %v10755_v12 = vpop.f32.mrf.mxu1 }
 0x600   : > { %v19590_v31 = vrot.slane %v12851_v34, %v20345_v33  ;;  %v19593_v30 = vrot.slane %v12867_v56, %v20345_v33  ;;  %v12866_v25 = vrot.slane %v12852_v49, %v20345_v33  ;;  %v12882_v4 = vrot.slane %v12868_v23, %v20345_v33  ;;  %v14384_v18 = vpop.f32.mrf.mxu1  ;;  %v14558_v6 = vpop.permute.xlu0 %14557 }
 0x601   : > { %v14560_v45 = vunpack.i.h.bf16 %v14558_v6  ;;  %v14559_v0 = vunpack.i.l.bf16 %v14558_v6  ;;  %v20460_v18 = vcombine.low %v19189_v53, %v19192_v48 }
 0x602   : > { %v12884_v17 = vcombine.high %v19590_v31, %v19593_v30  ;;  %v12885_v28 = vcombine.low %v12866_v25, %v12882_v4  ;;  %v12886_v57 = vcombine.high %v12866_v25, %v12882_v4  ;;  %v12883_v20 = vcombine.low %v19590_v31, %v19593_v30  ;;  %v10840_v22 = vpop.f32.mrf.mxu1 }
 0x603   : > { %v11815_v36 = vcombine.low %v10752_v63, %v10840_v22  ;;  %v11816_v7 = vcombine.high %v10752_v63, %v10840_v22  ;;  %v20459_v4 = vcombine.low %v19175_v27, %v19178_v54 }
 0x604   : > { %v14611_v16 = vpack.i.bf16 %v12884_v17, %v12816_v55  ;;  %v14395_v39 = vpop.f32.mrf.mxu1  ;;  %v14616_v21 = vpack.i.bf16 %v12885_v28, %v12817_v9  ;;  %v14621_v58 = vpack.i.bf16 %v12886_v57, %v12818_v62  ;;  %v14563_v29 = vpop.permute.xlu0 %14562  ;;  %v13220_v17 = vsel %vm7197_vm1, %v20460_v18, %v14560_v45 }
 0x605   : > { %v14565_v62 = vunpack.i.h.bf16 %v14563_v29  ;;  %v14564_v34 = vunpack.i.l.bf16 %v14563_v29  ;;  %v11823_v49 = vrot.slane %v11815_v36, %v20334_v14  ;;  %v11830_v23 = vrot.slane %v11816_v7, %v20334_v14 }
 0x606   : > { %14612 = vrot.lane.b32.xlu1 %v14611_v16, %s15108_s14  ;;  %v10843_v2 = vpop.f32.mrf.mxu1 }
 0x607   : > { %v11883_v40 = vcombine.low %v10755_v12, %v10843_v2  ;;  %v11884_v50 = vcombine.high %v10755_v12, %v10843_v2  ;;  %v19626_v2 = vsel %vm13231_vm3, %v13220_v17, %v14565_v62 }
 0x608   : > { %v14396_v15 = vpop.f32.mrf.mxu1 }
 0x609   : > { %v11891_v12 = vrot.slane %v11883_v40, %v20334_v14  ;;  %v11898_v25 = vrot.slane %v11884_v50, %v20334_v14 }
 0x60a   : > { %14617 = vrot.lane.b32.xlu1 %v14616_v21, %s15110_s12 }
 0x60e   : > { %14622 = vrot.lane.b32.xlu1 %v14621_v58, %s15109_s10 }
 0x618   : > { %v19620_v57 = vpop.permute.xlu0 %14567 }
 0x619   : > { %v14570_v7 = vunpack.i.h.bf16 %v19620_v57  ;;  %v14569_v29 = vunpack.i.l.bf16 %v19620_v57 }
 0x61f   : > { %v10796_v32 = vpop.f32.mrf.mxu0 }
 0x620   : > { %v11799_v55 = vcombine.low %v19569_v24, %v10796_v32  ;;  %v11800_v9 = vcombine.high %v19569_v24, %v10796_v32  ;;  %v13219_v24 = vsel %vm7197_vm1, %v20459_v4, %v14559_v0 }
 0x621   : > { %v14389_v56 = vpop.f32.mrf.mxu0  ;;  %v19623_v58 = vsel %vm13231_vm3, %v13219_v24, %v14564_v34 }
 0x622   : > { %v11807_v8 = vrot.slane %v11799_v55, %v20334_v14  ;;  %v11814_v63 = vrot.slane %v11800_v9, %v20334_v14 }
 0x623   : > { %v10799_v28 = vpop.f32.mrf.mxu0 }
 0x624   : > { %v11831_v22 = vcombine.low %v11807_v8, %v11823_v49  ;;  %v11832_v16 = vcombine.high %v11807_v8, %v11823_v49  ;;  %v11847_v39 = vcombine.low %v11814_v63, %v11830_v23  ;;  %v11848_v21 = vcombine.high %v11814_v63, %v11830_v23 }
 0x625   : > { %v11867_v27 = vcombine.low %v19583_v10, %v10799_v28  ;;  %v11868_v54 = vcombine.high %v19583_v10, %v10799_v28  ;;  %v14390_v53 = vpop.f32.mrf.mxu0 }
 0x626   : > { %v11839_v48 = vrot.slane %v11831_v22, %v20345_v33  ;;  %v11846_v15 = vrot.slane %v11832_v16, %v20345_v33  ;;  %v11855_v6 = vrot.slane %v11847_v39, %v20345_v33  ;;  %v11862_v36 = vrot.slane %v11848_v21, %v20345_v33 }
 0x627   : > { %v11875_v40 = vrot.slane %v11867_v27, %v20334_v14  ;;  %v11882_v50 = vrot.slane %v11868_v54, %v20334_v14 }
 0x628   : > { %v12887_v45 = vcombine.low %v11839_v48, %v11846_v15  ;;  %v13798_v0 = vcombine.high %v11839_v48, %v11846_v15  ;;  %v12903_v10 = vcombine.low %v11855_v6, %v11862_v36  ;;  %v13799_v32 = vcombine.high %v11855_v6, %v11862_v36  ;;  %v14588_v56 = vpop.permute.xlu1 %14587 }
 0x629   : > { %v11899_v55 = vcombine.low %v11875_v40, %v11891_v12  ;;  %v11900_v9 = vcombine.high %v11875_v40, %v11891_v12  ;;  %v11915_v62 = vcombine.low %v11882_v50, %v11898_v25  ;;  %v11916_v34 = vcombine.high %v11882_v50, %v11898_v25  ;;  %v14573_v4 = vpop.permute.xlu0 %14572 }
 0x62a   : > { %v19639_v49 = vrot.slane %v12887_v45, %v20334_v14  ;;  %v19642_v23 = vrot.slane %v13798_v0, %v20334_v14  ;;  %v19645_v8 = vrot.slane %v12903_v10, %v20334_v14  ;;  %v19648_v63 = vrot.slane %v13799_v32, %v20334_v14 }
 0x62b   : > { %v11907_v24 = vrot.slane %v11899_v55, %v20345_v33  ;;  %v11914_v12 = vrot.slane %v11900_v9, %v20345_v33  ;;  %v11923_v25 = vrot.slane %v11915_v62, %v20345_v33  ;;  %v11930_v18 = vrot.slane %v11916_v34, %v20345_v33 }
 0x62c   : > { %v14590_v17 = vunpack.i.h.bf16 %v14588_v56  ;;  %v14589_v28 = vunpack.i.l.bf16 %v14588_v56  ;;  %v14575_v57 = vunpack.i.h.bf16 %v14573_v4  ;;  %v14574_v22 = vunpack.i.l.bf16 %v14573_v4  ;;  %v14593_v54 = vpop.permute.xlu1 %14592 }
 0x62d   : > { %v12955_v16 = vcombine.low %v11907_v24, %v11914_v12  ;;  %v13800_v39 = vcombine.high %v11907_v24, %v11914_v12  ;;  %v12971_v21 = vcombine.low %v11923_v25, %v11930_v18  ;;  %v13801_v27 = vcombine.high %v11923_v25, %v11930_v18  ;;  %v14578_v36 = vpop.permute.xlu0 %14577 }
 0x62e   : > { %v13223_v53 = vsel %vm7197_vm1, %v12543_v59, %v14574_v22  ;;  %v13224_v48 = vsel %vm7197_vm1, %v12611_v37, %v14575_v57  ;;  %v14595_v15 = vunpack.i.h.bf16 %v14593_v54  ;;  %v14594_v6 = vunpack.i.l.bf16 %v14593_v54 }
 0x62f   : > { %v13221_v40 = vsel %vm7197_vm1, %v12407_v43, %v14569_v29  ;;  %v12962_v50 = vrot.slane %v12955_v16, %v20334_v14  ;;  %v12970_v45 = vrot.slane %v13800_v39, %v20334_v14  ;;  %v12978_v47 = vrot.slane %v12971_v21, %v20334_v14 }
 0x630   : > { %v12986_v35 = vrot.slane %v13801_v27, %v20334_v14  ;;  %v14580_v59 = vunpack.i.h.bf16 %v14578_v36  ;;  %v13240_v42 = vsel %vm13231_vm3, %v13223_v53, %v14589_v28  ;;  %v13241_v52 = vsel %vm13231_vm3, %v13224_v48, %v14590_v17 }
 0x631   : > { %v13257_v37 = vsel %vm13248_vm4, %v13240_v42, %v14594_v6  ;;  %v13258_v0 = vsel %vm13248_vm4, %v13241_v52, %v14595_v15  ;;  %v12919_v11 = vcombine.low %v19639_v49, %v19642_v23  ;;  %v12935_v13 = vcombine.low %v19645_v8, %v19648_v63  ;;  %v14583_v29 = vpop.permute.xlu0 %14582 }
 0x632   : > { %v13222_v14 = vsel %vm7197_vm1, %v12475_v60, %v14570_v7  ;;  %v14579_v43 = vunpack.i.l.bf16 %v14578_v36  ;;  %v13269_v10 = vpack.c.bf16 %v13258_v0, %v13257_v37  ;;  %v12987_v32 = vcombine.low %v12962_v50, %v12970_v45 }
 0x633   : > { %v14585_v55 = vunpack.i.h.bf16 %v14583_v29  ;;  %v14584_v9 = vunpack.i.l.bf16 %v14583_v29  ;;  %v19683_v62 = vrot.slane %v12919_v11, %v20345_v33  ;;  %v19686_v34 = vrot.slane %v12935_v13, %v20345_v33 }
 0x634   : > { %14421 = vmatprep.mubr.bf16.mxu1 %v13269_v10  ;;  %v19689_v56 = vrot.slane %v12987_v32, %v20345_v33  ;;  %v13003_v4 = vcombine.low %v12978_v47, %v12986_v35  ;;  %v12920_v19 = vcombine.high %v19639_v49, %v19642_v23  ;;  %v12936_v46 = vcombine.high %v19645_v8, %v19648_v63 }
 0x635   : > { %v13239_v60 = vsel %vm13231_vm3, %v13222_v14, %v14580_v59  ;;  %v13253_v7 = vsel %vm13248_vm4, %v19623_v58, %v14584_v9  ;;  %v13254_v24 = vsel %vm13248_vm4, %v19626_v2, %v14585_v55  ;;  %v12988_v12 = vcombine.high %v12962_v50, %v12970_v45  ;;  %v14638_v18 = vpop.permute.xlu0 %14637 }
 0x636   : > { %v13238_v25 = vsel %vm13231_vm3, %v13221_v40, %v14579_v43  ;;  %v12952_v17 = vcombine.high %v19683_v62, %v19686_v34  ;;  %v19704_v49 = vrot.slane %v13003_v4, %v20345_v33  ;;  %v13267_v23 = vpack.c.bf16 %v13254_v24, %v13253_v7 }
 0x637   : > { %v14640_v8 = vunpack.i.h.bf16 %v14638_v18  ;;  %v14639_v63 = vunpack.i.l.bf16 %v14638_v18  ;;  %v13002_v28 = vrot.slane %v12988_v12, %v20345_v33  ;;  %v13004_v57 = vcombine.high %v12978_v47, %v12986_v35 }
 0x638   : > { %v13020_v58 = vcombine.high %v19689_v56, %v19704_v49  ;;  %14417 = vmatprep.mubr.bf16.mxu0 %v13267_v23  ;;  %v12934_v2 = vrot.slane %v12920_v19, %v20345_v33  ;;  %v12950_v22 = vrot.slane %v12936_v46, %v20345_v33  ;;  %v12951_v16 = vcombine.low %v19683_v62, %v19686_v34 }
 0x639   : > { %v13255_v39 = vsel %vm13248_vm4, %v13238_v25, %v14639_v63  ;;  %v13256_v21 = vsel %vm13248_vm4, %v13239_v60, %v14640_v8  ;;  %v13018_v27 = vrot.slane %v13004_v57, %v20345_v33  ;;  %v13019_v54 = vcombine.low %v19689_v56, %v19704_v49 }
 0x63a   : > { %v13268_v53 = vpack.c.bf16 %v13256_v21, %v13255_v39  ;;  %v14626_v48 = vpack.i.bf16 %v13020_v58, %v12952_v17  ;;  %v12953_v6 = vcombine.low %v12934_v2, %v12950_v22  ;;  %v12954_v45 = vcombine.high %v12934_v2, %v12950_v22 }
 0x63b   : > { %v13021_v15 = vcombine.low %v13002_v28, %v13018_v27  ;;  %v13022_v50 = vcombine.high %v13002_v28, %v13018_v27 }
 0x63c   : > { %14627 = vrot.lane.b32.xlu1 %v14626_v48, %s15108_s14  ;;  %14418 = vmatmul.mubr.bf16.gmra.mxu0 %v13268_v53  ;;  %s15036_s14 = scalar_lea.vmem %s15035_s26, 4096 }
 0x63d   : > { %v14631_v36 = vpack.i.bf16 %v13021_v15, %v12953_v6  ;;  %v14598_v40 = vpop.permute.xlu1 %14597  ;;  %v14641_v47 = vpack.i.bf16 %v13022_v50, %v12954_v45  ;;  %p15038_p12 = scmp.lt.s32.totalorder %s15036_s14, %s15030_s8 }
 0x63e   : > { %v14600_v59 = vunpack.i.h.bf16 %v14598_v40  ;;  %v14599_v33 = vunpack.i.l.bf16 %v14598_v40 }
 0x63f   : > { %p15039_p3 = por %p15038_p12, %p15037_p6 }
 0x640   : > { %14632 = vrot.lane.b32.xlu1 %v14631_v36, %s15110_s12  ;;  %v13225_v0 = vsel %vm7197_vm1, %v12679_v38, %v14599_v33  ;;  %v13226_v11 = vsel %vm7197_vm1, %v12747_v41, %v14600_v59 }
 0x641   : > { %v14603_v35 = vpop.permute.xlu1 %14602  ;;  %p15040_p9 = pnand %p15039_p3, %p15033_p2 }
 0x642   : > { %v14605_v42 = vunpack.i.h.bf16 %v14603_v35  ;;  %v14604_v52 = vunpack.i.l.bf16 %v14603_v35 }
 0x644   : > { %14642 = vrot.lane.b32.xlu1 %v14641_v47, %s15109_s10  ;;  %v13242_v43 = vsel %vm13231_vm3, %v13225_v0, %v14604_v52  ;;  %v13243_v29 = vsel %vm13231_vm3, %v13226_v11, %v14605_v42 }
 0x645   : > { %v14608_v37 = vpop.permute.xlu1 %14607 }
 0x646   : > { %v14610_v13 = vunpack.i.h.bf16 %v14608_v37  ;;  %v14609_v14 = vunpack.i.l.bf16 %v14608_v37 }
 0x648   : > { %v13259_v10 = vsel %vm13248_vm4, %v13242_v43, %v14609_v14  ;;  %v13260_v32 = vsel %vm13248_vm4, %v13243_v29, %v14610_v13 }
 0x649   : > { %v13270_v55 = vpack.c.bf16 %v13260_v32, %v13259_v10 }
 0x64b   : > { %14422 = vmatmul.mubr.bf16.vlgmr.msra.gmra.mxu1 %v13270_v55 }
 0x678   : > { %v14613_v3 = vpop.permute.xlu1 %14612 }
 0x679   : > { %v14615_v38 = vunpack.i.h.bf16 %v14613_v3  ;;  %v14614_v9 = vunpack.i.l.bf16 %v14613_v3 }
 0x67b   : > { %v13227_v4 = vsel %vm7197_vm1, %v12815_v51, %v14614_v9  ;;  %v13228_v19 = vsel %vm7197_vm1, %v12883_v20, %v14615_v38 }
 0x67c   : > { %v14618_v44 = vpop.permute.xlu1 %14617 }
 0x67d   : > { %v14620_v5 = vunpack.i.h.bf16 %v14618_v44  ;;  %v14619_v26 = vunpack.i.l.bf16 %v14618_v44 }
 0x67f   : > { %v13244_v7 = vsel %vm13231_vm3, %v13227_v4, %v14619_v26  ;;  %v13245_v24 = vsel %vm13231_vm3, %v13228_v19, %v14620_v5 }
 0x680   : > { %v14623_v41 = vpop.permute.xlu1 %14622 }
 0x681   : > { %v14625_v46 = vunpack.i.h.bf16 %v14623_v41  ;;  %v14624_v60 = vunpack.i.l.bf16 %v14623_v41 }
 0x683   : > { %v13261_v12 = vsel %vm13248_vm4, %v13244_v7, %v14624_v60  ;;  %v13262_v25 = vsel %vm13248_vm4, %v13245_v24, %v14625_v46 }
 0x684   : > { %v13271_v18 = vpack.c.bf16 %v13262_v25, %v13261_v12 }
 0x686   : > { %14425 = vmatprep.mubr.bf16.mxu1 %v13271_v18 }
 0x6aa   : > { %v14415_v1 = vpop.f32.mrf.mxu0 }
 0x6ab   : > { %v13387_v51 = vadd.f32 %v14415_v1, %v19749_v61 }
 0x6ac   : > { %v13378_v31 = vpop.f32.mrf.mxu0 }
 0x6ad   : > { %13443 = vst [vmem:[%s19752_s30 + $0x10] sm:$0xff] %v13387_v51  ;;  %v13379_v20 = vadd.f32 %v19749_v61, %v13378_v31 }
 0x6ae   : > { %v14628_v30 = vpop.permute.xlu1 %14627  ;;  %v14416_v17 = vpop.f32.mrf.mxu0 }
 0x6af   : > { %13441 = vst [vmem:[%s19752_s30] sm:$0xff] %v13379_v20  ;;  %v13390_v23 = vadd.f32 %v14416_v17, %v19749_v61  ;;  %v14630_v57 = vunpack.i.h.bf16 %v14628_v30  ;;  %v14629_v58 = vunpack.i.l.bf16 %v14628_v30 }
 0x6b0   : > { %v13381_v8 = vpop.f32.mrf.mxu0 }
 0x6b1   : > { %13444 = vst [vmem:[%s19752_s30 + $0x18] sm:$0xff] %v13390_v23  ;;  %v13382_v28 = vadd.f32 %v19749_v61, %v13381_v8  ;;  %v13229_v21 = vsel %vm7197_vm1, %v12951_v16, %v14629_v58  ;;  %v13230_v27 = vsel %vm7197_vm1, %v13019_v54, %v14630_v57 }
 0x6b2   : > { %v14633_v63 = vpop.permute.xlu1 %14632 }
 0x6b3   : > { %v14635_v2 = vunpack.i.h.bf16 %v14633_v63  ;;  %v14634_v22 = vunpack.i.l.bf16 %v14633_v63  ;;  %13442 = vst [vmem:[%s19752_s30 + $0x8] sm:$0xff] %v13382_v28 }
 0x6b5   : > { %v13246_v15 = vsel %vm13231_vm3, %v13229_v21, %v14634_v22  ;;  %v13247_v6 = vsel %vm13231_vm3, %v13230_v27, %v14635_v2 }
 0x6b6   : > { %v14643_v39 = vpop.permute.xlu1 %14642 }
 0x6b7   : > { %v14645_v53 = vunpack.i.h.bf16 %v14643_v39  ;;  %v14644_v48 = vunpack.i.l.bf16 %v14643_v39 }
 0x6b9   : > { %v13263_v36 = vsel %vm13248_vm4, %v13246_v15, %v14644_v48  ;;  %v13264_v62 = vsel %vm13248_vm4, %v13247_v6, %v14645_v53 }
 0x6ba   : > { %v13272_v34 = vpack.c.bf16 %v13264_v62, %v13263_v36 }
 0x6bc   : > { %14426 = vmatmul.mubr.bf16.gmra.mxu1 %v13272_v34 }
 0x6fc   : > { %v14419_v16 = vpop.f32.mrf.mxu0 }
 0x6fd   : > { %v13403_v56 = vadd.f32 %v14419_v16, %v19749_v61 }
 0x6fe   : > { %v13394_v49 = vpop.f32.mrf.mxu0 }
 0x6ff   : > { %13447 = vst [vmem:[%s19752_s30 + $0x30] sm:$0xff] %v13403_v56  ;;  %v13395_v54 = vadd.f32 %v19749_v61, %v13394_v49 }
 0x700   : > { %v14420_v40 = vpop.f32.mrf.mxu0 }
 0x701   : > { %13445 = vst [vmem:[%s19752_s30 + $0x20] sm:$0xff] %v13395_v54  ;;  %v13406_v50 = vadd.f32 %v14420_v40, %v19749_v61 }
 0x702   : > { %v13397_v45 = vpop.f32.mrf.mxu0 }
 0x703   : > { %13448 = vst [vmem:[%s19752_s30 + $0x38] sm:$0xff] %v13406_v50  ;;  %v13398_v47 = vadd.f32 %v19749_v61, %v13397_v45 }
 0x705   : > { %13446 = vst [vmem:[%s19752_s30 + $0x28] sm:$0xff] %v13398_v47 }
 0x70b   : > { %v14423_v35 = vpop.f32.mrf.mxu1 }
 0x70c   : > { %v13419_v59 = vadd.f32 %v14423_v35, %v19749_v61 }
 0x70d   : > { %v13410_v33 = vpop.f32.mrf.mxu1 }
 0x70e   : > { %13451 = vst [vmem:[%s19752_s30 + $0x50] sm:$0xff] %v13419_v59  ;;  %v13411_v42 = vadd.f32 %v19749_v61, %v13410_v33 }
 0x70f   : > { %v14424_v52 = vpop.f32.mrf.mxu1 }
 0x710   : > { %13449 = vst [vmem:[%s19752_s30 + $0x40] sm:$0xff] %v13411_v42  ;;  %v13422_v37 = vadd.f32 %v14424_v52, %v19749_v61 }
 0x711   : > { %v13413_v0 = vpop.f32.mrf.mxu1 }
 0x712   : > { %13452 = vst [vmem:[%s19752_s30 + $0x58] sm:$0xff] %v13422_v37  ;;  %v13414_v11 = vadd.f32 %v19749_v61, %v13413_v0 }
 0x714   : > { %13450 = vst [vmem:[%s19752_s30 + $0x48] sm:$0xff] %v13414_v11 }
 0x77c   : > { %v14427_v13 = vpop.f32.mrf.mxu1 }
 0x77d   : > { %v13435_v14 = vadd.f32 %v14427_v13, %v19749_v61 }
 0x77e   : > { %v13426_v43 = vpop.f32.mrf.mxu1 }
 0x77f   : > { %13455 = vst [vmem:[%s19752_s30 + $0x70] sm:$0xff] %v13435_v14  ;;  %v13427_v29 = vadd.f32 %v19749_v61, %v13426_v43 }
 0x780   : > { %v14428_v10 = vpop.f32.mrf.mxu1 }
 0x781   : > { %13453 = vst [vmem:[%s19752_s30 + $0x60] sm:$0xff] %v13427_v29  ;;  %v13438_v32 = vadd.f32 %v14428_v10, %v19749_v61 }
 0x782   : > { %v13429_v55 = vpop.f32.mrf.mxu1 }
 0x783   : > { %13456 = vst [vmem:[%s19752_s30 + $0x78] sm:$0xff] %v13438_v32  ;;  %v13430_v3 = vadd.f32 %v19749_v61, %v13429_v55 }
 0x785   : > { %13454 = vst [vmem:[%s19752_s30 + $0x68] sm:$0xff] %v13430_v3 }
 0x786   : > { %15043 = shalt.err (!%p15040_p9)
}
 0x787   : > { %s15044_s10 = scalar_lea.hbm %s19799_s7, 2048  ;;  %s15048_s16 = scalar_lea.hbm %s19852_s5, 4096 }
 0x788   : > { %p15045_p13 = scmp.ne.s32.totalorder %s19799_s7, %s15044_s10  ;;  %p15049_p4 = scmp.lt.s32.totalorder %s19799_s7, %s19852_s5 }
 0x789   : > { %p15050_p8 = scmp.lt.s32.totalorder %s15048_s16, %s15044_s10 }
 0x78a   : > { %p15046_p5 = pnand %p15045_p13, %p20461_p10 }
 0x78b   : > { %p15051_p7 = por %p15050_p8, %p15049_p4 }
 0x78c   : > { %p15047_p0 = pneg %p15046_p5 }
 0x78e   : > { %p15052_p11 = pnand %p15051_p7, %p15047_p0 }
 0x790   : > { %15055 = shalt.err (!%p15052_p11)
}
 0x791   : > { %s15116_s11 = smov 128   ;;  %s15117_s23 = smov 8  }
 0x792   : > { %14455 = dma.vmem_to_hbm [thread:$0]  (%p20461_p10), %s19801_s27, 2048, %s19799_s7, %s13458_s22, %s15116_s11, %s15116_s11, %s15117_s23  }
 0x793 PF: > { %s13487_s13 = sand.u32 1, %s15086_s18   ;;  %p20462_p1 = scmp.ne.s32.totalorder %s20042_s25, 0 }
 0x794   : > { %p20463_p2 = scmp.ge.s32.totalorder %s15098_s21, 2  ;;  %s13488_s8 = scalar_lea.sflag [#allocation4], %s13487_s13 }
 0x796   : > { %p14469_p6 = pnand %p20463_p2, %p20462_p1 }
 0x798   : > { %p14470_p12 = pneg %p14469_p6 }
 0x79a   : > { %15081 = dma.done.wait (%p14470_p12), %s13488_s8, 2048  }
 0x79b   : > { %15083 = vsyncadd (%p14470_p12), %s13488_s8, 4294965248  ;;  %p19_p3 = scmp.ge.s32.totalorder %s15223_s17, 4   ;;  %s20464_s18 = smov %s15090_s19 }
 0x79c   : > { %s20465_s19 = smov %s15094_s20  ;;  %s20466_s20 = smov %s15232_s28 }
 0x79d   : > { %s20467_s21 = smov %s15223_s17  ;;  %21 = sbr.rel (!%p19_p3) target bundleno = 6 (0x6), region = 93 }
 0x7a2   :  { %13493 = vsyncpa [#allocation3], 1 }
 0x7a3   :  { %13495 = vsyncpa [#allocation3 + $0x1], 1 }
 0x7a4   :  { %13496 = vsyncpa [#allocation6], 1 }
 0x7a5   :  { %13497 = vsyncpa [#allocation4], 1 }
 0x7a6   :  { %13499 = vsyncpa [#allocation4 + $0x1], 1 }

</bundles_post_ra>
